<compile_context>
chip_gen: v7x
topology: tpu7x:2x2x1
jax: 0.10.0
libtpu: 0.0.40
codegen_flags: <defaults>
</compile_context>

<pallas_src>
import functools

import jax
import jax.numpy as jnp
from jax.experimental import pallas as pl
from jax.experimental.pallas import tpu as pltpu


# ----------------------------------------------------------------------------
# Small helpers
# ----------------------------------------------------------------------------
def _sigmoid(v):
    # sigmoid(x) == 0.5 * (1 + tanh(x / 2)); tanh uses the EUP slot.
    return 0.5 * jnp.tanh(0.5 * v) + 0.5


def _roll_lanes(x, shift, n):
    """out[..., i] = x[..., (i - shift) % n]  (jnp.roll semantics, lane axis)."""
    s = shift % n
    if s == 0:
        return x
    return pltpu.roll(x, shift=s, axis=x.ndim - 1)


def _shift_offsets(K, H, W):
    """Flat-index offsets of the K^3 kernel taps, ordered (kd, kh, kw)."""
    p = K // 2
    offs = []
    for kd in range(K):
        for kh in range(K):
            for kw in range(K):
                offs.append((kd - p) * H * W + (kh - p) * W + (kw - p))
    return tuple(offs)


def _make_shift_masks(K, D, H, W):
    """(K^3, N) 0/1 masks: validity of each tap under zero 'same' padding."""
    p = K // 2
    d = jnp.arange(D).reshape(D, 1, 1)
    h = jnp.arange(H).reshape(1, H, 1)
    w = jnp.arange(W).reshape(1, 1, W)
    rows = []
    for kd in range(K):
        for kh in range(K):
            for kw in range(K):
                dd, dh, dw = kd - p, kh - p, kw - p
                m = ((d + dd >= 0) & (d + dd < D) &
                     (h + dh >= 0) & (h + dh < H) &
                     (w + dw >= 0) & (w + dw < W))
                rows.append(m.reshape(1, D * H * W))
    return jnp.concatenate(rows, axis=0).astype(jnp.float32)


def _vmem_limit(scratch_bytes, block_bytes, fixed_bytes):
    """Scoped-VMEM limit: scratch + double-buffered grid blocks + resident weights."""
    need = int(scratch_bytes + 2 * block_bytes + fixed_bytes) + (2 << 20)
    # never below today's defaults; stay under v7x's 64 MiB physical VMEM.
    return min(max(need, 32 << 20), 60 << 20)


def _weight_bytes(weights, masks):
    return int(masks.size) * 4 + sum(int(w.size) * w.dtype.itemsize for w in weights)


def _full_spec(arr):
    return pl.BlockSpec(arr.shape, lambda b, t: (0, 0))


# ----------------------------------------------------------------------------
# In-kernel conv building blocks (channels-major: (C, N), N on lanes)
# ----------------------------------------------------------------------------
def _build_patch(x_cn, mask_ref, patch_ref, offsets, n):
    """Transposed im2col: row block idx holds the masked, shifted input.

    x_cn     : (Cin, N) f32 value
    mask_ref : (K^3, N) f32 0/1 masks (zero 'same' padding)
    patch_ref: (K^3*Cin, N) f32 VMEM scratch
    Row order (kd, kh, kw, cin) matches the matmul-form weights.
    """
    cin = x_cn.shape[0]
    for idx, off in enumerate(offsets):
        shifted = _roll_lanes(x_cn, -off, n)          # shifted[i] = x[i + off]
        if off == 0:                                   # center tap: mask is all ones
            patch_ref[idx * cin:(idx + 1) * cin, :] = shifted
        else:
            patch_ref[idx * cin:(idx + 1) * cin, :] = (
                shifted * mask_ref[idx:idx + 1, :])
    return patch_ref[...]


def _conv_k_tanh_1x1(x_cn, mask_ref, patch_ref, w1, b1, w2, b2, offsets, n):
    """Conv3d(K, zero pad) -> +b -> tanh -> Conv3d(1x1x1) -> +b, channels-major.

    Both matmuls use bf16 operands on the MXU with f32 accumulation; all
    elementwise math stays in f32. Returns (Cout2, N) f32.
    """
    patch = _build_patch(x_cn, mask_ref, patch_ref, offsets, n).astype(jnp.bfloat16)
    a = jnp.dot(w1[...], patch, preferred_element_type=jnp.float32) + b1[...]
    a = jnp.tanh(a)
    return (jnp.dot(w2[...], a.astype(jnp.bfloat16),
                    preferred_element_type=jnp.float32) + b2[...])


# ----------------------------------------------------------------------------
# Kernel bodies
# ----------------------------------------------------------------------------
def _i2h_kernel(x_ref, mask_ref, w1, b1, w2, b2, ih_ref, patch, *, offsets, n):
    """Fully parallel i2h: Conv3d(K) -> tanh -> Conv3d(1) for one (b, t)."""
    x = x_ref[0, 0]                                                  # (Cin, N)
    ih_ref[0, 0] = _conv_k_tanh_1x1(x, mask_ref, patch, w1, b1, w2, b2,
                                    offsets, n)


def _gru_recurrence_kernel(ih_ref, mask_ref,
                           wh1, bh1, wh2, bh2, wc1, bc1, wc2, bc2,
                           hseq_ref, hstate, patch,
                           *, offsets, n, hid):
    """Sequential (over T) GRU update for one (b, t); hidden carried in VMEM."""
    t = pl.program_id(1)

    @pl.when(t == 0)
    def _():
        hstate[...] = jnp.zeros_like(hstate)

    h = hstate[...]                                                  # (hid, N) f32
    ih = ih_ref[0, 0]                                                # (3*hid, N)

    # h2h: Conv3d(K) -> tanh -> Conv3d(1)
    hh = _conv_k_tanh_1x1(h, mask_ref, patch, wh1, bh1, wh2, bh2, offsets, n)

    reset = _sigmoid(ih[0:hid] + hh[0:hid])
    update = _sigmoid(ih[hid:2 * hid] + hh[hid:2 * hid])

    # h2candidate on reset * H
    ch = _conv_k_tanh_1x1(reset * h, mask_ref, patch, wc1, bc1, wc2, bc2,
                          offsets, n)
    cand = jnp.tanh(ih[2 * hid:3 * hid] + ch)
    h_new = (1.0 - update) * cand + update * h

    hstate[...] = h_new
    hseq_ref[0, 0] = h_new


def _out_div_kernel(h_ref, x_ref, mask_ref,
                    wo1, bo1, wo2, bo2, wo3, bo3,
                    o_ref, patch,
                    *, offsets3, n, HW, W):
    """toOut (1x1 -> tanh -> 1x1 -> tanh -> Conv3d(3)) + divergence + residual."""
    h = h_ref[0, 0]                                                  # (hid, N)
    z = jnp.tanh(jnp.dot(wo1[...], h.astype(jnp.bfloat16),
                         preferred_element_type=jnp.float32) + bo1[...])
    z = jnp.tanh(jnp.dot(wo2[...], z.astype(jnp.bfloat16),
                         preferred_element_type=jnp.float32) + bo2[...])
    pv = _build_patch(z, mask_ref, patch, offsets3, n).astype(jnp.bfloat16)
    J = jnp.dot(wo3[...], pv, preferred_element_type=jnp.float32) + bo3[...]  # (3, N)

    # per-sample, per-channel removal of the spatial mean (matches torch.mean
    # over (-1,-2,-3) with keepdim, taken before the finite differences).
    J = J - jnp.mean(J, axis=1, keepdims=True)

    # finite-difference divergence with zero 'same' padding, channels-major.
    # PyTorch filter (cross-correlation): grad_a = J_a(a - 1) - J_a(a + 1),
    # no 1/(2*dx) factor — matches make_div_filters exactly.
    def central_diff(v, stride, idx_minus, idx_plus):
        back = _roll_lanes(v, stride, n) * mask_ref[idx_minus:idx_minus + 1, :]
        fwd = _roll_lanes(v, -stride, n) * mask_ref[idx_plus:idx_plus + 1, :]
        return back - fwd

    # mask row indices in the (kd, kh, kw) ordering of a 3x3x3 kernel
    div = (central_diff(J[0:1], HW, 4, 22)     # d: taps (0,1,1) / (2,1,1)
           + central_diff(J[1:2], W, 10, 16)   # h: taps (1,0,1) / (1,2,1)
           + central_diff(J[2:3], 1, 12, 14))  # w: taps (1,1,0) / (1,1,2)

    o_ref[0, 0] = x_ref[0, 0] + div


# ----------------------------------------------------------------------------
# pallas_call wrappers
# ----------------------------------------------------------------------------
def i2h_fused(q, x_seq, masks, offsets):
    """x_seq: (B, T, Cin, N) -> precomputed i2h activations (B, T, 3*hid, N)."""
    B, T, Cin, N = x_seq.shape
    cout = q["wi1"].shape[0]                       # 3 * hidden_channels
    KC = len(offsets) * Cin
    weights = (q["wi1"], q["bi1"], q["wi2"], q["bi2"])
    fixed = _weight_bytes(weights, masks)

    kern = functools.partial(_i2h_kernel, offsets=offsets, n=N)
    return pl.pallas_call(
        kern,
        out_shape=jax.ShapeDtypeStruct((B, T, cout, N), jnp.float32),
        grid=(B, T),
        in_specs=[pl.BlockSpec((1, 1, Cin, N), lambda b, t: (b, t, 0, 0)),
                  _full_spec(masks)] + [_full_spec(w) for w in weights],
        out_specs=pl.BlockSpec((1, 1, cout, N), lambda b, t: (b, t, 0, 0)),
        scratch_shapes=[pltpu.VMEM((KC, N), jnp.float32)],
        compiler_params=pltpu.CompilerParams(
            dimension_semantics=("parallel", "parallel"),
            vmem_limit_bytes=_vmem_limit(4 * KC * N, 4 * N * (Cin + cout), fixed)),
        cost_estimate=pl.CostEstimate(
            flops=int(2 * B * T * N * (KC * cout + cout * cout)),
            transcendentals=int(B * T * cout * N),
            bytes_accessed=int(4 * B * T * N * (Cin + cout) + fixed)),
    )(x_seq, masks, *weights)


def gru_recurrence_fused(q, ih_seq, masks, offsets, hid):
    """ih_seq: (B, T, 3*hid, N) -> hidden sequence (B, T, hid, N).

    Grid (B, T): B parallel (feeds both v7x TensorCores), T arbitrary with the
    hidden state carried in a persistent VMEM scratch (re-zeroed at t == 0).
    """
    B, T, three_hid, N = ih_seq.shape
    KH = len(offsets) * hid
    weights = (q["wh1"], q["bh1"], q["wh2"], q["bh2"],
               q["wc1"], q["bc1"], q["wc2"], q["bc2"])
    fixed = _weight_bytes(weights, masks)

    kern = functools.partial(_gru_recurrence_kernel, offsets=offsets, n=N, hid=hid)
    return pl.pallas_call(
        kern,
        out_shape=jax.ShapeDtypeStruct((B, T, hid, N), jnp.float32),
        grid=(B, T),
        in_specs=[pl.BlockSpec((1, 1, three_hid, N), lambda b, t: (b, t, 0, 0)),
                  _full_spec(masks)] + [_full_spec(w) for w in weights],
        out_specs=pl.BlockSpec((1, 1, hid, N), lambda b, t: (b, t, 0, 0)),
        scratch_shapes=[pltpu.VMEM((hid, N), jnp.float32),   # carried hidden state
                        pltpu.VMEM((KH, N), jnp.float32)],   # transposed im2col patch
        compiler_params=pltpu.CompilerParams(
            dimension_semantics=("parallel", "arbitrary"),
            vmem_limit_bytes=_vmem_limit(4 * N * (hid + KH),
                                         4 * N * (three_hid + hid), fixed)),
        cost_estimate=pl.CostEstimate(
            flops=int(2 * B * T * N * (3 * hid * KH + 5 * hid * hid)
                      + 12 * B * T * N * hid),
            transcendentals=int(6 * B * T * hid * N),
            bytes_accessed=int(4 * B * T * N * (three_hid + hid) + fixed)),
    )(ih_seq, masks, *weights)


def out_div_fused(q, h_seq, x_seq, masks3, offsets3, HW, W):
    """h_seq: (B, T, hid, N); x_seq: (B, T, 1, N) -> x + div(toOut(h))."""
    B, T, hid, N = h_seq.shape
    K3H = len(offsets3) * hid
    weights = (q["wo1"], q["bo1"], q["wo2"], q["bo2"], q["wo3"], q["bo3"])
    fixed = _weight_bytes(weights, masks3)

    kern = functools.partial(_out_div_kernel, offsets3=offsets3, n=N, HW=HW, W=W)
    return pl.pallas_call(
        kern,
        out_shape=jax.ShapeDtypeStruct((B, T, 1, N), jnp.float32),
        grid=(B, T),
        in_specs=[pl.BlockSpec((1, 1, hid, N), lambda b, t: (b, t, 0, 0)),
                  pl.BlockSpec((1, 1, 1, N), lambda b, t: (b, t, 0, 0)),
                  _full_spec(masks3)] + [_full_spec(w) for w in weights],
        out_specs=pl.BlockSpec((1, 1, 1, N), lambda b, t: (b, t, 0, 0)),
        scratch_shapes=[pltpu.VMEM((K3H, N), jnp.float32)],
        compiler_params=pltpu.CompilerParams(
            dimension_semantics=("parallel", "parallel"),
            vmem_limit_bytes=_vmem_limit(4 * K3H * N, 4 * N * (hid + 2), fixed)),
        cost_estimate=pl.CostEstimate(
            flops=int(2 * B * T * N * (2 * hid * hid + 3 * K3H) + 20 * B * T * N),
            transcendentals=int(2 * B * T * hid * N),
            bytes_accessed=int(4 * B * T * N * (hid + 2) + fixed)),
    )(h_seq, x_seq, masks3, *weights)


# ----------------------------------------------------------------------------
# Weight layout prep (PyTorch Conv3d layout -> channels-major matmul form)
# ----------------------------------------------------------------------------
def _prep_conv(w, b):
    """(Cout, Cin, kD, kH, kW) -> bf16 (Cout, kD*kH*kW*Cin) + f32 (Cout, 1) bias.

    Column order (kd, kh, kw, cin) matches the transposed im2col patch rows.
    """
    cout = w.shape[0]
    wm = jnp.transpose(w, (0, 2, 3, 4, 1)).reshape(cout, -1)
    return wm.astype(jnp.bfloat16), b.reshape(cout, 1).astype(jnp.float32)


_GRU_WNAMES = (("wi1", "bi1"), ("wi2", "bi2"), ("wh1", "bh1"),
               ("wh2", "bh2"), ("wc1", "bc1"), ("wc2", "bc2"))
_OUT_WNAMES = (("wo1", "bo1"), ("wo2", "bo2"), ("wo3", "bo3"))


def _prep_cell(p, names):
    q = {}
    for wn, bn in names:
        q[wn], q[bn] = _prep_conv(p[wn], p[bn])
    return q


# ----------------------------------------------------------------------------
# Full ConvGRU3D forward (div_mode=True, future=0, params=None, no dropout/noise)
# ----------------------------------------------------------------------------
def convgru3d_forward(params, in_seq):
    """in_seq: (B, T, C, D, H, W) with C == 1 (PyTorch layout). Returns same shape."""
    B, T, C, D, H, W = in_seq.shape
    assert C == 1, "divergence mode requires input_channels == 1"
    N = D * H * W

    gru_raw = params["gru"]
    nunits = len(gru_raw)
    K = gru_raw[0]["wi1"].shape[-1]              # static spatial kernel size
    hid = gru_raw[0]["wc2"].shape[0]             # static hidden_channels

    gru_q = [_prep_cell(p, _GRU_WNAMES) for p in gru_raw]
    out_q = _prep_cell(params["toOut"], _OUT_WNAMES)

    offsets = _shift_offsets(K, H, W)
    masks = _make_shift_masks(K, D, H, W)
    if K == 3:
        offsets3, masks3 = offsets, masks        # toOut's last conv is always k=3
    else:
        offsets3, masks3 = _shift_offsets(3, H, W), _make_shift_masks(3, D, H, W)

    x_flat = in_seq.reshape(B, T, C, N).astype(jnp.float32)       # (B, T, 1, N)

    # Stacked-GRU reordering: layer kk's input sequence is fully available
    # before its recurrence, so i2h is computed fully in parallel per layer and
    # only h2h / gates / h2candidate stay on the sequential (T) path.
    seq = x_flat
    for kk in range(nunits):
        ih = i2h_fused(gru_q[kk], seq, masks, offsets)
        seq = gru_recurrence_fused(gru_q[kk], ih, masks, offsets, hid)

    out = out_div_fused(out_q, seq, x_flat, masks3, offsets3, H * W, W)

    # TODO(synk): dropout, noise_reg, cat_params (num_params>0) and future>0
    # rollout are not implemented (module defaults leave them off).
    # TODO(synk): only padding_mode='zeros' is implemented (masks encode it).
    # TODO(synk): for large D,H,W tile N spatially (with halo-aware shifts) so
    # the (K^3*hid, N) patch fits v7x's 64 MiB VMEM; and when B == 1 add a
    # parallel spatial split so both v7x TensorCores are used.
    return out.reshape(B, T, C, D, H, W).astype(in_seq.dtype)


# ----------------------------------------------------------------------------
# Deterministic parameter init (PyTorch Conv3d weight layout)
# ----------------------------------------------------------------------------
def init_params(key, input_channels, hidden_channels, hidden_units, kernel_size):
    keys = iter(jax.random.split(key, 128))

    def conv_w(cin, cout, k):
        scale = 0.3 / float(cin * k ** 3) ** 0.5
        w = jax.random.normal(next(keys), (cout, cin, k, k, k), jnp.float32) * scale
        b = jax.random.normal(next(keys), (cout,), jnp.float32) * 0.01
        return w, b

    gru = []
    for kk in range(hidden_units):
        cin = input_channels if kk == 0 else hidden_channels
        p = {}
        p["wi1"], p["bi1"] = conv_w(cin, 3 * hidden_channels, kernel_size)
        p["wi2"], p["bi2"] = conv_w(3 * hidden_channels, 3 * hidden_channels, 1)
        p["wh1"], p["bh1"] = conv_w(hidden_channels, 2 * hidden_channels, kernel_size)
        p["wh2"], p["bh2"] = conv_w(2 * hidden_channels, 2 * hidden_channels, 1)
        p["wc1"], p["bc1"] = conv_w(hidden_channels, hidden_channels, kernel_size)
        p["wc2"], p["bc2"] = conv_w(hidden_channels, hidden_channels, 1)
        gru.append(p)

    out_p = {}
    out_p["wo1"], out_p["bo1"] = conv_w(hidden_channels, hidden_channels, 1)
    out_p["wo2"], out_p["bo2"] = conv_w(hidden_channels, hidden_channels, 1)
    out_p["wo3"], out_p["bo3"] = conv_w(hidden_channels, 3 * input_channels, 3)

    return {"gru": gru, "toOut": out_p}


# ----------------------------------------------------------------------------
if __name__ == "__main__":
    # divergence mode requires input_channels == 1; N = D*H*W = 512 (lane-dense).
    B, T, D, H, W = 2, 3, 8, 8, 8
    input_channels = 1
    hidden_channels = 8
    hidden_units = 2
    kernel_size = 3

    key = jax.random.PRNGKey(0)
    pkey, xkey = jax.random.split(key)
    params = init_params(pkey, input_channels, hidden_channels, hidden_units,
                         kernel_size)

    # PyTorch layout: (B, T, C, D, H, W)
    in_seq = jax.random.normal(xkey, (B, T, input_channels, D, H, W), jnp.float32)

    fwd = jax.jit(convgru3d_forward)
    out = jax.block_until_ready(fwd(params, in_seq))

    assert out.shape == (B, T, input_channels, D, H, W)
    assert bool(jnp.all(jnp.isfinite(out)))
    print("KERNEL_OK")
</pallas_src>

<mosaic_0001>
module attributes {stable_mosaic.version = 11 : i64} {
  func.func @_i2h_kernel(%arg0: i32, %arg1: i32, %arg2: memref<1x1x1x512xf32, #tpu.memory_space<vmem>>, %arg3: memref<27x512xf32, #tpu.memory_space<vmem>>, %arg4: memref<24x27xbf16, #tpu.memory_space<vmem>>, %arg5: memref<24x1xf32, #tpu.memory_space<vmem>>, %arg6: memref<24x24xbf16, #tpu.memory_space<vmem>>, %arg7: memref<24x1xf32, #tpu.memory_space<vmem>>, %arg8: memref<1x1x24x512xf32, #tpu.memory_space<vmem>>, %arg9: memref<27x512xf32, #tpu.memory_space<vmem>>) attributes {dimension_semantics = [#tpu.dimension_semantics<parallel>, #tpu.dimension_semantics<parallel>], iteration_bounds = array<i64: 2, 3>, scalar_prefetch = 0 : i64, scratch_operands = 1 : i64, tpu.core_type = #tpu.core_type<tc>, window_params = [{transform_indices = @transform_0, window_bounds = array<i64: 1, 1, 1, 512>}, {pipeline_mode = #tpu.pipeline_mode<synchronous>, transform_indices = @transform_1, window_bounds = array<i64: 27, 512>}, {pipeline_mode = #tpu.pipeline_mode<synchronous>, transform_indices = @transform_2, window_bounds = array<i64: 24, 27>}, {pipeline_mode = #tpu.pipeline_mode<synchronous>, transform_indices = @transform_3, window_bounds = array<i64: 24, 1>}, {pipeline_mode = #tpu.pipeline_mode<synchronous>, transform_indices = @transform_4, window_bounds = array<i64: 24, 24>}, {pipeline_mode = #tpu.pipeline_mode<synchronous>, transform_indices = @transform_5, window_bounds = array<i64: 24, 1>}, {transform_indices = @transform_6, window_bounds = array<i64: 1, 1, 24, 512>}]} {
    %c0 = arith.constant 0 : index
    %c0_0 = arith.constant 0 : index
    %c0_1 = arith.constant 0 : index
    %c0_2 = arith.constant 0 : index
    %0 = vector.load %arg2[%c0, %c0_0, %c0_1, %c0_2] : memref<1x1x1x512xf32, #tpu.memory_space<vmem>>, vector<1x1x1x512xf32>
    %1 = vector.shape_cast %0 : vector<1x1x1x512xf32> to vector<1x512xf32>
    %c73_i32 = arith.constant 73 : i32
    %2 = tpu.dynamic_rotate %1 by %c73_i32 dim 1 : vector<1x512xf32>, i32 -> vector<1x512xf32>
    %c0_3 = arith.constant 0 : index
    %c0_4 = arith.constant 0 : index
    %3 = vector.load %arg3[%c0_3, %c0_4] : memref<27x512xf32, #tpu.memory_space<vmem>>, vector<1x512xf32>
    %4 = arith.mulf %2, %3 : vector<1x512xf32>
    %c0_5 = arith.constant 0 : index
    %c0_6 = arith.constant 0 : index
    %5 = vector.load %arg9[%c0_5, %c0_6] : memref<27x512xf32, #tpu.memory_space<vmem>>, vector<1x512xf32>
    tpu.vector_store %arg9[%c0_5, %c0_6], %4 {strides = array<i32>} : memref<27x512xf32, #tpu.memory_space<vmem>>, vector<1x512xf32>,
    %c72_i32 = arith.constant 72 : i32
    %6 = tpu.dynamic_rotate %1 by %c72_i32 dim 1 : vector<1x512xf32>, i32 -> vector<1x512xf32>
    %c1 = arith.constant 1 : index
    %c0_7 = arith.constant 0 : index
    %7 = vector.load %arg3[%c1, %c0_7] : memref<27x512xf32, #tpu.memory_space<vmem>>, vector<1x512xf32>
    %8 = arith.mulf %6, %7 : vector<1x512xf32>
    %c1_8 = arith.constant 1 : index
    %c0_9 = arith.constant 0 : index
    %9 = vector.load %arg9[%c1_8, %c0_9] : memref<27x512xf32, #tpu.memory_space<vmem>>, vector<1x512xf32>
    tpu.vector_store %arg9[%c1_8, %c0_9], %8 {strides = array<i32>} : memref<27x512xf32, #tpu.memory_space<vmem>>, vector<1x512xf32>,
    %c71_i32 = arith.constant 71 : i32
    %10 = tpu.dynamic_rotate %1 by %c71_i32 dim 1 : vector<1x512xf32>, i32 -> vector<1x512xf32>
    %c2 = arith.constant 2 : index
    %c0_10 = arith.constant 0 : index
    %11 = vector.load %arg3[%c2, %c0_10] : memref<27x512xf32, #tpu.memory_space<vmem>>, vector<1x512xf32>
    %12 = arith.mulf %10, %11 : vector<1x512xf32>
    %c2_11 = arith.constant 2 : index
    %c0_12 = arith.constant 0 : index
    %13 = vector.load %arg9[%c2_11, %c0_12] : memref<27x512xf32, #tpu.memory_space<vmem>>, vector<1x512xf32>
    tpu.vector_store %arg9[%c2_11, %c0_12], %12 {strides = array<i32>} : memref<27x512xf32, #tpu.memory_space<vmem>>, vector<1x512xf32>,
    %c65_i32 = arith.constant 65 : i32
    %14 = tpu.dynamic_rotate %1 by %c65_i32 dim 1 : vector<1x512xf32>, i32 -> vector<1x512xf32>
    %c3 = arith.constant 3 : index
    %c0_13 = arith.constant 0 : index
    %15 = vector.load %arg3[%c3, %c0_13] : memref<27x512xf32, #tpu.memory_space<vmem>>, vector<1x512xf32>
    %16 = arith.mulf %14, %15 : vector<1x512xf32>
    %c3_14 = arith.constant 3 : index
    %c0_15 = arith.constant 0 : index
    %17 = vector.load %arg9[%c3_14, %c0_15] : memref<27x512xf32, #tpu.memory_space<vmem>>, vector<1x512xf32>
    tpu.vector_store %arg9[%c3_14, %c0_15], %16 {strides = array<i32>} : memref<27x512xf32, #tpu.memory_space<vmem>>, vector<1x512xf32>,
    %c64_i32 = arith.constant 64 : i32
    %18 = tpu.dynamic_rotate %1 by %c64_i32 dim 1 : vector<1x512xf32>, i32 -> vector<1x512xf32>
    %c4 = arith.constant 4 : index
    %c0_16 = arith.constant 0 : index
    %19 = vector.load %arg3[%c4, %c0_16] : memref<27x512xf32, #tpu.memory_space<vmem>>, vector<1x512xf32>
    %20 = arith.mulf %18, %19 : vector<1x512xf32>
    %c4_17 = arith.constant 4 : index
    %c0_18 = arith.constant 0 : index
    %21 = vector.load %arg9[%c4_17, %c0_18] : memref<27x512xf32, #tpu.memory_space<vmem>>, vector<1x512xf32>
    tpu.vector_store %arg9[%c4_17, %c0_18], %20 {strides = array<i32>} : memref<27x512xf32, #tpu.memory_space<vmem>>, vector<1x512xf32>,
    %c63_i32 = arith.constant 63 : i32
    %22 = tpu.dynamic_rotate %1 by %c63_i32 dim 1 : vector<1x512xf32>, i32 -> vector<1x512xf32>
    %c5 = arith.constant 5 : index
    %c0_19 = arith.constant 0 : index
    %23 = vector.load %arg3[%c5, %c0_19] : memref<27x512xf32, #tpu.memory_space<vmem>>, vector<1x512xf32>
    %24 = arith.mulf %22, %23 : vector<1x512xf32>
    %c5_20 = arith.constant 5 : index
    %c0_21 = arith.constant 0 : index
    %25 = vector.load %arg9[%c5_20, %c0_21] : memref<27x512xf32, #tpu.memory_space<vmem>>, vector<1x512xf32>
    tpu.vector_store %arg9[%c5_20, %c0_21], %24 {strides = array<i32>} : memref<27x512xf32, #tpu.memory_space<vmem>>, vector<1x512xf32>,
    %c57_i32 = arith.constant 57 : i32
    %26 = tpu.dynamic_rotate %1 by %c57_i32 dim 1 : vector<1x512xf32>, i32 -> vector<1x512xf32>
    %c6 = arith.constant 6 : index
    %c0_22 = arith.constant 0 : index
    %27 = vector.load %arg3[%c6, %c0_22] : memref<27x512xf32, #tpu.memory_space<vmem>>, vector<1x512xf32>
    %28 = arith.mulf %26, %27 : vector<1x512xf32>
    %c6_23 = arith.constant 6 : index
    %c0_24 = arith.constant 0 : index
    %29 = vector.load %arg9[%c6_23, %c0_24] : memref<27x512xf32, #tpu.memory_space<vmem>>, vector<1x512xf32>
    tpu.vector_store %arg9[%c6_23, %c0_24], %28 {strides = array<i32>} : memref<27x512xf32, #tpu.memory_space<vmem>>, vector<1x512xf32>,
    %c56_i32 = arith.constant 56 : i32
    %30 = tpu.dynamic_rotate %1 by %c56_i32 dim 1 : vector<1x512xf32>, i32 -> vector<1x512xf32>
    %c7 = arith.constant 7 : index
    %c0_25 = arith.constant 0 : index
    %31 = vector.load %arg3[%c7, %c0_25] : memref<27x512xf32, #tpu.memory_space<vmem>>, vector<1x512xf32>
    %32 = arith.mulf %30, %31 : vector<1x512xf32>
    %c7_26 = arith.constant 7 : index
    %c0_27 = arith.constant 0 : index
    %33 = vector.load %arg9[%c7_26, %c0_27] : memref<27x512xf32, #tpu.memory_space<vmem>>, vector<1x512xf32>
    tpu.vector_store %arg9[%c7_26, %c0_27], %32 {strides = array<i32>} : memref<27x512xf32, #tpu.memory_space<vmem>>, vector<1x512xf32>,
    %c55_i32 = arith.constant 55 : i32
    %34 = tpu.dynamic_rotate %1 by %c55_i32 dim 1 : vector<1x512xf32>, i32 -> vector<1x512xf32>
    %c8 = arith.constant 8 : index
    %c0_28 = arith.constant 0 : index
    %35 = vector.load %arg3[%c8, %c0_28] : memref<27x512xf32, #tpu.memory_space<vmem>>, vector<1x512xf32>
    %36 = arith.mulf %34, %35 : vector<1x512xf32>
    %c8_29 = arith.constant 8 : index
    %c0_30 = arith.constant 0 : index
    %37 = vector.load %arg9[%c8_29, %c0_30] : memref<27x512xf32, #tpu.memory_space<vmem>>, vector<1x512xf32>
    tpu.vector_store %arg9[%c8_29, %c0_30], %36 {strides = array<i32>} : memref<27x512xf32, #tpu.memory_space<vmem>>, vector<1x512xf32>,
    %c9_i32 = arith.constant 9 : i32
    %38 = tpu.dynamic_rotate %1 by %c9_i32 dim 1 : vector<1x512xf32>, i32 -> vector<1x512xf32>
    %c9 = arith.constant 9 : index
    %c0_31 = arith.constant 0 : index
    %39 = vector.load %arg3[%c9, %c0_31] : memref<27x512xf32, #tpu.memory_space<vmem>>, vector<1x512xf32>
    %40 = arith.mulf %38, %39 : vector<1x512xf32>
    %c9_32 = arith.constant 9 : index
    %c0_33 = arith.constant 0 : index
    %41 = vector.load %arg9[%c9_32, %c0_33] : memref<27x512xf32, #tpu.memory_space<vmem>>, vector<1x512xf32>
    tpu.vector_store %arg9[%c9_32, %c0_33], %40 {strides = array<i32>} : memref<27x512xf32, #tpu.memory_space<vmem>>, vector<1x512xf32>,
    %c8_i32 = arith.constant 8 : i32
    %42 = tpu.dynamic_rotate %1 by %c8_i32 dim 1 : vector<1x512xf32>, i32 -> vector<1x512xf32>
    %c10 = arith.constant 10 : index
    %c0_34 = arith.constant 0 : index
    %43 = vector.load %arg3[%c10, %c0_34] : memref<27x512xf32, #tpu.memory_space<vmem>>, vector<1x512xf32>
    %44 = arith.mulf %42, %43 : vector<1x512xf32>
    %c10_35 = arith.constant 10 : index
    %c0_36 = arith.constant 0 : index
    %45 = vector.load %arg9[%c10_35, %c0_36] : memref<27x512xf32, #tpu.memory_space<vmem>>, vector<1x512xf32>
    tpu.vector_store %arg9[%c10_35, %c0_36], %44 {strides = array<i32>} : memref<27x512xf32, #tpu.memory_space<vmem>>, vector<1x512xf32>,
    %c7_i32 = arith.constant 7 : i32
    %46 = tpu.dynamic_rotate %1 by %c7_i32 dim 1 : vector<1x512xf32>, i32 -> vector<1x512xf32>
    %c11 = arith.constant 11 : index
    %c0_37 = arith.constant 0 : index
    %47 = vector.load %arg3[%c11, %c0_37] : memref<27x512xf32, #tpu.memory_space<vmem>>, vector<1x512xf32>
    %48 = arith.mulf %46, %47 : vector<1x512xf32>
    %c11_38 = arith.constant 11 : index
    %c0_39 = arith.constant 0 : index
    %49 = vector.load %arg9[%c11_38, %c0_39] : memref<27x512xf32, #tpu.memory_space<vmem>>, vector<1x512xf32>
    tpu.vector_store %arg9[%c11_38, %c0_39], %48 {strides = array<i32>} : memref<27x512xf32, #tpu.memory_space<vmem>>, vector<1x512xf32>,
    %c1_i32 = arith.constant 1 : i32
    %50 = tpu.dynamic_rotate %1 by %c1_i32 dim 1 : vector<1x512xf32>, i32 -> vector<1x512xf32>
    %c12 = arith.constant 12 : index
    %c0_40 = arith.constant 0 : index
    %51 = vector.load %arg3[%c12, %c0_40] : memref<27x512xf32, #tpu.memory_space<vmem>>, vector<1x512xf32>
    %52 = arith.mulf %50, %51 : vector<1x512xf32>
    %c12_41 = arith.constant 12 : index
    %c0_42 = arith.constant 0 : index
    %53 = vector.load %arg9[%c12_41, %c0_42] : memref<27x512xf32, #tpu.memory_space<vmem>>, vector<1x512xf32>
    tpu.vector_store %arg9[%c12_41, %c0_42], %52 {strides = array<i32>} : memref<27x512xf32, #tpu.memory_space<vmem>>, vector<1x512xf32>,
    %c13 = arith.constant 13 : index
    %c0_43 = arith.constant 0 : index
    %54 = vector.load %arg9[%c13, %c0_43] : memref<27x512xf32, #tpu.memory_space<vmem>>, vector<1x512xf32>
    tpu.vector_store %arg9[%c13, %c0_43], %1 {strides = array<i32>} : memref<27x512xf32, #tpu.memory_space<vmem>>, vector<1x512xf32>,
    %c511_i32 = arith.constant 511 : i32
    %55 = tpu.dynamic_rotate %1 by %c511_i32 dim 1 : vector<1x512xf32>, i32 -> vector<1x512xf32>
    %c14 = arith.constant 14 : index
    %c0_44 = arith.constant 0 : index
    %56 = vector.load %arg3[%c14, %c0_44] : memref<27x512xf32, #tpu.memory_space<vmem>>, vector<1x512xf32>
    %57 = arith.mulf %55, %56 : vector<1x512xf32>
    %c14_45 = arith.constant 14 : index
    %c0_46 = arith.constant 0 : index
    %58 = vector.load %arg9[%c14_45, %c0_46] : memref<27x512xf32, #tpu.memory_space<vmem>>, vector<1x512xf32>
    tpu.vector_store %arg9[%c14_45, %c0_46], %57 {strides = array<i32>} : memref<27x512xf32, #tpu.memory_space<vmem>>, vector<1x512xf32>,
    %c505_i32 = arith.constant 505 : i32
    %59 = tpu.dynamic_rotate %1 by %c505_i32 dim 1 : vector<1x512xf32>, i32 -> vector<1x512xf32>
    %c15 = arith.constant 15 : index
    %c0_47 = arith.constant 0 : index
    %60 = vector.load %arg3[%c15, %c0_47] : memref<27x512xf32, #tpu.memory_space<vmem>>, vector<1x512xf32>
    %61 = arith.mulf %59, %60 : vector<1x512xf32>
    %c15_48 = arith.constant 15 : index
    %c0_49 = arith.constant 0 : index
    %62 = vector.load %arg9[%c15_48, %c0_49] : memref<27x512xf32, #tpu.memory_space<vmem>>, vector<1x512xf32>
    tpu.vector_store %arg9[%c15_48, %c0_49], %61 {strides = array<i32>} : memref<27x512xf32, #tpu.memory_space<vmem>>, vector<1x512xf32>,
    %c504_i32 = arith.constant 504 : i32
    %63 = tpu.dynamic_rotate %1 by %c504_i32 dim 1 : vector<1x512xf32>, i32 -> vector<1x512xf32>
    %c16 = arith.constant 16 : index
    %c0_50 = arith.constant 0 : index
    %64 = vector.load %arg3[%c16, %c0_50] : memref<27x512xf32, #tpu.memory_space<vmem>>, vector<1x512xf32>
    %65 = arith.mulf %63, %64 : vector<1x512xf32>
    %c16_51 = arith.constant 16 : index
    %c0_52 = arith.constant 0 : index
    %66 = vector.load %arg9[%c16_51, %c0_52] : memref<27x512xf32, #tpu.memory_space<vmem>>, vector<1x512xf32>
    tpu.vector_store %arg9[%c16_51, %c0_52], %65 {strides = array<i32>} : memref<27x512xf32, #tpu.memory_space<vmem>>, vector<1x512xf32>,
    %c503_i32 = arith.constant 503 : i32
    %67 = tpu.dynamic_rotate %1 by %c503_i32 dim 1 : vector<1x512xf32>, i32 -> vector<1x512xf32>
    %c17 = arith.constant 17 : index
    %c0_53 = arith.constant 0 : index
    %68 = vector.load %arg3[%c17, %c0_53] : memref<27x512xf32, #tpu.memory_space<vmem>>, vector<1x512xf32>
    %69 = arith.mulf %67, %68 : vector<1x512xf32>
    %c17_54 = arith.constant 17 : index
    %c0_55 = arith.constant 0 : index
    %70 = vector.load %arg9[%c17_54, %c0_55] : memref<27x512xf32, #tpu.memory_space<vmem>>, vector<1x512xf32>
    tpu.vector_store %arg9[%c17_54, %c0_55], %69 {strides = array<i32>} : memref<27x512xf32, #tpu.memory_space<vmem>>, vector<1x512xf32>,
    %c457_i32 = arith.constant 457 : i32
    %71 = tpu.dynamic_rotate %1 by %c457_i32 dim 1 : vector<1x512xf32>, i32 -> vector<1x512xf32>
    %c18 = arith.constant 18 : index
    %c0_56 = arith.constant 0 : index
    %72 = vector.load %arg3[%c18, %c0_56] : memref<27x512xf32, #tpu.memory_space<vmem>>, vector<1x512xf32>
    %73 = arith.mulf %71, %72 : vector<1x512xf32>
    %c18_57 = arith.constant 18 : index
    %c0_58 = arith.constant 0 : index
    %74 = vector.load %arg9[%c18_57, %c0_58] : memref<27x512xf32, #tpu.memory_space<vmem>>, vector<1x512xf32>
    tpu.vector_store %arg9[%c18_57, %c0_58], %73 {strides = array<i32>} : memref<27x512xf32, #tpu.memory_space<vmem>>, vector<1x512xf32>,
    %c456_i32 = arith.constant 456 : i32
    %75 = tpu.dynamic_rotate %1 by %c456_i32 dim 1 : vector<1x512xf32>, i32 -> vector<1x512xf32>
    %c19 = arith.constant 19 : index
    %c0_59 = arith.constant 0 : index
    %76 = vector.load %arg3[%c19, %c0_59] : memref<27x512xf32, #tpu.memory_space<vmem>>, vector<1x512xf32>
    %77 = arith.mulf %75, %76 : vector<1x512xf32>
    %c19_60 = arith.constant 19 : index
    %c0_61 = arith.constant 0 : index
    %78 = vector.load %arg9[%c19_60, %c0_61] : memref<27x512xf32, #tpu.memory_space<vmem>>, vector<1x512xf32>
    tpu.vector_store %arg9[%c19_60, %c0_61], %77 {strides = array<i32>} : memref<27x512xf32, #tpu.memory_space<vmem>>, vector<1x512xf32>,
    %c455_i32 = arith.constant 455 : i32
    %79 = tpu.dynamic_rotate %1 by %c455_i32 dim 1 : vector<1x512xf32>, i32 -> vector<1x512xf32>
    %c20 = arith.constant 20 : index
    %c0_62 = arith.constant 0 : index
    %80 = vector.load %arg3[%c20, %c0_62] : memref<27x512xf32, #tpu.memory_space<vmem>>, vector<1x512xf32>
    %81 = arith.mulf %79, %80 : vector<1x512xf32>
    %c20_63 = arith.constant 20 : index
    %c0_64 = arith.constant 0 : index
    %82 = vector.load %arg9[%c20_63, %c0_64] : memref<27x512xf32, #tpu.memory_space<vmem>>, vector<1x512xf32>
    tpu.vector_store %arg9[%c20_63, %c0_64], %81 {strides = array<i32>} : memref<27x512xf32, #tpu.memory_space<vmem>>, vector<1x512xf32>,
    %c449_i32 = arith.constant 449 : i32
    %83 = tpu.dynamic_rotate %1 by %c449_i32 dim 1 : vector<1x512xf32>, i32 -> vector<1x512xf32>
    %c21 = arith.constant 21 : index
    %c0_65 = arith.constant 0 : index
    %84 = vector.load %arg3[%c21, %c0_65] : memref<27x512xf32, #tpu.memory_space<vmem>>, vector<1x512xf32>
    %85 = arith.mulf %83, %84 : vector<1x512xf32>
    %c21_66 = arith.constant 21 : index
    %c0_67 = arith.constant 0 : index
    %86 = vector.load %arg9[%c21_66, %c0_67] : memref<27x512xf32, #tpu.memory_space<vmem>>, vector<1x512xf32>
    tpu.vector_store %arg9[%c21_66, %c0_67], %85 {strides = array<i32>} : memref<27x512xf32, #tpu.memory_space<vmem>>, vector<1x512xf32>,
    %c448_i32 = arith.constant 448 : i32
    %87 = tpu.dynamic_rotate %1 by %c448_i32 dim 1 : vector<1x512xf32>, i32 -> vector<1x512xf32>
    %c22 = arith.constant 22 : index
    %c0_68 = arith.constant 0 : index
    %88 = vector.load %arg3[%c22, %c0_68] : memref<27x512xf32, #tpu.memory_space<vmem>>, vector<1x512xf32>
    %89 = arith.mulf %87, %88 : vector<1x512xf32>
    %c22_69 = arith.constant 22 : index
    %c0_70 = arith.constant 0 : index
    %90 = vector.load %arg9[%c22_69, %c0_70] : memref<27x512xf32, #tpu.memory_space<vmem>>, vector<1x512xf32>
    tpu.vector_store %arg9[%c22_69, %c0_70], %89 {strides = array<i32>} : memref<27x512xf32, #tpu.memory_space<vmem>>, vector<1x512xf32>,
    %c447_i32 = arith.constant 447 : i32
    %91 = tpu.dynamic_rotate %1 by %c447_i32 dim 1 : vector<1x512xf32>, i32 -> vector<1x512xf32>
    %c23 = arith.constant 23 : index
    %c0_71 = arith.constant 0 : index
    %92 = vector.load %arg3[%c23, %c0_71] : memref<27x512xf32, #tpu.memory_space<vmem>>, vector<1x512xf32>
    %93 = arith.mulf %91, %92 : vector<1x512xf32>
    %c23_72 = arith.constant 23 : index
    %c0_73 = arith.constant 0 : index
    %94 = vector.load %arg9[%c23_72, %c0_73] : memref<27x512xf32, #tpu.memory_space<vmem>>, vector<1x512xf32>
    tpu.vector_store %arg9[%c23_72, %c0_73], %93 {strides = array<i32>} : memref<27x512xf32, #tpu.memory_space<vmem>>, vector<1x512xf32>,
    %c441_i32 = arith.constant 441 : i32
    %95 = tpu.dynamic_rotate %1 by %c441_i32 dim 1 : vector<1x512xf32>, i32 -> vector<1x512xf32>
    %c24 = arith.constant 24 : index
    %c0_74 = arith.constant 0 : index
    %96 = vector.load %arg3[%c24, %c0_74] : memref<27x512xf32, #tpu.memory_space<vmem>>, vector<1x512xf32>
    %97 = arith.mulf %95, %96 : vector<1x512xf32>
    %c24_75 = arith.constant 24 : index
    %c0_76 = arith.constant 0 : index
    %98 = vector.load %arg9[%c24_75, %c0_76] : memref<27x512xf32, #tpu.memory_space<vmem>>, vector<1x512xf32>
    tpu.vector_store %arg9[%c24_75, %c0_76], %97 {strides = array<i32>} : memref<27x512xf32, #tpu.memory_space<vmem>>, vector<1x512xf32>,
    %c440_i32 = arith.constant 440 : i32
    %99 = tpu.dynamic_rotate %1 by %c440_i32 dim 1 : vector<1x512xf32>, i32 -> vector<1x512xf32>
    %c25 = arith.constant 25 : index
    %c0_77 = arith.constant 0 : index
    %100 = vector.load %arg3[%c25, %c0_77] : memref<27x512xf32, #tpu.memory_space<vmem>>, vector<1x512xf32>
    %101 = arith.mulf %99, %100 : vector<1x512xf32>
    %c25_78 = arith.constant 25 : index
    %c0_79 = arith.constant 0 : index
    %102 = vector.load %arg9[%c25_78, %c0_79] : memref<27x512xf32, #tpu.memory_space<vmem>>, vector<1x512xf32>
    tpu.vector_store %arg9[%c25_78, %c0_79], %101 {strides = array<i32>} : memref<27x512xf32, #tpu.memory_space<vmem>>, vector<1x512xf32>,
    %c439_i32 = arith.constant 439 : i32
    %103 = tpu.dynamic_rotate %1 by %c439_i32 dim 1 : vector<1x512xf32>, i32 -> vector<1x512xf32>
    %c26 = arith.constant 26 : index
    %c0_80 = arith.constant 0 : index
    %104 = vector.load %arg3[%c26, %c0_80] : memref<27x512xf32, #tpu.memory_space<vmem>>, vector<1x512xf32>
    %105 = arith.mulf %103, %104 : vector<1x512xf32>
    %c26_81 = arith.constant 26 : index
    %c0_82 = arith.constant 0 : index
    %106 = vector.load %arg9[%c26_81, %c0_82] : memref<27x512xf32, #tpu.memory_space<vmem>>, vector<1x512xf32>
    tpu.vector_store %arg9[%c26_81, %c0_82], %105 {strides = array<i32>} : memref<27x512xf32, #tpu.memory_space<vmem>>, vector<1x512xf32>,
    %c0_83 = arith.constant 0 : index
    %c0_84 = arith.constant 0 : index
    %107 = vector.load %arg9[%c0_83, %c0_84] : memref<27x512xf32, #tpu.memory_space<vmem>>, vector<27x512xf32>
    %108 = arith.truncf %107 : vector<27x512xf32> to vector<27x512xbf16>
    %c0_85 = arith.constant 0 : index
    %c0_86 = arith.constant 0 : index
    %109 = vector.load %arg4[%c0_85, %c0_86] : memref<24x27xbf16, #tpu.memory_space<vmem>>, vector<24x27xbf16>
    %cst = arith.constant dense<0.000000e+00> : vector<24x512xf32>
    %110 = tpu.matmul %109, %108, %cst {dimension_numbers = #tpu.dot_dimension_numbers<[1], [0], [0], [1], [0, 0, 1, 1], [], []>} : vector<24x27xbf16>, vector<27x512xbf16>, vector<24x512xf32> -> vector<24x512xf32>
    %c0_87 = arith.constant 0 : index
    %c0_88 = arith.constant 0 : index
    %111 = vector.load %arg5[%c0_87, %c0_88] : memref<24x1xf32, #tpu.memory_space<vmem>>, vector<24x1xf32>
    %112 = vector.broadcast %111 : vector<24x1xf32> to vector<24x512xf32>
    %113 = arith.addf %110, %112 : vector<24x512xf32>
    %114 = math.tanh %113 : vector<24x512xf32>
    %c0_89 = arith.constant 0 : index
    %c0_90 = arith.constant 0 : index
    %115 = vector.load %arg6[%c0_89, %c0_90] : memref<24x24xbf16, #tpu.memory_space<vmem>>, vector<24x24xbf16>
    %116 = arith.truncf %114 : vector<24x512xf32> to vector<24x512xbf16>
    %cst_91 = arith.constant dense<0.000000e+00> : vector<24x512xf32>
    %117 = tpu.matmul %115, %116, %cst_91 {dimension_numbers = #tpu.dot_dimension_numbers<[1], [0], [0], [1], [0, 0, 1, 1], [], []>} : vector<24x24xbf16>, vector<24x512xbf16>, vector<24x512xf32> -> vector<24x512xf32>
    %c0_92 = arith.constant 0 : index
    %c0_93 = arith.constant 0 : index
    %118 = vector.load %arg7[%c0_92, %c0_93] : memref<24x1xf32, #tpu.memory_space<vmem>>, vector<24x1xf32>
    %119 = vector.broadcast %118 : vector<24x1xf32> to vector<24x512xf32>
    %120 = arith.addf %117, %119 : vector<24x512xf32>
    %c0_94 = arith.constant 0 : index
    %c0_95 = arith.constant 0 : index
    %c0_96 = arith.constant 0 : index
    %c0_97 = arith.constant 0 : index
    %121 = vector.load %arg8[%c0_94, %c0_95, %c0_96, %c0_97] : memref<1x1x24x512xf32, #tpu.memory_space<vmem>>, vector<1x1x24x512xf32>
    %122 = vector.shape_cast %121 : vector<1x1x24x512xf32> to vector<24x512xf32>
    %123 = vector.shape_cast %120 : vector<24x512xf32> to vector<1x1x24x512xf32>
    tpu.vector_store %arg8[%c0_94, %c0_95, %c0_96, %c0_97], %123 {strides = array<i32>} : memref<1x1x24x512xf32, #tpu.memory_space<vmem>>, vector<1x1x24x512xf32>,
    return
  }
  func.func @transform_0(%arg0: i32, %arg1: i32) -> (i32, i32, i32, i32) {
    %c0_i32 = arith.constant 0 : i32
    %c0_i32_0 = arith.constant 0 : i32
    %c0_i32_1 = arith.constant 0 : i32
    return %arg0, %arg1, %c0_i32, %c0_i32_0 : i32, i32, i32, i32
  }
  func.func @transform_1(%arg0: i32, %arg1: i32) -> (i32, i32) {
    %c0_i32 = arith.constant 0 : i32
    %c0_i32_0 = arith.constant 0 : i32
    %c0_i32_1 = arith.constant 0 : i32
    return %c0_i32, %c0_i32_0 : i32, i32
  }
  func.func @transform_2(%arg0: i32, %arg1: i32) -> (i32, i32) {
    %c0_i32 = arith.constant 0 : i32
    %c0_i32_0 = arith.constant 0 : i32
    %c0_i32_1 = arith.constant 0 : i32
    return %c0_i32, %c0_i32_0 : i32, i32
  }
  func.func @transform_3(%arg0: i32, %arg1: i32) -> (i32, i32) {
    %c0_i32 = arith.constant 0 : i32
    %c0_i32_0 = arith.constant 0 : i32
    %c0_i32_1 = arith.constant 0 : i32
    return %c0_i32, %c0_i32_0 : i32, i32
  }
  func.func @transform_4(%arg0: i32, %arg1: i32) -> (i32, i32) {
    %c0_i32 = arith.constant 0 : i32
    %c0_i32_0 = arith.constant 0 : i32
    %c0_i32_1 = arith.constant 0 : i32
    return %c0_i32, %c0_i32_0 : i32, i32
  }
  func.func @transform_5(%arg0: i32, %arg1: i32) -> (i32, i32) {
    %c0_i32 = arith.constant 0 : i32
    %c0_i32_0 = arith.constant 0 : i32
    %c0_i32_1 = arith.constant 0 : i32
    return %c0_i32, %c0_i32_0 : i32, i32
  }
  func.func @transform_6(%arg0: i32, %arg1: i32) -> (i32, i32, i32, i32) {
    %c0_i32 = arith.constant 0 : i32
    %c0_i32_0 = arith.constant 0 : i32
    %c0_i32_1 = arith.constant 0 : i32
    return %arg0, %arg1, %c0_i32, %c0_i32_0 : i32, i32, i32, i32
  }
}

module attributes {stable_mosaic.version = 11 : i64} {
  func.func @_i2h_kernel(%arg0: i32, %arg1: i32, %arg2: memref<1x1x8x512xf32, #tpu.memory_space<vmem>>, %arg3: memref<27x512xf32, #tpu.memory_space<vmem>>, %arg4: memref<24x216xbf16, #tpu.memory_space<vmem>>, %arg5: memref<24x1xf32, #tpu.memory_space<vmem>>, %arg6: memref<24x24xbf16, #tpu.memory_space<vmem>>, %arg7: memref<24x1xf32, #tpu.memory_space<vmem>>, %arg8: memref<1x1x24x512xf32, #tpu.memory_space<vmem>>, %arg9: memref<216x512xf32, #tpu.memory_space<vmem>>) attributes {dimension_semantics = [#tpu.dimension_semantics<parallel>, #tpu.dimension_semantics<parallel>], iteration_bounds = array<i64: 2, 3>, scalar_prefetch = 0 : i64, scratch_operands = 1 : i64, tpu.core_type = #tpu.core_type<tc>, window_params = [{transform_indices = @transform_0, window_bounds = array<i64: 1, 1, 8, 512>}, {pipeline_mode = #tpu.pipeline_mode<synchronous>, transform_indices = @transform_1, window_bounds = array<i64: 27, 512>}, {pipeline_mode = #tpu.pipeline_mode<synchronous>, transform_indices = @transform_2, window_bounds = array<i64: 24, 216>}, {pipeline_mode = #tpu.pipeline_mode<synchronous>, transform_indices = @transform_3, window_bounds = array<i64: 24, 1>}, {pipeline_mode = #tpu.pipeline_mode<synchronous>, transform_indices = @transform_4, window_bounds = array<i64: 24, 24>}, {pipeline_mode = #tpu.pipeline_mode<synchronous>, transform_indices = @transform_5, window_bounds = array<i64: 24, 1>}, {transform_indices = @transform_6, window_bounds = array<i64: 1, 1, 24, 512>}]} {
    %c0 = arith.constant 0 : index
    %c0_0 = arith.constant 0 : index
    %c0_1 = arith.constant 0 : index
    %c0_2 = arith.constant 0 : index
    %0 = vector.load %arg2[%c0, %c0_0, %c0_1, %c0_2] : memref<1x1x8x512xf32, #tpu.memory_space<vmem>>, vector<1x1x8x512xf32>
    %1 = vector.shape_cast %0 : vector<1x1x8x512xf32> to vector<8x512xf32>
    %c73_i32 = arith.constant 73 : i32
    %2 = tpu.dynamic_rotate %1 by %c73_i32 dim 1 : vector<8x512xf32>, i32 -> vector<8x512xf32>
    %c0_3 = arith.constant 0 : index
    %c0_4 = arith.constant 0 : index
    %3 = vector.load %arg3[%c0_3, %c0_4] : memref<27x512xf32, #tpu.memory_space<vmem>>, vector<1x512xf32>
    %4 = vector.broadcast %3 : vector<1x512xf32> to vector<8x512xf32>
    %5 = arith.mulf %2, %4 : vector<8x512xf32>
    %c0_5 = arith.constant 0 : index
    %c0_6 = arith.constant 0 : index
    %6 = vector.load %arg9[%c0_5, %c0_6] : memref<216x512xf32, #tpu.memory_space<vmem>>, vector<8x512xf32>
    tpu.vector_store %arg9[%c0_5, %c0_6], %5 {strides = array<i32>} : memref<216x512xf32, #tpu.memory_space<vmem>>, vector<8x512xf32>,
    %c72_i32 = arith.constant 72 : i32
    %7 = tpu.dynamic_rotate %1 by %c72_i32 dim 1 : vector<8x512xf32>, i32 -> vector<8x512xf32>
    %c1 = arith.constant 1 : index
    %c0_7 = arith.constant 0 : index
    %8 = vector.load %arg3[%c1, %c0_7] : memref<27x512xf32, #tpu.memory_space<vmem>>, vector<1x512xf32>
    %9 = vector.broadcast %8 : vector<1x512xf32> to vector<8x512xf32>
    %10 = arith.mulf %7, %9 : vector<8x512xf32>
    %c8 = arith.constant 8 : index
    %c0_8 = arith.constant 0 : index
    %11 = vector.load %arg9[%c8, %c0_8] : memref<216x512xf32, #tpu.memory_space<vmem>>, vector<8x512xf32>
    tpu.vector_store %arg9[%c8, %c0_8], %10 {strides = array<i32>} : memref<216x512xf32, #tpu.memory_space<vmem>>, vector<8x512xf32>,
    %c71_i32 = arith.constant 71 : i32
    %12 = tpu.dynamic_rotate %1 by %c71_i32 dim 1 : vector<8x512xf32>, i32 -> vector<8x512xf32>
    %c2 = arith.constant 2 : index
    %c0_9 = arith.constant 0 : index
    %13 = vector.load %arg3[%c2, %c0_9] : memref<27x512xf32, #tpu.memory_space<vmem>>, vector<1x512xf32>
    %14 = vector.broadcast %13 : vector<1x512xf32> to vector<8x512xf32>
    %15 = arith.mulf %12, %14 : vector<8x512xf32>
    %c16 = arith.constant 16 : index
    %c0_10 = arith.constant 0 : index
    %16 = vector.load %arg9[%c16, %c0_10] : memref<216x512xf32, #tpu.memory_space<vmem>>, vector<8x512xf32>
    tpu.vector_store %arg9[%c16, %c0_10], %15 {strides = array<i32>} : memref<216x512xf32, #tpu.memory_space<vmem>>, vector<8x512xf32>,
    %c65_i32 = arith.constant 65 : i32
    %17 = tpu.dynamic_rotate %1 by %c65_i32 dim 1 : vector<8x512xf32>, i32 -> vector<8x512xf32>
    %c3 = arith.constant 3 : index
    %c0_11 = arith.constant 0 : index
    %18 = vector.load %arg3[%c3, %c0_11] : memref<27x512xf32, #tpu.memory_space<vmem>>, vector<1x512xf32>
    %19 = vector.broadcast %18 : vector<1x512xf32> to vector<8x512xf32>
    %20 = arith.mulf %17, %19 : vector<8x512xf32>
    %c24 = arith.constant 24 : index
    %c0_12 = arith.constant 0 : index
    %21 = vector.load %arg9[%c24, %c0_12] : memref<216x512xf32, #tpu.memory_space<vmem>>, vector<8x512xf32>
    tpu.vector_store %arg9[%c24, %c0_12], %20 {strides = array<i32>} : memref<216x512xf32, #tpu.memory_space<vmem>>, vector<8x512xf32>,
    %c64_i32 = arith.constant 64 : i32
    %22 = tpu.dynamic_rotate %1 by %c64_i32 dim 1 : vector<8x512xf32>, i32 -> vector<8x512xf32>
    %c4 = arith.constant 4 : index
    %c0_13 = arith.constant 0 : index
    %23 = vector.load %arg3[%c4, %c0_13] : memref<27x512xf32, #tpu.memory_space<vmem>>, vector<1x512xf32>
    %24 = vector.broadcast %23 : vector<1x512xf32> to vector<8x512xf32>
    %25 = arith.mulf %22, %24 : vector<8x512xf32>
    %c32 = arith.constant 32 : index
    %c0_14 = arith.constant 0 : index
    %26 = vector.load %arg9[%c32, %c0_14] : memref<216x512xf32, #tpu.memory_space<vmem>>, vector<8x512xf32>
    tpu.vector_store %arg9[%c32, %c0_14], %25 {strides = array<i32>} : memref<216x512xf32, #tpu.memory_space<vmem>>, vector<8x512xf32>,
    %c63_i32 = arith.constant 63 : i32
    %27 = tpu.dynamic_rotate %1 by %c63_i32 dim 1 : vector<8x512xf32>, i32 -> vector<8x512xf32>
    %c5 = arith.constant 5 : index
    %c0_15 = arith.constant 0 : index
    %28 = vector.load %arg3[%c5, %c0_15] : memref<27x512xf32, #tpu.memory_space<vmem>>, vector<1x512xf32>
    %29 = vector.broadcast %28 : vector<1x512xf32> to vector<8x512xf32>
    %30 = arith.mulf %27, %29 : vector<8x512xf32>
    %c40 = arith.constant 40 : index
    %c0_16 = arith.constant 0 : index
    %31 = vector.load %arg9[%c40, %c0_16] : memref<216x512xf32, #tpu.memory_space<vmem>>, vector<8x512xf32>
    tpu.vector_store %arg9[%c40, %c0_16], %30 {strides = array<i32>} : memref<216x512xf32, #tpu.memory_space<vmem>>, vector<8x512xf32>,
    %c57_i32 = arith.constant 57 : i32
    %32 = tpu.dynamic_rotate %1 by %c57_i32 dim 1 : vector<8x512xf32>, i32 -> vector<8x512xf32>
    %c6 = arith.constant 6 : index
    %c0_17 = arith.constant 0 : index
    %33 = vector.load %arg3[%c6, %c0_17] : memref<27x512xf32, #tpu.memory_space<vmem>>, vector<1x512xf32>
    %34 = vector.broadcast %33 : vector<1x512xf32> to vector<8x512xf32>
    %35 = arith.mulf %32, %34 : vector<8x512xf32>
    %c48 = arith.constant 48 : index
    %c0_18 = arith.constant 0 : index
    %36 = vector.load %arg9[%c48, %c0_18] : memref<216x512xf32, #tpu.memory_space<vmem>>, vector<8x512xf32>
    tpu.vector_store %arg9[%c48, %c0_18], %35 {strides = array<i32>} : memref<216x512xf32, #tpu.memory_space<vmem>>, vector<8x512xf32>,
    %c56_i32 = arith.constant 56 : i32
    %37 = tpu.dynamic_rotate %1 by %c56_i32 dim 1 : vector<8x512xf32>, i32 -> vector<8x512xf32>
    %c7 = arith.constant 7 : index
    %c0_19 = arith.constant 0 : index
    %38 = vector.load %arg3[%c7, %c0_19] : memref<27x512xf32, #tpu.memory_space<vmem>>, vector<1x512xf32>
    %39 = vector.broadcast %38 : vector<1x512xf32> to vector<8x512xf32>
    %40 = arith.mulf %37, %39 : vector<8x512xf32>
    %c56 = arith.constant 56 : index
    %c0_20 = arith.constant 0 : index
    %41 = vector.load %arg9[%c56, %c0_20] : memref<216x512xf32, #tpu.memory_space<vmem>>, vector<8x512xf32>
    tpu.vector_store %arg9[%c56, %c0_20], %40 {strides = array<i32>} : memref<216x512xf32, #tpu.memory_space<vmem>>, vector<8x512xf32>,
    %c55_i32 = arith.constant 55 : i32
    %42 = tpu.dynamic_rotate %1 by %c55_i32 dim 1 : vector<8x512xf32>, i32 -> vector<8x512xf32>
    %c8_21 = arith.constant 8 : index
    %c0_22 = arith.constant 0 : index
    %43 = vector.load %arg3[%c8_21, %c0_22] : memref<27x512xf32, #tpu.memory_space<vmem>>, vector<1x512xf32>
    %44 = vector.broadcast %43 : vector<1x512xf32> to vector<8x512xf32>
    %45 = arith.mulf %42, %44 : vector<8x512xf32>
    %c64 = arith.constant 64 : index
    %c0_23 = arith.constant 0 : index
    %46 = vector.load %arg9[%c64, %c0_23] : memref<216x512xf32, #tpu.memory_space<vmem>>, vector<8x512xf32>
    tpu.vector_store %arg9[%c64, %c0_23], %45 {strides = array<i32>} : memref<216x512xf32, #tpu.memory_space<vmem>>, vector<8x512xf32>,
    %c9_i32 = arith.constant 9 : i32
    %47 = tpu.dynamic_rotate %1 by %c9_i32 dim 1 : vector<8x512xf32>, i32 -> vector<8x512xf32>
    %c9 = arith.constant 9 : index
    %c0_24 = arith.constant 0 : index
    %48 = vector.load %arg3[%c9, %c0_24] : memref<27x512xf32, #tpu.memory_space<vmem>>, vector<1x512xf32>
    %49 = vector.broadcast %48 : vector<1x512xf32> to vector<8x512xf32>
    %50 = arith.mulf %47, %49 : vector<8x512xf32>
    %c72 = arith.constant 72 : index
    %c0_25 = arith.constant 0 : index
    %51 = vector.load %arg9[%c72, %c0_25] : memref<216x512xf32, #tpu.memory_space<vmem>>, vector<8x512xf32>
    tpu.vector_store %arg9[%c72, %c0_25], %50 {strides = array<i32>} : memref<216x512xf32, #tpu.memory_space<vmem>>, vector<8x512xf32>,
    %c8_i32 = arith.constant 8 : i32
    %52 = tpu.dynamic_rotate %1 by %c8_i32 dim 1 : vector<8x512xf32>, i32 -> vector<8x512xf32>
    %c10 = arith.constant 10 : index
    %c0_26 = arith.constant 0 : index
    %53 = vector.load %arg3[%c10, %c0_26] : memref<27x512xf32, #tpu.memory_space<vmem>>, vector<1x512xf32>
    %54 = vector.broadcast %53 : vector<1x512xf32> to vector<8x512xf32>
    %55 = arith.mulf %52, %54 : vector<8x512xf32>
    %c80 = arith.constant 80 : index
    %c0_27 = arith.constant 0 : index
    %56 = vector.load %arg9[%c80, %c0_27] : memref<216x512xf32, #tpu.memory_space<vmem>>, vector<8x512xf32>
    tpu.vector_store %arg9[%c80, %c0_27], %55 {strides = array<i32>} : memref<216x512xf32, #tpu.memory_space<vmem>>, vector<8x512xf32>,
    %c7_i32 = arith.constant 7 : i32
    %57 = tpu.dynamic_rotate %1 by %c7_i32 dim 1 : vector<8x512xf32>, i32 -> vector<8x512xf32>
    %c11 = arith.constant 11 : index
    %c0_28 = arith.constant 0 : index
    %58 = vector.load %arg3[%c11, %c0_28] : memref<27x512xf32, #tpu.memory_space<vmem>>, vector<1x512xf32>
    %59 = vector.broadcast %58 : vector<1x512xf32> to vector<8x512xf32>
    %60 = arith.mulf %57, %59 : vector<8x512xf32>
    %c88 = arith.constant 88 : index
    %c0_29 = arith.constant 0 : index
    %61 = vector.load %arg9[%c88, %c0_29] : memref<216x512xf32, #tpu.memory_space<vmem>>, vector<8x512xf32>
    tpu.vector_store %arg9[%c88, %c0_29], %60 {strides = array<i32>} : memref<216x512xf32, #tpu.memory_space<vmem>>, vector<8x512xf32>,
    %c1_i32 = arith.constant 1 : i32
    %62 = tpu.dynamic_rotate %1 by %c1_i32 dim 1 : vector<8x512xf32>, i32 -> vector<8x512xf32>
    %c12 = arith.constant 12 : index
    %c0_30 = arith.constant 0 : index
    %63 = vector.load %arg3[%c12, %c0_30] : memref<27x512xf32, #tpu.memory_space<vmem>>, vector<1x512xf32>
    %64 = vector.broadcast %63 : vector<1x512xf32> to vector<8x512xf32>
    %65 = arith.mulf %62, %64 : vector<8x512xf32>
    %c96 = arith.constant 96 : index
    %c0_31 = arith.constant 0 : index
    %66 = vector.load %arg9[%c96, %c0_31] : memref<216x512xf32, #tpu.memory_space<vmem>>, vector<8x512xf32>
    tpu.vector_store %arg9[%c96, %c0_31], %65 {strides = array<i32>} : memref<216x512xf32, #tpu.memory_space<vmem>>, vector<8x512xf32>,
    %c104 = arith.constant 104 : index
    %c0_32 = arith.constant 0 : index
    %67 = vector.load %arg9[%c104, %c0_32] : memref<216x512xf32, #tpu.memory_space<vmem>>, vector<8x512xf32>
    tpu.vector_store %arg9[%c104, %c0_32], %1 {strides = array<i32>} : memref<216x512xf32, #tpu.memory_space<vmem>>, vector<8x512xf32>,
    %c511_i32 = arith.constant 511 : i32
    %68 = tpu.dynamic_rotate %1 by %c511_i32 dim 1 : vector<8x512xf32>, i32 -> vector<8x512xf32>
    %c14 = arith.constant 14 : index
    %c0_33 = arith.constant 0 : index
    %69 = vector.load %arg3[%c14, %c0_33] : memref<27x512xf32, #tpu.memory_space<vmem>>, vector<1x512xf32>
    %70 = vector.broadcast %69 : vector<1x512xf32> to vector<8x512xf32>
    %71 = arith.mulf %68, %70 : vector<8x512xf32>
    %c112 = arith.constant 112 : index
    %c0_34 = arith.constant 0 : index
    %72 = vector.load %arg9[%c112, %c0_34] : memref<216x512xf32, #tpu.memory_space<vmem>>, vector<8x512xf32>
    tpu.vector_store %arg9[%c112, %c0_34], %71 {strides = array<i32>} : memref<216x512xf32, #tpu.memory_space<vmem>>, vector<8x512xf32>,
    %c505_i32 = arith.constant 505 : i32
    %73 = tpu.dynamic_rotate %1 by %c505_i32 dim 1 : vector<8x512xf32>, i32 -> vector<8x512xf32>
    %c15 = arith.constant 15 : index
    %c0_35 = arith.constant 0 : index
    %74 = vector.load %arg3[%c15, %c0_35] : memref<27x512xf32, #tpu.memory_space<vmem>>, vector<1x512xf32>
    %75 = vector.broadcast %74 : vector<1x512xf32> to vector<8x512xf32>
    %76 = arith.mulf %73, %75 : vector<8x512xf32>
    %c120 = arith.constant 120 : index
    %c0_36 = arith.constant 0 : index
    %77 = vector.load %arg9[%c120, %c0_36] : memref<216x512xf32, #tpu.memory_space<vmem>>, vector<8x512xf32>
    tpu.vector_store %arg9[%c120, %c0_36], %76 {strides = array<i32>} : memref<216x512xf32, #tpu.memory_space<vmem>>, vector<8x512xf32>,
    %c504_i32 = arith.constant 504 : i32
    %78 = tpu.dynamic_rotate %1 by %c504_i32 dim 1 : vector<8x512xf32>, i32 -> vector<8x512xf32>
    %c16_37 = arith.constant 16 : index
    %c0_38 = arith.constant 0 : index
    %79 = vector.load %arg3[%c16_37, %c0_38] : memref<27x512xf32, #tpu.memory_space<vmem>>, vector<1x512xf32>
    %80 = vector.broadcast %79 : vector<1x512xf32> to vector<8x512xf32>
    %81 = arith.mulf %78, %80 : vector<8x512xf32>
    %c128 = arith.constant 128 : index
    %c0_39 = arith.constant 0 : index
    %82 = vector.load %arg9[%c128, %c0_39] : memref<216x512xf32, #tpu.memory_space<vmem>>, vector<8x512xf32>
    tpu.vector_store %arg9[%c128, %c0_39], %81 {strides = array<i32>} : memref<216x512xf32, #tpu.memory_space<vmem>>, vector<8x512xf32>,
    %c503_i32 = arith.constant 503 : i32
    %83 = tpu.dynamic_rotate %1 by %c503_i32 dim 1 : vector<8x512xf32>, i32 -> vector<8x512xf32>
    %c17 = arith.constant 17 : index
    %c0_40 = arith.constant 0 : index
    %84 = vector.load %arg3[%c17, %c0_40] : memref<27x512xf32, #tpu.memory_space<vmem>>, vector<1x512xf32>
    %85 = vector.broadcast %84 : vector<1x512xf32> to vector<8x512xf32>
    %86 = arith.mulf %83, %85 : vector<8x512xf32>
    %c136 = arith.constant 136 : index
    %c0_41 = arith.constant 0 : index
    %87 = vector.load %arg9[%c136, %c0_41] : memref<216x512xf32, #tpu.memory_space<vmem>>, vector<8x512xf32>
    tpu.vector_store %arg9[%c136, %c0_41], %86 {strides = array<i32>} : memref<216x512xf32, #tpu.memory_space<vmem>>, vector<8x512xf32>,
    %c457_i32 = arith.constant 457 : i32
    %88 = tpu.dynamic_rotate %1 by %c457_i32 dim 1 : vector<8x512xf32>, i32 -> vector<8x512xf32>
    %c18 = arith.constant 18 : index
    %c0_42 = arith.constant 0 : index
    %89 = vector.load %arg3[%c18, %c0_42] : memref<27x512xf32, #tpu.memory_space<vmem>>, vector<1x512xf32>
    %90 = vector.broadcast %89 : vector<1x512xf32> to vector<8x512xf32>
    %91 = arith.mulf %88, %90 : vector<8x512xf32>
    %c144 = arith.constant 144 : index
    %c0_43 = arith.constant 0 : index
    %92 = vector.load %arg9[%c144, %c0_43] : memref<216x512xf32, #tpu.memory_space<vmem>>, vector<8x512xf32>
    tpu.vector_store %arg9[%c144, %c0_43], %91 {strides = array<i32>} : memref<216x512xf32, #tpu.memory_space<vmem>>, vector<8x512xf32>,
    %c456_i32 = arith.constant 456 : i32
    %93 = tpu.dynamic_rotate %1 by %c456_i32 dim 1 : vector<8x512xf32>, i32 -> vector<8x512xf32>
    %c19 = arith.constant 19 : index
    %c0_44 = arith.constant 0 : index
    %94 = vector.load %arg3[%c19, %c0_44] : memref<27x512xf32, #tpu.memory_space<vmem>>, vector<1x512xf32>
    %95 = vector.broadcast %94 : vector<1x512xf32> to vector<8x512xf32>
    %96 = arith.mulf %93, %95 : vector<8x512xf32>
    %c152 = arith.constant 152 : index
    %c0_45 = arith.constant 0 : index
    %97 = vector.load %arg9[%c152, %c0_45] : memref<216x512xf32, #tpu.memory_space<vmem>>, vector<8x512xf32>
    tpu.vector_store %arg9[%c152, %c0_45], %96 {strides = array<i32>} : memref<216x512xf32, #tpu.memory_space<vmem>>, vector<8x512xf32>,
    %c455_i32 = arith.constant 455 : i32
    %98 = tpu.dynamic_rotate %1 by %c455_i32 dim 1 : vector<8x512xf32>, i32 -> vector<8x512xf32>
    %c20 = arith.constant 20 : index
    %c0_46 = arith.constant 0 : index
    %99 = vector.load %arg3[%c20, %c0_46] : memref<27x512xf32, #tpu.memory_space<vmem>>, vector<1x512xf32>
    %100 = vector.broadcast %99 : vector<1x512xf32> to vector<8x512xf32>
    %101 = arith.mulf %98, %100 : vector<8x512xf32>
    %c160 = arith.constant 160 : index
    %c0_47 = arith.constant 0 : index
    %102 = vector.load %arg9[%c160, %c0_47] : memref<216x512xf32, #tpu.memory_space<vmem>>, vector<8x512xf32>
    tpu.vector_store %arg9[%c160, %c0_47], %101 {strides = array<i32>} : memref<216x512xf32, #tpu.memory_space<vmem>>, vector<8x512xf32>,
    %c449_i32 = arith.constant 449 : i32
    %103 = tpu.dynamic_rotate %1 by %c449_i32 dim 1 : vector<8x512xf32>, i32 -> vector<8x512xf32>
    %c21 = arith.constant 21 : index
    %c0_48 = arith.constant 0 : index
    %104 = vector.load %arg3[%c21, %c0_48] : memref<27x512xf32, #tpu.memory_space<vmem>>, vector<1x512xf32>
    %105 = vector.broadcast %104 : vector<1x512xf32> to vector<8x512xf32>
    %106 = arith.mulf %103, %105 : vector<8x512xf32>
    %c168 = arith.constant 168 : index
    %c0_49 = arith.constant 0 : index
    %107 = vector.load %arg9[%c168, %c0_49] : memref<216x512xf32, #tpu.memory_space<vmem>>, vector<8x512xf32>
    tpu.vector_store %arg9[%c168, %c0_49], %106 {strides = array<i32>} : memref<216x512xf32, #tpu.memory_space<vmem>>, vector<8x512xf32>,
    %c448_i32 = arith.constant 448 : i32
    %108 = tpu.dynamic_rotate %1 by %c448_i32 dim 1 : vector<8x512xf32>, i32 -> vector<8x512xf32>
    %c22 = arith.constant 22 : index
    %c0_50 = arith.constant 0 : index
    %109 = vector.load %arg3[%c22, %c0_50] : memref<27x512xf32, #tpu.memory_space<vmem>>, vector<1x512xf32>
    %110 = vector.broadcast %109 : vector<1x512xf32> to vector<8x512xf32>
    %111 = arith.mulf %108, %110 : vector<8x512xf32>
    %c176 = arith.constant 176 : index
    %c0_51 = arith.constant 0 : index
    %112 = vector.load %arg9[%c176, %c0_51] : memref<216x512xf32, #tpu.memory_space<vmem>>, vector<8x512xf32>
    tpu.vector_store %arg9[%c176, %c0_51], %111 {strides = array<i32>} : memref<216x512xf32, #tpu.memory_space<vmem>>, vector<8x512xf32>,
    %c447_i32 = arith.constant 447 : i32
    %113 = tpu.dynamic_rotate %1 by %c447_i32 dim 1 : vector<8x512xf32>, i32 -> vector<8x512xf32>
    %c23 = arith.constant 23 : index
    %c0_52 = arith.constant 0 : index
    %114 = vector.load %arg3[%c23, %c0_52] : memref<27x512xf32, #tpu.memory_space<vmem>>, vector<1x512xf32>
    %115 = vector.broadcast %114 : vector<1x512xf32> to vector<8x512xf32>
    %116 = arith.mulf %113, %115 : vector<8x512xf32>
    %c184 = arith.constant 184 : index
    %c0_53 = arith.constant 0 : index
    %117 = vector.load %arg9[%c184, %c0_53] : memref<216x512xf32, #tpu.memory_space<vmem>>, vector<8x512xf32>
    tpu.vector_store %arg9[%c184, %c0_53], %116 {strides = array<i32>} : memref<216x512xf32, #tpu.memory_space<vmem>>, vector<8x512xf32>,
    %c441_i32 = arith.constant 441 : i32
    %118 = tpu.dynamic_rotate %1 by %c441_i32 dim 1 : vector<8x512xf32>, i32 -> vector<8x512xf32>
    %c24_54 = arith.constant 24 : index
    %c0_55 = arith.constant 0 : index
    %119 = vector.load %arg3[%c24_54, %c0_55] : memref<27x512xf32, #tpu.memory_space<vmem>>, vector<1x512xf32>
    %120 = vector.broadcast %119 : vector<1x512xf32> to vector<8x512xf32>
    %121 = arith.mulf %118, %120 : vector<8x512xf32>
    %c192 = arith.constant 192 : index
    %c0_56 = arith.constant 0 : index
    %122 = vector.load %arg9[%c192, %c0_56] : memref<216x512xf32, #tpu.memory_space<vmem>>, vector<8x512xf32>
    tpu.vector_store %arg9[%c192, %c0_56], %121 {strides = array<i32>} : memref<216x512xf32, #tpu.memory_space<vmem>>, vector<8x512xf32>,
    %c440_i32 = arith.constant 440 : i32
    %123 = tpu.dynamic_rotate %1 by %c440_i32 dim 1 : vector<8x512xf32>, i32 -> vector<8x512xf32>
    %c25 = arith.constant 25 : index
    %c0_57 = arith.constant 0 : index
    %124 = vector.load %arg3[%c25, %c0_57] : memref<27x512xf32, #tpu.memory_space<vmem>>, vector<1x512xf32>
    %125 = vector.broadcast %124 : vector<1x512xf32> to vector<8x512xf32>
    %126 = arith.mulf %123, %125 : vector<8x512xf32>
    %c200 = arith.constant 200 : index
    %c0_58 = arith.constant 0 : index
    %127 = vector.load %arg9[%c200, %c0_58] : memref<216x512xf32, #tpu.memory_space<vmem>>, vector<8x512xf32>
    tpu.vector_store %arg9[%c200, %c0_58], %126 {strides = array<i32>} : memref<216x512xf32, #tpu.memory_space<vmem>>, vector<8x512xf32>,
    %c439_i32 = arith.constant 439 : i32
    %128 = tpu.dynamic_rotate %1 by %c439_i32 dim 1 : vector<8x512xf32>, i32 -> vector<8x512xf32>
    %c26 = arith.constant 26 : index
    %c0_59 = arith.constant 0 : index
    %129 = vector.load %arg3[%c26, %c0_59] : memref<27x512xf32, #tpu.memory_space<vmem>>, vector<1x512xf32>
    %130 = vector.broadcast %129 : vector<1x512xf32> to vector<8x512xf32>
    %131 = arith.mulf %128, %130 : vector<8x512xf32>
    %c208 = arith.constant 208 : index
    %c0_60 = arith.constant 0 : index
    %132 = vector.load %arg9[%c208, %c0_60] : memref<216x512xf32, #tpu.memory_space<vmem>>, vector<8x512xf32>
    tpu.vector_store %arg9[%c208, %c0_60], %131 {strides = array<i32>} : memref<216x512xf32, #tpu.memory_space<vmem>>, vector<8x512xf32>,
    %c0_61 = arith.constant 0 : index
    %c0_62 = arith.constant 0 : index
    %133 = vector.load %arg9[%c0_61, %c0_62] : memref<216x512xf32, #tpu.memory_space<vmem>>, vector<216x512xf32>
    %134 = arith.truncf %133 : vector<216x512xf32> to vector<216x512xbf16>
    %c0_63 = arith.constant 0 : index
    %c0_64 = arith.constant 0 : index
    %135 = vector.load %arg4[%c0_63, %c0_64] : memref<24x216xbf16, #tpu.memory_space<vmem>>, vector<24x216xbf16>
    %cst = arith.constant dense<0.000000e+00> : vector<24x512xf32>
    %136 = tpu.matmul %135, %134, %cst {dimension_numbers = #tpu.dot_dimension_numbers<[1], [0], [0], [1], [0, 0, 1, 1], [], []>} : vector<24x216xbf16>, vector<216x512xbf16>, vector<24x512xf32> -> vector<24x512xf32>
    %c0_65 = arith.constant 0 : index
    %c0_66 = arith.constant 0 : index
    %137 = vector.load %arg5[%c0_65, %c0_66] : memref<24x1xf32, #tpu.memory_space<vmem>>, vector<24x1xf32>
    %138 = vector.broadcast %137 : vector<24x1xf32> to vector<24x512xf32>
    %139 = arith.addf %136, %138 : vector<24x512xf32>
    %140 = math.tanh %139 : vector<24x512xf32>
    %c0_67 = arith.constant 0 : index
    %c0_68 = arith.constant 0 : index
    %141 = vector.load %arg6[%c0_67, %c0_68] : memref<24x24xbf16, #tpu.memory_space<vmem>>, vector<24x24xbf16>
    %142 = arith.truncf %140 : vector<24x512xf32> to vector<24x512xbf16>
    %cst_69 = arith.constant dense<0.000000e+00> : vector<24x512xf32>
    %143 = tpu.matmul %141, %142, %cst_69 {dimension_numbers = #tpu.dot_dimension_numbers<[1], [0], [0], [1], [0, 0, 1, 1], [], []>} : vector<24x24xbf16>, vector<24x512xbf16>, vector<24x512xf32> -> vector<24x512xf32>
    %c0_70 = arith.constant 0 : index
    %c0_71 = arith.constant 0 : index
    %144 = vector.load %arg7[%c0_70, %c0_71] : memref<24x1xf32, #tpu.memory_space<vmem>>, vector<24x1xf32>
    %145 = vector.broadcast %144 : vector<24x1xf32> to vector<24x512xf32>
    %146 = arith.addf %143, %145 : vector<24x512xf32>
    %c0_72 = arith.constant 0 : index
    %c0_73 = arith.constant 0 : index
    %c0_74 = arith.constant 0 : index
    %c0_75 = arith.constant 0 : index
    %147 = vector.load %arg8[%c0_72, %c0_73, %c0_74, %c0_75] : memref<1x1x24x512xf32, #tpu.memory_space<vmem>>, vector<1x1x24x512xf32>
    %148 = vector.shape_cast %147 : vector<1x1x24x512xf32> to vector<24x512xf32>
    %149 = vector.shape_cast %146 : vector<24x512xf32> to vector<1x1x24x512xf32>
    tpu.vector_store %arg8[%c0_72, %c0_73, %c0_74, %c0_75], %149 {strides = array<i32>} : memref<1x1x24x512xf32, #tpu.memory_space<vmem>>, vector<1x1x24x512xf32>,
    return
  }
  func.func @transform_0(%arg0: i32, %arg1: i32) -> (i32, i32, i32, i32) {
    %c0_i32 = arith.constant 0 : i32
    %c0_i32_0 = arith.constant 0 : i32
    %c0_i32_1 = arith.constant 0 : i32
    return %arg0, %arg1, %c0_i32, %c0_i32_0 : i32, i32, i32, i32
  }
  func.func @transform_1(%arg0: i32, %arg1: i32) -> (i32, i32) {
    %c0_i32 = arith.constant 0 : i32
    %c0_i32_0 = arith.constant 0 : i32
    %c0_i32_1 = arith.constant 0 : i32
    return %c0_i32, %c0_i32_0 : i32, i32
  }
  func.func @transform_2(%arg0: i32, %arg1: i32) -> (i32, i32) {
    %c0_i32 = arith.constant 0 : i32
    %c0_i32_0 = arith.constant 0 : i32
    %c0_i32_1 = arith.constant 0 : i32
    return %c0_i32, %c0_i32_0 : i32, i32
  }
  func.func @transform_3(%arg0: i32, %arg1: i32) -> (i32, i32) {
    %c0_i32 = arith.constant 0 : i32
    %c0_i32_0 = arith.constant 0 : i32
    %c0_i32_1 = arith.constant 0 : i32
    return %c0_i32, %c0_i32_0 : i32, i32
  }
  func.func @transform_4(%arg0: i32, %arg1: i32) -> (i32, i32) {
    %c0_i32 = arith.constant 0 : i32
    %c0_i32_0 = arith.constant 0 : i32
    %c0_i32_1 = arith.constant 0 : i32
    return %c0_i32, %c0_i32_0 : i32, i32
  }
  func.func @transform_5(%arg0: i32, %arg1: i32) -> (i32, i32) {
    %c0_i32 = arith.constant 0 : i32
    %c0_i32_0 = arith.constant 0 : i32
    %c0_i32_1 = arith.constant 0 : i32
    return %c0_i32, %c0_i32_0 : i32, i32
  }
  func.func @transform_6(%arg0: i32, %arg1: i32) -> (i32, i32, i32, i32) {
    %c0_i32 = arith.constant 0 : i32
    %c0_i32_0 = arith.constant 0 : i32
    %c0_i32_1 = arith.constant 0 : i32
    return %arg0, %arg1, %c0_i32, %c0_i32_0 : i32, i32, i32, i32
  }
}

module attributes {stable_mosaic.version = 11 : i64} {
  func.func @_gru_recurrence_kernel(%arg0: i32, %arg1: i32, %arg2: memref<1x1x24x512xf32, #tpu.memory_space<vmem>>, %arg3: memref<27x512xf32, #tpu.memory_space<vmem>>, %arg4: memref<16x216xbf16, #tpu.memory_space<vmem>>, %arg5: memref<16x1xf32, #tpu.memory_space<vmem>>, %arg6: memref<16x16xbf16, #tpu.memory_space<vmem>>, %arg7: memref<16x1xf32, #tpu.memory_space<vmem>>, %arg8: memref<8x216xbf16, #tpu.memory_space<vmem>>, %arg9: memref<8x1xf32, #tpu.memory_space<vmem>>, %arg10: memref<8x8xbf16, #tpu.memory_space<vmem>>, %arg11: memref<8x1xf32, #tpu.memory_space<vmem>>, %arg12: memref<1x1x8x512xf32, #tpu.memory_space<vmem>>, %arg13: memref<8x512xf32, #tpu.memory_space<vmem>>, %arg14: memref<216x512xf32, #tpu.memory_space<vmem>>) attributes {dimension_semantics = [#tpu.dimension_semantics<parallel>, #tpu.dimension_semantics<arbitrary>], iteration_bounds = array<i64: 2, 3>, scalar_prefetch = 0 : i64, scratch_operands = 2 : i64, tpu.core_type = #tpu.core_type<tc>, window_params = [{transform_indices = @transform_0, window_bounds = array<i64: 1, 1, 24, 512>}, {pipeline_mode = #tpu.pipeline_mode<synchronous>, transform_indices = @transform_1, window_bounds = array<i64: 27, 512>}, {pipeline_mode = #tpu.pipeline_mode<synchronous>, transform_indices = @transform_2, window_bounds = array<i64: 16, 216>}, {pipeline_mode = #tpu.pipeline_mode<synchronous>, transform_indices = @transform_3, window_bounds = array<i64: 16, 1>}, {pipeline_mode = #tpu.pipeline_mode<synchronous>, transform_indices = @transform_4, window_bounds = array<i64: 16, 16>}, {pipeline_mode = #tpu.pipeline_mode<synchronous>, transform_indices = @transform_5, window_bounds = array<i64: 16, 1>}, {pipeline_mode = #tpu.pipeline_mode<synchronous>, transform_indices = @transform_6, window_bounds = array<i64: 8, 216>}, {pipeline_mode = #tpu.pipeline_mode<synchronous>, transform_indices = @transform_7, window_bounds = array<i64: 8, 1>}, {pipeline_mode = #tpu.pipeline_mode<synchronous>, transform_indices = @transform_8, window_bounds = array<i64: 8, 8>}, {pipeline_mode = #tpu.pipeline_mode<synchronous>, transform_indices = @transform_9, window_bounds = array<i64: 8, 1>}, {transform_indices = @transform_10, window_bounds = array<i64: 1, 1, 8, 512>}]} {
    %c0_i32 = arith.constant 0 : i32
    %0 = arith.cmpi eq, %arg1, %c0_i32 : i32
    %1 = arith.extui %0 : i1 to i32
    %c0_i32_0 = arith.constant 0 : i32
    %2 = arith.cmpi ne, %1, %c0_i32_0 : i32
    scf.if %2 {
      %cst_232 = arith.constant 0.000000e+00 : f32
      %329 = vector.broadcast %cst_232 : f32 to vector<8x512xf32>
      %c0_233 = arith.constant 0 : index
      %c0_234 = arith.constant 0 : index
      %330 = vector.load %arg13[%c0_233, %c0_234] : memref<8x512xf32, #tpu.memory_space<vmem>>, vector<8x512xf32>
      tpu.vector_store %arg13[%c0_233, %c0_234], %329 {strides = array<i32>} : memref<8x512xf32, #tpu.memory_space<vmem>>, vector<8x512xf32>,
    } else {
    }
    %c0 = arith.constant 0 : index
    %c0_1 = arith.constant 0 : index
    %3 = vector.load %arg13[%c0, %c0_1] : memref<8x512xf32, #tpu.memory_space<vmem>>, vector<8x512xf32>
    %c0_2 = arith.constant 0 : index
    %c0_3 = arith.constant 0 : index
    %c0_4 = arith.constant 0 : index
    %c0_5 = arith.constant 0 : index
    %4 = vector.load %arg2[%c0_2, %c0_3, %c0_4, %c0_5] : memref<1x1x24x512xf32, #tpu.memory_space<vmem>>, vector<1x1x24x512xf32>
    %5 = vector.shape_cast %4 : vector<1x1x24x512xf32> to vector<24x512xf32>
    %c73_i32 = arith.constant 73 : i32
    %6 = tpu.dynamic_rotate %3 by %c73_i32 dim 1 : vector<8x512xf32>, i32 -> vector<8x512xf32>
    %c0_6 = arith.constant 0 : index
    %c0_7 = arith.constant 0 : index
    %7 = vector.load %arg3[%c0_6, %c0_7] : memref<27x512xf32, #tpu.memory_space<vmem>>, vector<1x512xf32>
    %8 = vector.broadcast %7 : vector<1x512xf32> to vector<8x512xf32>
    %9 = arith.mulf %6, %8 : vector<8x512xf32>
    %c0_8 = arith.constant 0 : index
    %c0_9 = arith.constant 0 : index
    %10 = vector.load %arg14[%c0_8, %c0_9] : memref<216x512xf32, #tpu.memory_space<vmem>>, vector<8x512xf32>
    tpu.vector_store %arg14[%c0_8, %c0_9], %9 {strides = array<i32>} : memref<216x512xf32, #tpu.memory_space<vmem>>, vector<8x512xf32>,
    %c72_i32 = arith.constant 72 : i32
    %11 = tpu.dynamic_rotate %3 by %c72_i32 dim 1 : vector<8x512xf32>, i32 -> vector<8x512xf32>
    %c1 = arith.constant 1 : index
    %c0_10 = arith.constant 0 : index
    %12 = vector.load %arg3[%c1, %c0_10] : memref<27x512xf32, #tpu.memory_space<vmem>>, vector<1x512xf32>
    %13 = vector.broadcast %12 : vector<1x512xf32> to vector<8x512xf32>
    %14 = arith.mulf %11, %13 : vector<8x512xf32>
    %c8 = arith.constant 8 : index
    %c0_11 = arith.constant 0 : index
    %15 = vector.load %arg14[%c8, %c0_11] : memref<216x512xf32, #tpu.memory_space<vmem>>, vector<8x512xf32>
    tpu.vector_store %arg14[%c8, %c0_11], %14 {strides = array<i32>} : memref<216x512xf32, #tpu.memory_space<vmem>>, vector<8x512xf32>,
    %c71_i32 = arith.constant 71 : i32
    %16 = tpu.dynamic_rotate %3 by %c71_i32 dim 1 : vector<8x512xf32>, i32 -> vector<8x512xf32>
    %c2 = arith.constant 2 : index
    %c0_12 = arith.constant 0 : index
    %17 = vector.load %arg3[%c2, %c0_12] : memref<27x512xf32, #tpu.memory_space<vmem>>, vector<1x512xf32>
    %18 = vector.broadcast %17 : vector<1x512xf32> to vector<8x512xf32>
    %19 = arith.mulf %16, %18 : vector<8x512xf32>
    %c16 = arith.constant 16 : index
    %c0_13 = arith.constant 0 : index
    %20 = vector.load %arg14[%c16, %c0_13] : memref<216x512xf32, #tpu.memory_space<vmem>>, vector<8x512xf32>
    tpu.vector_store %arg14[%c16, %c0_13], %19 {strides = array<i32>} : memref<216x512xf32, #tpu.memory_space<vmem>>, vector<8x512xf32>,
    %c65_i32 = arith.constant 65 : i32
    %21 = tpu.dynamic_rotate %3 by %c65_i32 dim 1 : vector<8x512xf32>, i32 -> vector<8x512xf32>
    %c3 = arith.constant 3 : index
    %c0_14 = arith.constant 0 : index
    %22 = vector.load %arg3[%c3, %c0_14] : memref<27x512xf32, #tpu.memory_space<vmem>>, vector<1x512xf32>
    %23 = vector.broadcast %22 : vector<1x512xf32> to vector<8x512xf32>
    %24 = arith.mulf %21, %23 : vector<8x512xf32>
    %c24 = arith.constant 24 : index
    %c0_15 = arith.constant 0 : index
    %25 = vector.load %arg14[%c24, %c0_15] : memref<216x512xf32, #tpu.memory_space<vmem>>, vector<8x512xf32>
    tpu.vector_store %arg14[%c24, %c0_15], %24 {strides = array<i32>} : memref<216x512xf32, #tpu.memory_space<vmem>>, vector<8x512xf32>,
    %c64_i32 = arith.constant 64 : i32
    %26 = tpu.dynamic_rotate %3 by %c64_i32 dim 1 : vector<8x512xf32>, i32 -> vector<8x512xf32>
    %c4 = arith.constant 4 : index
    %c0_16 = arith.constant 0 : index
    %27 = vector.load %arg3[%c4, %c0_16] : memref<27x512xf32, #tpu.memory_space<vmem>>, vector<1x512xf32>
    %28 = vector.broadcast %27 : vector<1x512xf32> to vector<8x512xf32>
    %29 = arith.mulf %26, %28 : vector<8x512xf32>
    %c32 = arith.constant 32 : index
    %c0_17 = arith.constant 0 : index
    %30 = vector.load %arg14[%c32, %c0_17] : memref<216x512xf32, #tpu.memory_space<vmem>>, vector<8x512xf32>
    tpu.vector_store %arg14[%c32, %c0_17], %29 {strides = array<i32>} : memref<216x512xf32, #tpu.memory_space<vmem>>, vector<8x512xf32>,
    %c63_i32 = arith.constant 63 : i32
    %31 = tpu.dynamic_rotate %3 by %c63_i32 dim 1 : vector<8x512xf32>, i32 -> vector<8x512xf32>
    %c5 = arith.constant 5 : index
    %c0_18 = arith.constant 0 : index
    %32 = vector.load %arg3[%c5, %c0_18] : memref<27x512xf32, #tpu.memory_space<vmem>>, vector<1x512xf32>
    %33 = vector.broadcast %32 : vector<1x512xf32> to vector<8x512xf32>
    %34 = arith.mulf %31, %33 : vector<8x512xf32>
    %c40 = arith.constant 40 : index
    %c0_19 = arith.constant 0 : index
    %35 = vector.load %arg14[%c40, %c0_19] : memref<216x512xf32, #tpu.memory_space<vmem>>, vector<8x512xf32>
    tpu.vector_store %arg14[%c40, %c0_19], %34 {strides = array<i32>} : memref<216x512xf32, #tpu.memory_space<vmem>>, vector<8x512xf32>,
    %c57_i32 = arith.constant 57 : i32
    %36 = tpu.dynamic_rotate %3 by %c57_i32 dim 1 : vector<8x512xf32>, i32 -> vector<8x512xf32>
    %c6 = arith.constant 6 : index
    %c0_20 = arith.constant 0 : index
    %37 = vector.load %arg3[%c6, %c0_20] : memref<27x512xf32, #tpu.memory_space<vmem>>, vector<1x512xf32>
    %38 = vector.broadcast %37 : vector<1x512xf32> to vector<8x512xf32>
    %39 = arith.mulf %36, %38 : vector<8x512xf32>
    %c48 = arith.constant 48 : index
    %c0_21 = arith.constant 0 : index
    %40 = vector.load %arg14[%c48, %c0_21] : memref<216x512xf32, #tpu.memory_space<vmem>>, vector<8x512xf32>
    tpu.vector_store %arg14[%c48, %c0_21], %39 {strides = array<i32>} : memref<216x512xf32, #tpu.memory_space<vmem>>, vector<8x512xf32>,
    %c56_i32 = arith.constant 56 : i32
    %41 = tpu.dynamic_rotate %3 by %c56_i32 dim 1 : vector<8x512xf32>, i32 -> vector<8x512xf32>
    %c7 = arith.constant 7 : index
    %c0_22 = arith.constant 0 : index
    %42 = vector.load %arg3[%c7, %c0_22] : memref<27x512xf32, #tpu.memory_space<vmem>>, vector<1x512xf32>
    %43 = vector.broadcast %42 : vector<1x512xf32> to vector<8x512xf32>
    %44 = arith.mulf %41, %43 : vector<8x512xf32>
    %c56 = arith.constant 56 : index
    %c0_23 = arith.constant 0 : index
    %45 = vector.load %arg14[%c56, %c0_23] : memref<216x512xf32, #tpu.memory_space<vmem>>, vector<8x512xf32>
    tpu.vector_store %arg14[%c56, %c0_23], %44 {strides = array<i32>} : memref<216x512xf32, #tpu.memory_space<vmem>>, vector<8x512xf32>,
    %c55_i32 = arith.constant 55 : i32
    %46 = tpu.dynamic_rotate %3 by %c55_i32 dim 1 : vector<8x512xf32>, i32 -> vector<8x512xf32>
    %c8_24 = arith.constant 8 : index
    %c0_25 = arith.constant 0 : index
    %47 = vector.load %arg3[%c8_24, %c0_25] : memref<27x512xf32, #tpu.memory_space<vmem>>, vector<1x512xf32>
    %48 = vector.broadcast %47 : vector<1x512xf32> to vector<8x512xf32>
    %49 = arith.mulf %46, %48 : vector<8x512xf32>
    %c64 = arith.constant 64 : index
    %c0_26 = arith.constant 0 : index
    %50 = vector.load %arg14[%c64, %c0_26] : memref<216x512xf32, #tpu.memory_space<vmem>>, vector<8x512xf32>
    tpu.vector_store %arg14[%c64, %c0_26], %49 {strides = array<i32>} : memref<216x512xf32, #tpu.memory_space<vmem>>, vector<8x512xf32>,
    %c9_i32 = arith.constant 9 : i32
    %51 = tpu.dynamic_rotate %3 by %c9_i32 dim 1 : vector<8x512xf32>, i32 -> vector<8x512xf32>
    %c9 = arith.constant 9 : index
    %c0_27 = arith.constant 0 : index
    %52 = vector.load %arg3[%c9, %c0_27] : memref<27x512xf32, #tpu.memory_space<vmem>>, vector<1x512xf32>
    %53 = vector.broadcast %52 : vector<1x512xf32> to vector<8x512xf32>
    %54 = arith.mulf %51, %53 : vector<8x512xf32>
    %c72 = arith.constant 72 : index
    %c0_28 = arith.constant 0 : index
    %55 = vector.load %arg14[%c72, %c0_28] : memref<216x512xf32, #tpu.memory_space<vmem>>, vector<8x512xf32>
    tpu.vector_store %arg14[%c72, %c0_28], %54 {strides = array<i32>} : memref<216x512xf32, #tpu.memory_space<vmem>>, vector<8x512xf32>,
    %c8_i32 = arith.constant 8 : i32
    %56 = tpu.dynamic_rotate %3 by %c8_i32 dim 1 : vector<8x512xf32>, i32 -> vector<8x512xf32>
    %c10 = arith.constant 10 : index
    %c0_29 = arith.constant 0 : index
    %57 = vector.load %arg3[%c10, %c0_29] : memref<27x512xf32, #tpu.memory_space<vmem>>, vector<1x512xf32>
    %58 = vector.broadcast %57 : vector<1x512xf32> to vector<8x512xf32>
    %59 = arith.mulf %56, %58 : vector<8x512xf32>
    %c80 = arith.constant 80 : index
    %c0_30 = arith.constant 0 : index
    %60 = vector.load %arg14[%c80, %c0_30] : memref<216x512xf32, #tpu.memory_space<vmem>>, vector<8x512xf32>
    tpu.vector_store %arg14[%c80, %c0_30], %59 {strides = array<i32>} : memref<216x512xf32, #tpu.memory_space<vmem>>, vector<8x512xf32>,
    %c7_i32 = arith.constant 7 : i32
    %61 = tpu.dynamic_rotate %3 by %c7_i32 dim 1 : vector<8x512xf32>, i32 -> vector<8x512xf32>
    %c11 = arith.constant 11 : index
    %c0_31 = arith.constant 0 : index
    %62 = vector.load %arg3[%c11, %c0_31] : memref<27x512xf32, #tpu.memory_space<vmem>>, vector<1x512xf32>
    %63 = vector.broadcast %62 : vector<1x512xf32> to vector<8x512xf32>
    %64 = arith.mulf %61, %63 : vector<8x512xf32>
    %c88 = arith.constant 88 : index
    %c0_32 = arith.constant 0 : index
    %65 = vector.load %arg14[%c88, %c0_32] : memref<216x512xf32, #tpu.memory_space<vmem>>, vector<8x512xf32>
    tpu.vector_store %arg14[%c88, %c0_32], %64 {strides = array<i32>} : memref<216x512xf32, #tpu.memory_space<vmem>>, vector<8x512xf32>,
    %c1_i32 = arith.constant 1 : i32
    %66 = tpu.dynamic_rotate %3 by %c1_i32 dim 1 : vector<8x512xf32>, i32 -> vector<8x512xf32>
    %c12 = arith.constant 12 : index
    %c0_33 = arith.constant 0 : index
    %67 = vector.load %arg3[%c12, %c0_33] : memref<27x512xf32, #tpu.memory_space<vmem>>, vector<1x512xf32>
    %68 = vector.broadcast %67 : vector<1x512xf32> to vector<8x512xf32>
    %69 = arith.mulf %66, %68 : vector<8x512xf32>
    %c96 = arith.constant 96 : index
    %c0_34 = arith.constant 0 : index
    %70 = vector.load %arg14[%c96, %c0_34] : memref<216x512xf32, #tpu.memory_space<vmem>>, vector<8x512xf32>
    tpu.vector_store %arg14[%c96, %c0_34], %69 {strides = array<i32>} : memref<216x512xf32, #tpu.memory_space<vmem>>, vector<8x512xf32>,
    %c104 = arith.constant 104 : index
    %c0_35 = arith.constant 0 : index
    %71 = vector.load %arg14[%c104, %c0_35] : memref<216x512xf32, #tpu.memory_space<vmem>>, vector<8x512xf32>
    tpu.vector_store %arg14[%c104, %c0_35], %3 {strides = array<i32>} : memref<216x512xf32, #tpu.memory_space<vmem>>, vector<8x512xf32>,
    %c511_i32 = arith.constant 511 : i32
    %72 = tpu.dynamic_rotate %3 by %c511_i32 dim 1 : vector<8x512xf32>, i32 -> vector<8x512xf32>
    %c14 = arith.constant 14 : index
    %c0_36 = arith.constant 0 : index
    %73 = vector.load %arg3[%c14, %c0_36] : memref<27x512xf32, #tpu.memory_space<vmem>>, vector<1x512xf32>
    %74 = vector.broadcast %73 : vector<1x512xf32> to vector<8x512xf32>
    %75 = arith.mulf %72, %74 : vector<8x512xf32>
    %c112 = arith.constant 112 : index
    %c0_37 = arith.constant 0 : index
    %76 = vector.load %arg14[%c112, %c0_37] : memref<216x512xf32, #tpu.memory_space<vmem>>, vector<8x512xf32>
    tpu.vector_store %arg14[%c112, %c0_37], %75 {strides = array<i32>} : memref<216x512xf32, #tpu.memory_space<vmem>>, vector<8x512xf32>,
    %c505_i32 = arith.constant 505 : i32
    %77 = tpu.dynamic_rotate %3 by %c505_i32 dim 1 : vector<8x512xf32>, i32 -> vector<8x512xf32>
    %c15 = arith.constant 15 : index
    %c0_38 = arith.constant 0 : index
    %78 = vector.load %arg3[%c15, %c0_38] : memref<27x512xf32, #tpu.memory_space<vmem>>, vector<1x512xf32>
    %79 = vector.broadcast %78 : vector<1x512xf32> to vector<8x512xf32>
    %80 = arith.mulf %77, %79 : vector<8x512xf32>
    %c120 = arith.constant 120 : index
    %c0_39 = arith.constant 0 : index
    %81 = vector.load %arg14[%c120, %c0_39] : memref<216x512xf32, #tpu.memory_space<vmem>>, vector<8x512xf32>
    tpu.vector_store %arg14[%c120, %c0_39], %80 {strides = array<i32>} : memref<216x512xf32, #tpu.memory_space<vmem>>, vector<8x512xf32>,
    %c504_i32 = arith.constant 504 : i32
    %82 = tpu.dynamic_rotate %3 by %c504_i32 dim 1 : vector<8x512xf32>, i32 -> vector<8x512xf32>
    %c16_40 = arith.constant 16 : index
    %c0_41 = arith.constant 0 : index
    %83 = vector.load %arg3[%c16_40, %c0_41] : memref<27x512xf32, #tpu.memory_space<vmem>>, vector<1x512xf32>
    %84 = vector.broadcast %83 : vector<1x512xf32> to vector<8x512xf32>
    %85 = arith.mulf %82, %84 : vector<8x512xf32>
    %c128 = arith.constant 128 : index
    %c0_42 = arith.constant 0 : index
    %86 = vector.load %arg14[%c128, %c0_42] : memref<216x512xf32, #tpu.memory_space<vmem>>, vector<8x512xf32>
    tpu.vector_store %arg14[%c128, %c0_42], %85 {strides = array<i32>} : memref<216x512xf32, #tpu.memory_space<vmem>>, vector<8x512xf32>,
    %c503_i32 = arith.constant 503 : i32
    %87 = tpu.dynamic_rotate %3 by %c503_i32 dim 1 : vector<8x512xf32>, i32 -> vector<8x512xf32>
    %c17 = arith.constant 17 : index
    %c0_43 = arith.constant 0 : index
    %88 = vector.load %arg3[%c17, %c0_43] : memref<27x512xf32, #tpu.memory_space<vmem>>, vector<1x512xf32>
    %89 = vector.broadcast %88 : vector<1x512xf32> to vector<8x512xf32>
    %90 = arith.mulf %87, %89 : vector<8x512xf32>
    %c136 = arith.constant 136 : index
    %c0_44 = arith.constant 0 : index
    %91 = vector.load %arg14[%c136, %c0_44] : memref<216x512xf32, #tpu.memory_space<vmem>>, vector<8x512xf32>
    tpu.vector_store %arg14[%c136, %c0_44], %90 {strides = array<i32>} : memref<216x512xf32, #tpu.memory_space<vmem>>, vector<8x512xf32>,
    %c457_i32 = arith.constant 457 : i32
    %92 = tpu.dynamic_rotate %3 by %c457_i32 dim 1 : vector<8x512xf32>, i32 -> vector<8x512xf32>
    %c18 = arith.constant 18 : index
    %c0_45 = arith.constant 0 : index
    %93 = vector.load %arg3[%c18, %c0_45] : memref<27x512xf32, #tpu.memory_space<vmem>>, vector<1x512xf32>
    %94 = vector.broadcast %93 : vector<1x512xf32> to vector<8x512xf32>
    %95 = arith.mulf %92, %94 : vector<8x512xf32>
    %c144 = arith.constant 144 : index
    %c0_46 = arith.constant 0 : index
    %96 = vector.load %arg14[%c144, %c0_46] : memref<216x512xf32, #tpu.memory_space<vmem>>, vector<8x512xf32>
    tpu.vector_store %arg14[%c144, %c0_46], %95 {strides = array<i32>} : memref<216x512xf32, #tpu.memory_space<vmem>>, vector<8x512xf32>,
    %c456_i32 = arith.constant 456 : i32
    %97 = tpu.dynamic_rotate %3 by %c456_i32 dim 1 : vector<8x512xf32>, i32 -> vector<8x512xf32>
    %c19 = arith.constant 19 : index
    %c0_47 = arith.constant 0 : index
    %98 = vector.load %arg3[%c19, %c0_47] : memref<27x512xf32, #tpu.memory_space<vmem>>, vector<1x512xf32>
    %99 = vector.broadcast %98 : vector<1x512xf32> to vector<8x512xf32>
    %100 = arith.mulf %97, %99 : vector<8x512xf32>
    %c152 = arith.constant 152 : index
    %c0_48 = arith.constant 0 : index
    %101 = vector.load %arg14[%c152, %c0_48] : memref<216x512xf32, #tpu.memory_space<vmem>>, vector<8x512xf32>
    tpu.vector_store %arg14[%c152, %c0_48], %100 {strides = array<i32>} : memref<216x512xf32, #tpu.memory_space<vmem>>, vector<8x512xf32>,
    %c455_i32 = arith.constant 455 : i32
    %102 = tpu.dynamic_rotate %3 by %c455_i32 dim 1 : vector<8x512xf32>, i32 -> vector<8x512xf32>
    %c20 = arith.constant 20 : index
    %c0_49 = arith.constant 0 : index
    %103 = vector.load %arg3[%c20, %c0_49] : memref<27x512xf32, #tpu.memory_space<vmem>>, vector<1x512xf32>
    %104 = vector.broadcast %103 : vector<1x512xf32> to vector<8x512xf32>
    %105 = arith.mulf %102, %104 : vector<8x512xf32>
    %c160 = arith.constant 160 : index
    %c0_50 = arith.constant 0 : index
    %106 = vector.load %arg14[%c160, %c0_50] : memref<216x512xf32, #tpu.memory_space<vmem>>, vector<8x512xf32>
    tpu.vector_store %arg14[%c160, %c0_50], %105 {strides = array<i32>} : memref<216x512xf32, #tpu.memory_space<vmem>>, vector<8x512xf32>,
    %c449_i32 = arith.constant 449 : i32
    %107 = tpu.dynamic_rotate %3 by %c449_i32 dim 1 : vector<8x512xf32>, i32 -> vector<8x512xf32>
    %c21 = arith.constant 21 : index
    %c0_51 = arith.constant 0 : index
    %108 = vector.load %arg3[%c21, %c0_51] : memref<27x512xf32, #tpu.memory_space<vmem>>, vector<1x512xf32>
    %109 = vector.broadcast %108 : vector<1x512xf32> to vector<8x512xf32>
    %110 = arith.mulf %107, %109 : vector<8x512xf32>
    %c168 = arith.constant 168 : index
    %c0_52 = arith.constant 0 : index
    %111 = vector.load %arg14[%c168, %c0_52] : memref<216x512xf32, #tpu.memory_space<vmem>>, vector<8x512xf32>
    tpu.vector_store %arg14[%c168, %c0_52], %110 {strides = array<i32>} : memref<216x512xf32, #tpu.memory_space<vmem>>, vector<8x512xf32>,
    %c448_i32 = arith.constant 448 : i32
    %112 = tpu.dynamic_rotate %3 by %c448_i32 dim 1 : vector<8x512xf32>, i32 -> vector<8x512xf32>
    %c22 = arith.constant 22 : index
    %c0_53 = arith.constant 0 : index
    %113 = vector.load %arg3[%c22, %c0_53] : memref<27x512xf32, #tpu.memory_space<vmem>>, vector<1x512xf32>
    %114 = vector.broadcast %113 : vector<1x512xf32> to vector<8x512xf32>
    %115 = arith.mulf %112, %114 : vector<8x512xf32>
    %c176 = arith.constant 176 : index
    %c0_54 = arith.constant 0 : index
    %116 = vector.load %arg14[%c176, %c0_54] : memref<216x512xf32, #tpu.memory_space<vmem>>, vector<8x512xf32>
    tpu.vector_store %arg14[%c176, %c0_54], %115 {strides = array<i32>} : memref<216x512xf32, #tpu.memory_space<vmem>>, vector<8x512xf32>,
    %c447_i32 = arith.constant 447 : i32
    %117 = tpu.dynamic_rotate %3 by %c447_i32 dim 1 : vector<8x512xf32>, i32 -> vector<8x512xf32>
    %c23 = arith.constant 23 : index
    %c0_55 = arith.constant 0 : index
    %118 = vector.load %arg3[%c23, %c0_55] : memref<27x512xf32, #tpu.memory_space<vmem>>, vector<1x512xf32>
    %119 = vector.broadcast %118 : vector<1x512xf32> to vector<8x512xf32>
    %120 = arith.mulf %117, %119 : vector<8x512xf32>
    %c184 = arith.constant 184 : index
    %c0_56 = arith.constant 0 : index
    %121 = vector.load %arg14[%c184, %c0_56] : memref<216x512xf32, #tpu.memory_space<vmem>>, vector<8x512xf32>
    tpu.vector_store %arg14[%c184, %c0_56], %120 {strides = array<i32>} : memref<216x512xf32, #tpu.memory_space<vmem>>, vector<8x512xf32>,
    %c441_i32 = arith.constant 441 : i32
    %122 = tpu.dynamic_rotate %3 by %c441_i32 dim 1 : vector<8x512xf32>, i32 -> vector<8x512xf32>
    %c24_57 = arith.constant 24 : index
    %c0_58 = arith.constant 0 : index
    %123 = vector.load %arg3[%c24_57, %c0_58] : memref<27x512xf32, #tpu.memory_space<vmem>>, vector<1x512xf32>
    %124 = vector.broadcast %123 : vector<1x512xf32> to vector<8x512xf32>
    %125 = arith.mulf %122, %124 : vector<8x512xf32>
    %c192 = arith.constant 192 : index
    %c0_59 = arith.constant 0 : index
    %126 = vector.load %arg14[%c192, %c0_59] : memref<216x512xf32, #tpu.memory_space<vmem>>, vector<8x512xf32>
    tpu.vector_store %arg14[%c192, %c0_59], %125 {strides = array<i32>} : memref<216x512xf32, #tpu.memory_space<vmem>>, vector<8x512xf32>,
    %c440_i32 = arith.constant 440 : i32
    %127 = tpu.dynamic_rotate %3 by %c440_i32 dim 1 : vector<8x512xf32>, i32 -> vector<8x512xf32>
    %c25 = arith.constant 25 : index
    %c0_60 = arith.constant 0 : index
    %128 = vector.load %arg3[%c25, %c0_60] : memref<27x512xf32, #tpu.memory_space<vmem>>, vector<1x512xf32>
    %129 = vector.broadcast %128 : vector<1x512xf32> to vector<8x512xf32>
    %130 = arith.mulf %127, %129 : vector<8x512xf32>
    %c200 = arith.constant 200 : index
    %c0_61 = arith.constant 0 : index
    %131 = vector.load %arg14[%c200, %c0_61] : memref<216x512xf32, #tpu.memory_space<vmem>>, vector<8x512xf32>
    tpu.vector_store %arg14[%c200, %c0_61], %130 {strides = array<i32>} : memref<216x512xf32, #tpu.memory_space<vmem>>, vector<8x512xf32>,
    %c439_i32 = arith.constant 439 : i32
    %132 = tpu.dynamic_rotate %3 by %c439_i32 dim 1 : vector<8x512xf32>, i32 -> vector<8x512xf32>
    %c26 = arith.constant 26 : index
    %c0_62 = arith.constant 0 : index
    %133 = vector.load %arg3[%c26, %c0_62] : memref<27x512xf32, #tpu.memory_space<vmem>>, vector<1x512xf32>
    %134 = vector.broadcast %133 : vector<1x512xf32> to vector<8x512xf32>
    %135 = arith.mulf %132, %134 : vector<8x512xf32>
    %c208 = arith.constant 208 : index
    %c0_63 = arith.constant 0 : index
    %136 = vector.load %arg14[%c208, %c0_63] : memref<216x512xf32, #tpu.memory_space<vmem>>, vector<8x512xf32>
    tpu.vector_store %arg14[%c208, %c0_63], %135 {strides = array<i32>} : memref<216x512xf32, #tpu.memory_space<vmem>>, vector<8x512xf32>,
    %c0_64 = arith.constant 0 : index
    %c0_65 = arith.constant 0 : index
    %137 = vector.load %arg14[%c0_64, %c0_65] : memref<216x512xf32, #tpu.memory_space<vmem>>, vector<216x512xf32>
    %138 = arith.truncf %137 : vector<216x512xf32> to vector<216x512xbf16>
    %c0_66 = arith.constant 0 : index
    %c0_67 = arith.constant 0 : index
    %139 = vector.load %arg4[%c0_66, %c0_67] : memref<16x216xbf16, #tpu.memory_space<vmem>>, vector<16x216xbf16>
    %cst = arith.constant dense<0.000000e+00> : vector<16x512xf32>
    %140 = tpu.matmul %139, %138, %cst {dimension_numbers = #tpu.dot_dimension_numbers<[1], [0], [0], [1], [0, 0, 1, 1], [], []>} : vector<16x216xbf16>, vector<216x512xbf16>, vector<16x512xf32> -> vector<16x512xf32>
    %c0_68 = arith.constant 0 : index
    %c0_69 = arith.constant 0 : index
    %141 = vector.load %arg5[%c0_68, %c0_69] : memref<16x1xf32, #tpu.memory_space<vmem>>, vector<16x1xf32>
    %142 = vector.broadcast %141 : vector<16x1xf32> to vector<16x512xf32>
    %143 = arith.addf %140, %142 : vector<16x512xf32>
    %144 = math.tanh %143 : vector<16x512xf32>
    %c0_70 = arith.constant 0 : index
    %c0_71 = arith.constant 0 : index
    %145 = vector.load %arg6[%c0_70, %c0_71] : memref<16x16xbf16, #tpu.memory_space<vmem>>, vector<16x16xbf16>
    %146 = arith.truncf %144 : vector<16x512xf32> to vector<16x512xbf16>
    %cst_72 = arith.constant dense<0.000000e+00> : vector<16x512xf32>
    %147 = tpu.matmul %145, %146, %cst_72 {dimension_numbers = #tpu.dot_dimension_numbers<[1], [0], [0], [1], [0, 0, 1, 1], [], []>} : vector<16x16xbf16>, vector<16x512xbf16>, vector<16x512xf32> -> vector<16x512xf32>
    %c0_73 = arith.constant 0 : index
    %c0_74 = arith.constant 0 : index
    %148 = vector.load %arg7[%c0_73, %c0_74] : memref<16x1xf32, #tpu.memory_space<vmem>>, vector<16x1xf32>
    %149 = vector.broadcast %148 : vector<16x1xf32> to vector<16x512xf32>
    %150 = arith.addf %147, %149 : vector<16x512xf32>
    %151 = vector.extract_strided_slice %5 {offsets = [0, 0], sizes = [8, 512], strides = [1, 1]} : vector<24x512xf32> to vector<8x512xf32>
    %152 = vector.extract_strided_slice %150 {offsets = [0, 0], sizes = [8, 512], strides = [1, 1]} : vector<16x512xf32> to vector<8x512xf32>
    %153 = arith.addf %151, %152 : vector<8x512xf32>
    %cst_75 = arith.constant 5.000000e-01 : f32
    %154 = vector.broadcast %cst_75 : f32 to vector<8x512xf32>
    %155 = arith.mulf %154, %153 : vector<8x512xf32>
    %156 = math.tanh %155 : vector<8x512xf32>
    %cst_76 = arith.constant 5.000000e-01 : f32
    %157 = vector.broadcast %cst_76 : f32 to vector<8x512xf32>
    %158 = arith.mulf %157, %156 : vector<8x512xf32>
    %cst_77 = arith.constant 5.000000e-01 : f32
    %159 = vector.broadcast %cst_77 : f32 to vector<8x512xf32>
    %160 = arith.addf %158, %159 : vector<8x512xf32>
    %161 = vector.extract_strided_slice %5 {offsets = [8, 0], sizes = [8, 512], strides = [1, 1]} : vector<24x512xf32> to vector<8x512xf32>
    %162 = vector.extract_strided_slice %150 {offsets = [8, 0], sizes = [8, 512], strides = [1, 1]} : vector<16x512xf32> to vector<8x512xf32>
    %163 = arith.addf %161, %162 : vector<8x512xf32>
    %cst_78 = arith.constant 5.000000e-01 : f32
    %164 = vector.broadcast %cst_78 : f32 to vector<8x512xf32>
    %165 = arith.mulf %164, %163 : vector<8x512xf32>
    %166 = math.tanh %165 : vector<8x512xf32>
    %cst_79 = arith.constant 5.000000e-01 : f32
    %167 = vector.broadcast %cst_79 : f32 to vector<8x512xf32>
    %168 = arith.mulf %167, %166 : vector<8x512xf32>
    %cst_80 = arith.constant 5.000000e-01 : f32
    %169 = vector.broadcast %cst_80 : f32 to vector<8x512xf32>
    %170 = arith.addf %168, %169 : vector<8x512xf32>
    %171 = arith.mulf %160, %3 : vector<8x512xf32>
    %c73_i32_81 = arith.constant 73 : i32
    %172 = tpu.dynamic_rotate %171 by %c73_i32_81 dim 1 : vector<8x512xf32>, i32 -> vector<8x512xf32>
    %c0_82 = arith.constant 0 : index
    %c0_83 = arith.constant 0 : index
    %173 = vector.load %arg3[%c0_82, %c0_83] : memref<27x512xf32, #tpu.memory_space<vmem>>, vector<1x512xf32>
    %174 = vector.broadcast %173 : vector<1x512xf32> to vector<8x512xf32>
    %175 = arith.mulf %172, %174 : vector<8x512xf32>
    %c0_84 = arith.constant 0 : index
    %c0_85 = arith.constant 0 : index
    %176 = vector.load %arg14[%c0_84, %c0_85] : memref<216x512xf32, #tpu.memory_space<vmem>>, vector<8x512xf32>
    tpu.vector_store %arg14[%c0_84, %c0_85], %175 {strides = array<i32>} : memref<216x512xf32, #tpu.memory_space<vmem>>, vector<8x512xf32>,
    %c72_i32_86 = arith.constant 72 : i32
    %177 = tpu.dynamic_rotate %171 by %c72_i32_86 dim 1 : vector<8x512xf32>, i32 -> vector<8x512xf32>
    %c1_87 = arith.constant 1 : index
    %c0_88 = arith.constant 0 : index
    %178 = vector.load %arg3[%c1_87, %c0_88] : memref<27x512xf32, #tpu.memory_space<vmem>>, vector<1x512xf32>
    %179 = vector.broadcast %178 : vector<1x512xf32> to vector<8x512xf32>
    %180 = arith.mulf %177, %179 : vector<8x512xf32>
    %c8_89 = arith.constant 8 : index
    %c0_90 = arith.constant 0 : index
    %181 = vector.load %arg14[%c8_89, %c0_90] : memref<216x512xf32, #tpu.memory_space<vmem>>, vector<8x512xf32>
    tpu.vector_store %arg14[%c8_89, %c0_90], %180 {strides = array<i32>} : memref<216x512xf32, #tpu.memory_space<vmem>>, vector<8x512xf32>,
    %c71_i32_91 = arith.constant 71 : i32
    %182 = tpu.dynamic_rotate %171 by %c71_i32_91 dim 1 : vector<8x512xf32>, i32 -> vector<8x512xf32>
    %c2_92 = arith.constant 2 : index
    %c0_93 = arith.constant 0 : index
    %183 = vector.load %arg3[%c2_92, %c0_93] : memref<27x512xf32, #tpu.memory_space<vmem>>, vector<1x512xf32>
    %184 = vector.broadcast %183 : vector<1x512xf32> to vector<8x512xf32>
    %185 = arith.mulf %182, %184 : vector<8x512xf32>
    %c16_94 = arith.constant 16 : index
    %c0_95 = arith.constant 0 : index
    %186 = vector.load %arg14[%c16_94, %c0_95] : memref<216x512xf32, #tpu.memory_space<vmem>>, vector<8x512xf32>
    tpu.vector_store %arg14[%c16_94, %c0_95], %185 {strides = array<i32>} : memref<216x512xf32, #tpu.memory_space<vmem>>, vector<8x512xf32>,
    %c65_i32_96 = arith.constant 65 : i32
    %187 = tpu.dynamic_rotate %171 by %c65_i32_96 dim 1 : vector<8x512xf32>, i32 -> vector<8x512xf32>
    %c3_97 = arith.constant 3 : index
    %c0_98 = arith.constant 0 : index
    %188 = vector.load %arg3[%c3_97, %c0_98] : memref<27x512xf32, #tpu.memory_space<vmem>>, vector<1x512xf32>
    %189 = vector.broadcast %188 : vector<1x512xf32> to vector<8x512xf32>
    %190 = arith.mulf %187, %189 : vector<8x512xf32>
    %c24_99 = arith.constant 24 : index
    %c0_100 = arith.constant 0 : index
    %191 = vector.load %arg14[%c24_99, %c0_100] : memref<216x512xf32, #tpu.memory_space<vmem>>, vector<8x512xf32>
    tpu.vector_store %arg14[%c24_99, %c0_100], %190 {strides = array<i32>} : memref<216x512xf32, #tpu.memory_space<vmem>>, vector<8x512xf32>,
    %c64_i32_101 = arith.constant 64 : i32
    %192 = tpu.dynamic_rotate %171 by %c64_i32_101 dim 1 : vector<8x512xf32>, i32 -> vector<8x512xf32>
    %c4_102 = arith.constant 4 : index
    %c0_103 = arith.constant 0 : index
    %193 = vector.load %arg3[%c4_102, %c0_103] : memref<27x512xf32, #tpu.memory_space<vmem>>, vector<1x512xf32>
    %194 = vector.broadcast %193 : vector<1x512xf32> to vector<8x512xf32>
    %195 = arith.mulf %192, %194 : vector<8x512xf32>
    %c32_104 = arith.constant 32 : index
    %c0_105 = arith.constant 0 : index
    %196 = vector.load %arg14[%c32_104, %c0_105] : memref<216x512xf32, #tpu.memory_space<vmem>>, vector<8x512xf32>
    tpu.vector_store %arg14[%c32_104, %c0_105], %195 {strides = array<i32>} : memref<216x512xf32, #tpu.memory_space<vmem>>, vector<8x512xf32>,
    %c63_i32_106 = arith.constant 63 : i32
    %197 = tpu.dynamic_rotate %171 by %c63_i32_106 dim 1 : vector<8x512xf32>, i32 -> vector<8x512xf32>
    %c5_107 = arith.constant 5 : index
    %c0_108 = arith.constant 0 : index
    %198 = vector.load %arg3[%c5_107, %c0_108] : memref<27x512xf32, #tpu.memory_space<vmem>>, vector<1x512xf32>
    %199 = vector.broadcast %198 : vector<1x512xf32> to vector<8x512xf32>
    %200 = arith.mulf %197, %199 : vector<8x512xf32>
    %c40_109 = arith.constant 40 : index
    %c0_110 = arith.constant 0 : index
    %201 = vector.load %arg14[%c40_109, %c0_110] : memref<216x512xf32, #tpu.memory_space<vmem>>, vector<8x512xf32>
    tpu.vector_store %arg14[%c40_109, %c0_110], %200 {strides = array<i32>} : memref<216x512xf32, #tpu.memory_space<vmem>>, vector<8x512xf32>,
    %c57_i32_111 = arith.constant 57 : i32
    %202 = tpu.dynamic_rotate %171 by %c57_i32_111 dim 1 : vector<8x512xf32>, i32 -> vector<8x512xf32>
    %c6_112 = arith.constant 6 : index
    %c0_113 = arith.constant 0 : index
    %203 = vector.load %arg3[%c6_112, %c0_113] : memref<27x512xf32, #tpu.memory_space<vmem>>, vector<1x512xf32>
    %204 = vector.broadcast %203 : vector<1x512xf32> to vector<8x512xf32>
    %205 = arith.mulf %202, %204 : vector<8x512xf32>
    %c48_114 = arith.constant 48 : index
    %c0_115 = arith.constant 0 : index
    %206 = vector.load %arg14[%c48_114, %c0_115] : memref<216x512xf32, #tpu.memory_space<vmem>>, vector<8x512xf32>
    tpu.vector_store %arg14[%c48_114, %c0_115], %205 {strides = array<i32>} : memref<216x512xf32, #tpu.memory_space<vmem>>, vector<8x512xf32>,
    %c56_i32_116 = arith.constant 56 : i32
    %207 = tpu.dynamic_rotate %171 by %c56_i32_116 dim 1 : vector<8x512xf32>, i32 -> vector<8x512xf32>
    %c7_117 = arith.constant 7 : index
    %c0_118 = arith.constant 0 : index
    %208 = vector.load %arg3[%c7_117, %c0_118] : memref<27x512xf32, #tpu.memory_space<vmem>>, vector<1x512xf32>
    %209 = vector.broadcast %208 : vector<1x512xf32> to vector<8x512xf32>
    %210 = arith.mulf %207, %209 : vector<8x512xf32>
    %c56_119 = arith.constant 56 : index
    %c0_120 = arith.constant 0 : index
    %211 = vector.load %arg14[%c56_119, %c0_120] : memref<216x512xf32, #tpu.memory_space<vmem>>, vector<8x512xf32>
    tpu.vector_store %arg14[%c56_119, %c0_120], %210 {strides = array<i32>} : memref<216x512xf32, #tpu.memory_space<vmem>>, vector<8x512xf32>,
    %c55_i32_121 = arith.constant 55 : i32
    %212 = tpu.dynamic_rotate %171 by %c55_i32_121 dim 1 : vector<8x512xf32>, i32 -> vector<8x512xf32>
    %c8_122 = arith.constant 8 : index
    %c0_123 = arith.constant 0 : index
    %213 = vector.load %arg3[%c8_122, %c0_123] : memref<27x512xf32, #tpu.memory_space<vmem>>, vector<1x512xf32>
    %214 = vector.broadcast %213 : vector<1x512xf32> to vector<8x512xf32>
    %215 = arith.mulf %212, %214 : vector<8x512xf32>
    %c64_124 = arith.constant 64 : index
    %c0_125 = arith.constant 0 : index
    %216 = vector.load %arg14[%c64_124, %c0_125] : memref<216x512xf32, #tpu.memory_space<vmem>>, vector<8x512xf32>
    tpu.vector_store %arg14[%c64_124, %c0_125], %215 {strides = array<i32>} : memref<216x512xf32, #tpu.memory_space<vmem>>, vector<8x512xf32>,
    %c9_i32_126 = arith.constant 9 : i32
    %217 = tpu.dynamic_rotate %171 by %c9_i32_126 dim 1 : vector<8x512xf32>, i32 -> vector<8x512xf32>
    %c9_127 = arith.constant 9 : index
    %c0_128 = arith.constant 0 : index
    %218 = vector.load %arg3[%c9_127, %c0_128] : memref<27x512xf32, #tpu.memory_space<vmem>>, vector<1x512xf32>
    %219 = vector.broadcast %218 : vector<1x512xf32> to vector<8x512xf32>
    %220 = arith.mulf %217, %219 : vector<8x512xf32>
    %c72_129 = arith.constant 72 : index
    %c0_130 = arith.constant 0 : index
    %221 = vector.load %arg14[%c72_129, %c0_130] : memref<216x512xf32, #tpu.memory_space<vmem>>, vector<8x512xf32>
    tpu.vector_store %arg14[%c72_129, %c0_130], %220 {strides = array<i32>} : memref<216x512xf32, #tpu.memory_space<vmem>>, vector<8x512xf32>,
    %c8_i32_131 = arith.constant 8 : i32
    %222 = tpu.dynamic_rotate %171 by %c8_i32_131 dim 1 : vector<8x512xf32>, i32 -> vector<8x512xf32>
    %c10_132 = arith.constant 10 : index
    %c0_133 = arith.constant 0 : index
    %223 = vector.load %arg3[%c10_132, %c0_133] : memref<27x512xf32, #tpu.memory_space<vmem>>, vector<1x512xf32>
    %224 = vector.broadcast %223 : vector<1x512xf32> to vector<8x512xf32>
    %225 = arith.mulf %222, %224 : vector<8x512xf32>
    %c80_134 = arith.constant 80 : index
    %c0_135 = arith.constant 0 : index
    %226 = vector.load %arg14[%c80_134, %c0_135] : memref<216x512xf32, #tpu.memory_space<vmem>>, vector<8x512xf32>
    tpu.vector_store %arg14[%c80_134, %c0_135], %225 {strides = array<i32>} : memref<216x512xf32, #tpu.memory_space<vmem>>, vector<8x512xf32>,
    %c7_i32_136 = arith.constant 7 : i32
    %227 = tpu.dynamic_rotate %171 by %c7_i32_136 dim 1 : vector<8x512xf32>, i32 -> vector<8x512xf32>
    %c11_137 = arith.constant 11 : index
    %c0_138 = arith.constant 0 : index
    %228 = vector.load %arg3[%c11_137, %c0_138] : memref<27x512xf32, #tpu.memory_space<vmem>>, vector<1x512xf32>
    %229 = vector.broadcast %228 : vector<1x512xf32> to vector<8x512xf32>
    %230 = arith.mulf %227, %229 : vector<8x512xf32>
    %c88_139 = arith.constant 88 : index
    %c0_140 = arith.constant 0 : index
    %231 = vector.load %arg14[%c88_139, %c0_140] : memref<216x512xf32, #tpu.memory_space<vmem>>, vector<8x512xf32>
    tpu.vector_store %arg14[%c88_139, %c0_140], %230 {strides = array<i32>} : memref<216x512xf32, #tpu.memory_space<vmem>>, vector<8x512xf32>,
    %c1_i32_141 = arith.constant 1 : i32
    %232 = tpu.dynamic_rotate %171 by %c1_i32_141 dim 1 : vector<8x512xf32>, i32 -> vector<8x512xf32>
    %c12_142 = arith.constant 12 : index
    %c0_143 = arith.constant 0 : index
    %233 = vector.load %arg3[%c12_142, %c0_143] : memref<27x512xf32, #tpu.memory_space<vmem>>, vector<1x512xf32>
    %234 = vector.broadcast %233 : vector<1x512xf32> to vector<8x512xf32>
    %235 = arith.mulf %232, %234 : vector<8x512xf32>
    %c96_144 = arith.constant 96 : index
    %c0_145 = arith.constant 0 : index
    %236 = vector.load %arg14[%c96_144, %c0_145] : memref<216x512xf32, #tpu.memory_space<vmem>>, vector<8x512xf32>
    tpu.vector_store %arg14[%c96_144, %c0_145], %235 {strides = array<i32>} : memref<216x512xf32, #tpu.memory_space<vmem>>, vector<8x512xf32>,
    %c104_146 = arith.constant 104 : index
    %c0_147 = arith.constant 0 : index
    %237 = vector.load %arg14[%c104_146, %c0_147] : memref<216x512xf32, #tpu.memory_space<vmem>>, vector<8x512xf32>
    tpu.vector_store %arg14[%c104_146, %c0_147], %171 {strides = array<i32>} : memref<216x512xf32, #tpu.memory_space<vmem>>, vector<8x512xf32>,
    %c511_i32_148 = arith.constant 511 : i32
    %238 = tpu.dynamic_rotate %171 by %c511_i32_148 dim 1 : vector<8x512xf32>, i32 -> vector<8x512xf32>
    %c14_149 = arith.constant 14 : index
    %c0_150 = arith.constant 0 : index
    %239 = vector.load %arg3[%c14_149, %c0_150] : memref<27x512xf32, #tpu.memory_space<vmem>>, vector<1x512xf32>
    %240 = vector.broadcast %239 : vector<1x512xf32> to vector<8x512xf32>
    %241 = arith.mulf %238, %240 : vector<8x512xf32>
    %c112_151 = arith.constant 112 : index
    %c0_152 = arith.constant 0 : index
    %242 = vector.load %arg14[%c112_151, %c0_152] : memref<216x512xf32, #tpu.memory_space<vmem>>, vector<8x512xf32>
    tpu.vector_store %arg14[%c112_151, %c0_152], %241 {strides = array<i32>} : memref<216x512xf32, #tpu.memory_space<vmem>>, vector<8x512xf32>,
    %c505_i32_153 = arith.constant 505 : i32
    %243 = tpu.dynamic_rotate %171 by %c505_i32_153 dim 1 : vector<8x512xf32>, i32 -> vector<8x512xf32>
    %c15_154 = arith.constant 15 : index
    %c0_155 = arith.constant 0 : index
    %244 = vector.load %arg3[%c15_154, %c0_155] : memref<27x512xf32, #tpu.memory_space<vmem>>, vector<1x512xf32>
    %245 = vector.broadcast %244 : vector<1x512xf32> to vector<8x512xf32>
    %246 = arith.mulf %243, %245 : vector<8x512xf32>
    %c120_156 = arith.constant 120 : index
    %c0_157 = arith.constant 0 : index
    %247 = vector.load %arg14[%c120_156, %c0_157] : memref<216x512xf32, #tpu.memory_space<vmem>>, vector<8x512xf32>
    tpu.vector_store %arg14[%c120_156, %c0_157], %246 {strides = array<i32>} : memref<216x512xf32, #tpu.memory_space<vmem>>, vector<8x512xf32>,
    %c504_i32_158 = arith.constant 504 : i32
    %248 = tpu.dynamic_rotate %171 by %c504_i32_158 dim 1 : vector<8x512xf32>, i32 -> vector<8x512xf32>
    %c16_159 = arith.constant 16 : index
    %c0_160 = arith.constant 0 : index
    %249 = vector.load %arg3[%c16_159, %c0_160] : memref<27x512xf32, #tpu.memory_space<vmem>>, vector<1x512xf32>
    %250 = vector.broadcast %249 : vector<1x512xf32> to vector<8x512xf32>
    %251 = arith.mulf %248, %250 : vector<8x512xf32>
    %c128_161 = arith.constant 128 : index
    %c0_162 = arith.constant 0 : index
    %252 = vector.load %arg14[%c128_161, %c0_162] : memref<216x512xf32, #tpu.memory_space<vmem>>, vector<8x512xf32>
    tpu.vector_store %arg14[%c128_161, %c0_162], %251 {strides = array<i32>} : memref<216x512xf32, #tpu.memory_space<vmem>>, vector<8x512xf32>,
    %c503_i32_163 = arith.constant 503 : i32
    %253 = tpu.dynamic_rotate %171 by %c503_i32_163 dim 1 : vector<8x512xf32>, i32 -> vector<8x512xf32>
    %c17_164 = arith.constant 17 : index
    %c0_165 = arith.constant 0 : index
    %254 = vector.load %arg3[%c17_164, %c0_165] : memref<27x512xf32, #tpu.memory_space<vmem>>, vector<1x512xf32>
    %255 = vector.broadcast %254 : vector<1x512xf32> to vector<8x512xf32>
    %256 = arith.mulf %253, %255 : vector<8x512xf32>
    %c136_166 = arith.constant 136 : index
    %c0_167 = arith.constant 0 : index
    %257 = vector.load %arg14[%c136_166, %c0_167] : memref<216x512xf32, #tpu.memory_space<vmem>>, vector<8x512xf32>
    tpu.vector_store %arg14[%c136_166, %c0_167], %256 {strides = array<i32>} : memref<216x512xf32, #tpu.memory_space<vmem>>, vector<8x512xf32>,
    %c457_i32_168 = arith.constant 457 : i32
    %258 = tpu.dynamic_rotate %171 by %c457_i32_168 dim 1 : vector<8x512xf32>, i32 -> vector<8x512xf32>
    %c18_169 = arith.constant 18 : index
    %c0_170 = arith.constant 0 : index
    %259 = vector.load %arg3[%c18_169, %c0_170] : memref<27x512xf32, #tpu.memory_space<vmem>>, vector<1x512xf32>
    %260 = vector.broadcast %259 : vector<1x512xf32> to vector<8x512xf32>
    %261 = arith.mulf %258, %260 : vector<8x512xf32>
    %c144_171 = arith.constant 144 : index
    %c0_172 = arith.constant 0 : index
    %262 = vector.load %arg14[%c144_171, %c0_172] : memref<216x512xf32, #tpu.memory_space<vmem>>, vector<8x512xf32>
    tpu.vector_store %arg14[%c144_171, %c0_172], %261 {strides = array<i32>} : memref<216x512xf32, #tpu.memory_space<vmem>>, vector<8x512xf32>,
    %c456_i32_173 = arith.constant 456 : i32
    %263 = tpu.dynamic_rotate %171 by %c456_i32_173 dim 1 : vector<8x512xf32>, i32 -> vector<8x512xf32>
    %c19_174 = arith.constant 19 : index
    %c0_175 = arith.constant 0 : index
    %264 = vector.load %arg3[%c19_174, %c0_175] : memref<27x512xf32, #tpu.memory_space<vmem>>, vector<1x512xf32>
    %265 = vector.broadcast %264 : vector<1x512xf32> to vector<8x512xf32>
    %266 = arith.mulf %263, %265 : vector<8x512xf32>
    %c152_176 = arith.constant 152 : index
    %c0_177 = arith.constant 0 : index
    %267 = vector.load %arg14[%c152_176, %c0_177] : memref<216x512xf32, #tpu.memory_space<vmem>>, vector<8x512xf32>
    tpu.vector_store %arg14[%c152_176, %c0_177], %266 {strides = array<i32>} : memref<216x512xf32, #tpu.memory_space<vmem>>, vector<8x512xf32>,
    %c455_i32_178 = arith.constant 455 : i32
    %268 = tpu.dynamic_rotate %171 by %c455_i32_178 dim 1 : vector<8x512xf32>, i32 -> vector<8x512xf32>
    %c20_179 = arith.constant 20 : index
    %c0_180 = arith.constant 0 : index
    %269 = vector.load %arg3[%c20_179, %c0_180] : memref<27x512xf32, #tpu.memory_space<vmem>>, vector<1x512xf32>
    %270 = vector.broadcast %269 : vector<1x512xf32> to vector<8x512xf32>
    %271 = arith.mulf %268, %270 : vector<8x512xf32>
    %c160_181 = arith.constant 160 : index
    %c0_182 = arith.constant 0 : index
    %272 = vector.load %arg14[%c160_181, %c0_182] : memref<216x512xf32, #tpu.memory_space<vmem>>, vector<8x512xf32>
    tpu.vector_store %arg14[%c160_181, %c0_182], %271 {strides = array<i32>} : memref<216x512xf32, #tpu.memory_space<vmem>>, vector<8x512xf32>,
    %c449_i32_183 = arith.constant 449 : i32
    %273 = tpu.dynamic_rotate %171 by %c449_i32_183 dim 1 : vector<8x512xf32>, i32 -> vector<8x512xf32>
    %c21_184 = arith.constant 21 : index
    %c0_185 = arith.constant 0 : index
    %274 = vector.load %arg3[%c21_184, %c0_185] : memref<27x512xf32, #tpu.memory_space<vmem>>, vector<1x512xf32>
    %275 = vector.broadcast %274 : vector<1x512xf32> to vector<8x512xf32>
    %276 = arith.mulf %273, %275 : vector<8x512xf32>
    %c168_186 = arith.constant 168 : index
    %c0_187 = arith.constant 0 : index
    %277 = vector.load %arg14[%c168_186, %c0_187] : memref<216x512xf32, #tpu.memory_space<vmem>>, vector<8x512xf32>
    tpu.vector_store %arg14[%c168_186, %c0_187], %276 {strides = array<i32>} : memref<216x512xf32, #tpu.memory_space<vmem>>, vector<8x512xf32>,
    %c448_i32_188 = arith.constant 448 : i32
    %278 = tpu.dynamic_rotate %171 by %c448_i32_188 dim 1 : vector<8x512xf32>, i32 -> vector<8x512xf32>
    %c22_189 = arith.constant 22 : index
    %c0_190 = arith.constant 0 : index
    %279 = vector.load %arg3[%c22_189, %c0_190] : memref<27x512xf32, #tpu.memory_space<vmem>>, vector<1x512xf32>
    %280 = vector.broadcast %279 : vector<1x512xf32> to vector<8x512xf32>
    %281 = arith.mulf %278, %280 : vector<8x512xf32>
    %c176_191 = arith.constant 176 : index
    %c0_192 = arith.constant 0 : index
    %282 = vector.load %arg14[%c176_191, %c0_192] : memref<216x512xf32, #tpu.memory_space<vmem>>, vector<8x512xf32>
    tpu.vector_store %arg14[%c176_191, %c0_192], %281 {strides = array<i32>} : memref<216x512xf32, #tpu.memory_space<vmem>>, vector<8x512xf32>,
    %c447_i32_193 = arith.constant 447 : i32
    %283 = tpu.dynamic_rotate %171 by %c447_i32_193 dim 1 : vector<8x512xf32>, i32 -> vector<8x512xf32>
    %c23_194 = arith.constant 23 : index
    %c0_195 = arith.constant 0 : index
    %284 = vector.load %arg3[%c23_194, %c0_195] : memref<27x512xf32, #tpu.memory_space<vmem>>, vector<1x512xf32>
    %285 = vector.broadcast %284 : vector<1x512xf32> to vector<8x512xf32>
    %286 = arith.mulf %283, %285 : vector<8x512xf32>
    %c184_196 = arith.constant 184 : index
    %c0_197 = arith.constant 0 : index
    %287 = vector.load %arg14[%c184_196, %c0_197] : memref<216x512xf32, #tpu.memory_space<vmem>>, vector<8x512xf32>
    tpu.vector_store %arg14[%c184_196, %c0_197], %286 {strides = array<i32>} : memref<216x512xf32, #tpu.memory_space<vmem>>, vector<8x512xf32>,
    %c441_i32_198 = arith.constant 441 : i32
    %288 = tpu.dynamic_rotate %171 by %c441_i32_198 dim 1 : vector<8x512xf32>, i32 -> vector<8x512xf32>
    %c24_199 = arith.constant 24 : index
    %c0_200 = arith.constant 0 : index
    %289 = vector.load %arg3[%c24_199, %c0_200] : memref<27x512xf32, #tpu.memory_space<vmem>>, vector<1x512xf32>
    %290 = vector.broadcast %289 : vector<1x512xf32> to vector<8x512xf32>
    %291 = arith.mulf %288, %290 : vector<8x512xf32>
    %c192_201 = arith.constant 192 : index
    %c0_202 = arith.constant 0 : index
    %292 = vector.load %arg14[%c192_201, %c0_202] : memref<216x512xf32, #tpu.memory_space<vmem>>, vector<8x512xf32>
    tpu.vector_store %arg14[%c192_201, %c0_202], %291 {strides = array<i32>} : memref<216x512xf32, #tpu.memory_space<vmem>>, vector<8x512xf32>,
    %c440_i32_203 = arith.constant 440 : i32
    %293 = tpu.dynamic_rotate %171 by %c440_i32_203 dim 1 : vector<8x512xf32>, i32 -> vector<8x512xf32>
    %c25_204 = arith.constant 25 : index
    %c0_205 = arith.constant 0 : index
    %294 = vector.load %arg3[%c25_204, %c0_205] : memref<27x512xf32, #tpu.memory_space<vmem>>, vector<1x512xf32>
    %295 = vector.broadcast %294 : vector<1x512xf32> to vector<8x512xf32>
    %296 = arith.mulf %293, %295 : vector<8x512xf32>
    %c200_206 = arith.constant 200 : index
    %c0_207 = arith.constant 0 : index
    %297 = vector.load %arg14[%c200_206, %c0_207] : memref<216x512xf32, #tpu.memory_space<vmem>>, vector<8x512xf32>
    tpu.vector_store %arg14[%c200_206, %c0_207], %296 {strides = array<i32>} : memref<216x512xf32, #tpu.memory_space<vmem>>, vector<8x512xf32>,
    %c439_i32_208 = arith.constant 439 : i32
    %298 = tpu.dynamic_rotate %171 by %c439_i32_208 dim 1 : vector<8x512xf32>, i32 -> vector<8x512xf32>
    %c26_209 = arith.constant 26 : index
    %c0_210 = arith.constant 0 : index
    %299 = vector.load %arg3[%c26_209, %c0_210] : memref<27x512xf32, #tpu.memory_space<vmem>>, vector<1x512xf32>
    %300 = vector.broadcast %299 : vector<1x512xf32> to vector<8x512xf32>
    %301 = arith.mulf %298, %300 : vector<8x512xf32>
    %c208_211 = arith.constant 208 : index
    %c0_212 = arith.constant 0 : index
    %302 = vector.load %arg14[%c208_211, %c0_212] : memref<216x512xf32, #tpu.memory_space<vmem>>, vector<8x512xf32>
    tpu.vector_store %arg14[%c208_211, %c0_212], %301 {strides = array<i32>} : memref<216x512xf32, #tpu.memory_space<vmem>>, vector<8x512xf32>,
    %c0_213 = arith.constant 0 : index
    %c0_214 = arith.constant 0 : index
    %303 = vector.load %arg14[%c0_213, %c0_214] : memref<216x512xf32, #tpu.memory_space<vmem>>, vector<216x512xf32>
    %304 = arith.truncf %303 : vector<216x512xf32> to vector<216x512xbf16>
    %c0_215 = arith.constant 0 : index
    %c0_216 = arith.constant 0 : index
    %305 = vector.load %arg8[%c0_215, %c0_216] : memref<8x216xbf16, #tpu.memory_space<vmem>>, vector<8x216xbf16>
    %cst_217 = arith.constant dense<0.000000e+00> : vector<8x512xf32>
    %306 = tpu.matmul %305, %304, %cst_217 {dimension_numbers = #tpu.dot_dimension_numbers<[1], [0], [0], [1], [0, 0, 1, 1], [], []>} : vector<8x216xbf16>, vector<216x512xbf16>, vector<8x512xf32> -> vector<8x512xf32>
    %c0_218 = arith.constant 0 : index
    %c0_219 = arith.constant 0 : index
    %307 = vector.load %arg9[%c0_218, %c0_219] : memref<8x1xf32, #tpu.memory_space<vmem>>, vector<8x1xf32>
    %308 = vector.broadcast %307 : vector<8x1xf32> to vector<8x512xf32>
    %309 = arith.addf %306, %308 : vector<8x512xf32>
    %310 = math.tanh %309 : vector<8x512xf32>
    %c0_220 = arith.constant 0 : index
    %c0_221 = arith.constant 0 : index
    %311 = vector.load %arg10[%c0_220, %c0_221] : memref<8x8xbf16, #tpu.memory_space<vmem>>, vector<8x8xbf16>
    %312 = arith.truncf %310 : vector<8x512xf32> to vector<8x512xbf16>
    %cst_222 = arith.constant dense<0.000000e+00> : vector<8x512xf32>
    %313 = tpu.matmul %311, %312, %cst_222 {dimension_numbers = #tpu.dot_dimension_numbers<[1], [0], [0], [1], [0, 0, 1, 1], [], []>} : vector<8x8xbf16>, vector<8x512xbf16>, vector<8x512xf32> -> vector<8x512xf32>
    %c0_223 = arith.constant 0 : index
    %c0_224 = arith.constant 0 : index
    %314 = vector.load %arg11[%c0_223, %c0_224] : memref<8x1xf32, #tpu.memory_space<vmem>>, vector<8x1xf32>
    %315 = vector.broadcast %314 : vector<8x1xf32> to vector<8x512xf32>
    %316 = arith.addf %313, %315 : vector<8x512xf32>
    %317 = vector.extract_strided_slice %5 {offsets = [16, 0], sizes = [8, 512], strides = [1, 1]} : vector<24x512xf32> to vector<8x512xf32>
    %318 = arith.addf %317, %316 : vector<8x512xf32>
    %319 = math.tanh %318 : vector<8x512xf32>
    %cst_225 = arith.constant 1.000000e+00 : f32
    %320 = vector.broadcast %cst_225 : f32 to vector<8x512xf32>
    %321 = arith.subf %320, %170 : vector<8x512xf32>
    %322 = arith.mulf %321, %319 : vector<8x512xf32>
    %323 = arith.mulf %170, %3 : vector<8x512xf32>
    %324 = arith.addf %322, %323 : vector<8x512xf32>
    %c0_226 = arith.constant 0 : index
    %c0_227 = arith.constant 0 : index
    %325 = vector.load %arg13[%c0_226, %c0_227] : memref<8x512xf32, #tpu.memory_space<vmem>>, vector<8x512xf32>
    tpu.vector_store %arg13[%c0_226, %c0_227], %324 {strides = array<i32>} : memref<8x512xf32, #tpu.memory_space<vmem>>, vector<8x512xf32>,
    %c0_228 = arith.constant 0 : index
    %c0_229 = arith.constant 0 : index
    %c0_230 = arith.constant 0 : index
    %c0_231 = arith.constant 0 : index
    %326 = vector.load %arg12[%c0_228, %c0_229, %c0_230, %c0_231] : memref<1x1x8x512xf32, #tpu.memory_space<vmem>>, vector<1x1x8x512xf32>
    %327 = vector.shape_cast %326 : vector<1x1x8x512xf32> to vector<8x512xf32>
    %328 = vector.shape_cast %324 : vector<8x512xf32> to vector<1x1x8x512xf32>
    tpu.vector_store %arg12[%c0_228, %c0_229, %c0_230, %c0_231], %328 {strides = array<i32>} : memref<1x1x8x512xf32, #tpu.memory_space<vmem>>, vector<1x1x8x512xf32>,
    return
  }
  func.func @transform_0(%arg0: i32, %arg1: i32) -> (i32, i32, i32, i32) {
    %c0_i32 = arith.constant 0 : i32
    %c0_i32_0 = arith.constant 0 : i32
    %c0_i32_1 = arith.constant 0 : i32
    return %arg0, %arg1, %c0_i32, %c0_i32_0 : i32, i32, i32, i32
  }
  func.func @transform_1(%arg0: i32, %arg1: i32) -> (i32, i32) {
    %c0_i32 = arith.constant 0 : i32
    %c0_i32_0 = arith.constant 0 : i32
    %c0_i32_1 = arith.constant 0 : i32
    return %c0_i32, %c0_i32_0 : i32, i32
  }
  func.func @transform_2(%arg0: i32, %arg1: i32) -> (i32, i32) {
    %c0_i32 = arith.constant 0 : i32
    %c0_i32_0 = arith.constant 0 : i32
    %c0_i32_1 = arith.constant 0 : i32
    return %c0_i32, %c0_i32_0 : i32, i32
  }
  func.func @transform_3(%arg0: i32, %arg1: i32) -> (i32, i32) {
    %c0_i32 = arith.constant 0 : i32
    %c0_i32_0 = arith.constant 0 : i32
    %c0_i32_1 = arith.constant 0 : i32
    return %c0_i32, %c0_i32_0 : i32, i32
  }
  func.func @transform_4(%arg0: i32, %arg1: i32) -> (i32, i32) {
    %c0_i32 = arith.constant 0 : i32
    %c0_i32_0 = arith.constant 0 : i32
    %c0_i32_1 = arith.constant 0 : i32
    return %c0_i32, %c0_i32_0 : i32, i32
  }
  func.func @transform_5(%arg0: i32, %arg1: i32) -> (i32, i32) {
    %c0_i32 = arith.constant 0 : i32
    %c0_i32_0 = arith.constant 0 : i32
    %c0_i32_1 = arith.constant 0 : i32
    return %c0_i32, %c0_i32_0 : i32, i32
  }
  func.func @transform_6(%arg0: i32, %arg1: i32) -> (i32, i32) {
    %c0_i32 = arith.constant 0 : i32
    %c0_i32_0 = arith.constant 0 : i32
    %c0_i32_1 = arith.constant 0 : i32
    return %c0_i32, %c0_i32_0 : i32, i32
  }
  func.func @transform_7(%arg0: i32, %arg1: i32) -> (i32, i32) {
    %c0_i32 = arith.constant 0 : i32
    %c0_i32_0 = arith.constant 0 : i32
    %c0_i32_1 = arith.constant 0 : i32
    return %c0_i32, %c0_i32_0 : i32, i32
  }
  func.func @transform_8(%arg0: i32, %arg1: i32) -> (i32, i32) {
    %c0_i32 = arith.constant 0 : i32
    %c0_i32_0 = arith.constant 0 : i32
    %c0_i32_1 = arith.constant 0 : i32
    return %c0_i32, %c0_i32_0 : i32, i32
  }
  func.func @transform_9(%arg0: i32, %arg1: i32) -> (i32, i32) {
    %c0_i32 = arith.constant 0 : i32
    %c0_i32_0 = arith.constant 0 : i32
    %c0_i32_1 = arith.constant 0 : i32
    return %c0_i32, %c0_i32_0 : i32, i32
  }
  func.func @transform_10(%arg0: i32, %arg1: i32) -> (i32, i32, i32, i32) {
    %c0_i32 = arith.constant 0 : i32
    %c0_i32_0 = arith.constant 0 : i32
    %c0_i32_1 = arith.constant 0 : i32
    return %arg0, %arg1, %c0_i32, %c0_i32_0 : i32, i32, i32, i32
  }
}

module attributes {stable_mosaic.version = 11 : i64} {
  func.func @_out_div_kernel(%arg0: i32, %arg1: i32, %arg2: memref<1x1x8x512xf32, #tpu.memory_space<vmem>>, %arg3: memref<1x1x1x512xf32, #tpu.memory_space<vmem>>, %arg4: memref<27x512xf32, #tpu.memory_space<vmem>>, %arg5: memref<8x8xbf16, #tpu.memory_space<vmem>>, %arg6: memref<8x1xf32, #tpu.memory_space<vmem>>, %arg7: memref<8x8xbf16, #tpu.memory_space<vmem>>, %arg8: memref<8x1xf32, #tpu.memory_space<vmem>>, %arg9: memref<3x216xbf16, #tpu.memory_space<vmem>>, %arg10: memref<3x1xf32, #tpu.memory_space<vmem>>, %arg11: memref<1x1x1x512xf32, #tpu.memory_space<vmem>>, %arg12: memref<216x512xf32, #tpu.memory_space<vmem>>) attributes {dimension_semantics = [#tpu.dimension_semantics<parallel>, #tpu.dimension_semantics<parallel>], iteration_bounds = array<i64: 2, 3>, scalar_prefetch = 0 : i64, scratch_operands = 1 : i64, tpu.core_type = #tpu.core_type<tc>, window_params = [{transform_indices = @transform_0, window_bounds = array<i64: 1, 1, 8, 512>}, {transform_indices = @transform_1, window_bounds = array<i64: 1, 1, 1, 512>}, {pipeline_mode = #tpu.pipeline_mode<synchronous>, transform_indices = @transform_2, window_bounds = array<i64: 27, 512>}, {pipeline_mode = #tpu.pipeline_mode<synchronous>, transform_indices = @transform_3, window_bounds = array<i64: 8, 8>}, {pipeline_mode = #tpu.pipeline_mode<synchronous>, transform_indices = @transform_4, window_bounds = array<i64: 8, 1>}, {pipeline_mode = #tpu.pipeline_mode<synchronous>, transform_indices = @transform_5, window_bounds = array<i64: 8, 8>}, {pipeline_mode = #tpu.pipeline_mode<synchronous>, transform_indices = @transform_6, window_bounds = array<i64: 8, 1>}, {pipeline_mode = #tpu.pipeline_mode<synchronous>, transform_indices = @transform_7, window_bounds = array<i64: 3, 216>}, {pipeline_mode = #tpu.pipeline_mode<synchronous>, transform_indices = @transform_8, window_bounds = array<i64: 3, 1>}, {transform_indices = @transform_9, window_bounds = array<i64: 1, 1, 1, 512>}]} {
    %c0 = arith.constant 0 : index
    %c0_0 = arith.constant 0 : index
    %c0_1 = arith.constant 0 : index
    %c0_2 = arith.constant 0 : index
    %0 = vector.load %arg2[%c0, %c0_0, %c0_1, %c0_2] : memref<1x1x8x512xf32, #tpu.memory_space<vmem>>, vector<1x1x8x512xf32>
    %1 = vector.shape_cast %0 : vector<1x1x8x512xf32> to vector<8x512xf32>
    %c0_3 = arith.constant 0 : index
    %c0_4 = arith.constant 0 : index
    %2 = vector.load %arg5[%c0_3, %c0_4] : memref<8x8xbf16, #tpu.memory_space<vmem>>, vector<8x8xbf16>
    %3 = arith.truncf %1 : vector<8x512xf32> to vector<8x512xbf16>
    %cst = arith.constant dense<0.000000e+00> : vector<8x512xf32>
    %4 = tpu.matmul %2, %3, %cst {dimension_numbers = #tpu.dot_dimension_numbers<[1], [0], [0], [1], [0, 0, 1, 1], [], []>} : vector<8x8xbf16>, vector<8x512xbf16>, vector<8x512xf32> -> vector<8x512xf32>
    %c0_5 = arith.constant 0 : index
    %c0_6 = arith.constant 0 : index
    %5 = vector.load %arg6[%c0_5, %c0_6] : memref<8x1xf32, #tpu.memory_space<vmem>>, vector<8x1xf32>
    %6 = vector.broadcast %5 : vector<8x1xf32> to vector<8x512xf32>
    %7 = arith.addf %4, %6 : vector<8x512xf32>
    %8 = math.tanh %7 : vector<8x512xf32>
    %c0_7 = arith.constant 0 : index
    %c0_8 = arith.constant 0 : index
    %9 = vector.load %arg7[%c0_7, %c0_8] : memref<8x8xbf16, #tpu.memory_space<vmem>>, vector<8x8xbf16>
    %10 = arith.truncf %8 : vector<8x512xf32> to vector<8x512xbf16>
    %cst_9 = arith.constant dense<0.000000e+00> : vector<8x512xf32>
    %11 = tpu.matmul %9, %10, %cst_9 {dimension_numbers = #tpu.dot_dimension_numbers<[1], [0], [0], [1], [0, 0, 1, 1], [], []>} : vector<8x8xbf16>, vector<8x512xbf16>, vector<8x512xf32> -> vector<8x512xf32>
    %c0_10 = arith.constant 0 : index
    %c0_11 = arith.constant 0 : index
    %12 = vector.load %arg8[%c0_10, %c0_11] : memref<8x1xf32, #tpu.memory_space<vmem>>, vector<8x1xf32>
    %13 = vector.broadcast %12 : vector<8x1xf32> to vector<8x512xf32>
    %14 = arith.addf %11, %13 : vector<8x512xf32>
    %15 = math.tanh %14 : vector<8x512xf32>
    %c73_i32 = arith.constant 73 : i32
    %16 = tpu.dynamic_rotate %15 by %c73_i32 dim 1 : vector<8x512xf32>, i32 -> vector<8x512xf32>
    %c0_12 = arith.constant 0 : index
    %c0_13 = arith.constant 0 : index
    %17 = vector.load %arg4[%c0_12, %c0_13] : memref<27x512xf32, #tpu.memory_space<vmem>>, vector<1x512xf32>
    %18 = vector.broadcast %17 : vector<1x512xf32> to vector<8x512xf32>
    %19 = arith.mulf %16, %18 : vector<8x512xf32>
    %c0_14 = arith.constant 0 : index
    %c0_15 = arith.constant 0 : index
    %20 = vector.load %arg12[%c0_14, %c0_15] : memref<216x512xf32, #tpu.memory_space<vmem>>, vector<8x512xf32>
    tpu.vector_store %arg12[%c0_14, %c0_15], %19 {strides = array<i32>} : memref<216x512xf32, #tpu.memory_space<vmem>>, vector<8x512xf32>,
    %c72_i32 = arith.constant 72 : i32
    %21 = tpu.dynamic_rotate %15 by %c72_i32 dim 1 : vector<8x512xf32>, i32 -> vector<8x512xf32>
    %c1 = arith.constant 1 : index
    %c0_16 = arith.constant 0 : index
    %22 = vector.load %arg4[%c1, %c0_16] : memref<27x512xf32, #tpu.memory_space<vmem>>, vector<1x512xf32>
    %23 = vector.broadcast %22 : vector<1x512xf32> to vector<8x512xf32>
    %24 = arith.mulf %21, %23 : vector<8x512xf32>
    %c8 = arith.constant 8 : index
    %c0_17 = arith.constant 0 : index
    %25 = vector.load %arg12[%c8, %c0_17] : memref<216x512xf32, #tpu.memory_space<vmem>>, vector<8x512xf32>
    tpu.vector_store %arg12[%c8, %c0_17], %24 {strides = array<i32>} : memref<216x512xf32, #tpu.memory_space<vmem>>, vector<8x512xf32>,
    %c71_i32 = arith.constant 71 : i32
    %26 = tpu.dynamic_rotate %15 by %c71_i32 dim 1 : vector<8x512xf32>, i32 -> vector<8x512xf32>
    %c2 = arith.constant 2 : index
    %c0_18 = arith.constant 0 : index
    %27 = vector.load %arg4[%c2, %c0_18] : memref<27x512xf32, #tpu.memory_space<vmem>>, vector<1x512xf32>
    %28 = vector.broadcast %27 : vector<1x512xf32> to vector<8x512xf32>
    %29 = arith.mulf %26, %28 : vector<8x512xf32>
    %c16 = arith.constant 16 : index
    %c0_19 = arith.constant 0 : index
    %30 = vector.load %arg12[%c16, %c0_19] : memref<216x512xf32, #tpu.memory_space<vmem>>, vector<8x512xf32>
    tpu.vector_store %arg12[%c16, %c0_19], %29 {strides = array<i32>} : memref<216x512xf32, #tpu.memory_space<vmem>>, vector<8x512xf32>,
    %c65_i32 = arith.constant 65 : i32
    %31 = tpu.dynamic_rotate %15 by %c65_i32 dim 1 : vector<8x512xf32>, i32 -> vector<8x512xf32>
    %c3 = arith.constant 3 : index
    %c0_20 = arith.constant 0 : index
    %32 = vector.load %arg4[%c3, %c0_20] : memref<27x512xf32, #tpu.memory_space<vmem>>, vector<1x512xf32>
    %33 = vector.broadcast %32 : vector<1x512xf32> to vector<8x512xf32>
    %34 = arith.mulf %31, %33 : vector<8x512xf32>
    %c24 = arith.constant 24 : index
    %c0_21 = arith.constant 0 : index
    %35 = vector.load %arg12[%c24, %c0_21] : memref<216x512xf32, #tpu.memory_space<vmem>>, vector<8x512xf32>
    tpu.vector_store %arg12[%c24, %c0_21], %34 {strides = array<i32>} : memref<216x512xf32, #tpu.memory_space<vmem>>, vector<8x512xf32>,
    %c64_i32 = arith.constant 64 : i32
    %36 = tpu.dynamic_rotate %15 by %c64_i32 dim 1 : vector<8x512xf32>, i32 -> vector<8x512xf32>
    %c4 = arith.constant 4 : index
    %c0_22 = arith.constant 0 : index
    %37 = vector.load %arg4[%c4, %c0_22] : memref<27x512xf32, #tpu.memory_space<vmem>>, vector<1x512xf32>
    %38 = vector.broadcast %37 : vector<1x512xf32> to vector<8x512xf32>
    %39 = arith.mulf %36, %38 : vector<8x512xf32>
    %c32 = arith.constant 32 : index
    %c0_23 = arith.constant 0 : index
    %40 = vector.load %arg12[%c32, %c0_23] : memref<216x512xf32, #tpu.memory_space<vmem>>, vector<8x512xf32>
    tpu.vector_store %arg12[%c32, %c0_23], %39 {strides = array<i32>} : memref<216x512xf32, #tpu.memory_space<vmem>>, vector<8x512xf32>,
    %c63_i32 = arith.constant 63 : i32
    %41 = tpu.dynamic_rotate %15 by %c63_i32 dim 1 : vector<8x512xf32>, i32 -> vector<8x512xf32>
    %c5 = arith.constant 5 : index
    %c0_24 = arith.constant 0 : index
    %42 = vector.load %arg4[%c5, %c0_24] : memref<27x512xf32, #tpu.memory_space<vmem>>, vector<1x512xf32>
    %43 = vector.broadcast %42 : vector<1x512xf32> to vector<8x512xf32>
    %44 = arith.mulf %41, %43 : vector<8x512xf32>
    %c40 = arith.constant 40 : index
    %c0_25 = arith.constant 0 : index
    %45 = vector.load %arg12[%c40, %c0_25] : memref<216x512xf32, #tpu.memory_space<vmem>>, vector<8x512xf32>
    tpu.vector_store %arg12[%c40, %c0_25], %44 {strides = array<i32>} : memref<216x512xf32, #tpu.memory_space<vmem>>, vector<8x512xf32>,
    %c57_i32 = arith.constant 57 : i32
    %46 = tpu.dynamic_rotate %15 by %c57_i32 dim 1 : vector<8x512xf32>, i32 -> vector<8x512xf32>
    %c6 = arith.constant 6 : index
    %c0_26 = arith.constant 0 : index
    %47 = vector.load %arg4[%c6, %c0_26] : memref<27x512xf32, #tpu.memory_space<vmem>>, vector<1x512xf32>
    %48 = vector.broadcast %47 : vector<1x512xf32> to vector<8x512xf32>
    %49 = arith.mulf %46, %48 : vector<8x512xf32>
    %c48 = arith.constant 48 : index
    %c0_27 = arith.constant 0 : index
    %50 = vector.load %arg12[%c48, %c0_27] : memref<216x512xf32, #tpu.memory_space<vmem>>, vector<8x512xf32>
    tpu.vector_store %arg12[%c48, %c0_27], %49 {strides = array<i32>} : memref<216x512xf32, #tpu.memory_space<vmem>>, vector<8x512xf32>,
    %c56_i32 = arith.constant 56 : i32
    %51 = tpu.dynamic_rotate %15 by %c56_i32 dim 1 : vector<8x512xf32>, i32 -> vector<8x512xf32>
    %c7 = arith.constant 7 : index
    %c0_28 = arith.constant 0 : index
    %52 = vector.load %arg4[%c7, %c0_28] : memref<27x512xf32, #tpu.memory_space<vmem>>, vector<1x512xf32>
    %53 = vector.broadcast %52 : vector<1x512xf32> to vector<8x512xf32>
    %54 = arith.mulf %51, %53 : vector<8x512xf32>
    %c56 = arith.constant 56 : index
    %c0_29 = arith.constant 0 : index
    %55 = vector.load %arg12[%c56, %c0_29] : memref<216x512xf32, #tpu.memory_space<vmem>>, vector<8x512xf32>
    tpu.vector_store %arg12[%c56, %c0_29], %54 {strides = array<i32>} : memref<216x512xf32, #tpu.memory_space<vmem>>, vector<8x512xf32>,
    %c55_i32 = arith.constant 55 : i32
    %56 = tpu.dynamic_rotate %15 by %c55_i32 dim 1 : vector<8x512xf32>, i32 -> vector<8x512xf32>
    %c8_30 = arith.constant 8 : index
    %c0_31 = arith.constant 0 : index
    %57 = vector.load %arg4[%c8_30, %c0_31] : memref<27x512xf32, #tpu.memory_space<vmem>>, vector<1x512xf32>
    %58 = vector.broadcast %57 : vector<1x512xf32> to vector<8x512xf32>
    %59 = arith.mulf %56, %58 : vector<8x512xf32>
    %c64 = arith.constant 64 : index
    %c0_32 = arith.constant 0 : index
    %60 = vector.load %arg12[%c64, %c0_32] : memref<216x512xf32, #tpu.memory_space<vmem>>, vector<8x512xf32>
    tpu.vector_store %arg12[%c64, %c0_32], %59 {strides = array<i32>} : memref<216x512xf32, #tpu.memory_space<vmem>>, vector<8x512xf32>,
    %c9_i32 = arith.constant 9 : i32
    %61 = tpu.dynamic_rotate %15 by %c9_i32 dim 1 : vector<8x512xf32>, i32 -> vector<8x512xf32>
    %c9 = arith.constant 9 : index
    %c0_33 = arith.constant 0 : index
    %62 = vector.load %arg4[%c9, %c0_33] : memref<27x512xf32, #tpu.memory_space<vmem>>, vector<1x512xf32>
    %63 = vector.broadcast %62 : vector<1x512xf32> to vector<8x512xf32>
    %64 = arith.mulf %61, %63 : vector<8x512xf32>
    %c72 = arith.constant 72 : index
    %c0_34 = arith.constant 0 : index
    %65 = vector.load %arg12[%c72, %c0_34] : memref<216x512xf32, #tpu.memory_space<vmem>>, vector<8x512xf32>
    tpu.vector_store %arg12[%c72, %c0_34], %64 {strides = array<i32>} : memref<216x512xf32, #tpu.memory_space<vmem>>, vector<8x512xf32>,
    %c8_i32 = arith.constant 8 : i32
    %66 = tpu.dynamic_rotate %15 by %c8_i32 dim 1 : vector<8x512xf32>, i32 -> vector<8x512xf32>
    %c10 = arith.constant 10 : index
    %c0_35 = arith.constant 0 : index
    %67 = vector.load %arg4[%c10, %c0_35] : memref<27x512xf32, #tpu.memory_space<vmem>>, vector<1x512xf32>
    %68 = vector.broadcast %67 : vector<1x512xf32> to vector<8x512xf32>
    %69 = arith.mulf %66, %68 : vector<8x512xf32>
    %c80 = arith.constant 80 : index
    %c0_36 = arith.constant 0 : index
    %70 = vector.load %arg12[%c80, %c0_36] : memref<216x512xf32, #tpu.memory_space<vmem>>, vector<8x512xf32>
    tpu.vector_store %arg12[%c80, %c0_36], %69 {strides = array<i32>} : memref<216x512xf32, #tpu.memory_space<vmem>>, vector<8x512xf32>,
    %c7_i32 = arith.constant 7 : i32
    %71 = tpu.dynamic_rotate %15 by %c7_i32 dim 1 : vector<8x512xf32>, i32 -> vector<8x512xf32>
    %c11 = arith.constant 11 : index
    %c0_37 = arith.constant 0 : index
    %72 = vector.load %arg4[%c11, %c0_37] : memref<27x512xf32, #tpu.memory_space<vmem>>, vector<1x512xf32>
    %73 = vector.broadcast %72 : vector<1x512xf32> to vector<8x512xf32>
    %74 = arith.mulf %71, %73 : vector<8x512xf32>
    %c88 = arith.constant 88 : index
    %c0_38 = arith.constant 0 : index
    %75 = vector.load %arg12[%c88, %c0_38] : memref<216x512xf32, #tpu.memory_space<vmem>>, vector<8x512xf32>
    tpu.vector_store %arg12[%c88, %c0_38], %74 {strides = array<i32>} : memref<216x512xf32, #tpu.memory_space<vmem>>, vector<8x512xf32>,
    %c1_i32 = arith.constant 1 : i32
    %76 = tpu.dynamic_rotate %15 by %c1_i32 dim 1 : vector<8x512xf32>, i32 -> vector<8x512xf32>
    %c12 = arith.constant 12 : index
    %c0_39 = arith.constant 0 : index
    %77 = vector.load %arg4[%c12, %c0_39] : memref<27x512xf32, #tpu.memory_space<vmem>>, vector<1x512xf32>
    %78 = vector.broadcast %77 : vector<1x512xf32> to vector<8x512xf32>
    %79 = arith.mulf %76, %78 : vector<8x512xf32>
    %c96 = arith.constant 96 : index
    %c0_40 = arith.constant 0 : index
    %80 = vector.load %arg12[%c96, %c0_40] : memref<216x512xf32, #tpu.memory_space<vmem>>, vector<8x512xf32>
    tpu.vector_store %arg12[%c96, %c0_40], %79 {strides = array<i32>} : memref<216x512xf32, #tpu.memory_space<vmem>>, vector<8x512xf32>,
    %c104 = arith.constant 104 : index
    %c0_41 = arith.constant 0 : index
    %81 = vector.load %arg12[%c104, %c0_41] : memref<216x512xf32, #tpu.memory_space<vmem>>, vector<8x512xf32>
    tpu.vector_store %arg12[%c104, %c0_41], %15 {strides = array<i32>} : memref<216x512xf32, #tpu.memory_space<vmem>>, vector<8x512xf32>,
    %c511_i32 = arith.constant 511 : i32
    %82 = tpu.dynamic_rotate %15 by %c511_i32 dim 1 : vector<8x512xf32>, i32 -> vector<8x512xf32>
    %c14 = arith.constant 14 : index
    %c0_42 = arith.constant 0 : index
    %83 = vector.load %arg4[%c14, %c0_42] : memref<27x512xf32, #tpu.memory_space<vmem>>, vector<1x512xf32>
    %84 = vector.broadcast %83 : vector<1x512xf32> to vector<8x512xf32>
    %85 = arith.mulf %82, %84 : vector<8x512xf32>
    %c112 = arith.constant 112 : index
    %c0_43 = arith.constant 0 : index
    %86 = vector.load %arg12[%c112, %c0_43] : memref<216x512xf32, #tpu.memory_space<vmem>>, vector<8x512xf32>
    tpu.vector_store %arg12[%c112, %c0_43], %85 {strides = array<i32>} : memref<216x512xf32, #tpu.memory_space<vmem>>, vector<8x512xf32>,
    %c505_i32 = arith.constant 505 : i32
    %87 = tpu.dynamic_rotate %15 by %c505_i32 dim 1 : vector<8x512xf32>, i32 -> vector<8x512xf32>
    %c15 = arith.constant 15 : index
    %c0_44 = arith.constant 0 : index
    %88 = vector.load %arg4[%c15, %c0_44] : memref<27x512xf32, #tpu.memory_space<vmem>>, vector<1x512xf32>
    %89 = vector.broadcast %88 : vector<1x512xf32> to vector<8x512xf32>
    %90 = arith.mulf %87, %89 : vector<8x512xf32>
    %c120 = arith.constant 120 : index
    %c0_45 = arith.constant 0 : index
    %91 = vector.load %arg12[%c120, %c0_45] : memref<216x512xf32, #tpu.memory_space<vmem>>, vector<8x512xf32>
    tpu.vector_store %arg12[%c120, %c0_45], %90 {strides = array<i32>} : memref<216x512xf32, #tpu.memory_space<vmem>>, vector<8x512xf32>,
    %c504_i32 = arith.constant 504 : i32
    %92 = tpu.dynamic_rotate %15 by %c504_i32 dim 1 : vector<8x512xf32>, i32 -> vector<8x512xf32>
    %c16_46 = arith.constant 16 : index
    %c0_47 = arith.constant 0 : index
    %93 = vector.load %arg4[%c16_46, %c0_47] : memref<27x512xf32, #tpu.memory_space<vmem>>, vector<1x512xf32>
    %94 = vector.broadcast %93 : vector<1x512xf32> to vector<8x512xf32>
    %95 = arith.mulf %92, %94 : vector<8x512xf32>
    %c128 = arith.constant 128 : index
    %c0_48 = arith.constant 0 : index
    %96 = vector.load %arg12[%c128, %c0_48] : memref<216x512xf32, #tpu.memory_space<vmem>>, vector<8x512xf32>
    tpu.vector_store %arg12[%c128, %c0_48], %95 {strides = array<i32>} : memref<216x512xf32, #tpu.memory_space<vmem>>, vector<8x512xf32>,
    %c503_i32 = arith.constant 503 : i32
    %97 = tpu.dynamic_rotate %15 by %c503_i32 dim 1 : vector<8x512xf32>, i32 -> vector<8x512xf32>
    %c17 = arith.constant 17 : index
    %c0_49 = arith.constant 0 : index
    %98 = vector.load %arg4[%c17, %c0_49] : memref<27x512xf32, #tpu.memory_space<vmem>>, vector<1x512xf32>
    %99 = vector.broadcast %98 : vector<1x512xf32> to vector<8x512xf32>
    %100 = arith.mulf %97, %99 : vector<8x512xf32>
    %c136 = arith.constant 136 : index
    %c0_50 = arith.constant 0 : index
    %101 = vector.load %arg12[%c136, %c0_50] : memref<216x512xf32, #tpu.memory_space<vmem>>, vector<8x512xf32>
    tpu.vector_store %arg12[%c136, %c0_50], %100 {strides = array<i32>} : memref<216x512xf32, #tpu.memory_space<vmem>>, vector<8x512xf32>,
    %c457_i32 = arith.constant 457 : i32
    %102 = tpu.dynamic_rotate %15 by %c457_i32 dim 1 : vector<8x512xf32>, i32 -> vector<8x512xf32>
    %c18 = arith.constant 18 : index
    %c0_51 = arith.constant 0 : index
    %103 = vector.load %arg4[%c18, %c0_51] : memref<27x512xf32, #tpu.memory_space<vmem>>, vector<1x512xf32>
    %104 = vector.broadcast %103 : vector<1x512xf32> to vector<8x512xf32>
    %105 = arith.mulf %102, %104 : vector<8x512xf32>
    %c144 = arith.constant 144 : index
    %c0_52 = arith.constant 0 : index
    %106 = vector.load %arg12[%c144, %c0_52] : memref<216x512xf32, #tpu.memory_space<vmem>>, vector<8x512xf32>
    tpu.vector_store %arg12[%c144, %c0_52], %105 {strides = array<i32>} : memref<216x512xf32, #tpu.memory_space<vmem>>, vector<8x512xf32>,
    %c456_i32 = arith.constant 456 : i32
    %107 = tpu.dynamic_rotate %15 by %c456_i32 dim 1 : vector<8x512xf32>, i32 -> vector<8x512xf32>
    %c19 = arith.constant 19 : index
    %c0_53 = arith.constant 0 : index
    %108 = vector.load %arg4[%c19, %c0_53] : memref<27x512xf32, #tpu.memory_space<vmem>>, vector<1x512xf32>
    %109 = vector.broadcast %108 : vector<1x512xf32> to vector<8x512xf32>
    %110 = arith.mulf %107, %109 : vector<8x512xf32>
    %c152 = arith.constant 152 : index
    %c0_54 = arith.constant 0 : index
    %111 = vector.load %arg12[%c152, %c0_54] : memref<216x512xf32, #tpu.memory_space<vmem>>, vector<8x512xf32>
    tpu.vector_store %arg12[%c152, %c0_54], %110 {strides = array<i32>} : memref<216x512xf32, #tpu.memory_space<vmem>>, vector<8x512xf32>,
    %c455_i32 = arith.constant 455 : i32
    %112 = tpu.dynamic_rotate %15 by %c455_i32 dim 1 : vector<8x512xf32>, i32 -> vector<8x512xf32>
    %c20 = arith.constant 20 : index
    %c0_55 = arith.constant 0 : index
    %113 = vector.load %arg4[%c20, %c0_55] : memref<27x512xf32, #tpu.memory_space<vmem>>, vector<1x512xf32>
    %114 = vector.broadcast %113 : vector<1x512xf32> to vector<8x512xf32>
    %115 = arith.mulf %112, %114 : vector<8x512xf32>
    %c160 = arith.constant 160 : index
    %c0_56 = arith.constant 0 : index
    %116 = vector.load %arg12[%c160, %c0_56] : memref<216x512xf32, #tpu.memory_space<vmem>>, vector<8x512xf32>
    tpu.vector_store %arg12[%c160, %c0_56], %115 {strides = array<i32>} : memref<216x512xf32, #tpu.memory_space<vmem>>, vector<8x512xf32>,
    %c449_i32 = arith.constant 449 : i32
    %117 = tpu.dynamic_rotate %15 by %c449_i32 dim 1 : vector<8x512xf32>, i32 -> vector<8x512xf32>
    %c21 = arith.constant 21 : index
    %c0_57 = arith.constant 0 : index
    %118 = vector.load %arg4[%c21, %c0_57] : memref<27x512xf32, #tpu.memory_space<vmem>>, vector<1x512xf32>
    %119 = vector.broadcast %118 : vector<1x512xf32> to vector<8x512xf32>
    %120 = arith.mulf %117, %119 : vector<8x512xf32>
    %c168 = arith.constant 168 : index
    %c0_58 = arith.constant 0 : index
    %121 = vector.load %arg12[%c168, %c0_58] : memref<216x512xf32, #tpu.memory_space<vmem>>, vector<8x512xf32>
    tpu.vector_store %arg12[%c168, %c0_58], %120 {strides = array<i32>} : memref<216x512xf32, #tpu.memory_space<vmem>>, vector<8x512xf32>,
    %c448_i32 = arith.constant 448 : i32
    %122 = tpu.dynamic_rotate %15 by %c448_i32 dim 1 : vector<8x512xf32>, i32 -> vector<8x512xf32>
    %c22 = arith.constant 22 : index
    %c0_59 = arith.constant 0 : index
    %123 = vector.load %arg4[%c22, %c0_59] : memref<27x512xf32, #tpu.memory_space<vmem>>, vector<1x512xf32>
    %124 = vector.broadcast %123 : vector<1x512xf32> to vector<8x512xf32>
    %125 = arith.mulf %122, %124 : vector<8x512xf32>
    %c176 = arith.constant 176 : index
    %c0_60 = arith.constant 0 : index
    %126 = vector.load %arg12[%c176, %c0_60] : memref<216x512xf32, #tpu.memory_space<vmem>>, vector<8x512xf32>
    tpu.vector_store %arg12[%c176, %c0_60], %125 {strides = array<i32>} : memref<216x512xf32, #tpu.memory_space<vmem>>, vector<8x512xf32>,
    %c447_i32 = arith.constant 447 : i32
    %127 = tpu.dynamic_rotate %15 by %c447_i32 dim 1 : vector<8x512xf32>, i32 -> vector<8x512xf32>
    %c23 = arith.constant 23 : index
    %c0_61 = arith.constant 0 : index
    %128 = vector.load %arg4[%c23, %c0_61] : memref<27x512xf32, #tpu.memory_space<vmem>>, vector<1x512xf32>
    %129 = vector.broadcast %128 : vector<1x512xf32> to vector<8x512xf32>
    %130 = arith.mulf %127, %129 : vector<8x512xf32>
    %c184 = arith.constant 184 : index
    %c0_62 = arith.constant 0 : index
    %131 = vector.load %arg12[%c184, %c0_62] : memref<216x512xf32, #tpu.memory_space<vmem>>, vector<8x512xf32>
    tpu.vector_store %arg12[%c184, %c0_62], %130 {strides = array<i32>} : memref<216x512xf32, #tpu.memory_space<vmem>>, vector<8x512xf32>,
    %c441_i32 = arith.constant 441 : i32
    %132 = tpu.dynamic_rotate %15 by %c441_i32 dim 1 : vector<8x512xf32>, i32 -> vector<8x512xf32>
    %c24_63 = arith.constant 24 : index
    %c0_64 = arith.constant 0 : index
    %133 = vector.load %arg4[%c24_63, %c0_64] : memref<27x512xf32, #tpu.memory_space<vmem>>, vector<1x512xf32>
    %134 = vector.broadcast %133 : vector<1x512xf32> to vector<8x512xf32>
    %135 = arith.mulf %132, %134 : vector<8x512xf32>
    %c192 = arith.constant 192 : index
    %c0_65 = arith.constant 0 : index
    %136 = vector.load %arg12[%c192, %c0_65] : memref<216x512xf32, #tpu.memory_space<vmem>>, vector<8x512xf32>
    tpu.vector_store %arg12[%c192, %c0_65], %135 {strides = array<i32>} : memref<216x512xf32, #tpu.memory_space<vmem>>, vector<8x512xf32>,
    %c440_i32 = arith.constant 440 : i32
    %137 = tpu.dynamic_rotate %15 by %c440_i32 dim 1 : vector<8x512xf32>, i32 -> vector<8x512xf32>
    %c25 = arith.constant 25 : index
    %c0_66 = arith.constant 0 : index
    %138 = vector.load %arg4[%c25, %c0_66] : memref<27x512xf32, #tpu.memory_space<vmem>>, vector<1x512xf32>
    %139 = vector.broadcast %138 : vector<1x512xf32> to vector<8x512xf32>
    %140 = arith.mulf %137, %139 : vector<8x512xf32>
    %c200 = arith.constant 200 : index
    %c0_67 = arith.constant 0 : index
    %141 = vector.load %arg12[%c200, %c0_67] : memref<216x512xf32, #tpu.memory_space<vmem>>, vector<8x512xf32>
    tpu.vector_store %arg12[%c200, %c0_67], %140 {strides = array<i32>} : memref<216x512xf32, #tpu.memory_space<vmem>>, vector<8x512xf32>,
    %c439_i32 = arith.constant 439 : i32
    %142 = tpu.dynamic_rotate %15 by %c439_i32 dim 1 : vector<8x512xf32>, i32 -> vector<8x512xf32>
    %c26 = arith.constant 26 : index
    %c0_68 = arith.constant 0 : index
    %143 = vector.load %arg4[%c26, %c0_68] : memref<27x512xf32, #tpu.memory_space<vmem>>, vector<1x512xf32>
    %144 = vector.broadcast %143 : vector<1x512xf32> to vector<8x512xf32>
    %145 = arith.mulf %142, %144 : vector<8x512xf32>
    %c208 = arith.constant 208 : index
    %c0_69 = arith.constant 0 : index
    %146 = vector.load %arg12[%c208, %c0_69] : memref<216x512xf32, #tpu.memory_space<vmem>>, vector<8x512xf32>
    tpu.vector_store %arg12[%c208, %c0_69], %145 {strides = array<i32>} : memref<216x512xf32, #tpu.memory_space<vmem>>, vector<8x512xf32>,
    %c0_70 = arith.constant 0 : index
    %c0_71 = arith.constant 0 : index
    %147 = vector.load %arg12[%c0_70, %c0_71] : memref<216x512xf32, #tpu.memory_space<vmem>>, vector<216x512xf32>
    %148 = arith.truncf %147 : vector<216x512xf32> to vector<216x512xbf16>
    %c0_72 = arith.constant 0 : index
    %c0_73 = arith.constant 0 : index
    %149 = vector.load %arg9[%c0_72, %c0_73] : memref<3x216xbf16, #tpu.memory_space<vmem>>, vector<3x216xbf16>
    %cst_74 = arith.constant dense<0.000000e+00> : vector<3x512xf32>
    %150 = tpu.matmul %149, %148, %cst_74 {dimension_numbers = #tpu.dot_dimension_numbers<[1], [0], [0], [1], [0, 0, 1, 1], [], []>} : vector<3x216xbf16>, vector<216x512xbf16>, vector<3x512xf32> -> vector<3x512xf32>
    %c0_75 = arith.constant 0 : index
    %c0_76 = arith.constant 0 : index
    %151 = vector.load %arg10[%c0_75, %c0_76] : memref<3x1xf32, #tpu.memory_space<vmem>>, vector<3x1xf32>
    %152 = vector.broadcast %151 : vector<3x1xf32> to vector<3x512xf32>
    %153 = arith.addf %150, %152 : vector<3x512xf32>
    %cst_77 = arith.constant dense<0.000000e+00> : vector<3xf32>
    %154 = vector.multi_reduction <add>, %153, %cst_77 [1] : vector<3x512xf32> to vector<3xf32>
    %155 = vector.shape_cast %154 : vector<3xf32> to vector<3x1xf32>
    %cst_78 = arith.constant 5.120000e+02 : f32
    %156 = vector.broadcast %cst_78 : f32 to vector<3x1xf32>
    %157 = arith.divf %155, %156 : vector<3x1xf32>
    %158 = vector.broadcast %157 : vector<3x1xf32> to vector<3x512xf32>
    %159 = arith.subf %153, %158 : vector<3x512xf32>
    %160 = vector.extract_strided_slice %159 {offsets = [0, 0], sizes = [1, 512], strides = [1, 1]} : vector<3x512xf32> to vector<1x512xf32>
    %c64_i32_79 = arith.constant 64 : i32
    %161 = tpu.dynamic_rotate %160 by %c64_i32_79 dim 1 : vector<1x512xf32>, i32 -> vector<1x512xf32>
    %c4_80 = arith.constant 4 : index
    %c0_81 = arith.constant 0 : index
    %162 = vector.load %arg4[%c4_80, %c0_81] : memref<27x512xf32, #tpu.memory_space<vmem>>, vector<1x512xf32>
    %163 = arith.mulf %161, %162 : vector<1x512xf32>
    %c448_i32_82 = arith.constant 448 : i32
    %164 = tpu.dynamic_rotate %160 by %c448_i32_82 dim 1 : vector<1x512xf32>, i32 -> vector<1x512xf32>
    %c22_83 = arith.constant 22 : index
    %c0_84 = arith.constant 0 : index
    %165 = vector.load %arg4[%c22_83, %c0_84] : memref<27x512xf32, #tpu.memory_space<vmem>>, vector<1x512xf32>
    %166 = arith.mulf %164, %165 : vector<1x512xf32>
    %167 = arith.subf %163, %166 : vector<1x512xf32>
    %168 = vector.extract_strided_slice %159 {offsets = [1, 0], sizes = [1, 512], strides = [1, 1]} : vector<3x512xf32> to vector<1x512xf32>
    %c8_i32_85 = arith.constant 8 : i32
    %169 = tpu.dynamic_rotate %168 by %c8_i32_85 dim 1 : vector<1x512xf32>, i32 -> vector<1x512xf32>
    %c10_86 = arith.constant 10 : index
    %c0_87 = arith.constant 0 : index
    %170 = vector.load %arg4[%c10_86, %c0_87] : memref<27x512xf32, #tpu.memory_space<vmem>>, vector<1x512xf32>
    %171 = arith.mulf %169, %170 : vector<1x512xf32>
    %c504_i32_88 = arith.constant 504 : i32
    %172 = tpu.dynamic_rotate %168 by %c504_i32_88 dim 1 : vector<1x512xf32>, i32 -> vector<1x512xf32>
    %c16_89 = arith.constant 16 : index
    %c0_90 = arith.constant 0 : index
    %173 = vector.load %arg4[%c16_89, %c0_90] : memref<27x512xf32, #tpu.memory_space<vmem>>, vector<1x512xf32>
    %174 = arith.mulf %172, %173 : vector<1x512xf32>
    %175 = arith.subf %171, %174 : vector<1x512xf32>
    %176 = arith.addf %167, %175 : vector<1x512xf32>
    %177 = vector.extract_strided_slice %159 {offsets = [2, 0], sizes = [1, 512], strides = [1, 1]} : vector<3x512xf32> to vector<1x512xf32>
    %c1_i32_91 = arith.constant 1 : i32
    %178 = tpu.dynamic_rotate %177 by %c1_i32_91 dim 1 : vector<1x512xf32>, i32 -> vector<1x512xf32>
    %c12_92 = arith.constant 12 : index
    %c0_93 = arith.constant 0 : index
    %179 = vector.load %arg4[%c12_92, %c0_93] : memref<27x512xf32, #tpu.memory_space<vmem>>, vector<1x512xf32>
    %180 = arith.mulf %178, %179 : vector<1x512xf32>
    %c511_i32_94 = arith.constant 511 : i32
    %181 = tpu.dynamic_rotate %177 by %c511_i32_94 dim 1 : vector<1x512xf32>, i32 -> vector<1x512xf32>
    %c14_95 = arith.constant 14 : index
    %c0_96 = arith.constant 0 : index
    %182 = vector.load %arg4[%c14_95, %c0_96] : memref<27x512xf32, #tpu.memory_space<vmem>>, vector<1x512xf32>
    %183 = arith.mulf %181, %182 : vector<1x512xf32>
    %184 = arith.subf %180, %183 : vector<1x512xf32>
    %185 = arith.addf %176, %184 : vector<1x512xf32>
    %c0_97 = arith.constant 0 : index
    %c0_98 = arith.constant 0 : index
    %c0_99 = arith.constant 0 : index
    %c0_100 = arith.constant 0 : index
    %186 = vector.load %arg3[%c0_97, %c0_98, %c0_99, %c0_100] : memref<1x1x1x512xf32, #tpu.memory_space<vmem>>, vector<1x1x1x512xf32>
    %187 = vector.shape_cast %186 : vector<1x1x1x512xf32> to vector<1x512xf32>
    %188 = arith.addf %187, %185 : vector<1x512xf32>
    %c0_101 = arith.constant 0 : index
    %c0_102 = arith.constant 0 : index
    %c0_103 = arith.constant 0 : index
    %c0_104 = arith.constant 0 : index
    %189 = vector.load %arg11[%c0_101, %c0_102, %c0_103, %c0_104] : memref<1x1x1x512xf32, #tpu.memory_space<vmem>>, vector<1x1x1x512xf32>
    %190 = vector.shape_cast %189 : vector<1x1x1x512xf32> to vector<1x512xf32>
    %191 = vector.shape_cast %188 : vector<1x512xf32> to vector<1x1x1x512xf32>
    tpu.vector_store %arg11[%c0_101, %c0_102, %c0_103, %c0_104], %191 {strides = array<i32>} : memref<1x1x1x512xf32, #tpu.memory_space<vmem>>, vector<1x1x1x512xf32>,
    return
  }
  func.func @transform_0(%arg0: i32, %arg1: i32) -> (i32, i32, i32, i32) {
    %c0_i32 = arith.constant 0 : i32
    %c0_i32_0 = arith.constant 0 : i32
    %c0_i32_1 = arith.constant 0 : i32
    return %arg0, %arg1, %c0_i32, %c0_i32_0 : i32, i32, i32, i32
  }
  func.func @transform_1(%arg0: i32, %arg1: i32) -> (i32, i32, i32, i32) {
    %c0_i32 = arith.constant 0 : i32
    %c0_i32_0 = arith.constant 0 : i32
    %c0_i32_1 = arith.constant 0 : i32
    return %arg0, %arg1, %c0_i32, %c0_i32_0 : i32, i32, i32, i32
  }
  func.func @transform_2(%arg0: i32, %arg1: i32) -> (i32, i32) {
    %c0_i32 = arith.constant 0 : i32
    %c0_i32_0 = arith.constant 0 : i32
    %c0_i32_1 = arith.constant 0 : i32
    return %c0_i32, %c0_i32_0 : i32, i32
  }
  func.func @transform_3(%arg0: i32, %arg1: i32) -> (i32, i32) {
    %c0_i32 = arith.constant 0 : i32
    %c0_i32_0 = arith.constant 0 : i32
    %c0_i32_1 = arith.constant 0 : i32
    return %c0_i32, %c0_i32_0 : i32, i32
  }
  func.func @transform_4(%arg0: i32, %arg1: i32) -> (i32, i32) {
    %c0_i32 = arith.constant 0 : i32
    %c0_i32_0 = arith.constant 0 : i32
    %c0_i32_1 = arith.constant 0 : i32
    return %c0_i32, %c0_i32_0 : i32, i32
  }
  func.func @transform_5(%arg0: i32, %arg1: i32) -> (i32, i32) {
    %c0_i32 = arith.constant 0 : i32
    %c0_i32_0 = arith.constant 0 : i32
    %c0_i32_1 = arith.constant 0 : i32
    return %c0_i32, %c0_i32_0 : i32, i32
  }
  func.func @transform_6(%arg0: i32, %arg1: i32) -> (i32, i32) {
    %c0_i32 = arith.constant 0 : i32
    %c0_i32_0 = arith.constant 0 : i32
    %c0_i32_1 = arith.constant 0 : i32
    return %c0_i32, %c0_i32_0 : i32, i32
  }
  func.func @transform_7(%arg0: i32, %arg1: i32) -> (i32, i32) {
    %c0_i32 = arith.constant 0 : i32
    %c0_i32_0 = arith.constant 0 : i32
    %c0_i32_1 = arith.constant 0 : i32
    return %c0_i32, %c0_i32_0 : i32, i32
  }
  func.func @transform_8(%arg0: i32, %arg1: i32) -> (i32, i32) {
    %c0_i32 = arith.constant 0 : i32
    %c0_i32_0 = arith.constant 0 : i32
    %c0_i32_1 = arith.constant 0 : i32
    return %c0_i32, %c0_i32_0 : i32, i32
  }
  func.func @transform_9(%arg0: i32, %arg1: i32) -> (i32, i32, i32, i32) {
    %c0_i32 = arith.constant 0 : i32
    %c0_i32_0 = arith.constant 0 : i32
    %c0_i32_1 = arith.constant 0 : i32
    return %arg0, %arg1, %c0_i32, %c0_i32_0 : i32, i32, i32, i32
  }
}

</mosaic_0001>

<bundles_post_ra>
// kernel: convgru3d_forward.5
= control target key start
LH: loop header
LB: loop body
LE: loop exit
PB: predicated region body
PF: predicated region fallthrough
CT: control target
= control target key end

     0   :  { %s2759_s21 = smov 0   ;;  %s2761_s22 = smov 0   ;;  %s3552_s0 = inlined_call_operand.vmem [shape: f32[2,3,1,512], index: 0, kind: input, shape index: {}]   ;;  %s3553_s1 = inlined_call_operand.vmem [shape: f32[27,512], index: 1, kind: input, shape index: {}]   ;;  %s3554_s2 = inlined_call_operand.vmem [shape: bf16[24,27], index: 2, kind: input, shape index: {}]   ;;  %s3555_s3 = inlined_call_operand.vmem [shape: f32[24,1], index: 3, kind: input, shape index: {}]   ;;  %s3556_s4 = inlined_call_operand.vmem [shape: bf16[24,24], index: 4, kind: input, shape index: {}]   ;;  %s3557_s5 = inlined_call_operand.vmem [shape: f32[24,1], index: 5, kind: input, shape index: {}]   ;;  %s3558_s6 = inlined_call_operand.vmem [shape: f32[2,3,24,512], index: 6, kind: output, shape index: {}]  }
   0x1   :  { %s2763_s23 = smov 0   ;;  %s2765_s24 = smov 0  }
   0x2   :  { %s2767_s25 = smov 0  }
   0x3 LB: > { %s25_s26 = sadd.s32 1, %s2694_s23  ;;  %s28_s27 = sadd.s32 1, %s2698_s24  ;;  %s2702_s25 = sphi %s2767_s25, %s16_s25   ;;  %s2698_s24 = sphi %s2765_s24, %s3564_s24   ;;  %s2694_s23 = sphi %s2763_s23, %s3563_s23   ;;  %s2690_s22 = sphi %s2761_s22, %s3562_s22   ;;  %s2686_s21 = sphi %s2759_s21, %s3561_s21  }
   0x4   : > { %p26_p0 = scmp.ge.s32.totalorder %s25_s26, 3  ;;  %p2527_p1 = scmp.ge.s32.totalorder %s2702_s25, 1 }
   0x5   : > { %p231_p2 = scmp.lt.s32.totalorder %s2702_s25, 7 }
   0x6   : > { %s3566_s26 = smov (%p26_p0, %s25_s26), 0  ;;  %s3568_s27 = smov (!%p26_p0, %s28_s27), %s2698_s24 }
   0x7   : > { %p232_p3 = pnand %p2527_p1, %p231_p2  ;;  %p30_p4 = scmp.ge.s32.totalorder %s3568_s27, 2 }
   0x8   : > { %p268_p5 = scmp.lt.s32.totalorder (!%p232_p3), %s2690_s22, 1  ;;  %p270_p6 = scmp.lt.s32.totalorder (!%p232_p3), %s2686_s21, 2  ;;  %v288_v0 = vlaneseq (!%p232_p3)  ;;  %v2718_v12 = vmov (!%p232_p3), 1966171168  }
   0x9   : > { %s3570_s27 = smov (%p30_p4, %s3568_s27), 0  ;;  %235 = sbr.rel (%p232_p3) target bundleno = 765 (0x2fd), region = 44 }
   0xa   : > { %v2792_v1 = vshrl.u32 (!%p232_p3), %v288_v0, 7  ;;  %vm2814_vm0 = vcmp.lt.s32.totalorder (!%p232_p3), %v288_v0, 512  ;;  %s2704_s10 = smov (!%p232_p3), 73   ;;  %s2705_s11 = smov (!%p232_p3), 72   ;;  %v356_v13 = vunpack.c.l.s4 (!%p232_p3), %v2718_v12  ;;  %v2889_v14 = vand.u32 (!%p232_p3), 127, %v288_v0 }
   0xb   : > { %s2706_s12 = smov (!%p232_p3), 71   ;;  %s2707_s13 = smov (!%p232_p3), 65   ;;  %v323_v16 = vld [vmem:[%s3553_s1] ss:$8 sm:$0xf] (!%p232_p3) }
   0xc   : > { %v2799_v2 = vsub.s32 (!%p232_p3), 2, %v2792_v1  ;;  %v2802_v3 = vsub.s32 (!%p232_p3), 0, %v2792_v1  ;;  %v2808_v4 = vsub.s32 (!%p232_p3), 3, %v2792_v1  ;;  %v2811_v5 = vsub.s32 (!%p232_p3), 1, %v2792_v1  ;;  %s2708_s14 = smov (!%p232_p3), 64   ;;  %s2709_s15 = smov (!%p232_p3), 63  }
   0xd   : > { %s2710_s16 = smov (!%p232_p3), 57   ;;  %s2711_s17 = smov (!%p232_p3), 56   ;;  %v357_v15 = vunpack.c.0.s8 (!%p232_p3), %v356_v13  ;;  %v2546_v17 = vld [vmem:[%s3553_s1 + $0x42] ss:$8 sm:$0xf] (!%p232_p3)  ;;  %vm318_vm1 = vcmp.lt.s32.totalorder (!%p232_p3), %v2889_v14, 73 }
   0xe   : > { %s2712_s18 = smov (!%p232_p3), 55   ;;  %s2713_s19 = smov (!%p232_p3), 9   ;;  %v328_v21 = vrot.slane (!%p232_p3), %v323_v16, %v2802_v3  ;;  %v2907_v22 = vld [vmem:[%s3553_s1 + $0x1] ss:$8 sm:$0xf] (!%p232_p3)  ;;  %v340_v24 = vrot.slane (!%p232_p3), %v323_v16, %v2808_v4  ;;  %v1553_v25 = vrot.slane (!%p232_p3), %v2546_v17, %v2799_v2  ;;  %v1557_v26 = vrot.slane (!%p232_p3), %v2546_v17, %v2808_v4 }
   0xf   : > { %s2714_s20 = smov (!%p232_p3), 8   ;;  %v2901_v18 = vsub.s32 (!%p232_p3), %v357_v15, %v2792_v1  ;;  %v2912_v23 = vld [vmem:[%s3553_s1 + $0x43] ss:$8 sm:$0xf] (!%p232_p3)  ;;  %v332_v27 = vrot.slane (!%p232_p3), %v323_v16, %v2811_v5  ;;  %v336_v28 = vrot.slane (!%p232_p3), %v323_v16, %v2799_v2  ;;  %v1545_v29 = vrot.slane (!%p232_p3), %v2546_v17, %v2802_v3  ;;  %s2721_s8 = smov (!%p232_p3), 119  }
  0x10   : > { %s3572_s22 = smov (!%p268_p5, %s2690_s22), 1  ;;  %s3574_s21 = smov (!%p270_p6, %s2686_s21), 2  ;;  %v1549_v30 = vrot.slane %v2546_v17, %v2811_v5  ;;  %vm392_vm2 = vcmp.lt.s32.totalorder %v2889_v14, 72  ;;  %v407_v31 = vrot.slane %v2907_v22, %v2811_v5  ;;  %v1604_v32 = vrot.slane %v2912_v23, %v2802_v3  ;;  %v2951_v45 = vld [vmem:[%s3553_s1 + $0x2] ss:$8 sm:$0xf] }
  0x11   : > { %s2571_s28 = smul.u32 12, %s3572_s22  ;;  %s2528_s29 = sshll.u32 %s3574_s21, 2  ;;  %v403_v33 = vrot.slane %v2907_v22, %v2802_v3  ;;  %v1616_v34 = vrot.slane %v2912_v23, %v2808_v4  ;;  %v411_v37 = vrot.slane %v2907_v22, %v2799_v2  ;;  %v415_v38 = vrot.slane %v2907_v22, %v2808_v4  ;;  %v2956_v46 = vld [vmem:[%s3553_s1 + $0x44] ss:$8 sm:$0xf] }
  0x12   : > { %v1608_v39 = vrot.slane %v2912_v23, %v2811_v5  ;;  %v1612_v40 = vrot.slane %v2912_v23, %v2799_v2  ;;  %vm464_vm3 = vcmp.lt.s32.totalorder %v2889_v14, 71  ;;  %v479_v58 = vrot.slane %v2951_v45, %v2811_v5 }
  0x13   : > { %s274_s30 = sadd.s32 %s2571_s28, %s2528_s29  ;;  %s2715_s28 = smov 7   ;;  %v1663_v59 = vrot.slane %v2956_v46, %v2802_v3  ;;  %v475_v1 = vrot.slane %v2951_v45, %v2802_v3  ;;  %v483_v12 = vrot.slane %v2951_v45, %v2799_v2  ;;  %v487_v17 = vrot.slane %v2951_v45, %v2808_v4 }
  0x14   : > { %s275_s9 = scalar_lea.vmem %s3552_s0, %s274_s30  ;;  %s2716_s29 = smov 1   ;;  %vm536_vm4 = vcmp.lt.s32.totalorder %v2889_v14, 65  ;;  %vm608_vm5 = vcmp.lt.s32.totalorder %v2889_v14, 64  ;;  %vm680_vm6 = vcmp.lt.s32.totalorder %v2889_v14, 63  ;;  %vm752_vm7 = vcmp.lt.s32.totalorder %v2889_v14, 57 }
  0x15   : > { %v286_v6 = vld [vmem:[%s275_s9] sm:$0xf]  ;;  %s2717_s30 = smov 127   ;;  %s2719_s9 = smov 121   ;;  %vm824_vm8 = vcmp.lt.s32.totalorder %v2889_v14, 56  ;;  %vm896_vm9 = vcmp.lt.s32.totalorder %v2889_v14, 55 }
  0x16   : > { %v2819_v8 = vrot.slane %v286_v6, %v2799_v2  ;;  %v2822_v9 = vrot.slane %v286_v6, %v2802_v3  ;;  %1249 = vst.msk [vmem:[#allocation2 + $0x25] ss:$8 sm:$0xf] %vm2814_vm0, %v286_v6  ;;  %v2829_v10 = vrot.slane %v286_v6, %v2808_v4  ;;  %v2832_v11 = vrot.slane %v286_v6, %v2811_v5 }
  0x17   : > { %v1675_v6 = vrot.slane %v2956_v46, %v2808_v4  ;;  %vm968_vm10 = vcmp.lt.s32.totalorder %v2889_v14, 9  ;;  %vm1040_vm11 = vcmp.lt.s32.totalorder %v2889_v14, 8  ;;  %vm1112_vm12 = vcmp.lt.s32.totalorder %v2889_v14, 7 }
  0x18   : > { %312 = vrot.lane.b32.xlu1 %v2819_v8, %s2704_s10  ;;  %308 = vrot.lane.b32.xlu0 %v2822_v9, %s2704_s10  ;;  %vm1184_vm13 = vcmp.lt.s32.totalorder %v2889_v14, 1  ;;  %vm1259_vm14 = vcmp.lt.s32.totalorder %v2889_v14, 127  ;;  %vm1331_vm15 = vcmp.lt.s32.totalorder %v2889_v14, 121 }
  0x1c   : > { %314 = vrot.lane.b32.xlu1 %v2829_v10, %s2704_s10  ;;  %310 = vrot.lane.b32.xlu0 %v2832_v11, %s2704_s10 }
  0x20   : > { %386 = vrot.lane.b32.xlu1 %v2832_v11, %s2705_s11  ;;  %384 = vrot.lane.b32.xlu0 %v2822_v9, %s2705_s11 }
  0x24   : > { %390 = vrot.lane.b32.xlu1 %v2829_v10, %s2705_s11  ;;  %388 = vrot.lane.b32.xlu0 %v2819_v8, %s2705_s11 }
  0x28   : > { %458 = vrot.lane.b32.xlu1 %v2832_v11, %s2706_s12  ;;  %456 = vrot.lane.b32.xlu0 %v2822_v9, %s2706_s12 }
  0x2c   : > { %462 = vrot.lane.b32.xlu1 %v2829_v10, %s2706_s12  ;;  %460 = vrot.lane.b32.xlu0 %v2819_v8, %s2706_s12 }
  0x30   : > { %530 = vrot.lane.b32.xlu1 %v2832_v11, %s2707_s13  ;;  %528 = vrot.lane.b32.xlu0 %v2822_v9, %s2707_s13 }
  0x34   : > { %534 = vrot.lane.b32.xlu1 %v2829_v10, %s2707_s13  ;;  %532 = vrot.lane.b32.xlu0 %v2819_v8, %s2707_s13 }
  0x38   : > { %602 = vrot.lane.b32.xlu1 %v2832_v11, %s2708_s14  ;;  %600 = vrot.lane.b32.xlu0 %v2822_v9, %s2708_s14 }
  0x3c   : > { %606 = vrot.lane.b32.xlu1 %v2829_v10, %s2708_s14  ;;  %604 = vrot.lane.b32.xlu0 %v2819_v8, %s2708_s14  ;;  %s2572_s14 = smul.u32 12, %s3574_s21 }
  0x40   : > { %674 = vrot.lane.b32.xlu1 %v2832_v11, %s2709_s15  ;;  %672 = vrot.lane.b32.xlu0 %v2822_v9, %s2709_s15 }
  0x44   : > { %678 = vrot.lane.b32.xlu1 %v2829_v10, %s2709_s15  ;;  %676 = vrot.lane.b32.xlu0 %v2819_v8, %s2709_s15  ;;  %s2573_s15 = smul.u32 36, %s3572_s22 }
  0x48   : > { %746 = vrot.lane.b32.xlu1 %v2832_v11, %s2710_s16  ;;  %744 = vrot.lane.b32.xlu0 %v2822_v9, %s2710_s16 }
  0x4c   : > { %750 = vrot.lane.b32.xlu1 %v2829_v10, %s2710_s16  ;;  %748 = vrot.lane.b32.xlu0 %v2819_v8, %s2710_s16  ;;  %s282_s16 = sadd.s32 %s2573_s15, %s2572_s14 }
  0x50   : > { %818 = vrot.lane.b32.xlu1 %v2832_v11, %s2711_s17  ;;  %816 = vrot.lane.b32.xlu0 %v2822_v9, %s2711_s17 }
  0x54   : > { %822 = vrot.lane.b32.xlu1 %v2829_v10, %s2711_s17  ;;  %820 = vrot.lane.b32.xlu0 %v2819_v8, %s2711_s17  ;;  %s2529_s17 = sshll.u32 %s282_s16, 3 }
  0x58   : > { %890 = vrot.lane.b32.xlu1 %v2832_v11, %s2712_s18  ;;  %888 = vrot.lane.b32.xlu0 %v2822_v9, %s2712_s18 }
  0x5c   : > { %894 = vrot.lane.b32.xlu1 %v2829_v10, %s2712_s18  ;;  %892 = vrot.lane.b32.xlu0 %v2819_v8, %s2712_s18 }
  0x60   : > { %962 = vrot.lane.b32.xlu1 %v2832_v11, %s2713_s19  ;;  %960 = vrot.lane.b32.xlu0 %v2822_v9, %s2713_s19 }
  0x64   : > { %966 = vrot.lane.b32.xlu1 %v2829_v10, %s2713_s19  ;;  %964 = vrot.lane.b32.xlu0 %v2819_v8, %s2713_s19 }
  0x68   : > { %1034 = vrot.lane.b32.xlu1 %v2832_v11, %s2714_s20  ;;  %1032 = vrot.lane.b32.xlu0 %v2822_v9, %s2714_s20 }
  0x6c   : > { %1038 = vrot.lane.b32.xlu1 %v2829_v10, %s2714_s20  ;;  %1036 = vrot.lane.b32.xlu0 %v2819_v8, %s2714_s20  ;;  %s2720_s20 = smov 120  }
  0x70   : > { %1106 = vrot.lane.b32.xlu1 %v2832_v11, %s2715_s28  ;;  %1104 = vrot.lane.b32.xlu0 %v2822_v9, %s2715_s28 }
  0x74   : > { %1110 = vrot.lane.b32.xlu1 %v2829_v10, %s2715_s28  ;;  %1108 = vrot.lane.b32.xlu0 %v2819_v8, %s2715_s28 }
  0x78   : > { %1178 = vrot.lane.b32.xlu1 %v2832_v11, %s2716_s29  ;;  %1176 = vrot.lane.b32.xlu0 %v2822_v9, %s2716_s29 }
  0x7c   : > { %1182 = vrot.lane.b32.xlu1 %v2829_v10, %s2716_s29  ;;  %1180 = vrot.lane.b32.xlu0 %v2819_v8, %s2716_s29 }
  0x80   : > { %1253 = vrot.lane.b32.xlu1 %v2832_v11, %s2717_s30  ;;  %1251 = vrot.lane.b32.xlu0 %v2822_v9, %s2717_s30 }
  0x84   : > { %1257 = vrot.lane.b32.xlu1 %v2829_v10, %s2717_s30  ;;  %1255 = vrot.lane.b32.xlu0 %v2819_v8, %s2717_s30 }
  0x88   : > { %1325 = vrot.lane.b32.xlu1 %v2832_v11, %s2719_s9  ;;  %1323 = vrot.lane.b32.xlu0 %v2822_v9, %s2719_s9 }
  0x8a   : > { %v313_v19 = vpop.permute.xlu1 %312  ;;  %v309_v20 = vpop.permute.xlu0 %308 }
  0x8c   : > { %1329 = vrot.lane.b32.xlu1 %v2829_v10, %s2719_s9  ;;  %1327 = vrot.lane.b32.xlu0 %v2819_v8, %s2719_s9 }
  0x8e   : > { %v315_v35 = vpop.permute.xlu1 %314  ;;  %v311_v36 = vpop.permute.xlu0 %310 }
  0x8f   : > { %v319_v41 = vsel %vm318_vm1, %v313_v19, %v315_v35  ;;  %v322_v42 = vsel %vm318_vm1, %v315_v35, %v309_v20  ;;  %v320_v43 = vsel %vm318_vm1, %v311_v36, %v313_v19  ;;  %v321_v44 = vsel %vm318_vm1, %v309_v20, %v311_v36 }
  0x90   : > { %v345_v47 = vmul.f32 %v328_v21, %v322_v42  ;;  %v348_v48 = vmul.f32 %v340_v24, %v319_v41  ;;  %v1564_v49 = vmul.f32 %v1553_v25, %v319_v41  ;;  %v1565_v50 = vmul.f32 %v1557_v26, %v322_v42  ;;  %1397 = vrot.lane.b32.xlu1 %v2832_v11, %s2720_s20 }
  0x91   : > { %v346_v51 = vmul.f32 %v332_v27, %v321_v44  ;;  %v347_v52 = vmul.f32 %v336_v28, %v320_v43  ;;  %v1562_v53 = vmul.f32 %v1545_v29, %v321_v44  ;;  %v1563_v54 = vmul.f32 %v1549_v30, %v320_v43  ;;  %1395 = vrot.lane.b32.xlu0 %v2822_v9, %s2720_s20  ;;  %v2992_v30 = vld [vmem:[%s3553_s1 + $0x3] ss:$8 sm:$0xf] }
  0x92   : > { %v1571_v55 = vcombine.low %v1564_v49, %v1565_v50  ;;  %v387_v56 = vpop.permute.xlu1 %386  ;;  %v385_v57 = vpop.permute.xlu0 %384  ;;  %v1667_v24 = vrot.slane %v2956_v46, %v2811_v5  ;;  %v1671_v25 = vrot.slane %v2956_v46, %v2799_v2  ;;  %vm1403_vm1 = vcmp.lt.s32.totalorder %v2889_v14, 120 }
  0x93   : > { %v353_v60 = vcombine.low %v345_v47, %v346_v51  ;;  %v354_v61 = vcombine.low %v347_v52, %v348_v48  ;;  %v1570_v62 = vcombine.low %v1562_v53, %v1563_v54  ;;  %v395_v63 = vsel %vm392_vm2, %v385_v57, %v387_v56 }
  0x94   : > { %v1585_v0 = vrot.slane %v1571_v55, %v2901_v18  ;;  %1401 = vrot.lane.b32.xlu1 %v2829_v10, %s2720_s20  ;;  %v421_v19 = vmul.f32 %v407_v31, %v395_v63  ;;  %v1621_v20 = vmul.f32 %v1604_v32, %v395_v63  ;;  %v2997_v31 = vld [vmem:[%s3553_s1 + $0x45] ss:$8 sm:$0xf]  ;;  %v555_v52 = vrot.slane %v2992_v30, %v2799_v2 }
  0x95   : > { %v361_v13 = vrot.slane %v353_v60, %v2901_v18  ;;  %v368_v15 = vrot.slane %v354_v61, %v2901_v18  ;;  %v1578_v16 = vrot.slane %v1570_v62, %v2901_v18  ;;  %1399 = vrot.lane.b32.xlu0 %v2819_v8, %s2720_s20  ;;  %v1722_v49 = vrot.slane %v2997_v31, %v2802_v3  ;;  %s3523_s20 = scalar_lea.vmem %s3558_s6, %s2529_s17 }
  0x96   : > { %v391_v21 = vpop.permute.xlu1 %390  ;;  %v389_v22 = vpop.permute.xlu0 %388  ;;  %v1734_v51 = vrot.slane %v2997_v31, %v2808_v4  ;;  %v559_v55 = vrot.slane %v2992_v30, %v2808_v4 }
  0x97   : > { %v369_v26 = vcombine.low %v361_v13, %v368_v15  ;;  %v1586_v27 = vcombine.low %v1578_v16, %v1585_v0  ;;  %v396_v28 = vsel %vm392_vm2, %v391_v21, %v385_v57  ;;  %v393_v29 = vsel %vm392_vm2, %v389_v22, %v391_v21 }
  0x98   : > { %v420_v32 = vmul.f32 %v403_v33, %v396_v28  ;;  %v1624_v35 = vmul.f32 %v1616_v34, %v396_v28  ;;  %v394_v36 = vsel %vm392_vm2, %v387_v56, %v389_v22  ;;  %v423_v41 = vmul.f32 %v415_v38, %v393_v29  ;;  %1469 = vrot.lane.b32.xlu1 %v2832_v11, %s2721_s8 }
  0x99   : > { %v376_v42 = vrot.slane %v369_v26, %v2901_v18  ;;  %v1593_v43 = vrot.slane %v1586_v27, %v2901_v18  ;;  %v422_v44 = vmul.f32 %v411_v37, %v394_v36  ;;  %v1622_v47 = vmul.f32 %v1608_v39, %v394_v36  ;;  %1467 = vrot.lane.b32.xlu0 %v2822_v9, %s2721_s8 }
  0x9a   : > { %v428_v48 = vcombine.low %v420_v32, %v421_v19  ;;  %v1623_v33 = vmul.f32 %v1612_v40, %v393_v29  ;;  %v459_v34 = vpop.permute.xlu1 %458  ;;  %v457_v38 = vpop.permute.xlu0 %456  ;;  %v551_v11 = vrot.slane %v2992_v30, %v2811_v5  ;;  %v547_v39 = vrot.slane %v2992_v30, %v2802_v3 }
  0x9b   : > { %382 = vst.msk [vmem:[#allocation2] ss:$8 sm:$0xf] %vm2814_vm0, %v376_v42  ;;  %1596 = vst.msk [vmem:[#allocation2 + $0x42] ss:$8 sm:$0xf] %vm2814_vm0, %v1593_v43  ;;  %v429_v9 = vcombine.low %v422_v44, %v423_v41  ;;  %v1629_v37 = vcombine.low %v1621_v20, %v1622_v47  ;;  %v467_v23 = vsel %vm464_vm3, %v457_v38, %v459_v34 }
  0x9c   : > { %v436_v40 = vrot.slane %v428_v48, %v2901_v18  ;;  %v1630_v50 = vcombine.low %v1623_v33, %v1624_v35  ;;  %1473 = vrot.lane.b32.xlu1 %v2829_v10, %s2721_s8  ;;  %v1726_v56 = vrot.slane %v2997_v31, %v2811_v5  ;;  %v493_v57 = vmul.f32 %v479_v58, %v467_v23  ;;  %v3052_v58 = vld [vmem:[%s3553_s1 + $0x4] ss:$8 sm:$0xf] }
  0x9d   : > { %v443_v53 = vrot.slane %v429_v9, %v2901_v18  ;;  %v1637_v54 = vrot.slane %v1629_v37, %v2901_v18  ;;  %1471 = vrot.lane.b32.xlu0 %v2819_v8, %s2721_s8  ;;  %v1680_v60 = vmul.f32 %v1663_v59, %v467_v23  ;;  %v1730_v8 = vrot.slane %v2997_v31, %v2799_v2 }
  0x9e   : > { %v1644_v10 = vrot.slane %v1630_v50, %v2901_v18  ;;  %v463_v61 = vpop.permute.xlu1 %462  ;;  %v461_v62 = vpop.permute.xlu0 %460  ;;  %v619_v32 = vrot.slane %v3052_v58, %v2802_v3  ;;  %v627_v43 = vrot.slane %v3052_v58, %v2799_v2  ;;  %vm1475_vm2 = vcmp.lt.s32.totalorder %v2889_v14, 119 }
  0x9f   : > { %v444_v63 = vcombine.low %v436_v40, %v443_v53  ;;  %v468_v0 = vsel %vm464_vm3, %v463_v61, %v457_v38  ;;  %v465_v13 = vsel %vm464_vm3, %v461_v62, %v463_v61  ;;  %v466_v15 = vsel %vm464_vm3, %v459_v34, %v461_v62  ;;  %v3109_v61 = vld [vmem:[%s3553_s1 + $0x5] ss:$8 sm:$0xf] }
  0xa0   : > { %v1645_v59 = vcombine.low %v1637_v54, %v1644_v10  ;;  %v492_v16 = vmul.f32 %v475_v1, %v468_v0  ;;  %v1683_v19 = vmul.f32 %v1675_v6, %v468_v0  ;;  %v494_v20 = vmul.f32 %v483_v12, %v466_v15  ;;  %v3070_v1 = vld [vmem:[%s3553_s1 + $0x46] ss:$8 sm:$0xf] }
  0xa1   : > { %v451_v21 = vrot.slane %v444_v63, %v2901_v18  ;;  %v495_v22 = vmul.f32 %v487_v17, %v465_v13  ;;  %v1681_v26 = vmul.f32 %v1667_v24, %v466_v15  ;;  %v1682_v27 = vmul.f32 %v1671_v25, %v465_v13 }
  0xa2   : > { %v1652_v46 = vrot.slane %v1645_v59, %v2901_v18  ;;  %v500_v6 = vcombine.low %v492_v16, %v493_v57  ;;  %v531_v28 = vpop.permute.xlu1 %530  ;;  %v529_v29 = vpop.permute.xlu0 %528  ;;  %v623_v12 = vrot.slane %v3052_v58, %v2811_v5  ;;  %v1781_v31 = vrot.slane %v3070_v1, %v2802_v3 }
  0xa3   : > { %454 = vst.msk [vmem:[#allocation2 + $0x1] ss:$8 sm:$0xf] %vm2814_vm0, %v451_v21  ;;  %v501_v45 = vcombine.low %v494_v20, %v495_v22  ;;  %v1688_v17 = vcombine.low %v1680_v60, %v1681_v26  ;;  %v1689_v24 = vcombine.low %v1682_v27, %v1683_v19  ;;  %v539_v25 = vsel %vm536_vm4, %v529_v29, %v531_v28 }
  0xa4   : > { %1655 = vst.msk [vmem:[#allocation2 + $0x43] ss:$8 sm:$0xf] %vm2814_vm0, %v1652_v46  ;;  %v508_v30 = vrot.slane %v500_v6, %v2901_v18  ;;  %v1793_v35 = vrot.slane %v3070_v1, %v2808_v4  ;;  %v565_v44 = vmul.f32 %v551_v11, %v539_v25  ;;  %v1739_v47 = vmul.f32 %v1722_v49, %v539_v25 }
  0xa5   : > { %v515_v36 = vrot.slane %v501_v45, %v2901_v18  ;;  %v1696_v41 = vrot.slane %v1688_v17, %v2901_v18  ;;  %v1703_v42 = vrot.slane %v1689_v24, %v2901_v18  ;;  %v631_v34 = vrot.slane %v3052_v58, %v2808_v4 }
  0xa6   : > { %v535_v48 = vpop.permute.xlu1 %534  ;;  %v533_v33 = vpop.permute.xlu0 %532  ;;  %v1785_v38 = vrot.slane %v3070_v1, %v2811_v5  ;;  %v2722_v13 = vmov 0   ;;  %v695_v59 = vrot.slane %v3109_v61, %v2811_v5  ;;  %v691_v21 = vrot.slane %v3109_v61, %v2802_v3 }
  0xa7   : > { %v516_v9 = vcombine.low %v508_v30, %v515_v36  ;;  %v1704_v37 = vcombine.low %v1696_v41, %v1703_v42  ;;  %v540_v23 = vsel %vm536_vm4, %v535_v48, %v529_v29  ;;  %v537_v40 = vsel %vm536_vm4, %v533_v33, %v535_v48  ;;  %2178 = vmatprep.mubr.bf16.mxu0 %v2722_v13 }
  0xa8   : > { %v564_v50 = vmul.f32 %v547_v39, %v540_v23  ;;  %v1742_v53 = vmul.f32 %v1734_v51, %v540_v23  ;;  %v538_v11 = vsel %vm536_vm4, %v531_v28, %v533_v33  ;;  %v567_v49 = vmul.f32 %v559_v55, %v537_v40  ;;  %v3116_v55 = vld [vmem:[%s3553_s1 + $0x47] ss:$8 sm:$0xf]  ;;  %2229 = vmatprep.mubr.bf16.mxu1 %v2722_v13  ;;  %v3165_v23 = vld [vmem:[%s3553_s1 + $0x60] ss:$8 sm:$0xf] }
  0xa9   : > { %v523_v54 = vrot.slane %v516_v9, %v2901_v18  ;;  %v1711_v10 = vrot.slane %v1704_v37, %v2901_v18  ;;  %v566_v57 = vmul.f32 %v555_v52, %v538_v11  ;;  %v1740_v60 = vmul.f32 %v1726_v56, %v538_v11  ;;  %2635 = vset.pattern.permute.xlu1 %v2722_v13 }
  0xaa   : > { %v572_v62 = vcombine.low %v564_v50, %v565_v44  ;;  %v1741_v63 = vmul.f32 %v1730_v8, %v537_v40  ;;  %v603_v0 = vpop.permute.xlu1 %602  ;;  %v601_v39 = vpop.permute.xlu0 %600  ;;  %v1789_v51 = vrot.slane %v3070_v1, %v2799_v2  ;;  %v1840_v20 = vrot.slane %v3116_v55, %v2802_v3  ;;  %2634 = vset.pattern.permute.xlu0 %v2722_v13  ;;  %v2098_v40 = vld [vmem:[%s3555_s3 + $0x8] sm:$0xff]  ;;  %v2097_v50 = vld [vmem:[%s3555_s3] sm:$0xff] }
  0xab   : > { %526 = vst.msk [vmem:[#allocation2 + $0x2] ss:$8 sm:$0xf] %vm2814_vm0, %v523_v54  ;;  %1714 = vst.msk [vmem:[#allocation2 + $0x44] ss:$8 sm:$0xf] %vm2814_vm0, %v1711_v10  ;;  %v573_v52 = vcombine.low %v566_v57, %v567_v49  ;;  %v1747_v56 = vcombine.low %v1739_v47, %v1740_v60  ;;  %v611_v8 = vsel %vm608_vm5, %v601_v39, %v603_v0  ;;  %2107 = vperm.xlu1 %2635, %v2098_v40  }
  0xac   : > { %v580_v15 = vrot.slane %v572_v62, %v2901_v18  ;;  %v1748_v58 = vcombine.low %v1741_v63, %v1742_v53  ;;  %v637_v26 = vmul.f32 %v623_v12, %v611_v8  ;;  %v1798_v27 = vmul.f32 %v1781_v31, %v611_v8  ;;  %2102 = vperm.xlu0 %2634, %v2097_v50  }
  0xad   : > { %v587_v16 = vrot.slane %v573_v52, %v2901_v18  ;;  %v1755_v19 = vrot.slane %v1747_v56, %v2901_v18  ;;  %v1852_v6 = vrot.slane %v3116_v55, %v2808_v4  ;;  %v699_v9 = vrot.slane %v3109_v61, %v2799_v2  ;;  %v2271_v52 = vld [vmem:[%s3557_s5] sm:$0xff] }
  0xae   : > { %v1762_v22 = vrot.slane %v1748_v58, %v2901_v18  ;;  %v607_v1 = vpop.permute.xlu1 %606  ;;  %v605_v46 = vpop.permute.xlu0 %604  ;;  %v703_v37 = vrot.slane %v3109_v61, %v2808_v4  ;;  %v1844_v11 = vrot.slane %v3116_v55, %v2811_v5  ;;  %v1848_v49 = vrot.slane %v3116_v55, %v2799_v2  ;;  %v2099_v61 = vld [vmem:[%s3555_s3 + $0x10] sm:$0xff] }
  0xaf   : > { %v588_v28 = vcombine.low %v580_v15, %v587_v16  ;;  %v612_v29 = vsel %vm608_vm5, %v607_v1, %v601_v39  ;;  %v609_v45 = vsel %vm608_vm5, %v605_v46, %v607_v1  ;;  %v610_v17 = vsel %vm608_vm5, %v603_v0, %v605_v46  ;;  %2112 = vperm.xlu1 %2635, %v2099_v61   ;;  %v2272_v46 = vld [vmem:[%s3557_s5 + $0x8] sm:$0xff] }
  0xb0   : > { %v1763_v24 = vcombine.low %v1755_v19, %v1762_v22  ;;  %v636_v25 = vmul.f32 %v619_v32, %v612_v29  ;;  %v1801_v30 = vmul.f32 %v1793_v35, %v612_v29  ;;  %v638_v12 = vmul.f32 %v627_v43, %v610_v17  ;;  %v3156_v32 = vld [vmem:[%s3553_s1 + $0x6] ss:$8 sm:$0xf]  ;;  %2276 = vperm.xlu0 %2634, %v2271_v52  }
  0xb1   : > { %v595_v31 = vrot.slane %v588_v28, %v2901_v18  ;;  %v639_v36 = vmul.f32 %v631_v34, %v609_v45  ;;  %v1799_v41 = vmul.f32 %v1785_v38, %v610_v17  ;;  %v1800_v42 = vmul.f32 %v1789_v51, %v609_v45 }
  0xb2   : > { %v1770_v44 = vrot.slane %v1763_v24, %v2901_v18  ;;  %v644_v47 = vcombine.low %v636_v25, %v637_v26  ;;  %v675_v48 = vpop.permute.xlu1 %674  ;;  %v673_v33 = vpop.permute.xlu0 %672  ;;  %v767_v60 = vrot.slane %v3156_v32, %v2811_v5  ;;  %v1899_v51 = vrot.slane %v3165_v23, %v2802_v3  ;;  %v3214_v24 = vld [vmem:[%s3553_s1 + $0x7] ss:$8 sm:$0xf] }
  0xb3   : > { %598 = vst.msk [vmem:[#allocation2 + $0x3] ss:$8 sm:$0xf] %vm2814_vm0, %v595_v31  ;;  %v645_v35 = vcombine.low %v638_v12, %v639_v36  ;;  %v1806_v43 = vcombine.low %v1798_v27, %v1799_v41  ;;  %v1807_v34 = vcombine.low %v1800_v42, %v1801_v30  ;;  %v683_v38 = vsel %vm680_vm6, %v673_v33, %v675_v48  ;;  %v2273_v25 = vld [vmem:[%s3557_s5 + $0x10] sm:$0xff] }
  0xb4   : > { %1773 = vst.msk [vmem:[#allocation2 + $0x45] ss:$8 sm:$0xf] %vm2814_vm0, %v1770_v44  ;;  %v652_v53 = vrot.slane %v644_v47, %v2901_v18  ;;  %v709_v62 = vmul.f32 %v695_v59, %v683_v38  ;;  %v1857_v63 = vmul.f32 %v1840_v20, %v683_v38  ;;  %v763_v55 = vrot.slane %v3156_v32, %v2802_v3  ;;  %v3230_v41 = vld [vmem:[%s3553_s1 + $0x61] ss:$8 sm:$0xf] }
  0xb5   : > { %v659_v54 = vrot.slane %v645_v35, %v2901_v18  ;;  %v1814_v10 = vrot.slane %v1806_v43, %v2901_v18  ;;  %v1821_v57 = vrot.slane %v1807_v34, %v2901_v18  ;;  %v1911_v45 = vrot.slane %v3165_v23, %v2808_v4  ;;  %2281 = vperm.xlu1 %2635, %v2272_v46  }
  0xb6   : > { %v679_v0 = vpop.permute.xlu1 %678  ;;  %v677_v39 = vpop.permute.xlu0 %676  ;;  %v771_v17 = vrot.slane %v3156_v32, %v2799_v2  ;;  %v775_v36 = vrot.slane %v3156_v32, %v2808_v4  ;;  %v1903_v47 = vrot.slane %v3165_v23, %v2811_v5  ;;  %2286 = vperm.xlu0 %2634, %v2273_v25   ;;  %vm2130_vm3 = vcmask 1044480  }
  0xb7   : > { %v660_v56 = vcombine.low %v652_v53, %v659_v54  ;;  %v1822_v8 = vcombine.low %v1814_v10, %v1821_v57  ;;  %v684_v15 = vsel %vm680_vm6, %v679_v0, %v673_v33  ;;  %v681_v58 = vsel %vm680_vm6, %v677_v39, %v679_v0 }
  0xb8   : > { %v708_v59 = vmul.f32 %v691_v21, %v684_v15  ;;  %v1860_v16 = vmul.f32 %v1852_v6, %v684_v15  ;;  %v682_v19 = vsel %vm680_vm6, %v675_v48, %v677_v39  ;;  %v711_v20 = vmul.f32 %v703_v37, %v681_v58 }
  0xb9   : > { %v667_v22 = vrot.slane %v660_v56, %v2901_v18  ;;  %v1829_v26 = vrot.slane %v1822_v8, %v2901_v18  ;;  %v710_v27 = vmul.f32 %v699_v9, %v682_v19  ;;  %v1858_v1 = vmul.f32 %v1844_v11, %v682_v19 }
  0xba   : > { %v716_v28 = vcombine.low %v708_v59, %v709_v62  ;;  %v1859_v29 = vmul.f32 %v1848_v49, %v681_v58  ;;  %v747_v21 = vpop.permute.xlu1 %746  ;;  %v745_v6 = vpop.permute.xlu0 %744  ;;  %v1907_v48 = vrot.slane %v3165_v23, %v2799_v2  ;;  %v839_v37 = vrot.slane %v3214_v24, %v2811_v5 }
  0xbb   : > { %670 = vst.msk [vmem:[#allocation2 + $0x4] ss:$8 sm:$0xf] %vm2814_vm0, %v667_v22  ;;  %1832 = vst.msk [vmem:[#allocation2 + $0x46] ss:$8 sm:$0xf] %vm2814_vm0, %v1829_v26  ;;  %v717_v30 = vcombine.low %v710_v27, %v711_v20  ;;  %v1865_v12 = vcombine.low %v1857_v63, %v1858_v1  ;;  %v755_v31 = vsel %vm752_vm7, %v745_v6, %v747_v21 }
  0xbc   : > { %v724_v42 = vrot.slane %v716_v28, %v2901_v18  ;;  %v1866_v44 = vcombine.low %v1859_v29, %v1860_v16  ;;  %v781_v35 = vmul.f32 %v767_v60, %v755_v31  ;;  %v1916_v43 = vmul.f32 %v1899_v51, %v755_v31  ;;  %v3264_v16 = vld [vmem:[%s3553_s1 + $0x20] ss:$8 sm:$0xf]  ;;  %v2554_v31 = vld [vmem:[%s3553_s1 + $0x62] ss:$8 sm:$0xf] }
  0xbd   : > { %v731_v33 = vrot.slane %v717_v30, %v2901_v18  ;;  %v1873_v9 = vrot.slane %v1865_v12, %v2901_v18  ;;  %v1958_v23 = vrot.slane %v3230_v41, %v2802_v3  ;;  %v835_v56 = vrot.slane %v3214_v24, %v2802_v3 }
  0xbe   : > { %v1880_v32 = vrot.slane %v1866_v44, %v2901_v18  ;;  %v751_v34 = vpop.permute.xlu1 %750  ;;  %v749_v38 = vpop.permute.xlu0 %748  ;;  %v1970_v8 = vrot.slane %v3230_v41, %v2808_v4  ;;  %v843_v20 = vrot.slane %v3214_v24, %v2799_v2  ;;  %v847_v22 = vrot.slane %v3214_v24, %v2808_v4 }
  0xbf   : > { %v732_v40 = vcombine.low %v724_v42, %v731_v33  ;;  %v756_v50 = vsel %vm752_vm7, %v751_v34, %v745_v6  ;;  %v753_v53 = vsel %vm752_vm7, %v749_v38, %v751_v34  ;;  %v754_v11 = vsel %vm752_vm7, %v747_v21, %v749_v38 }
  0xc0   : > { %v1881_v49 = vcombine.low %v1873_v9, %v1880_v32  ;;  %v780_v54 = vmul.f32 %v763_v55, %v756_v50  ;;  %v1919_v10 = vmul.f32 %v1911_v45, %v756_v50  ;;  %v782_v57 = vmul.f32 %v771_v17, %v754_v11 }
  0xc1   : > { %v739_v60 = vrot.slane %v732_v40, %v2901_v18  ;;  %v783_v61 = vmul.f32 %v775_v36, %v753_v53  ;;  %v1917_v62 = vmul.f32 %v1903_v47, %v754_v11  ;;  %v1918_v63 = vmul.f32 %v1907_v48, %v753_v53 }
  0xc2   : > { %v1888_v0 = vrot.slane %v1881_v49, %v2901_v18  ;;  %v788_v39 = vcombine.low %v780_v54, %v781_v35  ;;  %v819_v51 = vpop.permute.xlu1 %818  ;;  %v817_v52 = vpop.permute.xlu0 %816  ;;  %v1962_v26 = vrot.slane %v3230_v41, %v2811_v5  ;;  %v1966_v28 = vrot.slane %v3230_v41, %v2799_v2 }
  0xc3   : > { %742 = vst.msk [vmem:[#allocation2 + $0x5] ss:$8 sm:$0xf] %vm2814_vm0, %v739_v60  ;;  %v789_v55 = vcombine.low %v782_v57, %v783_v61  ;;  %v1924_v15 = vcombine.low %v1916_v43, %v1917_v62  ;;  %v1925_v58 = vcombine.low %v1918_v63, %v1919_v10  ;;  %v827_v59 = vsel %vm824_vm8, %v817_v52, %v819_v51 }
  0xc4   : > { %1891 = vst.msk [vmem:[#allocation2 + $0x47] ss:$8 sm:$0xf] %vm2814_vm0, %v1888_v0  ;;  %v796_v19 = vrot.slane %v788_v39, %v2901_v18  ;;  %v853_v29 = vmul.f32 %v839_v37, %v827_v59  ;;  %v1975_v21 = vmul.f32 %v1958_v23, %v827_v59  ;;  %v911_v17 = vrot.slane %v3264_v16, %v2811_v5 }
  0xc5   : > { %v803_v27 = vrot.slane %v789_v55, %v2901_v18  ;;  %v1932_v1 = vrot.slane %v1924_v15, %v2901_v18  ;;  %v1939_v46 = vrot.slane %v1925_v58, %v2901_v18  ;;  %v2017_v43 = vrot.slane %v2554_v31, %v2802_v3 }
  0xc6   : > { %v823_v6 = vpop.permute.xlu1 %822  ;;  %v821_v45 = vpop.permute.xlu0 %820  ;;  %v907_v38 = vrot.slane %v3264_v16, %v2802_v3  ;;  %v2029_v53 = vrot.slane %v2554_v31, %v2808_v4  ;;  %v915_v54 = vrot.slane %v3264_v16, %v2799_v2  ;;  %v919_v10 = vrot.slane %v3264_v16, %v2808_v4 }
  0xc7   : > { %v804_v24 = vcombine.low %v796_v19, %v803_v27  ;;  %v1940_v25 = vcombine.low %v1932_v1, %v1939_v46  ;;  %v828_v30 = vsel %vm824_vm8, %v823_v6, %v817_v52  ;;  %v825_v12 = vsel %vm824_vm8, %v821_v45, %v823_v6 }
  0xc8   : > { %v852_v36 = vmul.f32 %v835_v56, %v828_v30  ;;  %v1978_v41 = vmul.f32 %v1970_v8, %v828_v30  ;;  %v826_v42 = vsel %vm824_vm8, %v819_v51, %v821_v45  ;;  %v855_v44 = vmul.f32 %v847_v22, %v825_v12 }
  0xc9   : > { %v811_v47 = vrot.slane %v804_v24, %v2901_v18  ;;  %v1947_v48 = vrot.slane %v1940_v25, %v2901_v18  ;;  %v854_v33 = vmul.f32 %v843_v20, %v826_v42  ;;  %v1976_v9 = vmul.f32 %v1962_v26, %v826_v42  ;;  %v2538_v20 = vld [vmem:[%s3553_s1 + $0x21] ss:$8 sm:$0xf] }
  0xca   : > { %v860_v37 = vcombine.low %v852_v36, %v853_v29  ;;  %v1977_v32 = vmul.f32 %v1966_v28, %v825_v12  ;;  %v891_v35 = vpop.permute.xlu1 %890  ;;  %v889_v34 = vpop.permute.xlu0 %888  ;;  %v2021_v61 = vrot.slane %v2554_v31, %v2811_v5  ;;  %v2025_v62 = vrot.slane %v2554_v31, %v2799_v2 }
  0xcb   : > { %814 = vst.msk [vmem:[#allocation2 + $0x6] ss:$8 sm:$0xf] %vm2814_vm0, %v811_v47  ;;  %1950 = vst.msk [vmem:[#allocation2 + $0x60] ss:$8 sm:$0xf] %vm2814_vm0, %v1947_v48  ;;  %v861_v23 = vcombine.low %v854_v33, %v855_v44  ;;  %v1983_v40 = vcombine.low %v1975_v21, %v1976_v9  ;;  %v899_v50 = vsel %vm896_vm9, %v889_v34, %v891_v35 }
  0xcc   : > { %v868_v11 = vrot.slane %v860_v37, %v2901_v18  ;;  %v1984_v49 = vcombine.low %v1977_v32, %v1978_v41  ;;  %v925_v0 = vmul.f32 %v911_v17, %v899_v50  ;;  %v2034_v39 = vmul.f32 %v2017_v43, %v899_v50 }
  0xcd   : > { %v875_v57 = vrot.slane %v861_v23, %v2901_v18  ;;  %v1991_v60 = vrot.slane %v1983_v40, %v2901_v18  ;;  %v983_v24 = vrot.slane %v2538_v20, %v2811_v5  ;;  %v979_v30 = vrot.slane %v2538_v20, %v2802_v3  ;;  %v2539_v23 = vld [vmem:[%s3553_s1 + $0x22] ss:$8 sm:$0xf] }
  0xce   : > { %v1998_v63 = vrot.slane %v1984_v49, %v2901_v18  ;;  %v895_v51 = vpop.permute.xlu1 %894  ;;  %v893_v52 = vpop.permute.xlu0 %892  ;;  %v987_v12 = vrot.slane %v2538_v20, %v2799_v2  ;;  %v991_v31 = vrot.slane %v2538_v20, %v2808_v4  ;;  %v2540_v20 = vld [vmem:[%s3553_s1 + $0x23] ss:$8 sm:$0xf]  ;;  %vm2131_vm4 = vcmask 1045504  }
  0xcf   : > { %v876_v56 = vcombine.low %v868_v11, %v875_v57  ;;  %v900_v8 = vsel %vm896_vm9, %v895_v51, %v889_v34  ;;  %v897_v55 = vsel %vm896_vm9, %v893_v52, %v895_v51  ;;  %v898_v15 = vsel %vm896_vm9, %v891_v35, %v893_v52 }
  0xd0   : > { %v1999_v58 = vcombine.low %v1991_v60, %v1998_v63  ;;  %v924_v59 = vmul.f32 %v907_v38, %v900_v8  ;;  %v2037_v16 = vmul.f32 %v2029_v53, %v900_v8  ;;  %v926_v19 = vmul.f32 %v915_v54, %v898_v15 }
  0xd1   : > { %v883_v22 = vrot.slane %v876_v56, %v2901_v18  ;;  %v927_v26 = vmul.f32 %v919_v10, %v897_v55  ;;  %v2035_v27 = vmul.f32 %v2021_v61, %v898_v15  ;;  %v2036_v1 = vmul.f32 %v2025_v62, %v897_v55 }
  0xd2   : > { %v2006_v46 = vrot.slane %v1999_v58, %v2901_v18  ;;  %v932_v28 = vcombine.low %v924_v59, %v925_v0  ;;  %v963_v29 = vpop.permute.xlu1 %962  ;;  %v961_v21 = vpop.permute.xlu0 %960  ;;  %v1055_v57 = vrot.slane %v2539_v23, %v2811_v5  ;;  %v1051_v61 = vrot.slane %v2539_v23, %v2802_v3 }
  0xd3   : > { %886 = vst.msk [vmem:[#allocation2 + $0x7] ss:$8 sm:$0xf] %vm2814_vm0, %v883_v22  ;;  %v933_v6 = vcombine.low %v926_v19, %v927_v26  ;;  %v2042_v45 = vcombine.low %v2034_v39, %v2035_v27  ;;  %v2043_v17 = vcombine.low %v2036_v1, %v2037_v16  ;;  %v971_v44 = vsel %vm968_vm10, %v961_v21, %v963_v29 }
  0xd4   : > { %2009 = vst.msk [vmem:[#allocation2 + $0x61] ss:$8 sm:$0xf] %vm2814_vm0, %v2006_v46  ;;  %v940_v25 = vrot.slane %v932_v28, %v2901_v18  ;;  %v997_v35 = vmul.f32 %v983_v24, %v971_v44  ;;  %v1059_v62 = vrot.slane %v2539_v23, %v2799_v2  ;;  %v1063_v63 = vrot.slane %v2539_v23, %v2808_v4 }
  0xd5   : > { %v947_v36 = vrot.slane %v933_v6, %v2901_v18  ;;  %v2050_v41 = vrot.slane %v2042_v45, %v2901_v18  ;;  %v2057_v42 = vrot.slane %v2043_v17, %v2901_v18  ;;  %v1127_v28 = vrot.slane %v2540_v20, %v2811_v5 }
  0xd6   : > { %v967_v47 = vpop.permute.xlu1 %966  ;;  %v965_v48 = vpop.permute.xlu0 %964  ;;  %v1135_v24 = vrot.slane %v2540_v20, %v2808_v4  ;;  %vm2304_vm5 = vcmask 1043456   ;;  %vm2297_vm6 = vcmask 195584  }
  0xd7   : > { %v948_v33 = vcombine.low %v940_v25, %v947_v36  ;;  %v2058_v9 = vcombine.low %v2050_v41, %v2057_v42  ;;  %v972_v37 = vsel %vm968_vm10, %v967_v47, %v961_v21  ;;  %v969_v32 = vsel %vm968_vm10, %v965_v48, %v967_v47 }
  0xd8   : > { %v996_v43 = vmul.f32 %v979_v30, %v972_v37  ;;  %v970_v34 = vsel %vm968_vm10, %v963_v29, %v965_v48  ;;  %v999_v38 = vmul.f32 %v991_v31, %v969_v32  ;;  %v1123_v29 = vrot.slane %v2540_v20, %v2802_v3 }
  0xd9   : > { %v955_v40 = vrot.slane %v948_v33, %v2901_v18  ;;  %v2065_v50 = vrot.slane %v2058_v9, %v2901_v18  ;;  %v998_v53 = vmul.f32 %v987_v12, %v970_v34  ;;  %v1131_v21 = vrot.slane %v2540_v20, %v2799_v2  ;;  %v2541_v9 = vld [vmem:[%s3553_s1 + $0x24] ss:$8 sm:$0xf] }
  0xda   : > { %v1004_v11 = vcombine.low %v996_v43, %v997_v35  ;;  %v1035_v49 = vpop.permute.xlu1 %1034  ;;  %v1033_v54 = vpop.permute.xlu0 %1032  ;;  %v1199_v34 = vrot.slane %v2541_v9, %v2811_v5  ;;  %v1203_v23 = vrot.slane %v2541_v9, %v2799_v2 }
  0xdb   : > { %958 = vst.msk [vmem:[#allocation2 + $0x20] ss:$8 sm:$0xf] %vm2814_vm0, %v955_v40  ;;  %2068 = vst.msk [vmem:[#allocation2 + $0x62] ss:$8 sm:$0xf] %vm2814_vm0, %v2065_v50  ;;  %v1005_v10 = vcombine.low %v998_v53, %v999_v38  ;;  %v1043_v39 = vsel %vm1040_vm11, %v1033_v54, %v1035_v49  ;;  %v1195_v38 = vrot.slane %v2541_v9, %v2802_v3 }
  0xdc   : > { %v1012_v60 = vrot.slane %v1004_v11, %v2901_v18  ;;  %v1069_v58 = vmul.f32 %v1055_v57, %v1043_v39  ;;  %v1207_v11 = vrot.slane %v2541_v9, %v2808_v4 }
  0xdd   : > { %v1019_v0 = vrot.slane %v1005_v10, %v2901_v18 }
  0xde   : > { %v1039_v51 = vpop.permute.xlu1 %1038  ;;  %v1037_v52 = vpop.permute.xlu0 %1036 }
  0xdf   : > { %v1020_v56 = vcombine.low %v1012_v60, %v1019_v0  ;;  %v1044_v8 = vsel %vm1040_vm11, %v1039_v51, %v1033_v54  ;;  %v1041_v55 = vsel %vm1040_vm11, %v1037_v52, %v1039_v51  ;;  %v1042_v15 = vsel %vm1040_vm11, %v1035_v49, %v1037_v52  ;;  %v2542_v52 = vld [vmem:[%s3553_s1 + $0x26] ss:$8 sm:$0xf] }
  0xe0   : > { %v1068_v59 = vmul.f32 %v1051_v61, %v1044_v8  ;;  %v1070_v16 = vmul.f32 %v1059_v62, %v1042_v15  ;;  %v1071_v19 = vmul.f32 %v1063_v63, %v1041_v55 }
  0xe1   : > { %v1027_v22 = vrot.slane %v1020_v56, %v2901_v18 }
  0xe2   : > { %v1076_v26 = vcombine.low %v1068_v59, %v1069_v58  ;;  %v1077_v27 = vcombine.low %v1070_v16, %v1071_v19  ;;  %v1107_v1 = vpop.permute.xlu1 %1106  ;;  %v1105_v46 = vpop.permute.xlu0 %1104  ;;  %v1270_v58 = vrot.slane %v2542_v52, %v2802_v3  ;;  %v1282_v59 = vrot.slane %v2542_v52, %v2808_v4 }
  0xe3   : > { %1030 = vst.msk [vmem:[#allocation2 + $0x21] ss:$8 sm:$0xf] %vm2814_vm0, %v1027_v22  ;;  %v1115_v17 = vsel %vm1112_vm12, %v1105_v46, %v1107_v1  ;;  %v1274_v16 = vrot.slane %v2542_v52, %v2811_v5 }
  0xe4   : > { %v1084_v6 = vrot.slane %v1076_v26, %v2901_v18  ;;  %v1091_v45 = vrot.slane %v1077_v27, %v2901_v18  ;;  %v1141_v31 = vmul.f32 %v1127_v28, %v1115_v17  ;;  %v1278_v26 = vrot.slane %v2542_v52, %v2799_v2 }
  0xe6   : > { %v1092_v25 = vcombine.low %v1084_v6, %v1091_v45  ;;  %v1111_v30 = vpop.permute.xlu1 %1110  ;;  %v1109_v12 = vpop.permute.xlu0 %1108 }
  0xe7   : > { %v1116_v36 = vsel %vm1112_vm12, %v1111_v30, %v1105_v46  ;;  %v1113_v41 = vsel %vm1112_vm12, %v1109_v12, %v1111_v30  ;;  %v1114_v42 = vsel %vm1112_vm12, %v1107_v1, %v1109_v12  ;;  %v2543_v30 = vld [vmem:[%s3553_s1 + $0x27] ss:$8 sm:$0xf] }
  0xe8   : > { %v1099_v44 = vrot.slane %v1092_v25, %v2901_v18  ;;  %v1140_v47 = vmul.f32 %v1123_v29, %v1116_v36  ;;  %v1142_v48 = vmul.f32 %v1131_v21, %v1114_v42  ;;  %v1143_v33 = vmul.f32 %v1135_v24, %v1113_v41 }
  0xe9   : > { %v1342_v42 = vrot.slane %v2543_v30, %v2802_v3 }
  0xea   : > { %1102 = vst.msk [vmem:[#allocation2 + $0x22] ss:$8 sm:$0xf] %vm2814_vm0, %v1099_v44  ;;  %v1148_v37 = vcombine.low %v1140_v47, %v1141_v31  ;;  %v1149_v32 = vcombine.low %v1142_v48, %v1143_v33  ;;  %v1179_v35 = vpop.permute.xlu1 %1178  ;;  %v1177_v43 = vpop.permute.xlu0 %1176  ;;  %v1354_v44 = vrot.slane %v2543_v30, %v2808_v4  ;;  %v1346_v47 = vrot.slane %v2543_v30, %v2811_v5 }
  0xeb   : > { %v1187_v53 = vsel %vm1184_vm13, %v1177_v43, %v1179_v35 }
  0xec   : > { %v1156_v40 = vrot.slane %v1148_v37, %v2901_v18  ;;  %v1163_v50 = vrot.slane %v1149_v32, %v2901_v18  ;;  %v1213_v57 = vmul.f32 %v1199_v34, %v1187_v53  ;;  %v1350_v37 = vrot.slane %v2543_v30, %v2799_v2 }
  0xee   : > { %v1164_v49 = vcombine.low %v1156_v40, %v1163_v50  ;;  %v1183_v54 = vpop.permute.xlu1 %1182  ;;  %v1181_v10 = vpop.permute.xlu0 %1180 }
  0xef   : > { %v1188_v60 = vsel %vm1184_vm13, %v1183_v54, %v1177_v43  ;;  %v1185_v61 = vsel %vm1184_vm13, %v1181_v10, %v1183_v54  ;;  %v1186_v62 = vsel %vm1184_vm13, %v1179_v35, %v1181_v10 }
  0xf0   : > { %v1171_v63 = vrot.slane %v1164_v49, %v2901_v18  ;;  %v1212_v0 = vmul.f32 %v1195_v38, %v1188_v60  ;;  %v1214_v39 = vmul.f32 %v1203_v23, %v1186_v62  ;;  %v1215_v51 = vmul.f32 %v1207_v11, %v1185_v61  ;;  %v2544_v60 = vld [vmem:[%s3553_s1 + $0x40] ss:$8 sm:$0xf] }
  0xf1   : > { %v1422_v52 = vrot.slane %v2544_v60, %v2799_v2 }
  0xf2   : > { %1174 = vst.msk [vmem:[#allocation2 + $0x23] ss:$8 sm:$0xf] %vm2814_vm0, %v1171_v63  ;;  %v1220_v56 = vcombine.low %v1212_v0, %v1213_v57  ;;  %v1221_v8 = vcombine.low %v1214_v39, %v1215_v51  ;;  %v1254_v55 = vpop.permute.xlu1 %1253  ;;  %v1252_v15 = vpop.permute.xlu0 %1251  ;;  %v1426_v0 = vrot.slane %v2544_v60, %v2808_v4  ;;  %v1414_v39 = vrot.slane %v2544_v60, %v2802_v3 }
  0xf3   : > { %v1262_v22 = vsel %vm1259_vm14, %v1252_v15, %v1254_v55  ;;  %v1418_v51 = vrot.slane %v2544_v60, %v2811_v5  ;;  %v2723_v60 = vmov 65535  }
  0xf4   : > { %v1228_v19 = vrot.slane %v1220_v56, %v2901_v18  ;;  %v1235_v20 = vrot.slane %v1221_v8, %v2901_v18  ;;  %v1287_v28 = vmul.f32 %v1270_v58, %v1262_v22 }
  0xf6   : > { %v1236_v27 = vcombine.low %v1228_v19, %v1235_v20  ;;  %v1258_v1 = vpop.permute.xlu1 %1257  ;;  %v1256_v46 = vpop.permute.xlu0 %1255 }
  0xf7   : > { %v1263_v29 = vsel %vm1259_vm14, %v1258_v1, %v1252_v15  ;;  %v1260_v21 = vsel %vm1259_vm14, %v1256_v46, %v1258_v1  ;;  %v1261_v6 = vsel %vm1259_vm14, %v1254_v55, %v1256_v46  ;;  %v2545_v1 = vld [vmem:[%s3553_s1 + $0x41] ss:$8 sm:$0xf] }
  0xf8   : > { %v1243_v45 = vrot.slane %v1236_v27, %v2901_v18  ;;  %v1290_v17 = vmul.f32 %v1282_v59, %v1263_v29  ;;  %v1288_v24 = vmul.f32 %v1274_v16, %v1261_v6  ;;  %v1289_v25 = vmul.f32 %v1278_v26, %v1260_v21 }
  0xf9   : > { %v1486_v6 = vrot.slane %v2545_v1, %v2802_v3  ;;  %v1494_v30 = vrot.slane %v2545_v1, %v2799_v2  ;;  %v2073_v3 = vld [vmem:[#allocation2 + $0x18] sm:$0xff] }
  0xfa   : > { %1246 = vst.msk [vmem:[#allocation2 + $0x24] ss:$8 sm:$0xf] %vm2814_vm0, %v1243_v45  ;;  %v1295_v12 = vcombine.low %v1287_v28, %v1288_v24  ;;  %v1296_v31 = vcombine.low %v1289_v25, %v1290_v17  ;;  %v1326_v36 = vpop.permute.xlu1 %1325  ;;  %v1324_v41 = vpop.permute.xlu0 %1323  ;;  %v1498_v45 = vrot.slane %v2545_v1, %v2808_v4  ;;  %v1490_v25 = vrot.slane %v2545_v1, %v2811_v5 }
  0xfb   : > { %v1334_v9 = vsel %vm1331_vm15, %v1324_v41, %v1326_v36 }
  0xfc   : > { %v1303_v48 = vrot.slane %v1295_v12, %v2901_v18  ;;  %v1310_v33 = vrot.slane %v1296_v31, %v2901_v18  ;;  %v1359_v34 = vmul.f32 %v1342_v42, %v1334_v9 }
  0xfe   : > { %v1311_v32 = vcombine.low %v1303_v48, %v1310_v33  ;;  %v1330_v35 = vpop.permute.xlu1 %1329  ;;  %v1328_v43 = vpop.permute.xlu0 %1327  ;;  %v2071_v48 = vld [vmem:[#allocation2 + $0x8] sm:$0xff]  ;;  %v2070_v33 = vld [vmem:[#allocation2] sm:$0xff] }
  0xff   : > { %v1335_v38 = vsel %vm1331_vm15, %v1330_v35, %v1324_v41  ;;  %v1332_v23 = vsel %vm1331_vm15, %v1328_v43, %v1330_v35  ;;  %v1333_v40 = vsel %vm1331_vm15, %v1326_v36, %v1328_v43 }
 0x100   : > { %v1318_v50 = vrot.slane %v1311_v32, %v2901_v18  ;;  %v1362_v53 = vmul.f32 %v1354_v44, %v1335_v38  ;;  %v1360_v11 = vmul.f32 %v1346_v47, %v1333_v40  ;;  %v1361_v49 = vmul.f32 %v1350_v37, %v1332_v23  ;;  %v2072_v23 = vld [vmem:[#allocation2 + $0x10] sm:$0xff] }
 0x102   : > { %1321 = vst.msk [vmem:[#allocation2 + $0x26] ss:$8 sm:$0xf] %vm2814_vm0, %v1318_v50  ;;  %v1367_v54 = vcombine.low %v1359_v34, %v1360_v11  ;;  %v1368_v10 = vcombine.low %v1361_v49, %v1362_v53  ;;  %v1398_v57 = vpop.permute.xlu1 %1397 }
 0x103   : > { %v1396_v61 = vpop.permute.xlu0 %1395 }
 0x104   : > { %v1375_v62 = vrot.slane %v1367_v54, %v2901_v18  ;;  %v1382_v63 = vrot.slane %v1368_v10, %v2901_v18  ;;  %v1406_v8 = vsel %vm1403_vm1, %v1396_v61, %v1398_v57 }
 0x105   : > { %v1431_v22 = vmul.f32 %v1414_v39, %v1406_v8 }
 0x106   : > { %v1383_v56 = vcombine.low %v1375_v62, %v1382_v63  ;;  %v1402_v55 = vpop.permute.xlu1 %1401  ;;  %v2083_v62 = vld [vmem:[#allocation2 + $0x68] sm:$0x7]  ;;  %v2085_v63 = vld [vmem:[#allocation2 + $0x78] sm:$0x7] }
 0x107   : > { %v1407_v15 = vsel %vm1403_vm1, %v1402_v55, %v1396_v61  ;;  %v1400_v58 = vpop.permute.xlu0 %1399  ;;  %v2132_v61 = vsel %vm2130_vm3, 4294967295, %v2723_v60 }
 0x108   : > { %v1390_v59 = vrot.slane %v1383_v56, %v2901_v18  ;;  %v1434_v16 = vmul.f32 %v1426_v0, %v1407_v15  ;;  %v1404_v19 = vsel %vm1403_vm1, %v1400_v58, %v1402_v55  ;;  %v1405_v20 = vsel %vm1403_vm1, %v1398_v57, %v1400_v58  ;;  %v2082_v0 = vld [vmem:[#allocation2 + $0x60] sm:$0x7] }
 0x109   : > { %v1432_v26 = vmul.f32 %v1418_v51, %v1405_v20  ;;  %v1433_v27 = vmul.f32 %v1422_v52, %v1404_v19  ;;  %v2133_v51 = vsel %vm2131_vm4, %v2132_v61, 0 }
 0x10a   : > { %1393 = vst.msk [vmem:[#allocation2 + $0x27] ss:$8 sm:$0xf] %vm2814_vm0, %v1390_v59  ;;  %v1470_v46 = vpop.permute.xlu1 %1469  ;;  %v2084_v59 = vld [vmem:[#allocation2 + $0x70] sm:$0x7] }
 0x10b   : > { %v1439_v28 = vcombine.low %v1431_v22, %v1432_v26  ;;  %v1440_v29 = vcombine.low %v1433_v27, %v1434_v16  ;;  %v1468_v21 = vpop.permute.xlu0 %1467  ;;  %v2636_v22 = vld [vmem:[%s3554_s2] sm:$0xff]   ;;  %v2637_v26 = vld [vmem:[%s3554_s2 + $0x8] ss:$0 sps:$4 sm:$0xff]  }
 0x10c   : > { %v1478_v12 = vsel %vm1475_vm2, %v1468_v21, %v1470_v46 }
 0x10d   : > { %v1447_v17 = vrot.slane %v1439_v28, %v2901_v18  ;;  %v1454_v24 = vrot.slane %v1440_v29, %v2901_v18  ;;  %v1503_v9 = vmul.f32 %v1486_v6, %v1478_v12 }
 0x10e   : > { %v1474_v31 = vpop.permute.xlu1 %1473 }
 0x10f   : > { %v1455_v36 = vcombine.low %v1447_v17, %v1454_v24  ;;  %v1479_v41 = vsel %vm1475_vm2, %v1474_v31, %v1468_v21  ;;  %v1472_v42 = vpop.permute.xlu0 %1471 }
 0x110   : > { %v1506_v44 = vmul.f32 %v1498_v45, %v1479_v41  ;;  %v1476_v14 = vsel %vm1475_vm2, %v1472_v42, %v1474_v31  ;;  %v1477_v47 = vsel %vm1475_vm2, %v1470_v46, %v1472_v42 }
 0x111   : > { %v1462_v4 = vrot.slane %v1455_v36, %v2901_v18  ;;  %v1504_v37 = vmul.f32 %v1490_v25, %v1477_v47  ;;  %v1505_v32 = vmul.f32 %v1494_v30, %v1476_v14  ;;  %v2075_v35 = vld [vmem:[#allocation2 + $0x28] sm:$0xff]  ;;  %v2077_v5 = vld [vmem:[#allocation2 + $0x38] sm:$0xff]  ;;  %v2074_v43 = vld [vmem:[#allocation2 + $0x20] sm:$0xff] }
 0x112   : > { %v2087_v2 = vpack.c.bf16 %v2075_v35, %v2071_v48  ;;  %v2089_v34 = vpack.c.bf16 %v2077_v5, %v2073_v3  ;;  %v2086_v38 = vpack.c.bf16 %v2074_v43, %v2070_v33  ;;  %v2076_v40 = vld [vmem:[#allocation2 + $0x30] sm:$0xff] }
 0x113   : > { %1465 = vst.msk [vmem:[#allocation2 + $0x40] ss:$8 sm:$0xf] %vm2814_vm0, %v1462_v4  ;;  %v1511_v50 = vcombine.low %v1503_v9, %v1504_v37  ;;  %v1512_v53 = vcombine.low %v1505_v32, %v1506_v44  ;;  %v2088_v11 = vpack.c.bf16 %v2076_v40, %v2072_v23 }
 0x114   : > { %2146 = vmatprep.subr.bf16.mxu0 %v2087_v2  ;;  %2197 = vmatprep.subr.bf16.mxu1 %v2089_v34 }
 0x115   : > { %v1519_v49 = vrot.slane %v1511_v50, %v2901_v18  ;;  %v1526_v54 = vrot.slane %v1512_v53, %v2901_v18  ;;  %2147 = vmatpush1.bf16.msra.mxu0 %v2086_v38  ;;  %2198 = vmatpush1.bf16.msra.mxu1 %v2088_v11 }
 0x117   : > { %v1527_v10 = vcombine.low %v1519_v49, %v1526_v54 }
 0x119   : > { %v1534_v57 = vrot.slane %v1527_v10, %v2901_v18 }
 0x11b   : > { %1537 = vst.msk [vmem:[#allocation2 + $0x41] ss:$8 sm:$0xf] %vm2814_vm0, %v1534_v57  ;;  %vm2123_vm0 = vcmask 220160  }
 0x122   : > { %v2079_v39 = vld [vmem:[#allocation2 + $0x48] sm:$0xff]  ;;  %v2081_v52 = vld [vmem:[#allocation2 + $0x58] sm:$0xff]  ;;  %v2078_v56 = vld [vmem:[#allocation2 + $0x40] sm:$0xff] }
 0x123   : > { %v2091_v8 = vpack.c.bf16 %v2083_v62, %v2079_v39  ;;  %v2093_v55 = vpack.c.bf16 %v2085_v63, %v2081_v52  ;;  %v2090_v15 = vpack.c.bf16 %v2082_v0, %v2078_v56  ;;  %v2080_v58 = vld [vmem:[#allocation2 + $0x50] sm:$0xff] }
 0x124   : > { %v2092_v18 = vpack.c.bf16 %v2084_v59, %v2080_v58  ;;  %v2639_v58 = vld [vmem:[%s3556_s4 + $0x8] ss:$0 sps:$4 sm:$0xff]  }
 0x125   : > { %v2138_v16 = vand.u32 %v2133_v51, %v2091_v8  ;;  %v2144_v7 = vand.u32 %v2133_v51, %v2093_v55  ;;  %v2135_v19 = vand.u32 %v2133_v51, %v2090_v15  ;;  %v2638_v15 = vld [vmem:[%s3556_s4] sm:$0xff]  }
 0x126   : > { %v2141_v20 = vand.u32 %v2133_v51, %v2092_v18 }
 0x127   : > { %2148 = vmatprep.subr.bf16.mxu0 %v2138_v16  ;;  %2199 = vmatprep.subr.bf16.mxu1 %v2144_v7 }
 0x128   : > { %2149 = vmatpush1.bf16.msra.mxu0 %v2135_v19  ;;  %2200 = vmatpush1.bf16.msra.mxu1 %v2141_v20 }
 0x12a   : > { %v2108_v27 = vpop.permute.xlu1 %2107 }
 0x12b   : > { %2557 = vmatmul.mubr.msk.bf16.vlgmr.msra.gmra.mrb[0].mxu0 %vm2123_vm0, %v2636_v22  ;;  %2559 = vmatmul.mubr.msk.bf16.vlgmr.msra.gmra.mrb[0].mxu1 %vm2123_vm0, %v2636_v22  ;;  %v2103_v1 = vpop.permute.xlu0 %2102 }
 0x12c   : > { %2188 = vmatprep.mubr.bf16.mxu0 %v2722_v13  ;;  %2239 = vmatprep.mubr.bf16.mxu1 %v2722_v13 }
 0x12e   : > { %v2113_v14 = vpop.permute.xlu1 %2112 }
 0x12f   : > { %v2277_v59 = vpop.permute.xlu0 %2276 }
 0x133   : > { %2558 = vmatmul.mubr.msk.bf16.gmra.mrb[4].mxu0 %vm2123_vm0, %v2637_v26  ;;  %2560 = vmatmul.mubr.msk.bf16.gmra.mrb[4].mxu1 %vm2123_vm0, %v2637_v26 }
 0x134   : > { %2349 = vmatprep.mubr.bf16.mxu0 %v2722_v13  ;;  %2400 = vmatprep.mubr.bf16.mxu1 %v2722_v13  ;;  %v2282_v18 = vpop.permute.xlu1 %2281 }
 0x1fe   : > { %v2180_v46 = vpop.f32.mrb[0].mxu0  ;;  %v2231_v28 = vpop.f32.mrb[0].mxu1 }
 0x1ff   : > { %v2181_v29 = vadd.f32 %v2180_v46, %v2103_v1  ;;  %v2232_v21 = vadd.f32 %v2231_v28, %v2103_v1  ;;  %v2182_v6 = vpop.f32.mrb[1].mxu0  ;;  %v2233_v45 = vpop.f32.mrb[1].mxu1 }
 0x200   : > { %v2183_v17 = vadd.f32 %v2182_v6, %v2103_v1  ;;  %v2234_v24 = vadd.f32 %v2233_v45, %v2103_v1  ;;  %v2184_v25 = vpop.f32.mrb[2].mxu0  ;;  %v2235_v30 = vpop.f32.mrb[2].mxu1 }
 0x201   : > { %2640 = vtanh.f32 %v2181_v29  ;;  %v2185_v12 = vadd.f32 %v2184_v25, %v2108_v27  ;;  %v2186_v31 = vpop.f32.mrb[3].mxu0  ;;  %v2237_v36 = vpop.f32.mrb[3].mxu1  ;;  %v2236_v41 = vadd.f32 %v2235_v30, %v2108_v27 }
 0x202   : > { %2642 = vtanh.f32 %v2232_v21  ;;  %v2187_v42 = vadd.f32 %v2186_v31, %v2108_v27  ;;  %v2238_v44 = vadd.f32 %v2237_v36, %v2108_v27 }
 0x203   : > { %2644 = vtanh.f32 %v2183_v17 }
 0x204   : > { %2646 = vtanh.f32 %v2234_v24  ;;  %v2287_v24 = vpop.permute.xlu0 %2286 }
 0x205   : > { %2648 = vtanh.f32 %v2185_v12 }
 0x206   : > { %2650 = vtanh.f32 %v2236_v41  ;;  %v2190_v47 = vpop.f32.mrb[4].mxu0  ;;  %v2241_v48 = vpop.f32.mrb[4].mxu1 }
 0x207   : > { %2652 = vtanh.f32 %v2187_v42  ;;  %v2191_v3 = vadd.f32 %v2190_v47, %v2113_v14  ;;  %v2242_v33 = vadd.f32 %v2241_v48, %v2113_v14  ;;  %v2192_v4 = vpop.f32.mrb[5].mxu0  ;;  %v2243_v9 = vpop.f32.mrb[5].mxu1 }
 0x208   : > { %2654 = vtanh.f32 %v2238_v44  ;;  %v2193_v37 = vadd.f32 %v2192_v4, %v2113_v14  ;;  %v2244_v32 = vadd.f32 %v2243_v9, %v2113_v14  ;;  %v2194_v35 = vpop.f32.mrb[6].mxu0  ;;  %v2245_v5 = vpop.f32.mrb[6].mxu1 }
 0x209   : > { %2656 = vtanh.f32 %v2191_v3  ;;  %v2195_v43 = vpop.f32.mrb[7].mxu0  ;;  %v2246_v2 = vpop.f32.mrb[7].mxu1 }
 0x20a   : > { %2658 = vtanh.f32 %v2242_v33 }
 0x20b   : > { %v2641_v34 = vpop.eup %2640  ;;  %2660 = vtanh.f32 %v2193_v37 }
 0x20c   : > { %v2643_v38 = vpop.eup %2642  ;;  %2662 = vtanh.f32 %v2244_v32 }
 0x20d   : > { %v2645_v23 = vpop.eup %2644 }
 0x20e   : > { %v2647_v40 = vpop.eup %2646 }
 0x20f   : > { %v2649_v50 = vpop.eup %2648 }
 0x210   : > { %v2651_v53 = vpop.eup %2650  ;;  %v2263_v11 = vpack.c.bf16 %v2649_v50, %v2641_v34 }
 0x211   : > { %v2653_v49 = vpop.eup %2652  ;;  %v2265_v54 = vpack.c.bf16 %v2651_v53, %v2643_v38 }
 0x212   : > { %v2655_v10 = vpop.eup %2654  ;;  %v2264_v57 = vpack.c.bf16 %v2653_v49, %v2645_v23 }
 0x213   : > { %v2657_v60 = vpop.eup %2656  ;;  %v2266_v61 = vpack.c.bf16 %v2655_v10, %v2647_v40 }
 0x214   : > { %v2659_v62 = vpop.eup %2658  ;;  %v2267_v63 = vpack.c.bf16 %v2657_v60, %v2657_v60  ;;  %2317 = vmatprep.subr.bf16.mxu0 %v2264_v57 }
 0x215   : > { %v2661_v0 = vpop.eup %2660  ;;  %v2269_v39 = vpack.c.bf16 %v2659_v62, %v2659_v62  ;;  %2368 = vmatprep.subr.bf16.mxu1 %v2266_v61  ;;  %2318 = vmatpush1.bf16.msra.mxu0 %v2263_v11 }
 0x216   : > { %v2663_v51 = vpop.eup %2662  ;;  %v2268_v52 = vpack.c.bf16 %v2661_v0, %v2661_v0  ;;  %2369 = vmatpush1.bf16.msra.mxu1 %v2265_v54  ;;  %v2306_v56 = vsel %vm2304_vm5, %v2267_v63, 0 }
 0x217   : > { %v2270_v8 = vpack.c.bf16 %v2663_v51, %v2663_v51  ;;  %v2312_v55 = vsel %vm2304_vm5, %v2269_v39, 0 }
 0x218   : > { %2563 = vmatprep.subr.msk.bf16.mxu0 %vm2304_vm5, %v2268_v52 }
 0x219   : > { %2566 = vmatprep.subr.msk.bf16.mxu1 %vm2304_vm5, %v2270_v8  ;;  %2320 = vmatpush1.bf16.msra.mxu0 %v2306_v56 }
 0x21a   : > { %2371 = vmatpush1.bf16.msra.mxu1 %v2312_v55 }
 0x21c   : > { %2564 = vmatmul.mubr.msk.bf16.vlgmr.msra.gmra.mrb[8].mxu0 %vm2297_vm6, %v2638_v15 }
 0x21d   : > { %2567 = vmatmul.mubr.msk.bf16.vlgmr.msra.gmra.mrb[8].mxu1 %vm2297_vm6, %v2638_v15  ;;  %2359 = vmatprep.mubr.bf16.mxu0 %v2722_v13 }
 0x21e   : > { %2410 = vmatprep.mubr.bf16.mxu1 %v2722_v13 }
 0x224   : > { %2565 = vmatmul.mubr.msk.bf16.gmra.mrb[12].mxu0 %vm2297_vm6, %v2639_v58 }
 0x225   : > { %2568 = vmatmul.mubr.msk.bf16.gmra.mrb[12].mxu1 %vm2297_vm6, %v2639_v58 }
 0x2ef   : > { %v2351_v13 = vpop.f32.mrb[8].mxu0 }
 0x2f0   : > { %v2352_v16 = vadd.f32 %v2351_v13, %v2277_v59  ;;  %v2402_v7 = vpop.f32.mrb[8].mxu1  ;;  %v2353_v19 = vpop.f32.mrb[9].mxu0 }
 0x2f1   : > { %v2403_v20 = vadd.f32 %v2402_v7, %v2277_v59  ;;  %v2354_v22 = vadd.f32 %v2353_v19, %v2277_v59  ;;  %v2404_v26 = vpop.f32.mrb[9].mxu1  ;;  %v2355_v27 = vpop.f32.mrb[10].mxu0 }
 0x2f2   : > { %2419 = vst [vmem:[%s3523_s20] sm:$0xff] %v2352_v16  ;;  %v2405_v1 = vadd.f32 %v2404_v26, %v2277_v59  ;;  %v2356_v46 = vadd.f32 %v2355_v27, %v2282_v18  ;;  %v2406_v28 = vpop.f32.mrb[10].mxu1  ;;  %v2357_v29 = vpop.f32.mrb[11].mxu0 }
 0x2f3   : > { %2421 = vst [vmem:[%s3523_s20 + $0x10] sm:$0xff] %v2403_v20  ;;  %2420 = vst [vmem:[%s3523_s20 + $0x8] sm:$0xff] %v2354_v22  ;;  %v2407_v21 = vadd.f32 %v2406_v28, %v2282_v18  ;;  %v2358_v6 = vadd.f32 %v2357_v29, %v2282_v18  ;;  %v2408_v45 = vpop.f32.mrb[11].mxu1 }
 0x2f4   : > { %2422 = vst [vmem:[%s3523_s20 + $0x18] sm:$0xff] %v2405_v1  ;;  %2423 = vst [vmem:[%s3523_s20 + $0x20] sm:$0xff] %v2356_v46  ;;  %v2409_v17 = vadd.f32 %v2408_v45, %v2282_v18 }
 0x2f5   : > { %2425 = vst [vmem:[%s3523_s20 + $0x30] sm:$0xff] %v2407_v21  ;;  %2424 = vst [vmem:[%s3523_s20 + $0x28] sm:$0xff] %v2358_v6 }
 0x2f6   : > { %2426 = vst [vmem:[%s3523_s20 + $0x38] sm:$0xff] %v2409_v17 }
 0x2f7   : > { %v2361_v25 = vpop.f32.mrb[12].mxu0 }
 0x2f8   : > { %v2362_v30 = vadd.f32 %v2361_v25, %v2287_v24  ;;  %v2412_v12 = vpop.f32.mrb[12].mxu1  ;;  %v2363_v31 = vpop.f32.mrb[13].mxu0 }
 0x2f9   : > { %v2413_v36 = vadd.f32 %v2412_v12, %v2287_v24  ;;  %v2364_v41 = vadd.f32 %v2363_v31, %v2287_v24  ;;  %v2414_v42 = vpop.f32.mrb[13].mxu1  ;;  %v2365_v44 = vpop.f32.mrb[14].mxu0 }
 0x2fa   : > { %2427 = vst [vmem:[%s3523_s20 + $0x40] sm:$0xff] %v2362_v30  ;;  %v2415_v14 = vadd.f32 %v2414_v42, %v2287_v24  ;;  %v2416_v47 = vpop.f32.mrb[14].mxu1  ;;  %v2366_v48 = vpop.f32.mrb[15].mxu0 }
 0x2fb   : > { %2429 = vst [vmem:[%s3523_s20 + $0x50] sm:$0xff] %v2413_v36  ;;  %2428 = vst [vmem:[%s3523_s20 + $0x48] sm:$0xff] %v2364_v41  ;;  %v2417_v3 = vpop.f32.mrb[15].mxu1 }
 0x2fc   : > { %2430 = vst [vmem:[%s3523_s20 + $0x58] sm:$0xff] %v2415_v14 }
 0x2fd PF: > { %s16_s25 = sadd.s32 1, %s2702_s25   ;;  %s3561_s21 = smov %s2694_s23 }
 0x2fe   : > { %p13_p7 = scmp.ge.s32.totalorder %s16_s25, 8   ;;  %s3562_s22 = smov %s2698_s24 }
 0x2ff   : > { %s3563_s23 = smov %s3566_s26  ;;  %s3564_s24 = smov %s3570_s27 }
 0x300   :  { %15 = sbr.rel (!%p13_p7) target bundleno = 3 (0x3), region = 125 }

// kernel: convgru3d_forward.7
= control target key start
LH: loop header
LB: loop body
LE: loop exit
PB: predicated region body
PF: predicated region fallthrough
CT: control target
= control target key end

     0   :  { %s2164_s21 = smov 0   ;;  %s2166_s22 = smov 0   ;;  %s2875_s0 = inlined_call_operand.vmem [shape: f32[2,3,8,512], index: 0, kind: input, shape index: {}]   ;;  %s2876_s1 = inlined_call_operand.vmem [shape: f32[27,512], index: 1, kind: input, shape index: {}]   ;;  %s2877_s2 = inlined_call_operand.vmem [shape: bf16[24,216], index: 2, kind: input, shape index: {}]   ;;  %s2878_s3 = inlined_call_operand.vmem [shape: f32[24,1], index: 3, kind: input, shape index: {}]   ;;  %s2879_s4 = inlined_call_operand.vmem [shape: bf16[24,24], index: 4, kind: input, shape index: {}]   ;;  %s2880_s5 = inlined_call_operand.vmem [shape: f32[24,1], index: 5, kind: input, shape index: {}]   ;;  %s2881_s6 = inlined_call_operand.vmem [shape: f32[2,3,24,512], index: 6, kind: output, shape index: {}]  }
   0x1   :  { %s2168_s23 = smov 0   ;;  %s2170_s24 = smov 0  }
   0x2   :  { %s2172_s25 = smov 0  }
   0x3 LB: > { %s25_s26 = sadd.s32 1, %s2101_s23  ;;  %s28_s27 = sadd.s32 1, %s2105_s24  ;;  %s2109_s25 = sphi %s2172_s25, %s16_s25   ;;  %s2105_s24 = sphi %s2170_s24, %s2931_s24   ;;  %s2101_s23 = sphi %s2168_s23, %s2930_s23   ;;  %s2097_s22 = sphi %s2166_s22, %s2929_s22   ;;  %s2093_s21 = sphi %s2164_s21, %s2928_s21  }
   0x4   : > { %p26_p0 = scmp.ge.s32.totalorder %s25_s26, 3  ;;  %p1928_p1 = scmp.ge.s32.totalorder %s2109_s25, 1 }
   0x5   : > { %p232_p2 = scmp.lt.s32.totalorder %s2109_s25, 7 }
   0x6   : > { %s2933_s26 = smov (%p26_p0, %s25_s26), 0  ;;  %s2935_s27 = smov (!%p26_p0, %s28_s27), %s2105_s24 }
   0x7   : > { %p233_p3 = pnand %p1928_p1, %p232_p2  ;;  %p30_p4 = scmp.ge.s32.totalorder %s2935_s27, 2 }
   0x9   : > { %s2937_s27 = smov (%p30_p4, %s2935_s27), 0  ;;  %236 = sbr.rel (%p233_p3) target bundleno = 767 (0x2ff), region = 44 }
  0x10   : > { %p270_p5 = scmp.lt.s32.totalorder %s2097_s22, 1  ;;  %p272_p6 = scmp.lt.s32.totalorder %s2093_s21, 2  ;;  %v301_v4 = vlaneseq  ;;  %v2274_v9 = vld [vmem:[%s2876_s1] ss:$8 sm:$0xf]  ;;  %vm1525_vm4 = vcmask 719872  }
  0x11   : > { %s2111_s11 = smov 73   ;;  %s2112_s12 = smov 72   ;;  %v1948_v13 = vld [vmem:[%s2876_s1 + $0x42] ss:$8 sm:$0xf] }
  0x12   : > { %s2939_s22 = smov (!%p270_p5, %s2097_s22), 1  ;;  %s2941_s21 = smov (!%p272_p6, %s2093_s21), 2  ;;  %v311_v5 = vshrl.u32 %v301_v4, 7  ;;  %v2269_v8 = vand.u32 127, %v301_v4 }
  0x13   : > { %s1977_s28 = smul.u32 12, %s2939_s22  ;;  %s1929_s29 = sshll.u32 %s2941_s21, 2  ;;  %v1949_v15 = vld [vmem:[%s2876_s1 + $0x43] ss:$8 sm:$0xf] }
  0x14   : > { %s2113_s13 = smov 71   ;;  %s2114_s14 = smov 65   ;;  %v2276_v10 = vsub.s32 0, %v311_v5  ;;  %v2278_v11 = vsub.s32 2, %v311_v5  ;;  %v2280_v12 = vsub.s32 3, %v311_v5  ;;  %v2287_v14 = vsub.s32 1, %v311_v5 }
  0x15   : > { %s276_s30 = sadd.s32 %s1977_s28, %s1929_s29  ;;  %s2115_s15 = smov 64   ;;  %v1932_v16 = vld [vmem:[%s2876_s1 + $0x1] ss:$8 sm:$0xf]  ;;  %vm303_vm0 = vcmp.lt.s32.totalorder %v2269_v8, 73  ;;  %vm346_vm1 = vcmp.lt.s32.totalorder %v2269_v8, 72 }
  0x16   : > { %s1930_s7 = sshll.u32 %s276_s30, 3  ;;  %s2116_s16 = smov 63   ;;  %v313_v19 = vrot.slane %v2274_v9, %v2276_v10  ;;  %v1060_v20 = vrot.slane %v1948_v13, %v2278_v11  ;;  %v1064_v21 = vrot.slane %v1948_v13, %v2280_v12  ;;  %v1052_v22 = vrot.slane %v1948_v13, %v2276_v10 }
  0x17   : > { %s278_s10 = scalar_lea.vmem %s2875_s0, %s1930_s7  ;;  %s2117_s17 = smov 57   ;;  %v1083_v23 = vrot.slane %v1949_v15, %v2276_v10  ;;  %v317_v24 = vrot.slane %v2274_v9, %v2287_v14  ;;  %v361_v25 = vrot.slane %v1932_v16, %v2287_v14  ;;  %v321_v26 = vrot.slane %v2274_v9, %v2278_v11 }
  0x18   : > { %v2203_v0 = vld [vmem:[%s278_s10 + $0x10] sm:$0xff]  ;;  %v2205_v1 = vld [vmem:[%s278_s10] sm:$0xff]  ;;  %v2209_v2 = vld [vmem:[%s278_s10 + $0x18] sm:$0xff]  ;;  %s2118_s18 = smov 56   ;;  %s2119_s19 = smov 55   ;;  %v1056_v27 = vrot.slane %v1948_v13, %v2287_v14  ;;  %v1095_v29 = vrot.slane %v1949_v15, %v2280_v12  ;;  %v357_v34 = vrot.slane %v1932_v16, %v2276_v10  ;;  %v325_v35 = vrot.slane %v2274_v9, %v2280_v12 }
  0x19   : > { %297 = vrot.lane.b32.xlu1 %v2203_v0, %s2111_s11  ;;  %293 = vrot.lane.b32.xlu0 %v2205_v1, %s2111_s11  ;;  %v2211_v3 = vld [vmem:[%s278_s10 + $0x8] sm:$0xff]  ;;  %s2120_s20 = smov 9   ;;  %s2121_s28 = smov 8   ;;  %v365_v38 = vrot.slane %v1932_v16, %v2278_v11  ;;  %v1087_v39 = vrot.slane %v1949_v15, %v2287_v14  ;;  %v1091_v46 = vrot.slane %v1949_v15, %v2278_v11  ;;  %vm390_vm2 = vcmp.lt.s32.totalorder %v2269_v8, 71 }
  0x1a   : > { %s2122_s29 = smov 7   ;;  %s2123_s30 = smov 1   ;;  %v369_v47 = vrot.slane %v1932_v16, %v2280_v12  ;;  %vm434_vm3 = vcmp.lt.s32.totalorder %v2269_v8, 65  ;;  %vm478_vm5 = vcmp.lt.s32.totalorder %v2269_v8, 64  ;;  %vm522_vm6 = vcmp.lt.s32.totalorder %v2269_v8, 63 }
  0x1b   : > { %s2124_s7 = smov 127   ;;  %s2125_s8 = smov 121   ;;  %vm566_vm7 = vcmp.lt.s32.totalorder %v2269_v8, 57  ;;  %vm610_vm8 = vcmp.lt.s32.totalorder %v2269_v8, 56  ;;  %vm654_vm9 = vcmp.lt.s32.totalorder %v2269_v8, 55  ;;  %vm698_vm10 = vcmp.lt.s32.totalorder %v2269_v8, 9 }
  0x1c   : > { %vm742_vm11 = vcmp.lt.s32.totalorder %v2269_v8, 8  ;;  %vm786_vm12 = vcmp.lt.s32.totalorder %v2269_v8, 7  ;;  %vm830_vm13 = vcmp.lt.s32.totalorder %v2269_v8, 1  ;;  %vm922_vm14 = vcmp.lt.s32.totalorder %v2269_v8, 121 }
  0x1d   : > { %299 = vrot.lane.b32.xlu1 %v2209_v2, %s2111_s11  ;;  %295 = vrot.lane.b32.xlu0 %v2211_v3, %s2111_s11  ;;  %vm878_vm15 = vcmp.lt.s32.totalorder %v2269_v8, 127 }
  0x21   : > { %340 = vrot.lane.b32.xlu1 %v2211_v3, %s2112_s12  ;;  %338 = vrot.lane.b32.xlu0 %v2205_v1, %s2112_s12 }
  0x25   : > { %344 = vrot.lane.b32.xlu1 %v2209_v2, %s2112_s12  ;;  %342 = vrot.lane.b32.xlu0 %v2203_v0, %s2112_s12 }
  0x29   : > { %384 = vrot.lane.b32.xlu1 %v2211_v3, %s2113_s13  ;;  %382 = vrot.lane.b32.xlu0 %v2205_v1, %s2113_s13 }
  0x2d   : > { %388 = vrot.lane.b32.xlu1 %v2209_v2, %s2113_s13  ;;  %386 = vrot.lane.b32.xlu0 %v2203_v0, %s2113_s13 }
  0x31   : > { %428 = vrot.lane.b32.xlu1 %v2211_v3, %s2114_s14  ;;  %426 = vrot.lane.b32.xlu0 %v2205_v1, %s2114_s14 }
  0x35   : > { %432 = vrot.lane.b32.xlu1 %v2209_v2, %s2114_s14  ;;  %430 = vrot.lane.b32.xlu0 %v2203_v0, %s2114_s14 }
  0x39   : > { %472 = vrot.lane.b32.xlu1 %v2211_v3, %s2115_s15  ;;  %470 = vrot.lane.b32.xlu0 %v2205_v1, %s2115_s15 }
  0x3d   : > { %476 = vrot.lane.b32.xlu1 %v2209_v2, %s2115_s15  ;;  %474 = vrot.lane.b32.xlu0 %v2203_v0, %s2115_s15 }
  0x41   : > { %516 = vrot.lane.b32.xlu1 %v2211_v3, %s2116_s16  ;;  %514 = vrot.lane.b32.xlu0 %v2205_v1, %s2116_s16 }
  0x45   : > { %520 = vrot.lane.b32.xlu1 %v2209_v2, %s2116_s16  ;;  %518 = vrot.lane.b32.xlu0 %v2203_v0, %s2116_s16 }
  0x49   : > { %560 = vrot.lane.b32.xlu1 %v2211_v3, %s2117_s17  ;;  %558 = vrot.lane.b32.xlu0 %v2205_v1, %s2117_s17 }
  0x4d   : > { %564 = vrot.lane.b32.xlu1 %v2209_v2, %s2117_s17  ;;  %562 = vrot.lane.b32.xlu0 %v2203_v0, %s2117_s17  ;;  %s2126_s17 = smov 120  }
  0x51   : > { %604 = vrot.lane.b32.xlu1 %v2211_v3, %s2118_s18  ;;  %602 = vrot.lane.b32.xlu0 %v2205_v1, %s2118_s18 }
  0x55   : > { %608 = vrot.lane.b32.xlu1 %v2209_v2, %s2118_s18  ;;  %606 = vrot.lane.b32.xlu0 %v2203_v0, %s2118_s18  ;;  %s2127_s18 = smov 119  }
  0x59   : > { %648 = vrot.lane.b32.xlu1 %v2211_v3, %s2119_s19  ;;  %646 = vrot.lane.b32.xlu0 %v2205_v1, %s2119_s19 }
  0x5d   : > { %652 = vrot.lane.b32.xlu1 %v2209_v2, %s2119_s19  ;;  %650 = vrot.lane.b32.xlu0 %v2203_v0, %s2119_s19 }
  0x61   : > { %692 = vrot.lane.b32.xlu1 %v2211_v3, %s2120_s20  ;;  %690 = vrot.lane.b32.xlu0 %v2205_v1, %s2120_s20 }
  0x65   : > { %696 = vrot.lane.b32.xlu1 %v2209_v2, %s2120_s20  ;;  %694 = vrot.lane.b32.xlu0 %v2203_v0, %s2120_s20 }
  0x69   : > { %736 = vrot.lane.b32.xlu1 %v2211_v3, %s2121_s28  ;;  %734 = vrot.lane.b32.xlu0 %v2205_v1, %s2121_s28 }
  0x6d   : > { %740 = vrot.lane.b32.xlu1 %v2209_v2, %s2121_s28  ;;  %738 = vrot.lane.b32.xlu0 %v2203_v0, %s2121_s28 }
  0x71   : > { %780 = vrot.lane.b32.xlu1 %v2211_v3, %s2122_s29  ;;  %778 = vrot.lane.b32.xlu0 %v2205_v1, %s2122_s29 }
  0x75   : > { %784 = vrot.lane.b32.xlu1 %v2209_v2, %s2122_s29  ;;  %782 = vrot.lane.b32.xlu0 %v2203_v0, %s2122_s29 }
  0x79   : > { %824 = vrot.lane.b32.xlu1 %v2211_v3, %s2123_s30  ;;  %822 = vrot.lane.b32.xlu0 %v2205_v1, %s2123_s30 }
  0x7d   : > { %828 = vrot.lane.b32.xlu1 %v2209_v2, %s2123_s30  ;;  %826 = vrot.lane.b32.xlu0 %v2203_v0, %s2123_s30 }
  0x81   : > { %872 = vrot.lane.b32.xlu1 %v2211_v3, %s2124_s7  ;;  %870 = vrot.lane.b32.xlu0 %v2205_v1, %s2124_s7 }
  0x85   : > { %876 = vrot.lane.b32.xlu1 %v2209_v2, %s2124_s7  ;;  %874 = vrot.lane.b32.xlu0 %v2203_v0, %s2124_s7 }
  0x89   : > { %916 = vrot.lane.b32.xlu1 %v2211_v3, %s2125_s8  ;;  %914 = vrot.lane.b32.xlu0 %v2205_v1, %s2125_s8 }
  0x8b   : > { %v298_v6 = vpop.permute.xlu1 %297  ;;  %v294_v7 = vpop.permute.xlu0 %293 }
  0x8d   : > { %920 = vrot.lane.b32.xlu1 %v2209_v2, %s2125_s8  ;;  %918 = vrot.lane.b32.xlu0 %v2203_v0, %s2125_s8 }
  0x8f   : > { %v300_v17 = vpop.permute.xlu1 %299  ;;  %v296_v18 = vpop.permute.xlu0 %295 }
  0x90   : > { %v306_v28 = vsel %vm303_vm0, %v294_v7, %v296_v18  ;;  %v304_v30 = vsel %vm303_vm0, %v298_v6, %v300_v17  ;;  %v307_v31 = vsel %vm303_vm0, %v300_v17, %v294_v7  ;;  %v305_v36 = vsel %vm303_vm0, %v296_v18, %v298_v6  ;;  %v1933_v18 = vld [vmem:[%s2876_s1 + $0x2] ss:$8 sm:$0xf] }
  0x91   : > { %960 = vrot.lane.b32.xlu1 %v2211_v3, %s2126_s17  ;;  %958 = vrot.lane.b32.xlu0 %v2205_v1, %s2126_s17  ;;  %v2327_v40 = vmul.f32 %v1052_v22, %v306_v28  ;;  %v331_v42 = vmul.f32 %v317_v24, %v306_v28  ;;  %v330_v44 = vmul.f32 %v313_v19, %v307_v31  ;;  %v1950_v19 = vld [vmem:[%s2876_s1 + $0x44] ss:$8 sm:$0xf]  ;;  %vm1010_vm0 = vcmp.lt.s32.totalorder %v2269_v8, 119 }
  0x92   : > { %v2332_v45 = vmul.f32 %v1060_v20, %v304_v30  ;;  %v2337_v48 = vmul.f32 %v1064_v21, %v307_v31  ;;  %v332_v49 = vmul.f32 %v321_v26, %v305_v36  ;;  %v2341_v54 = vmul.f32 %v1056_v27, %v305_v36  ;;  %v1934_v20 = vld [vmem:[%s2876_s1 + $0x3] ss:$8 sm:$0xf]  ;;  %v1951_v21 = vld [vmem:[%s2876_s1 + $0x45] ss:$8 sm:$0xf] }
  0x93   : > { %v341_v32 = vpop.permute.xlu1 %340  ;;  %v339_v33 = vpop.permute.xlu0 %338  ;;  %v333_v63 = vmul.f32 %v325_v35, %v304_v30  ;;  %v405_v24 = vrot.slane %v1933_v18, %v2287_v14  ;;  %v401_v26 = vrot.slane %v1933_v18, %v2276_v10  ;;  %v449_v28 = vrot.slane %v1934_v20, %v2287_v14 }
  0x94   : > { %v349_v37 = vsel %vm346_vm1, %v339_v33, %v341_v32  ;;  %v1126_v30 = vrot.slane %v1950_v19, %v2280_v12  ;;  %v409_v31 = vrot.slane %v1933_v18, %v2278_v11 }
  0x95   : > { %v2329_v41 = vmul.f32 %v1083_v23, %v349_v37  ;;  %964 = vrot.lane.b32.xlu1 %v2209_v2, %s2126_s17  ;;  %v375_v43 = vmul.f32 %v361_v25, %v349_v37  ;;  %962 = vrot.lane.b32.xlu0 %v2203_v0, %s2126_s17  ;;  %v1114_v25 = vrot.slane %v1950_v19, %v2276_v10  ;;  %s1978_s17 = smul.u32 12, %s2941_s21 }
  0x96   : > { %v445_v37 = vrot.slane %v1934_v20, %v2276_v10 }
  0x97   : > { %v345_v50 = vpop.permute.xlu1 %344  ;;  %v343_v51 = vpop.permute.xlu0 %342  ;;  %v1434_v52 = vpack.c.bf16 %v375_v43, %v331_v42 }
  0x98   : > { %v350_v55 = vsel %vm346_vm1, %v345_v50, %v339_v33  ;;  %v347_v56 = vsel %vm346_vm1, %v343_v51, %v345_v50  ;;  %v348_v57 = vsel %vm346_vm1, %v341_v32, %v343_v51  ;;  %v413_v32 = vrot.slane %v1933_v18, %v2280_v12 }
  0x99   : > { %v374_v58 = vmul.f32 %v357_v34, %v350_v55  ;;  %v2349_v59 = vmul.f32 %v1095_v29, %v350_v55  ;;  %v376_v60 = vmul.f32 %v365_v38, %v348_v57  ;;  %v2351_v61 = vmul.f32 %v1087_v39, %v348_v57  ;;  %1004 = vrot.lane.b32.xlu1 %v2211_v3, %s2127_s18 }
  0x9a   : > { %v2354_v62 = vmul.f32 %v1091_v46, %v347_v56  ;;  %1002 = vrot.lane.b32.xlu0 %v2205_v1, %s2127_s18  ;;  %1545 = vmatprep.subr.bf16.mxu0 %v1434_v52  ;;  %v377_v4 = vmul.f32 %v369_v47, %v347_v56  ;;  %v1145_v29 = vrot.slane %v1951_v21, %v2276_v10  ;;  %vm966_vm1 = vcmp.lt.s32.totalorder %v2269_v8, 120 }
  0x9b   : > { %v385_v5 = vpop.permute.xlu1 %384  ;;  %v383_v6 = vpop.permute.xlu0 %382  ;;  %v1433_v7 = vpack.c.bf16 %v374_v58, %v330_v44  ;;  %v1435_v9 = vpack.c.bf16 %v376_v60, %v332_v49  ;;  %v1118_v33 = vrot.slane %v1950_v19, %v2287_v14  ;;  %v1157_v38 = vrot.slane %v1951_v21, %v2280_v12 }
  0x9c   : > { %v1436_v16 = vpack.c.bf16 %v377_v4, %v333_v63  ;;  %v393_v27 = vsel %vm390_vm2, %v383_v6, %v385_v5  ;;  %v453_v39 = vrot.slane %v1934_v20, %v2278_v11  ;;  %v457_v46 = vrot.slane %v1934_v20, %v2280_v12 }
  0x9d   : > { %1008 = vrot.lane.b32.xlu1 %v2209_v2, %s2127_s18  ;;  %1546 = vmatpush1.bf16.msra.mxu0 %v1433_v7  ;;  %v419_v42 = vmul.f32 %v405_v24, %v393_v27  ;;  %v2400_v47 = vmul.f32 %v1114_v25, %v393_v27  ;;  %v1122_v55 = vrot.slane %v1950_v19, %v2278_v11 }
  0x9e   : > { %1006 = vrot.lane.b32.xlu0 %v2203_v0, %s2127_s18  ;;  %1596 = vmatprep.subr.bf16.mxu1 %v1436_v16  ;;  %v1149_v56 = vrot.slane %v1951_v21, %v2287_v14  ;;  %v1153_v57 = vrot.slane %v1951_v21, %v2278_v11  ;;  %v2903_v8 = vpack.c.bf16 %v2351_v61, %v2341_v54  ;;  %s1979_s18 = smul.u32 36, %s2939_s22 }
  0x9f   : > { %1597 = vmatpush1.bf16.msra.mxu1 %v1435_v9  ;;  %v389_v22 = vpop.permute.xlu1 %388  ;;  %v387_v23 = vpop.permute.xlu0 %386 }
  0xa0   : > { %v394_v34 = vsel %vm390_vm2, %v389_v22, %v383_v6  ;;  %v392_v43 = vsel %vm390_vm2, %v385_v5, %v387_v23  ;;  %v391_v49 = vsel %vm390_vm2, %v387_v23, %v389_v22  ;;  %vm1532_vm2 = vcmask 1043456   ;;  %s285_s19 = sadd.s32 %s1979_s18, %s1978_s17 }
  0xa1   : > { %v418_v52 = vmul.f32 %v401_v26, %v394_v34  ;;  %v2409_v58 = vmul.f32 %v1126_v30, %v394_v34  ;;  %v420_v60 = vmul.f32 %v409_v31, %v392_v43  ;;  %v421_v7 = vmul.f32 %v413_v32, %v391_v49  ;;  %s1931_s20 = sshll.u32 %s285_s19, 3 }
  0xa2   : > { %v2421_v23 = vmul.f32 %v1118_v33, %v392_v43  ;;  %v2423_v24 = vmul.f32 %v1122_v55, %v391_v49  ;;  %v2042_v33 = vld [vmem:[%s2877_s2 + $0x4] ss:$8 sps:$4 sm:$0xff]   ;;  %s2846_s30 = scalar_lea.vmem %s2881_s6, %s1931_s20 }
  0xa3   : > { %v429_v35 = vpop.permute.xlu1 %428  ;;  %v427_v36 = vpop.permute.xlu0 %426  ;;  %1962 = vmatprep.mubr.msk.bf16.mxu0 %vm1525_vm4, %v2042_v33  ;;  %1965 = vmatprep.mubr.msk.bf16.mxu1 %vm1525_vm4, %v2042_v33 }
  0xa4   : > { %v437_v44 = vsel %vm434_vm3, %v427_v36, %v429_v35 }
  0xa5   : > { %v463_v50 = vmul.f32 %v449_v28, %v437_v44  ;;  %v2404_v51 = vmul.f32 %v1145_v29, %v437_v44  ;;  %v1935_v28 = vld [vmem:[%s2876_s1 + $0x4] ss:$8 sm:$0xf] }
  0xa6   : > { %v489_v49 = vrot.slane %v1935_v28, %v2276_v10  ;;  %v501_v55 = vrot.slane %v1935_v28, %v2280_v12 }
  0xa7   : > { %v433_v63 = vpop.permute.xlu1 %432  ;;  %v431_v4 = vpop.permute.xlu0 %430  ;;  %v1438_v5 = vpack.c.bf16 %v463_v50, %v419_v42  ;;  %v493_v42 = vrot.slane %v1935_v28, %v2287_v14 }
  0xa8   : > { %v438_v9 = vsel %vm434_vm3, %v433_v63, %v427_v36  ;;  %v435_v16 = vsel %vm434_vm3, %v431_v4, %v433_v63  ;;  %v436_v18 = vsel %vm434_vm3, %v429_v35, %v431_v4  ;;  %v2440_v35 = vld [vmem:[%s2876_s1 + $0x46] ss:$8 sm:$0xf]  ;;  %vm1696_vm3 = vcmask 195584  }
  0xa9   : > { %v462_v19 = vmul.f32 %v445_v37, %v438_v9  ;;  %v2419_v20 = vmul.f32 %v1157_v38, %v438_v9  ;;  %v464_v21 = vmul.f32 %v453_v39, %v436_v18  ;;  %v465_v22 = vmul.f32 %v457_v46, %v435_v16  ;;  %1547 = vmatprep.subr.bf16.mxu0 %v1438_v5  ;;  %v1936_v38 = vld [vmem:[%s2876_s1 + $0x5] ss:$8 sm:$0xf]  ;;  %v2452_v39 = vld [vmem:[%s2876_s1 + $0x47] ss:$8 sm:$0xf] }
  0xaa   : > { %v2425_v25 = vmul.f32 %v1149_v56, %v436_v18  ;;  %v2427_v26 = vmul.f32 %v1153_v57, %v435_v16  ;;  %v1176_v43 = vrot.slane %v2440_v35, %v2276_v10  ;;  %v1188_v50 = vrot.slane %v2440_v35, %v2280_v12 }
  0xab   : > { %v473_v27 = vpop.permute.xlu1 %472  ;;  %v471_v29 = vpop.permute.xlu0 %470  ;;  %v1437_v30 = vpack.c.bf16 %v462_v19, %v418_v52  ;;  %v1440_v31 = vpack.c.bf16 %v465_v22, %v421_v7  ;;  %v1439_v32 = vpack.c.bf16 %v464_v21, %v420_v60  ;;  %v497_v52 = vrot.slane %v1935_v28, %v2278_v11 }
  0xac   : > { %v1180_v56 = vrot.slane %v2440_v35, %v2287_v14  ;;  %v537_v57 = vrot.slane %v1936_v38, %v2287_v14  ;;  %v1207_v60 = vrot.slane %v2452_v39, %v2276_v10  ;;  %v481_v63 = vsel %vm478_vm5, %v471_v29, %v473_v27 }
  0xad   : > { %1548 = vmatpush1.bf16.msra.mxu0 %v1437_v30  ;;  %1598 = vmatprep.subr.bf16.mxu1 %v1440_v31  ;;  %v1184_v4 = vrot.slane %v2440_v35, %v2278_v11  ;;  %v533_v5 = vrot.slane %v1936_v38, %v2276_v10  ;;  %v1219_v7 = vrot.slane %v2452_v39, %v2280_v12 }
  0xae   : > { %1599 = vmatpush1.bf16.msra.mxu1 %v1439_v32  ;;  %v541_v21 = vrot.slane %v1936_v38, %v2278_v11  ;;  %v545_v22 = vrot.slane %v1936_v38, %v2280_v12  ;;  %v1211_v31 = vrot.slane %v2452_v39, %v2287_v14  ;;  %v507_v32 = vmul.f32 %v493_v42, %v481_v63 }
  0xaf   : > { %v477_v44 = vpop.permute.xlu1 %476  ;;  %v475_v46 = vpop.permute.xlu0 %474  ;;  %v2907_v54 = vpack.c.bf16 %v2425_v25, %v2421_v23 }
  0xb0   : > { %v482_v9 = vsel %vm478_vm5, %v477_v44, %v471_v29  ;;  %v480_v16 = vsel %vm478_vm5, %v473_v27, %v475_v46  ;;  %v479_v28 = vsel %vm478_vm5, %v475_v46, %v477_v44  ;;  %v1215_v29 = vrot.slane %v2452_v39, %v2278_v11  ;;  %v1493_v44 = vld [vmem:[%s2878_s3 + $0x8] sm:$0xff]  ;;  %v1492_v46 = vld [vmem:[%s2878_s3] sm:$0xff] }
  0xb1   : > { %v2492_v27 = vmul.f32 %v1176_v43, %v481_v63  ;;  %v506_v6 = vmul.f32 %v489_v49, %v482_v9  ;;  %v2496_v38 = vmul.f32 %v1188_v50, %v482_v9  ;;  %v508_v37 = vmul.f32 %v497_v52, %v480_v16 }
  0xb2   : > { %v509_v36 = vmul.f32 %v501_v55, %v479_v28 }
  0xb3   : > { %v517_v18 = vpop.permute.xlu1 %516  ;;  %v515_v19 = vpop.permute.xlu0 %514  ;;  %2893 = vst [vmem:[#allocation3_spill] sm:$0xff] %v2492_v27 }
  0xb4   : > { %v525_v30 = vsel %vm522_vm6, %v515_v19, %v517_v18 }
  0xb5   : > { %v551_v33 = vmul.f32 %v537_v57, %v525_v30  ;;  %v2494_v35 = vmul.f32 %v1207_v60, %v525_v30  ;;  %v2882_v60 = vmov 0  }
  0xb6   : > { %2039 = vset.pattern.permute.xlu1 %v2882_v60  ;;  %2038 = vset.pattern.permute.xlu0 %v2882_v60 }
  0xb7   : > { %2894 = vst [vmem:[#allocation4_spill] sm:$0xff] %v2494_v35  ;;  %v521_v39 = vpop.permute.xlu1 %520  ;;  %v519_v42 = vpop.permute.xlu0 %518  ;;  %v1442_v43 = vpack.c.bf16 %v551_v33, %v507_v32  ;;  %1502 = vperm.xlu1 %2039, %v1493_v44   ;;  %1497 = vperm.xlu0 %2038, %v1492_v46   ;;  %v1494_v32 = vld [vmem:[%s2878_s3 + $0x10] sm:$0xff]  ;;  %v2522_v33 = vmul.f32 %v1180_v56, %v480_v16 }
  0xb8   : > { %v526_v49 = vsel %vm522_vm6, %v521_v39, %v515_v19  ;;  %v523_v50 = vsel %vm522_vm6, %v519_v42, %v521_v39  ;;  %v524_v52 = vsel %vm522_vm6, %v517_v18, %v519_v42  ;;  %v1670_v19 = vld [vmem:[%s2880_s5] sm:$0xff]  ;;  %v2524_v39 = vmul.f32 %v1184_v4, %v479_v28 }
  0xb9   : > { %v550_v55 = vmul.f32 %v533_v5, %v526_v49  ;;  %v2514_v63 = vmul.f32 %v1219_v7, %v526_v49  ;;  %v552_v9 = vmul.f32 %v541_v21, %v524_v52  ;;  %v553_v30 = vmul.f32 %v545_v22, %v523_v50  ;;  %1549 = vmatprep.subr.bf16.mxu0 %v1442_v43  ;;  %v1937_v43 = vld [vmem:[%s2876_s1 + $0x6] ss:$8 sm:$0xf]  ;;  %v1938_v16 = vld [vmem:[%s2876_s1 + $0x7] ss:$8 sm:$0xf] }
  0xba   : > { %2895 = vst [vmem:[#allocation5_spill] sm:$0xff] %v2524_v39  ;;  %v2526_v18 = vmul.f32 %v1211_v31, %v524_v52  ;;  %v2528_v5 = vmul.f32 %v1215_v29, %v523_v50  ;;  %v1955_v28 = vld [vmem:[%s2876_s1 + $0x61] ss:$8 sm:$0xf]  ;;  %v581_v49 = vrot.slane %v1937_v43, %v2287_v14  ;;  %v577_v52 = vrot.slane %v1937_v43, %v2276_v10 }
  0xbb   : > { %v561_v7 = vpop.permute.xlu1 %560  ;;  %v559_v21 = vpop.permute.xlu0 %558  ;;  %v1441_v22 = vpack.c.bf16 %v550_v55, %v506_v6  ;;  %v1444_v44 = vpack.c.bf16 %v553_v30, %v509_v36  ;;  %v1443_v46 = vpack.c.bf16 %v552_v9, %v508_v37  ;;  %1507 = vperm.xlu1 %2039, %v1494_v32   ;;  %1675 = vperm.xlu0 %2038, %v1670_v19   ;;  %v1954_v6 = vld [vmem:[%s2876_s1 + $0x60] ss:$8 sm:$0xf] }
  0xbc   : > { %2896 = vst [vmem:[#allocation6_spill] sm:$0xff] %v2528_v5  ;;  %v1671_v36 = vld [vmem:[%s2880_s5 + $0x8] sm:$0xff]  ;;  %v1672_v37 = vld [vmem:[%s2880_s5 + $0x10] sm:$0xff]  ;;  %v1238_v50 = vrot.slane %v1954_v6, %v2276_v10  ;;  %v569_v55 = vsel %vm566_vm7, %v559_v21, %v561_v7  ;;  %v625_v9 = vrot.slane %v1938_v16, %v2287_v14  ;;  %v1269_v30 = vrot.slane %v1955_v28, %v2276_v10  ;;  %v2916_v25 = vld [vmem:[#allocation3_spill] sm:$0xff] }
  0xbd   : > { %1550 = vmatpush1.bf16.msra.mxu0 %v1441_v22  ;;  %1600 = vmatprep.subr.bf16.mxu1 %v1444_v44  ;;  %v1250_v32 = vrot.slane %v1954_v6, %v2280_v12  ;;  %v585_v19 = vrot.slane %v1937_v43, %v2278_v11  ;;  %v589_v22 = vrot.slane %v1937_v43, %v2280_v12 }
  0xbe   : > { %1601 = vmatpush1.bf16.msra.mxu1 %v1443_v46  ;;  %v1242_v44 = vrot.slane %v1954_v6, %v2287_v14  ;;  %v621_v60 = vrot.slane %v1938_v16, %v2276_v10  ;;  %v1281_v57 = vrot.slane %v1955_v28, %v2280_v12  ;;  %v629_v4 = vrot.slane %v1938_v16, %v2278_v11 }
  0xbf   : > { %v565_v31 = vpop.permute.xlu1 %564  ;;  %v563_v29 = vpop.permute.xlu0 %562  ;;  %1680 = vperm.xlu1 %2039, %v1671_v36   ;;  %1685 = vperm.xlu0 %2038, %v1672_v37   ;;  %v595_v56 = vmul.f32 %v581_v49, %v569_v55  ;;  %v633_v34 = vrot.slane %v1938_v16, %v2280_v12  ;;  %v2577_v53 = vmul.f32 %v1238_v50, %v569_v55 }
  0xc0   : > { %v570_v46 = vsel %vm566_vm7, %v565_v31, %v559_v21  ;;  %v568_v42 = vsel %vm566_vm7, %v561_v7, %v563_v29  ;;  %v567_v21 = vsel %vm566_vm7, %v563_v29, %v565_v31  ;;  %v1246_v27 = vrot.slane %v1954_v6, %v2278_v11 }
  0xc1   : > { %2897 = vst [vmem:[#allocation7_spill] sm:$0xff] %v2577_v53  ;;  %v594_v15 = vmul.f32 %v577_v52, %v570_v46  ;;  %v1273_v49 = vrot.slane %v1955_v28, %v2287_v14  ;;  %v1277_v7 = vrot.slane %v1955_v28, %v2278_v11  ;;  %v2586_v35 = vmul.f32 %v1250_v32, %v570_v46 }
  0xc2   : > { %v596_v39 = vmul.f32 %v585_v19, %v568_v42  ;;  %v597_v31 = vmul.f32 %v589_v22, %v567_v21 }
  0xc3   : > { %v605_v36 = vpop.permute.xlu1 %604  ;;  %v603_v37 = vpop.permute.xlu0 %602  ;;  %v2912_v23 = vld [vmem:[#allocation6_spill] sm:$0xff] }
  0xc4   : > { %v613_v43 = vsel %vm610_vm8, %v603_v37, %v605_v36 }
  0xc5   : > { %v639_v17 = vmul.f32 %v625_v9, %v613_v43  ;;  %v2581_v13 = vmul.f32 %v1269_v30, %v613_v43 }
  0xc7   : > { %2898 = vst [vmem:[#allocation8_spill] sm:$0xff] %v2581_v13  ;;  %v609_v5 = vpop.permute.xlu1 %608  ;;  %v607_v16 = vpop.permute.xlu0 %606  ;;  %v1446_v50 = vpack.c.bf16 %v639_v17, %v595_v56  ;;  %v2598_v17 = vmul.f32 %v1242_v44, %v568_v42  ;;  %v2600_v56 = vmul.f32 %v1246_v27, %v567_v21  ;;  %v1939_v27 = vld [vmem:[%s2876_s1 + $0x20] ss:$8 sm:$0xf] }
  0xc8   : > { %v614_v29 = vsel %vm610_vm8, %v609_v5, %v603_v37  ;;  %v611_v6 = vsel %vm610_vm8, %v607_v16, %v609_v5  ;;  %v612_v52 = vsel %vm610_vm8, %v605_v36, %v607_v16  ;;  %v665_v21 = vrot.slane %v1939_v27, %v2276_v10 }
  0xc9   : > { %v638_v28 = vmul.f32 %v621_v60, %v614_v29  ;;  %v2596_v9 = vmul.f32 %v1281_v57, %v614_v29  ;;  %v640_v30 = vmul.f32 %v629_v4, %v612_v52  ;;  %v641_v32 = vmul.f32 %v633_v34, %v611_v6  ;;  %1551 = vmatprep.subr.bf16.mxu0 %v1446_v50 }
  0xca   : > { %2899 = vst [vmem:[#allocation9_spill] sm:$0xff] %v2598_v17  ;;  %2900 = vst [vmem:[#allocation10_spill] sm:$0xff] %v2600_v56  ;;  %v2602_v19 = vmul.f32 %v1273_v49, %v612_v52  ;;  %v2604_v22 = vmul.f32 %v1277_v7, %v611_v6  ;;  %v669_v4 = vrot.slane %v1939_v27, %v2287_v14 }
  0xcb   : > { %v649_v46 = vpop.permute.xlu1 %648  ;;  %v647_v37 = vpop.permute.xlu0 %646  ;;  %v1445_v5 = vpack.c.bf16 %v638_v28, %v594_v15  ;;  %v1448_v43 = vpack.c.bf16 %v641_v32, %v597_v31  ;;  %v1447_v55 = vpack.c.bf16 %v640_v30, %v596_v39  ;;  %v1940_v15 = vld [vmem:[%s2876_s1 + $0x21] ss:$8 sm:$0xf]  ;;  %v673_v49 = vrot.slane %v1939_v27, %v2278_v11 }
  0xcc   : > { %2901 = vst [vmem:[#allocation11_spill] sm:$0xff] %v2604_v22  ;;  %v713_v44 = vrot.slane %v1940_v15, %v2287_v14  ;;  %v2624_v36 = vsel %vm654_vm9, %v647_v37, %v649_v46  ;;  %v677_v7 = vrot.slane %v1939_v27, %v2280_v12  ;;  %v709_v29 = vrot.slane %v1940_v15, %v2276_v10 }
  0xcd   : > { %1552 = vmatpush1.bf16.msra.mxu0 %v1445_v5  ;;  %1602 = vmatprep.subr.bf16.mxu1 %v1448_v43  ;;  %v717_v6 = vrot.slane %v1940_v15, %v2278_v11  ;;  %v683_v52 = vmul.f32 %v669_v4, %v2624_v36  ;;  %v721_v32 = vrot.slane %v1940_v15, %v2280_v12 }
  0xce   : > { %1603 = vmatpush1.bf16.msra.mxu1 %v1447_v55 }
  0xcf   : > { %v653_v39 = vpop.permute.xlu1 %652  ;;  %v651_v42 = vpop.permute.xlu0 %650 }
  0xd0   : > { %v2631_v55 = vsel %vm654_vm9, %v653_v39, %v647_v37  ;;  %v2640_v28 = vsel %vm654_vm9, %v649_v46, %v651_v42  ;;  %v2645_v37 = vsel %vm654_vm9, %v651_v42, %v653_v39 }
  0xd1   : > { %v682_v5 = vmul.f32 %v665_v21, %v2631_v55  ;;  %v684_v34 = vmul.f32 %v673_v49, %v2640_v28 }
  0xd3   : > { %v693_v16 = vpop.permute.xlu1 %692  ;;  %v691_v50 = vpop.permute.xlu0 %690 }
  0xd4   : > { %v701_v31 = vsel %vm698_vm10, %v691_v50, %v693_v16 }
  0xd5   : > { %v727_v30 = vmul.f32 %v713_v44, %v701_v31  ;;  %v685_v44 = vmul.f32 %v677_v7, %v2645_v37  ;;  %v1942_v7 = vld [vmem:[%s2876_s1 + $0x23] ss:$8 sm:$0xf] }
  0xd7   : > { %v697_v43 = vpop.permute.xlu1 %696  ;;  %v695_v27 = vpop.permute.xlu0 %694  ;;  %v1450_v60 = vpack.c.bf16 %v727_v30, %v683_v52 }
  0xd8   : > { %v702_v4 = vsel %vm698_vm10, %v697_v43, %v691_v50  ;;  %v699_v46 = vsel %vm698_vm10, %v695_v27, %v697_v43  ;;  %v700_v15 = vsel %vm698_vm10, %v693_v16, %v695_v27  ;;  %v1941_v50 = vld [vmem:[%s2876_s1 + $0x22] ss:$8 sm:$0xf] }
  0xd9   : > { %v726_v39 = vmul.f32 %v709_v29, %v702_v4  ;;  %v728_v42 = vmul.f32 %v717_v6, %v700_v15  ;;  %v729_v31 = vmul.f32 %v721_v32, %v699_v46  ;;  %1553 = vmatprep.subr.bf16.mxu0 %v1450_v60  ;;  %v757_v29 = vrot.slane %v1941_v50, %v2287_v14 }
  0xda   : > { %v753_v32 = vrot.slane %v1941_v50, %v2276_v10  ;;  %v765_v43 = vrot.slane %v1941_v50, %v2280_v12 }
  0xdb   : > { %v737_v21 = vpop.permute.xlu1 %736  ;;  %v735_v57 = vpop.permute.xlu0 %734  ;;  %v1449_v52 = vpack.c.bf16 %v726_v39, %v682_v5  ;;  %v1452_v30 = vpack.c.bf16 %v729_v31, %v685_v44  ;;  %v1451_v49 = vpack.c.bf16 %v728_v42, %v684_v34  ;;  %v801_v34 = vrot.slane %v1942_v7, %v2287_v14  ;;  %v1943_v42 = vld [vmem:[%s2876_s1 + $0x24] ss:$8 sm:$0xf] }
  0xdc   : > { %v745_v6 = vsel %vm742_vm11, %v735_v57, %v737_v21  ;;  %v761_v5 = vrot.slane %v1941_v50, %v2278_v11  ;;  %v797_v44 = vrot.slane %v1942_v7, %v2276_v10  ;;  %v805_v39 = vrot.slane %v1942_v7, %v2278_v11 }
  0xdd   : > { %1554 = vmatpush1.bf16.msra.mxu0 %v1449_v52  ;;  %1604 = vmatprep.subr.bf16.mxu1 %v1452_v30  ;;  %v771_v31 = vmul.f32 %v757_v29, %v745_v6  ;;  %v845_v22 = vrot.slane %v1943_v42, %v2287_v14 }
  0xde   : > { %1605 = vmatpush1.bf16.msra.mxu1 %v1451_v49  ;;  %v809_v49 = vrot.slane %v1942_v7, %v2280_v12 }
  0xdf   : > { %v741_v16 = vpop.permute.xlu1 %740  ;;  %v739_v60 = vpop.permute.xlu0 %738 }
  0xe0   : > { %v746_v46 = vsel %vm742_vm11, %v741_v16, %v735_v57  ;;  %v744_v52 = vsel %vm742_vm11, %v737_v21, %v739_v60  ;;  %v743_v57 = vsel %vm742_vm11, %v739_v60, %v741_v16 }
  0xe1   : > { %v770_v50 = vmul.f32 %v753_v32, %v746_v46  ;;  %v772_v17 = vmul.f32 %v761_v5, %v744_v52 }
  0xe3   : > { %v781_v27 = vpop.permute.xlu1 %780  ;;  %v779_v4 = vpop.permute.xlu0 %778 }
  0xe4   : > { %v789_v15 = vsel %vm786_vm12, %v779_v4, %v781_v27 }
  0xe5   : > { %v815_v30 = vmul.f32 %v801_v34, %v789_v15  ;;  %v773_v34 = vmul.f32 %v765_v43, %v743_v57 }
  0xe7   : > { %v785_v53 = vpop.permute.xlu1 %784  ;;  %v783_v13 = vpop.permute.xlu0 %782  ;;  %v1454_v56 = vpack.c.bf16 %v815_v30, %v771_v31 }
  0xe8   : > { %v790_v29 = vsel %vm786_vm12, %v785_v53, %v779_v4  ;;  %v787_v21 = vsel %vm786_vm12, %v783_v13, %v785_v53  ;;  %v788_v7 = vsel %vm786_vm12, %v781_v27, %v783_v13  ;;  %v841_v4 = vrot.slane %v1943_v42, %v2276_v10 }
  0xe9   : > { %v814_v16 = vmul.f32 %v797_v44, %v790_v29  ;;  %v816_v60 = vmul.f32 %v805_v39, %v788_v7  ;;  %v817_v6 = vmul.f32 %v809_v49, %v787_v21  ;;  %1555 = vmatprep.subr.bf16.mxu0 %v1454_v56  ;;  %v849_v53 = vrot.slane %v1943_v42, %v2278_v11 }
  0xea   : > { %v853_v13 = vrot.slane %v1943_v42, %v2280_v12 }
  0xeb   : > { %v825_v32 = vpop.permute.xlu1 %824  ;;  %v823_v46 = vpop.permute.xlu0 %822  ;;  %v1453_v15 = vpack.c.bf16 %v814_v16, %v770_v50  ;;  %v1456_v31 = vpack.c.bf16 %v817_v6, %v773_v34  ;;  %v1455_v30 = vpack.c.bf16 %v816_v60, %v772_v17  ;;  %v1945_v16 = vld [vmem:[%s2876_s1 + $0x27] ss:$8 sm:$0xf]  ;;  %v1944_v60 = vld [vmem:[%s2876_s1 + $0x26] ss:$8 sm:$0xf] }
  0xec   : > { %v833_v5 = vsel %vm830_vm13, %v823_v46, %v825_v32 }
  0xed   : > { %v859_v52 = vmul.f32 %v845_v22, %v833_v5  ;;  %1556 = vmatpush1.bf16.msra.mxu0 %v1453_v15  ;;  %1606 = vmatprep.subr.bf16.mxu1 %v1456_v31  ;;  %v933_v31 = vrot.slane %v1945_v16, %v2276_v10  ;;  %v945_v5 = vrot.slane %v1945_v16, %v2280_v12 }
  0xee   : > { %1607 = vmatpush1.bf16.msra.mxu1 %v1455_v30 }
  0xef   : > { %v829_v43 = vpop.permute.xlu1 %828  ;;  %v827_v56 = vpop.permute.xlu0 %826  ;;  %v1458_v27 = vpack.c.bf16 %v2211_v3, %v859_v52  ;;  %v941_v52 = vrot.slane %v1945_v16, %v2278_v11 }
  0xf0   : > { %v834_v17 = vsel %vm830_vm13, %v829_v43, %v823_v46  ;;  %v831_v44 = vsel %vm830_vm13, %v827_v56, %v829_v43  ;;  %v832_v22 = vsel %vm830_vm13, %v825_v32, %v827_v56  ;;  %v897_v46 = vrot.slane %v1944_v60, %v2278_v11 }
  0xf1   : > { %v858_v39 = vmul.f32 %v841_v4, %v834_v17  ;;  %v860_v49 = vmul.f32 %v849_v53, %v832_v22  ;;  %v861_v57 = vmul.f32 %v853_v13, %v831_v44  ;;  %1557 = vmatprep.subr.bf16.mxu0 %v1458_v27  ;;  %v937_v4 = vrot.slane %v1945_v16, %v2287_v14 }
  0xf2   : > { %v889_v53 = vrot.slane %v1944_v60, %v2276_v10 }
  0xf3   : > { %v873_v50 = vpop.permute.xlu1 %872  ;;  %v871_v42 = vpop.permute.xlu0 %870  ;;  %v1457_v29 = vpack.c.bf16 %v2205_v1, %v858_v39  ;;  %v1460_v21 = vpack.c.bf16 %v2209_v2, %v861_v57  ;;  %v1459_v3 = vpack.c.bf16 %v2203_v0, %v860_v49  ;;  %v901_v1 = vrot.slane %v1944_v60, %v2280_v12 }
  0xf4   : > { %v893_v0 = vrot.slane %v1944_v60, %v2287_v14  ;;  %v881_v43 = vsel %vm878_vm15, %v871_v42, %v873_v50 }
  0xf5   : > { %1558 = vmatpush1.bf16.msra.mxu0 %v1457_v29  ;;  %1608 = vmatprep.subr.bf16.mxu1 %v1460_v21 }
  0xf6   : > { %1609 = vmatpush1.bf16.msra.mxu1 %v1459_v3 }
  0xf7   : > { %v877_v7 = vpop.permute.xlu1 %876  ;;  %v875_v34 = vpop.permute.xlu0 %874 }
  0xf8   : > { %v882_v32 = vsel %vm878_vm15, %v877_v7, %v871_v42  ;;  %v880_v15 = vsel %vm878_vm15, %v873_v50, %v875_v34  ;;  %v879_v13 = vsel %vm878_vm15, %v875_v34, %v877_v7  ;;  %v906_v7 = vmul.f32 %v889_v53, %v881_v43 }
  0xf9   : > { %v909_v56 = vmul.f32 %v901_v1, %v882_v32  ;;  %v907_v27 = vmul.f32 %v893_v0, %v880_v15  ;;  %v908_v29 = vmul.f32 %v897_v46, %v879_v13  ;;  %v1946_v46 = vld [vmem:[%s2876_s1 + $0x40] ss:$8 sm:$0xf] }
  0xfa   : > { %v985_v13 = vrot.slane %v1946_v46, %v2278_v11 }
  0xfb   : > { %v917_v2 = vpop.permute.xlu1 %916  ;;  %v915_v6 = vpop.permute.xlu0 %914 }
  0xfc   : > { %v925_v30 = vsel %vm922_vm14, %v915_v6, %v917_v2 }
  0xfd   : > { %v950_v22 = vmul.f32 %v933_v31, %v925_v30  ;;  %v989_v31 = vrot.slane %v1946_v46, %v2280_v12 }
  0xff   : > { %v921_v17 = vpop.permute.xlu1 %920  ;;  %v919_v44 = vpop.permute.xlu0 %918  ;;  %v1461_v0 = vpack.c.bf16 %v950_v22, %v906_v7 }
 0x100   : > { %v926_v39 = vsel %vm922_vm14, %v921_v17, %v915_v6  ;;  %v923_v49 = vsel %vm922_vm14, %v919_v44, %v921_v17  ;;  %v924_v57 = vsel %vm922_vm14, %v917_v2, %v919_v44  ;;  %v1947_v2 = vld [vmem:[%s2876_s1 + $0x41] ss:$8 sm:$0xf]  ;;  %v977_v17 = vrot.slane %v1946_v46, %v2276_v10 }
 0x101   : > { %v953_v21 = vmul.f32 %v945_v5, %v926_v39  ;;  %v951_v3 = vmul.f32 %v937_v4, %v924_v57  ;;  %v952_v16 = vmul.f32 %v941_v52, %v923_v49  ;;  %v981_v4 = vrot.slane %v1946_v46, %v2287_v14 }
 0x102   : > { %v1021_v52 = vrot.slane %v1947_v2, %v2276_v10  ;;  %v1033_v53 = vrot.slane %v1947_v2, %v2280_v12 }
 0x103   : > { %v961_v50 = vpop.permute.xlu1 %960  ;;  %v1462_v42 = vpack.c.bf16 %v951_v3, %v907_v27  ;;  %v1464_v34 = vpack.c.bf16 %v953_v21, %v909_v56  ;;  %v1463_v60 = vpack.c.bf16 %v952_v16, %v908_v29  ;;  %v959_v1 = vpop.permute.xlu0 %958  ;;  %v1025_v56 = vrot.slane %v1947_v2, %v2287_v14 }
 0x104   : > { %v1029_v27 = vrot.slane %v1947_v2, %v2278_v11  ;;  %v969_v49 = vsel %vm966_vm1, %v959_v1, %v961_v50 }
 0x105   : > { %1559 = vmatprep.subr.bf16.mxu0 %v1462_v42  ;;  %1610 = vmatprep.subr.bf16.mxu1 %v1464_v34 }
 0x106   : > { %1560 = vmatpush1.bf16.msra.mxu0 %v1461_v0  ;;  %1611 = vmatpush1.bf16.msra.mxu1 %v1463_v60 }
 0x107   : > { %v965_v6 = vpop.permute.xlu1 %964  ;;  %v963_v32 = vpop.permute.xlu0 %962 }
 0x108   : > { %v970_v5 = vsel %vm966_vm1, %v965_v6, %v959_v1  ;;  %v967_v44 = vsel %vm966_vm1, %v963_v32, %v965_v6  ;;  %v968_v22 = vsel %vm966_vm1, %v961_v50, %v963_v32  ;;  %v994_v32 = vmul.f32 %v977_v17, %v969_v49 }
 0x109   : > { %v997_v57 = vmul.f32 %v989_v31, %v970_v5  ;;  %v995_v34 = vmul.f32 %v981_v4, %v968_v22  ;;  %v996_v60 = vmul.f32 %v985_v13, %v967_v44  ;;  %v2902_v31 = vpack.c.bf16 %v2349_v59, %v2337_v48  ;;  %v2922_v4 = vld [vmem:[#allocation10_spill] sm:$0xff]  ;;  %v2925_v13 = vld [vmem:[#allocation7_spill] sm:$0xff] }
 0x10a   : > { %v2905_v5 = vpack.c.bf16 %v2329_v41, %v2327_v40  ;;  %v2906_v48 = vpack.c.bf16 %v2419_v20, %v2409_v58  ;;  %v2908_v40 = vpack.c.bf16 %v2427_v26, %v2423_v24  ;;  %v2909_v41 = vpack.c.bf16 %v2404_v51, %v2400_v47  ;;  %v2913_v24 = vld [vmem:[#allocation5_spill] sm:$0xff]  ;;  %v2915_v51 = vld [vmem:[#allocation4_spill] sm:$0xff] }
 0x10b   : > { %v1005_v15 = vpop.permute.xlu1 %1004  ;;  %v2910_v58 = vpack.c.bf16 %v2514_v63, %v2496_v38  ;;  %v2914_v47 = vpack.c.bf16 %v2912_v23, %v2913_v24  ;;  %v2917_v26 = vpack.c.bf16 %v2915_v51, %v2916_v25  ;;  %v2918_v38 = vpack.c.bf16 %v2596_v9, %v2586_v35  ;;  %v2919_v63 = vld [vmem:[#allocation9_spill] sm:$0xff] }
 0x10c   : > { %v1003_v30 = vpop.permute.xlu0 %1002  ;;  %v1491_v35 = vld [vmem:[%s2877_s2 + $0x10] sm:$0xff]  ;;  %v2927_v44 = vmov 0  }
 0x10d   : > { %v1013_v43 = vsel %vm1010_vm0, %v1003_v30, %v1005_v15  ;;  %v1959_v17 = vcombine.low %v1491_v35, %v1491_v35 }
 0x10e   : > { %v1038_v3 = vmul.f32 %v1021_v52, %v1013_v43 }
 0x10f   : > { %v1009_v39 = vpop.permute.xlu1 %1008 }
 0x110   : > { %v1014_v29 = vsel %vm1010_vm0, %v1009_v39, %v1003_v30  ;;  %v1007_v21 = vpop.permute.xlu0 %1006  ;;  %v1465_v46 = vpack.c.bf16 %v1038_v3, %v994_v32  ;;  %v1956_v30 = vld [vmem:[%s2876_s1 + $0x62] ss:$8 sm:$0xf] }
 0x111   : > { %v1041_v16 = vmul.f32 %v1033_v53, %v1014_v29  ;;  %v1011_v7 = vsel %vm1010_vm0, %v1007_v21, %v1009_v39  ;;  %v1012_v42 = vsel %vm1010_vm0, %v1005_v15, %v1007_v21  ;;  %v2904_v15 = vpack.c.bf16 %v2354_v62, %v2332_v45  ;;  %v2924_v53 = vld [vmem:[#allocation8_spill] sm:$0xff] }
 0x112   : > { %v1039_v0 = vmul.f32 %v1025_v56, %v1012_v42  ;;  %v1040_v6 = vmul.f32 %v1029_v27, %v1011_v7  ;;  %v1312_v59 = vrot.slane %v1956_v30, %v2280_v12  ;;  %v1308_v45 = vrot.slane %v1956_v30, %v2278_v11 }
 0x113   : > { %v1468_v2 = vpack.c.bf16 %v1041_v16, %v997_v57  ;;  %v1300_v61 = vrot.slane %v1956_v30, %v2276_v10  ;;  %v1304_v62 = vrot.slane %v1956_v30, %v2287_v14  ;;  %v2911_v12 = vpack.c.bf16 %v2526_v18, %v2522_v33 }
 0x114   : > { %v1466_v50 = vpack.c.bf16 %v1039_v0, %v995_v34  ;;  %v1467_v1 = vpack.c.bf16 %v1040_v6, %v996_v60  ;;  %v1320_v10 = vmul.f32 %v1312_v59, %v2631_v55  ;;  %v1319_v11 = vmul.f32 %v1308_v45, %v2645_v37  ;;  %v2921_v37 = vld [vmem:[#allocation11_spill] sm:$0xff] }
 0x115   : > { %1612 = vmatprep.subr.bf16.mxu1 %v1468_v2  ;;  %v1317_v14 = vmul.f32 %v1300_v61, %v2624_v36  ;;  %v1318_v20 = vmul.f32 %v1304_v62, %v2640_v28  ;;  %v2920_v33 = vpack.c.bf16 %v2602_v19, %v2919_v63  ;;  %v2923_v52 = vpack.c.bf16 %v2921_v37, %v2922_v4  ;;  %v2040_v19 = vld [vmem:[%s2877_s2] ss:$8 sps:$4 sm:$0xff]  }
 0x116   : > { %1561 = vmatprep.subr.bf16.mxu0 %v1466_v50  ;;  %1613 = vmatpush1.bf16.msra.mxu1 %v1467_v1  ;;  %v1488_v18 = vpack.c.bf16 %v1320_v10, %v1320_v10  ;;  %v1487_v36 = vpack.c.bf16 %v1319_v11, %v1319_v11  ;;  %v2926_v43 = vpack.c.bf16 %v2924_v53, %v2925_v13  ;;  %v2046_v53 = vld [vmem:[%s2879_s4 + $0x8] ss:$0 sps:$4 sm:$0xff]  }
 0x117   : > { %1562 = vmatpush1.bf16.msra.mxu0 %v1465_v46  ;;  %1614 = vmatprep.subr.bf16.mxu1 %v2902_v31  ;;  %v1485_v55 = vpack.c.bf16 %v1317_v14, %v1317_v14  ;;  %v1486_v28 = vpack.c.bf16 %v1318_v20, %v1318_v20  ;;  %v1960_v27 = vcombine.high %v1491_v35, %v1491_v35 }
 0x118   : > { %1563 = vmatprep.subr.bf16.mxu0 %v2903_v8  ;;  %v1540_v9 = vsel %vm1532_vm2, %v1487_v36, 0 }
 0x119   : > { %v1534_v56 = vsel %vm1532_vm2, %v1485_v55, 0 }
 0x11a   : > { %1615 = vmatpush1.bf16.msra.mxu1 %v2904_v15 }
 0x11b   : > { %1564 = vmatpush1.bf16.msra.mxu0 %v2905_v5  ;;  %1616 = vmatprep.subr.bf16.mxu1 %v2906_v48 }
 0x11c   : > { %1565 = vmatprep.subr.bf16.mxu0 %v2907_v54 }
 0x11e   : > { %1617 = vmatpush1.bf16.msra.mxu1 %v2908_v40 }
 0x11f   : > { %1566 = vmatpush1.bf16.msra.mxu0 %v2909_v41  ;;  %1618 = vmatprep.subr.bf16.mxu1 %v2910_v58 }
 0x120   : > { %1567 = vmatprep.subr.bf16.mxu0 %v2911_v12 }
 0x122   : > { %1619 = vmatpush1.bf16.msra.mxu1 %v2914_v47 }
 0x123   : > { %1568 = vmatpush1.bf16.msra.mxu0 %v2917_v26  ;;  %1620 = vmatprep.subr.bf16.mxu1 %v2918_v38 }
 0x124   : > { %1569 = vmatprep.subr.bf16.mxu0 %v2920_v33 }
 0x126   : > { %1621 = vmatpush1.bf16.msra.mxu1 %v2923_v52  ;;  %v2045_v52 = vld [vmem:[%s2879_s4] sm:$0xff]  }
 0x127   : > { %1570 = vmatpush1.bf16.msra.mxu0 %v2926_v43  ;;  %1964 = vmatprep.subr.msk.bf16.mxu1 %vm1532_vm2, %v1488_v18 }
 0x128   : > { %1961 = vmatprep.subr.msk.bf16.mxu0 %vm1532_vm2, %v1486_v28 }
 0x12a   : > { %1623 = vmatpush1.bf16.msra.mxu1 %v1540_v9 }
 0x12b   : > { %1572 = vmatpush1.bf16.msra.mxu0 %v1534_v56 }
 0x12d   : > { %1629 = vmatmul.mubr.bf16.vlgmr.msra.gmra.mrb[0].mxu1 %v2040_v19 }
 0x12e   : > { %1578 = vmatmul.mubr.bf16.vlgmr.msra.gmra.mrb[0].mxu0 %v2040_v19  ;;  %1966 = vmatprep.mubr.msk.bf16.mxu1 %vm1525_vm4, %v1960_v27 }
 0x12f   : > { %1963 = vmatprep.mubr.msk.bf16.mxu0 %vm1525_vm4, %v1960_v27 }
 0x135   : > { %1639 = vmatmul.mubr.bf16.gmra.mrb[4].mxu1 %v1959_v17 }
 0x136   : > { %1588 = vmatmul.mubr.bf16.gmra.mrb[4].mxu0 %v1959_v17  ;;  %1798 = vmatprep.mubr.bf16.mxu1 %v2927_v44  ;;  %v1503_v22 = vpop.permute.xlu1 %1502  ;;  %v1498_v39 = vpop.permute.xlu0 %1497 }
 0x137   : > { %1747 = vmatprep.mubr.bf16.mxu0 %v2927_v44 }
 0x13a   : > { %v1508_v46 = vpop.permute.xlu1 %1507  ;;  %v1676_v13 = vpop.permute.xlu0 %1675 }
 0x13e   : > { %v1681_v43 = vpop.permute.xlu1 %1680 }
 0x200   : > { %v1630_v49 = vpop.f32.mrb[0].mxu1 }
 0x201   : > { %v1579_v57 = vpop.f32.mrb[0].mxu0  ;;  %v1631_v29 = vadd.f32 %v1630_v49, %v1498_v39  ;;  %v1632_v21 = vpop.f32.mrb[1].mxu1 }
 0x202   : > { %v1580_v3 = vadd.f32 %v1579_v57, %v1498_v39  ;;  %v1581_v16 = vpop.f32.mrb[1].mxu0  ;;  %v1633_v7 = vadd.f32 %v1632_v21, %v1498_v39  ;;  %v1634_v42 = vpop.f32.mrb[2].mxu1 }
 0x203   : > { %2047 = vtanh.f32 %v1631_v29  ;;  %v1582_v34 = vadd.f32 %v1581_v16, %v1498_v39  ;;  %v1583_v60 = vpop.f32.mrb[2].mxu0  ;;  %v1636_v0 = vpop.f32.mrb[3].mxu1  ;;  %v1635_v32 = vadd.f32 %v1634_v42, %v1503_v22 }
 0x204   : > { %2049 = vtanh.f32 %v1580_v3  ;;  %v1584_v6 = vadd.f32 %v1583_v60, %v1503_v22  ;;  %v1585_v2 = vpop.f32.mrb[3].mxu0  ;;  %v1637_v1 = vadd.f32 %v1636_v0, %v1503_v22  ;;  %v1686_v42 = vpop.permute.xlu0 %1685 }
 0x205   : > { %2051 = vtanh.f32 %v1582_v34  ;;  %v1586_v50 = vadd.f32 %v1585_v2, %v1503_v22 }
 0x206   : > { %2053 = vtanh.f32 %v1633_v7 }
 0x207   : > { %2055 = vtanh.f32 %v1584_v6 }
 0x208   : > { %2057 = vtanh.f32 %v1635_v32  ;;  %v1640_v31 = vpop.f32.mrb[4].mxu1 }
 0x209   : > { %2059 = vtanh.f32 %v1586_v50  ;;  %v1589_v8 = vpop.f32.mrb[4].mxu0  ;;  %v1641_v15 = vadd.f32 %v1640_v31, %v1508_v46  ;;  %v1642_v30 = vpop.f32.mrb[5].mxu1 }
 0x20a   : > { %2061 = vtanh.f32 %v1637_v1  ;;  %v1590_v5 = vadd.f32 %v1589_v8, %v1508_v46  ;;  %v1591_v48 = vpop.f32.mrb[5].mxu0  ;;  %v1643_v54 = vadd.f32 %v1642_v30, %v1508_v46  ;;  %v1644_v59 = vpop.f32.mrb[6].mxu1 }
 0x20b   : > { %2063 = vtanh.f32 %v1641_v15  ;;  %v1592_v45 = vadd.f32 %v1591_v48, %v1508_v46  ;;  %v1593_v61 = vpop.f32.mrb[6].mxu0  ;;  %v1645_v62 = vpop.f32.mrb[7].mxu1 }
 0x20c   : > { %2065 = vtanh.f32 %v1590_v5  ;;  %v1594_v40 = vpop.f32.mrb[7].mxu0 }
 0x20d   : > { %v2048_v41 = vpop.eup %2047  ;;  %2067 = vtanh.f32 %v1592_v45 }
 0x20e   : > { %v2050_v58 = vpop.eup %2049  ;;  %2069 = vtanh.f32 %v1643_v54 }
 0x20f   : > { %v2052_v12 = vpop.eup %2051 }
 0x210   : > { %v2054_v10 = vpop.eup %2053 }
 0x211   : > { %v2056_v11 = vpop.eup %2055 }
 0x212   : > { %v2058_v14 = vpop.eup %2057  ;;  %v1662_v20 = vpack.c.bf16 %v2056_v11, %v2050_v58 }
 0x213   : > { %v2060_v23 = vpop.eup %2059  ;;  %v1664_v24 = vpack.c.bf16 %v2058_v14, %v2048_v41 }
 0x214   : > { %v2062_v47 = vpop.eup %2061  ;;  %v1663_v51 = vpack.c.bf16 %v2060_v23, %v2052_v12 }
 0x215   : > { %v2064_v25 = vpop.eup %2063  ;;  %v1665_v26 = vpack.c.bf16 %v2062_v47, %v2054_v10 }
 0x216   : > { %v2066_v38 = vpop.eup %2065  ;;  %v1668_v63 = vpack.c.bf16 %v2064_v25, %v2064_v25  ;;  %1715 = vmatprep.subr.bf16.mxu0 %v1663_v51 }
 0x217   : > { %v2068_v33 = vpop.eup %2067  ;;  %v1666_v18 = vpack.c.bf16 %v2066_v38, %v2066_v38  ;;  %1766 = vmatprep.subr.bf16.mxu1 %v1665_v26  ;;  %1716 = vmatpush1.bf16.msra.mxu0 %v1662_v20 }
 0x218   : > { %v2070_v36 = vpop.eup %2069  ;;  %v1667_v55 = vpack.c.bf16 %v2068_v33, %v2068_v33  ;;  %1767 = vmatpush1.bf16.msra.mxu1 %v1664_v24  ;;  %v1710_v4 = vsel %vm1532_vm2, %v1668_v63, 0 }
 0x219   : > { %v1669_v28 = vpack.c.bf16 %v2070_v36, %v2070_v36  ;;  %v1704_v37 = vsel %vm1532_vm2, %v1666_v18, 0 }
 0x21a   : > { %1969 = vmatprep.subr.msk.bf16.mxu0 %vm1532_vm2, %v1667_v55 }
 0x21b   : > { %1972 = vmatprep.subr.msk.bf16.mxu1 %vm1532_vm2, %v1669_v28  ;;  %1718 = vmatpush1.bf16.msra.mxu0 %v1704_v37 }
 0x21c   : > { %1769 = vmatpush1.bf16.msra.mxu1 %v1710_v4 }
 0x21e   : > { %1970 = vmatmul.mubr.msk.bf16.vlgmr.msra.gmra.mrb[8].mxu0 %vm1696_vm3, %v2045_v52 }
 0x21f   : > { %1973 = vmatmul.mubr.msk.bf16.vlgmr.msra.gmra.mrb[8].mxu1 %vm1696_vm3, %v2045_v52  ;;  %1757 = vmatprep.mubr.bf16.mxu0 %v2927_v44 }
 0x220   : > { %1808 = vmatprep.mubr.bf16.mxu1 %v2927_v44 }
 0x226   : > { %1971 = vmatmul.mubr.msk.bf16.gmra.mrb[12].mxu0 %vm1696_vm3, %v2046_v53 }
 0x227   : > { %1974 = vmatmul.mubr.msk.bf16.gmra.mrb[12].mxu1 %vm1696_vm3, %v2046_v53 }
 0x2f1   : > { %v1749_v35 = vpop.f32.mrb[8].mxu0 }
 0x2f2   : > { %v1750_v9 = vadd.f32 %v1749_v35, %v1676_v13  ;;  %v1800_v19 = vpop.f32.mrb[8].mxu1  ;;  %v1751_v56 = vpop.f32.mrb[9].mxu0 }
 0x2f3   : > { %v1801_v27 = vadd.f32 %v1800_v19, %v1676_v13  ;;  %v1752_v17 = vadd.f32 %v1751_v56, %v1676_v13  ;;  %v1802_v44 = vpop.f32.mrb[9].mxu1  ;;  %v1753_v22 = vpop.f32.mrb[10].mxu0 }
 0x2f4   : > { %1817 = vst [vmem:[%s2846_s30] sm:$0xff] %v1750_v9  ;;  %v1803_v39 = vadd.f32 %v1802_v44, %v1676_v13  ;;  %v1754_v49 = vadd.f32 %v1753_v22, %v1681_v43  ;;  %v1804_v57 = vpop.f32.mrb[10].mxu1  ;;  %v1755_v29 = vpop.f32.mrb[11].mxu0 }
 0x2f5   : > { %1819 = vst [vmem:[%s2846_s30 + $0x10] sm:$0xff] %v1801_v27  ;;  %1818 = vst [vmem:[%s2846_s30 + $0x8] sm:$0xff] %v1752_v17  ;;  %v1805_v21 = vadd.f32 %v1804_v57, %v1681_v43  ;;  %v1756_v3 = vadd.f32 %v1755_v29, %v1681_v43  ;;  %v1806_v16 = vpop.f32.mrb[11].mxu1 }
 0x2f6   : > { %1820 = vst [vmem:[%s2846_s30 + $0x18] sm:$0xff] %v1803_v39  ;;  %1821 = vst [vmem:[%s2846_s30 + $0x20] sm:$0xff] %v1754_v49  ;;  %v1807_v7 = vadd.f32 %v1806_v16, %v1681_v43 }
 0x2f7   : > { %1823 = vst [vmem:[%s2846_s30 + $0x30] sm:$0xff] %v1805_v21  ;;  %1822 = vst [vmem:[%s2846_s30 + $0x28] sm:$0xff] %v1756_v3 }
 0x2f8   : > { %1824 = vst [vmem:[%s2846_s30 + $0x38] sm:$0xff] %v1807_v7 }
 0x2f9   : > { %v1759_v34 = vpop.f32.mrb[12].mxu0 }
 0x2fa   : > { %v1760_v60 = vadd.f32 %v1759_v34, %v1686_v42  ;;  %v1810_v0 = vpop.f32.mrb[12].mxu1  ;;  %v1761_v6 = vpop.f32.mrb[13].mxu0 }
 0x2fb   : > { %v1811_v32 = vadd.f32 %v1810_v0, %v1686_v42  ;;  %v1762_v2 = vadd.f32 %v1761_v6, %v1686_v42  ;;  %v1812_v50 = vpop.f32.mrb[13].mxu1  ;;  %v1763_v1 = vpop.f32.mrb[14].mxu0 }
 0x2fc   : > { %1825 = vst [vmem:[%s2846_s30 + $0x40] sm:$0xff] %v1760_v60  ;;  %v1813_v46 = vadd.f32 %v1812_v50, %v1686_v42  ;;  %v1814_v31 = vpop.f32.mrb[14].mxu1  ;;  %v1764_v8 = vpop.f32.mrb[15].mxu0 }
 0x2fd   : > { %1827 = vst [vmem:[%s2846_s30 + $0x50] sm:$0xff] %v1811_v32  ;;  %1826 = vst [vmem:[%s2846_s30 + $0x48] sm:$0xff] %v1762_v2  ;;  %v1815_v15 = vpop.f32.mrb[15].mxu1 }
 0x2fe   : > { %1828 = vst [vmem:[%s2846_s30 + $0x58] sm:$0xff] %v1813_v46 }
 0x2ff PF: > { %s16_s25 = sadd.s32 1, %s2109_s25   ;;  %s2928_s21 = smov %s2101_s23 }
 0x300   : > { %p13_p7 = scmp.ge.s32.totalorder %s16_s25, 8   ;;  %s2929_s22 = smov %s2105_s24 }
 0x301   : > { %s2930_s23 = smov %s2933_s26  ;;  %s2931_s24 = smov %s2937_s27 }
 0x302   :  { %15 = sbr.rel (!%p13_p7) target bundleno = 3 (0x3), region = 99 }

// kernel: convgru3d_forward.9
= control target key start
LH: loop header
LB: loop body
LE: loop exit
PB: predicated region body
PF: predicated region fallthrough
CT: control target
= control target key end

     0   :  { %s2596_s30 = smov 0   ;;  %s2598_s10 = smov 0   ;;  %s3947_s0 = inlined_call_operand.vmem [shape: f32[2,3,8,512], index: 0, kind: input, shape index: {}]   ;;  %s3948_s1 = inlined_call_operand.vmem [shape: f32[2,3,1,512], index: 1, kind: input, shape index: {}]   ;;  %s3949_s2 = inlined_call_operand.vmem [shape: f32[27,512], index: 2, kind: input, shape index: {}]   ;;  %s3950_s3 = inlined_call_operand.vmem [shape: bf16[8,8], index: 3, kind: input, shape index: {}]   ;;  %s3951_s4 = inlined_call_operand.vmem [shape: f32[8,1], index: 4, kind: input, shape index: {}]   ;;  %s3952_s5 = inlined_call_operand.vmem [shape: bf16[8,8], index: 5, kind: input, shape index: {}]   ;;  %s3953_s6 = inlined_call_operand.vmem [shape: f32[8,1], index: 6, kind: input, shape index: {}]   ;;  %s3954_s7 = inlined_call_operand.vmem [shape: bf16[3,216], index: 7, kind: input, shape index: {}]   ;;  %s3955_s8 = inlined_call_operand.vmem [shape: f32[3,1], index: 8, kind: input, shape index: {}]   ;;  %s3956_s9 = inlined_call_operand.vmem [shape: f32[2,3,1,512], index: 9, kind: output, shape index: {}]  }
   0x1   :  { %s2600_s11 = smov 0   ;;  %s2602_s12 = smov 0  }
   0x2   :  { %s2604_s13 = smov 0  }
   0x3 LB: > { %s28_s14 = sadd.s32 1, %s2517_s11  ;;  %s31_s15 = sadd.s32 1, %s2521_s12  ;;  %s2525_s13 = sphi %s2604_s13, %s19_s13   ;;  %s2521_s12 = sphi %s2602_s12, %s4142_s12   ;;  %s2517_s11 = sphi %s2600_s11, %s4141_s11   ;;  %s2513_s10 = sphi %s2598_s10, %s4140_s10   ;;  %s2509_s30 = sphi %s2596_s30, %s4139_s30  }
   0x4   : > { %p29_p0 = scmp.ge.s32.totalorder %s28_s14, 3  ;;  %p2359_p1 = scmp.ge.s32.totalorder %s2525_s13, 1 }
   0x5   : > { %p322_p2 = scmp.lt.s32.totalorder %s2525_s13, 7 }
   0x6   : > { %s4144_s14 = smov (%p29_p0, %s28_s14), 0  ;;  %s4146_s15 = smov (!%p29_p0, %s31_s15), %s2521_s12 }
   0x7   : > { %p323_p3 = pnand %p2359_p1, %p322_p2  ;;  %p33_p4 = scmp.ge.s32.totalorder %s4146_s15, 2 }
   0x9   : > { %s4148_s15 = smov (%p33_p4, %s4146_s15), 0  ;;  %326 = sbr.rel (%p323_p3) target bundleno = 1334 (0x536), region = 56 }
  0x10   : > { %p373_p5 = scmp.lt.s32.totalorder %s2513_s10, 1  ;;  %p375_p6 = scmp.lt.s32.totalorder %s2509_s30, 2  ;;  %v2527_v0 = vmov 0   ;;  %v408_v1 = vld [vmem:[%s3951_s4] sm:$0xff]  ;;  %vm418_vm0 = vcmask 1043456   ;;  %vm414_vm1 = vcmask 64512  }
  0x11   : > { %463 = vmatprep.mubr.bf16.mxu0 %v2527_v0  ;;  %504 = vmatprep.mubr.bf16.mxu1 %v2527_v0  ;;  %v522_v2 = vld [vmem:[%s3953_s6] sm:$0xff]  ;;  %s2529_s16 = smov 73   ;;  %s2530_s17 = smov 71   ;;  %vm1842_vm2 = vcmask 719872  }
  0x12   : > { %s4150_s10 = smov (!%p373_p5, %s2513_s10), 1  ;;  %2470 = vset.pattern.permute.xlu0 %v2527_v0  ;;  %s4152_s30 = smov (!%p375_p6, %s2509_s30), 2  ;;  %v403_v13 = vld [vmem:[%s3950_s3] sm:$0xf] }
  0x13   : > { %411 = vperm.xlu0 %2470, %v408_v1   ;;  %s2410_s18 = smul.u32 12, %s4150_s10  ;;  %s2360_s21 = sshll.u32 %s4152_s30, 2  ;;  %v517_v37 = vld [vmem:[%s3952_s5] sm:$0xf] }
  0x14   : > { %s2528_s10 = smov 72   ;;  %s2532_s19 = smov 63   ;;  %v1826_v63 = vld [vmem:[%s3955_s8] sm:$0x7] }
  0x15   : > { %s2632_s22 = sadd.s32 %s2410_s18, %s2360_s21  ;;  %s2531_s18 = smov 65  }
  0x16   : > { %s2361_s23 = sshll.u32 %s2632_s22, 3  ;;  %s3957_s20 = smov 56  }
  0x17   : > { %525 = vperm.xlu0 %2470, %v522_v2   ;;  %s381_s26 = scalar_lea.vmem %s3947_s0, %s2361_s23  ;;  %s2534_s21 = smov 64  }
  0x18   : > { %v400_v3 = vld [vmem:[%s381_s26 + $0x8] sm:$0xff]  ;;  %v402_v4 = vld [vmem:[%s381_s26 + $0x18] sm:$0xff]  ;;  %v399_v5 = vld [vmem:[%s381_s26] sm:$0xff]  ;;  %s2535_s23 = smov 9   ;;  %s2536_s24 = smov 7  }
  0x19   : > { %v405_v6 = vpack.c.bf16 %v400_v3, %v400_v3  ;;  %v407_v7 = vpack.c.bf16 %v402_v4, %v402_v4  ;;  %v404_v8 = vpack.c.bf16 %v399_v5, %v399_v5  ;;  %v401_v9 = vld [vmem:[%s381_s26 + $0x10] sm:$0xff]  ;;  %s2537_s25 = smov 1   ;;  %s2538_s26 = smov 57  }
  0x1a   : > { %v406_v10 = vpack.c.bf16 %v401_v9, %v401_v9  ;;  %s2539_s27 = smov 127   ;;  %s3959_s28 = smov 121  }
  0x1b   : > { %2364 = vmatprep.subr.msk.bf16.mxu0 %vm418_vm0, %v405_v6  ;;  %2366 = vmatprep.subr.msk.bf16.mxu1 %vm418_vm0, %v407_v7  ;;  %v420_v11 = vsel %vm418_vm0, %v404_v8, 0  ;;  %s2541_s29 = smov 55   ;;  %s2542_s30 = smov 120  }
  0x1c   : > { %432 = vmatpush1.bf16.msra.mxu0 %v420_v11  ;;  %v426_v12 = vsel %vm418_vm0, %v406_v10, 0  ;;  %v2842_v10 = vld.sshfl [vmem:[%s3954_s7] sm:$0x33 pattern:$0x76325410] }
  0x1d   : > { %473 = vmatpush1.bf16.msra.mxu1 %v426_v12  ;;  %4016 = vst [vmem:[#allocation10_spill] sm:$0xff] %v2842_v10  ;;  %v1840_v11 = vcombine.high %v2842_v10, %v2842_v10 }
  0x1f   : > { %2365 = vmatmul.mubr.msk.bf16.vlgmr.msra.gmra.mrb[0].mxu0 %vm414_vm1, %v403_v13 }
  0x20   : > { %2367 = vmatmul.mubr.msk.bf16.vlgmr.msra.gmra.mrb[0].mxu1 %vm414_vm1, %v403_v13  ;;  %575 = vmatprep.mubr.bf16.mxu0 %v2527_v0 }
  0x21   : > { %616 = vmatprep.mubr.bf16.mxu1 %v2527_v0 }
  0x92   : > { %v412_v14 = vpop.permute.xlu0 %411 }
  0x96   : > { %v526_v38 = vpop.permute.xlu0 %525 }
  0xf2   : > { %v465_v15 = vpop.f32.mrb[0].mxu0 }
  0xf3   : > { %v466_v16 = vadd.f32 %v465_v15, %v412_v14  ;;  %v506_v17 = vpop.f32.mrb[0].mxu1  ;;  %v467_v18 = vpop.f32.mrb[1].mxu0 }
  0xf4   : > { %v507_v19 = vadd.f32 %v506_v17, %v412_v14  ;;  %v468_v20 = vadd.f32 %v467_v18, %v412_v14  ;;  %v508_v21 = vpop.f32.mrb[1].mxu1  ;;  %v469_v22 = vpop.f32.mrb[2].mxu0 }
  0xf5   : > { %2471 = vtanh.f32 %v466_v16  ;;  %v509_v23 = vadd.f32 %v508_v21, %v412_v14  ;;  %v470_v24 = vpop.f32.mrb[3].mxu0  ;;  %v510_v25 = vpop.f32.mrb[2].mxu1  ;;  %v3961_v16 = vlaneseq }
  0xf6   : > { %2473 = vtanh.f32 %v507_v19  ;;  %v511_v26 = vpop.f32.mrb[3].mxu1 }
  0xf7   : > { %2475 = vtanh.f32 %v468_v20  ;;  %v2859_v19 = vshrl.u32 %v3961_v16, 7  ;;  %v2866_v22 = vand.u32 127, %v3961_v16  ;;  %v2882_v26 = vld [vmem:[%s3949_s2 + $0x42] ss:$8 sm:$0xf] }
  0xf8   : > { %2477 = vtanh.f32 %v509_v23  ;;  %v2871_v23 = vld [vmem:[%s3949_s2] ss:$8 sm:$0xf] }
  0xf9   : > { %4020 = vst [vmem:[#allocation14_spill] sm:$0xff] %v2859_v19  ;;  %v2874_v24 = vsub.s32 1, %v2859_v19  ;;  %v2877_v25 = vsub.s32 0, %v2859_v19  ;;  %vm639_vm3 = vcmp.lt.s32.totalorder %v2866_v22, 73  ;;  %vm682_vm4 = vcmp.lt.s32.totalorder %v2866_v22, 72 }
  0xfa   : > { %vm726_vm5 = vcmp.lt.s32.totalorder %v2866_v22, 71  ;;  %vm770_vm6 = vcmp.lt.s32.totalorder %v2866_v22, 65  ;;  %vm814_vm7 = vcmp.lt.s32.totalorder %v2866_v22, 64  ;;  %vm858_vm8 = vcmp.lt.s32.totalorder %v2866_v22, 63 }
  0xfb   : > { %vm902_vm9 = vcmp.lt.s32.totalorder %v2866_v22, 57  ;;  %vm946_vm10 = vcmp.lt.s32.totalorder %v2866_v22, 56  ;;  %vm1034_vm11 = vcmp.lt.s32.totalorder %v2866_v22, 9  ;;  %vm990_vm12 = vcmp.lt.s32.totalorder %v2866_v22, 55 }
  0xfc   : > { %vm1078_vm13 = vcmp.lt.s32.totalorder %v2866_v22, 8  ;;  %vm1166_vm14 = vcmp.lt.s32.totalorder %v2866_v22, 1  ;;  %vm1214_vm15 = vcmp.lt.s32.totalorder %v2866_v22, 127 }
  0xff   : > { %v2472_v27 = vpop.eup %2471 }
 0x100   : > { %v2474_v28 = vpop.eup %2473  ;;  %v518_v29 = vpack.c.bf16 %v2472_v27, %v2472_v27  ;;  %v2887_v27 = vld [vmem:[%s3949_s2 + $0x1] ss:$8 sm:$0xf] }
 0x101   : > { %v2476_v30 = vpop.eup %2475  ;;  %v520_v31 = vpack.c.bf16 %v2474_v28, %v2474_v28  ;;  %v2892_v28 = vld [vmem:[%s3949_s2 + $0x43] ss:$8 sm:$0xf] }
 0x102   : > { %v2478_v32 = vpop.eup %2477  ;;  %v519_v33 = vpack.c.bf16 %v2476_v30, %v2476_v30  ;;  %v532_v34 = vsel %vm418_vm0, %v518_v29, 0  ;;  %4022 = vst [vmem:[#allocation16_spill] sm:$0xff] %v2892_v28 }
 0x103   : > { %v521_v35 = vpack.c.bf16 %v2478_v32, %v2478_v32  ;;  %v538_v36 = vsel %vm418_vm0, %v520_v31, 0  ;;  %v653_v31 = vrot.slane %v2871_v23, %v2874_v24  ;;  %v1388_v32 = vrot.slane %v2882_v26, %v2877_v25 }
 0x104   : > { %2368 = vmatprep.subr.msk.bf16.mxu0 %vm418_vm0, %v519_v33  ;;  %v697_v33 = vrot.slane %v2887_v27, %v2874_v24 }
 0x105   : > { %2370 = vmatprep.subr.msk.bf16.mxu1 %vm418_vm0, %v521_v35  ;;  %544 = vmatpush1.bf16.msra.mxu0 %v532_v34  ;;  %v1419_v34 = vrot.slane %v2892_v28, %v2877_v25 }
 0x106   : > { %585 = vmatpush1.bf16.msra.mxu1 %v538_v36 }
 0x108   : > { %2369 = vmatmul.mubr.msk.bf16.vlgmr.msra.gmra.mrb[4].mxu0 %vm414_vm1, %v517_v37 }
 0x109   : > { %2371 = vmatmul.mubr.msk.bf16.vlgmr.msra.gmra.mrb[4].mxu1 %vm414_vm1, %v517_v37  ;;  %2399 = vmatprep.mubr.msk.bf16.mxu0 %vm1842_vm2, %v1840_v11  ;;  %vm1122_vm1 = vcmp.lt.s32.totalorder %v2866_v22, 7 }
 0x10a   : > { %2401 = vmatprep.mubr.msk.bf16.mxu1 %vm1842_vm2, %v1840_v11  ;;  %vm1258_vm2 = vcmp.lt.s32.totalorder %v2866_v22, 121 }
 0x1db   : > { %v577_v39 = vpop.f32.mrb[4].mxu0 }
 0x1dc   : > { %v578_v40 = vadd.f32 %v577_v39, %v526_v38  ;;  %v618_v41 = vpop.f32.mrb[4].mxu1  ;;  %v579_v42 = vpop.f32.mrb[5].mxu0 }
 0x1dd   : > { %v620_v43 = vpop.f32.mrb[5].mxu1  ;;  %v581_v44 = vpop.f32.mrb[6].mxu0  ;;  %v619_v45 = vadd.f32 %v618_v41, %v526_v38  ;;  %v580_v51 = vadd.f32 %v579_v42, %v526_v38 }
 0x1de   : > { %2479 = vtanh.f32 %v578_v40  ;;  %v582_v46 = vpop.f32.mrb[7].mxu0  ;;  %v622_v47 = vpop.f32.mrb[6].mxu1  ;;  %v621_v52 = vadd.f32 %v620_v43, %v526_v38  ;;  %v2987_v43 = vld [vmem:[%s3949_s2 + $0x4] ss:$8 sm:$0xf] }
 0x1df   : > { %v623_v48 = vpop.f32.mrb[7].mxu1  ;;  %2481 = vtanh.f32 %v619_v45  ;;  %v829_v28 = vrot.slane %v2987_v43, %v2874_v24 }
 0x1e0   : > { %2483 = vtanh.f32 %v580_v51  ;;  %v2930_v51 = vsub.s32 2, %v2859_v19 }
 0x1e1   : > { %2485 = vtanh.f32 %v621_v52  ;;  %v2933_v52 = vsub.s32 3, %v2859_v19 }
 0x1e8   : > { %v2656_v49 = vpop.eup %2479 }
 0x1e9   : > { %4007 = vst [vmem:[#allocation3_spill] sm:$0xff] %v2656_v49  ;;  %674 = vrot.lane.b32.xlu0 %v2656_v49, %s2528_s10  ;;  %629 = vrot.lane.b32.xlu1 %v2656_v49, %s2529_s16  ;;  %v2662_v50 = vpop.eup %2481 }
 0x1ea   : > { %4008 = vst [vmem:[#allocation4_spill] sm:$0xff] %v2662_v50  ;;  %v2712_v53 = vpop.eup %2483 }
 0x1eb   : > { %4009 = vst [vmem:[#allocation5_spill] sm:$0xff] %v2712_v53  ;;  %v2722_v54 = vpop.eup %2485 }
 0x1ec   : > { %4010 = vst [vmem:[#allocation6_spill] sm:$0xff] %v2722_v54 }
 0x1ed   : > { %633 = vrot.lane.b32.xlu0 %v2662_v50, %s2529_s16  ;;  %678 = vrot.lane.b32.xlu1 %v2662_v50, %s2528_s10 }
 0x1f1   : > { %718 = vrot.lane.b32.xlu0 %v2656_v49, %s2530_s17  ;;  %766 = vrot.lane.b32.xlu1 %v2662_v50, %s2531_s18 }
 0x1f5   : > { %762 = vrot.lane.b32.xlu0 %v2656_v49, %s2531_s18  ;;  %854 = vrot.lane.b32.xlu1 %v2662_v50, %s2532_s19 }
 0x1f9   : > { %722 = vrot.lane.b32.xlu0 %v2662_v50, %s2530_s17  ;;  %942 = vrot.lane.b32.xlu1 %v2662_v50, %s3957_s20 }
 0x1fd   : > { %806 = vrot.lane.b32.xlu0 %v2656_v49, %s2534_s21  ;;  %1030 = vrot.lane.b32.xlu1 %v2662_v50, %s2535_s23 }
 0x201   : > { %850 = vrot.lane.b32.xlu0 %v2656_v49, %s2532_s19  ;;  %1118 = vrot.lane.b32.xlu1 %v2662_v50, %s2536_s24 }
 0x205   : > { %810 = vrot.lane.b32.xlu0 %v2662_v50, %s2534_s21  ;;  %1162 = vrot.lane.b32.xlu1 %v2662_v50, %s2537_s25 }
 0x209   : > { %894 = vrot.lane.b32.xlu0 %v2656_v49, %s2538_s26  ;;  %1210 = vrot.lane.b32.xlu1 %v2662_v50, %s2539_s27 }
 0x20d   : > { %938 = vrot.lane.b32.xlu0 %v2656_v49, %s3957_s20  ;;  %1254 = vrot.lane.b32.xlu1 %v2662_v50, %s3959_s28  ;;  %s2543_s20 = smov 119  }
 0x211   : > { %898 = vrot.lane.b32.xlu0 %v2662_v50, %s2538_s26  ;;  %1250 = vrot.lane.b32.xlu1 %v2656_v49, %s3959_s28  ;;  %s2544_s28 = smov 8  }
 0x215   : > { %982 = vrot.lane.b32.xlu0 %v2656_v49, %s2541_s29  ;;  %1298 = vrot.lane.b32.xlu1 %v2662_v50, %s2542_s30 }
 0x219   : > { %1026 = vrot.lane.b32.xlu0 %v2656_v49, %s2535_s23  ;;  %1342 = vrot.lane.b32.xlu1 %v2662_v50, %s2543_s20 }
 0x21d   : > { %986 = vrot.lane.b32.xlu0 %v2662_v50, %s2541_s29  ;;  %631 = vrot.lane.b32.xlu1 %v2712_v53, %s2529_s16 }
 0x221   : > { %1070 = vrot.lane.b32.xlu0 %v2656_v49, %s2544_s28  ;;  %676 = vrot.lane.b32.xlu1 %v2712_v53, %s2528_s10 }
 0x225   : > { %1114 = vrot.lane.b32.xlu0 %v2656_v49, %s2536_s24  ;;  %680 = vrot.lane.b32.xlu1 %v2722_v54, %s2528_s10  ;;  %s4011_s10 = smov 56  }
 0x229   : > { %1074 = vrot.lane.b32.xlu0 %v2662_v50, %s2544_s28  ;;  %720 = vrot.lane.b32.xlu1 %v2712_v53, %s2530_s17 }
 0x22d   : > { %1158 = vrot.lane.b32.xlu0 %v2656_v49, %s2537_s25  ;;  %764 = vrot.lane.b32.xlu1 %v2712_v53, %s2531_s18 }
 0x231   : > { %1206 = vrot.lane.b32.xlu0 %v2656_v49, %s2539_s27  ;;  %768 = vrot.lane.b32.xlu1 %v2722_v54, %s2531_s18 }
 0x235   : > { %1294 = vrot.lane.b32.xlu0 %v2656_v49, %s2542_s30  ;;  %808 = vrot.lane.b32.xlu1 %v2712_v53, %s2534_s21 }
 0x239   : > { %635 = vrot.lane.b32.xlu0 %v2722_v54, %s2529_s16  ;;  %852 = vrot.lane.b32.xlu1 %v2712_v53, %s2532_s19  ;;  %s4012_s16 = smov 121  }
 0x23d   : > { %724 = vrot.lane.b32.xlu0 %v2722_v54, %s2530_s17  ;;  %856 = vrot.lane.b32.xlu1 %v2722_v54, %s2532_s19 }
 0x241   : > { %812 = vrot.lane.b32.xlu0 %v2722_v54, %s2534_s21  ;;  %896 = vrot.lane.b32.xlu1 %v2712_v53, %s2538_s26 }
 0x245   : > { %900 = vrot.lane.b32.xlu0 %v2722_v54, %s2538_s26  ;;  %940 = vrot.lane.b32.xlu1 %v2712_v53, %s4011_s10 }
 0x249   : > { %988 = vrot.lane.b32.xlu0 %v2722_v54, %s2541_s29  ;;  %944 = vrot.lane.b32.xlu1 %v2722_v54, %s4011_s10 }
 0x24d   : > { %1076 = vrot.lane.b32.xlu0 %v2722_v54, %s2544_s28  ;;  %984 = vrot.lane.b32.xlu1 %v2712_v53, %s2541_s29 }
 0x251   : > { %1164 = vrot.lane.b32.xlu0 %v2722_v54, %s2537_s25  ;;  %1028 = vrot.lane.b32.xlu1 %v2712_v53, %s2535_s23 }
 0x255   : > { %1208 = vrot.lane.b32.xlu0 %v2712_v53, %s2539_s27  ;;  %1032 = vrot.lane.b32.xlu1 %v2722_v54, %s2535_s23 }
 0x259   : > { %1252 = vrot.lane.b32.xlu0 %v2712_v53, %s4012_s16  ;;  %1072 = vrot.lane.b32.xlu1 %v2712_v53, %s2544_s28 }
 0x25b   : > { %v2780_v55 = vpop.permute.xlu0 %674  ;;  %v2782_v56 = vpop.permute.xlu1 %629 }
 0x25d   : > { %1212 = vrot.lane.b32.xlu0 %v2722_v54, %s2539_s27  ;;  %1116 = vrot.lane.b32.xlu1 %v2712_v53, %s2536_s24 }
 0x25f   : > { %v2788_v57 = vpop.permute.xlu0 %633  ;;  %v2790_v58 = vpop.permute.xlu1 %678 }
 0x261   : > { %1296 = vrot.lane.b32.xlu0 %v2712_v53, %s2542_s30  ;;  %1120 = vrot.lane.b32.xlu1 %v2722_v54, %s2536_s24  ;;  %s389_s24 = scalar_lea.vmem %s3948_s1, %s2632_s22 }
 0x263   : > { %v2796_v59 = vpop.permute.xlu0 %718  ;;  %v2798_v60 = vpop.permute.xlu1 %766 }
 0x265   : > { %1340 = vrot.lane.b32.xlu0 %v2712_v53, %s2543_s20  ;;  %1160 = vrot.lane.b32.xlu1 %v2712_v53, %s2537_s25 }
 0x267   : > { %v2804_v61 = vpop.permute.xlu0 %762  ;;  %v2806_v62 = vpop.permute.xlu1 %854 }
 0x269   : > { %1300 = vrot.lane.b32.xlu0 %v2722_v54, %s2542_s30  ;;  %1338 = vrot.lane.b32.xlu1 %v2656_v49, %s2543_s20  ;;  %v649_v49 = vrot.slane %v2871_v23, %v2877_v25 }
 0x26b   : > { %v2815_v0 = vpop.permute.xlu0 %722  ;;  %v2817_v1 = vpop.permute.xlu1 %942 }
 0x26d   : > { %1829 = vperm.xlu0 %2470, %v1826_v63   ;;  %1256 = vrot.lane.b32.xlu1 %v2722_v54, %s4012_s16 }
 0x26f   : > { %v2821_v2 = vpop.permute.xlu0 %806  ;;  %v2823_v3 = vpop.permute.xlu1 %1030 }
 0x271   : > { %1344 = vrot.lane.b32.xlu1 %v2722_v54, %s2543_s20 }
 0x273   : > { %v2827_v4 = vpop.permute.xlu0 %850  ;;  %v2829_v5 = vpop.permute.xlu1 %1118 }
 0x274   : > { %4013 = vst [vmem:[#allocation7_spill] sm:$0xff] %v2829_v5  ;;  %v825_v5 = vrot.slane %v2987_v43, %v2877_v25 }
 0x277   : > { %v2831_v6 = vpop.permute.xlu0 %810  ;;  %v2833_v7 = vpop.permute.xlu1 %1162 }
 0x278   : > { %4014 = vst [vmem:[#allocation8_spill] sm:$0xff] %v2833_v7 }
 0x27b   : > { %v2835_v8 = vpop.permute.xlu0 %894  ;;  %v2837_v9 = vpop.permute.xlu1 %1210 }
 0x27c   : > { %4015 = vst [vmem:[#allocation9_spill] sm:$0xff] %v2837_v9 }
 0x27f   : > { %v2846_v12 = vpop.permute.xlu0 %938  ;;  %v2848_v13 = vpop.permute.xlu1 %1254 }
 0x280   : > { %4017 = vst [vmem:[#allocation11_spill] sm:$0xff] %v2848_v13 }
 0x283   : > { %v2850_v14 = vpop.permute.xlu0 %898  ;;  %v2852_v15 = vpop.permute.xlu1 %1250 }
 0x284   : > { %4018 = vst [vmem:[#allocation12_spill] sm:$0xff] %v2852_v15 }
 0x287   : > { %v2854_v17 = vpop.permute.xlu0 %982  ;;  %v2856_v18 = vpop.permute.xlu1 %1298 }
 0x288   : > { %4019 = vst [vmem:[#allocation13_spill] sm:$0xff] %v2856_v18 }
 0x28b   : > { %v2861_v20 = vpop.permute.xlu0 %1026  ;;  %v2863_v21 = vpop.permute.xlu1 %1342 }
 0x28c   : > { %4021 = vst [vmem:[#allocation15_spill] sm:$0xff] %v2863_v21 }
 0x28f   : > { %v2894_v29 = vpop.permute.xlu0 %986  ;;  %v2897_v30 = vpop.permute.xlu1 %631 }
 0x290   : > { %v642_v35 = vsel %vm639_vm3, %v2782_v56, %v2897_v30 }
 0x291   : > { %v667_v39 = vmul.f32 %v653_v31, %v642_v35  ;;  %v2917_v40 = vmul.f32 %v1388_v32, %v642_v35  ;;  %v2942_v31 = vld [vmem:[%s3949_s2 + $0x2] ss:$8 sm:$0xf]  ;;  %v2947_v32 = vld [vmem:[%s3949_s2 + $0x44] ss:$8 sm:$0xf]  ;;  %v701_v35 = vrot.slane %v2887_v27, %v2930_v51 }
 0x293   : > { %v2912_v36 = vpop.permute.xlu0 %1070  ;;  %v677_v37 = vpop.permute.xlu1 %676  ;;  %4023 = vst [vmem:[#allocation17_spill] sm:$0xff] %v2917_v40 }
 0x294   : > { %v685_v38 = vsel %vm682_vm4, %v2780_v55, %v677_v37 }
 0x295   : > { %v711_v41 = vmul.f32 %v697_v33, %v685_v38  ;;  %v2919_v42 = vmul.f32 %v1419_v34, %v685_v38  ;;  %v2973_v38 = vld [vmem:[%s3949_s2 + $0x45] ss:$8 sm:$0xf]  ;;  %v741_v34 = vrot.slane %v2942_v31, %v2874_v24 }
 0x296   : > { %4028 = vst [vmem:[#allocation22_spill] sm:$0xff] %v2973_v38  ;;  %v3012_v33 = vld [vmem:[%s3949_s2 + $0x5] ss:$8 sm:$0xf]  ;;  %v3036_v38 = vsel %vm682_vm4, %v677_v37, %v2790_v58 }
 0x297   : > { %4024 = vst [vmem:[#allocation18_spill] sm:$0xff] %v2919_v42  ;;  %v2923_v44 = vpop.permute.xlu0 %1114  ;;  %v681_v45 = vpop.permute.xlu1 %680  ;;  %v1770_v46 = vpack.c.bf16 %v711_v41, %v667_v39  ;;  %v2960_v39 = vld [vmem:[%s3949_s2 + $0x3] ss:$8 sm:$0xf]  ;;  %v693_v41 = vrot.slane %v2887_v27, %v2877_v25  ;;  %v661_v42 = vrot.slane %v2871_v23, %v2933_v52  ;;  %v873_v50 = vrot.slane %v3012_v33, %v2874_v24 }
 0x298   : > { %4025 = vst [vmem:[#allocation19_spill] sm:$0xff] %v2923_v44  ;;  %v785_v40 = vrot.slane %v2960_v39, %v2874_v24  ;;  %v781_v10 = vrot.slane %v2960_v39, %v2877_v25  ;;  %v3055_v37 = vsel %vm682_vm4, %v681_v45, %v2780_v55  ;;  %v869_v54 = vrot.slane %v3012_v33, %v2877_v25 }
 0x299   : > { %1858 = vmatprep.subr.bf16.mxu0 %v1770_v46  ;;  %v705_v46 = vrot.slane %v2887_v27, %v2933_v52  ;;  %v2999_v27 = vld [vmem:[%s3949_s2 + $0x46] ss:$8 sm:$0xf]  ;;  %v712_v15 = vmul.f32 %v701_v35, %v3036_v38  ;;  %v710_v44 = vmul.f32 %v693_v41, %v3055_v37 }
 0x29b   : > { %v2925_v47 = vpop.permute.xlu0 %1074  ;;  %v2927_v48 = vpop.permute.xlu1 %720 }
 0x29c   : > { %4026 = vst [vmem:[#allocation20_spill] sm:$0xff] %v2925_v47  ;;  %v3065_v9 = vsel %vm726_vm5, %v2796_v59, %v2927_v48 }
 0x29d   : > { %4033 = vst [vmem:[#allocation27_spill] sm:$0xff] %v3065_v9 }
 0x29f   : > { %v2935_v63 = vpop.permute.xlu0 %1158  ;;  %v2937_v11 = vpop.permute.xlu1 %764 }
 0x2a0   : > { %4027 = vst [vmem:[#allocation21_spill] sm:$0xff] %v2935_v63  ;;  %v3042_v18 = vsel %vm770_vm6, %v2804_v61, %v2937_v11 }
 0x2a1   : > { %4031 = vst [vmem:[#allocation25_spill] sm:$0xff] %v3042_v18  ;;  %v799_v13 = vmul.f32 %v785_v40, %v3042_v18  ;;  %v755_v40 = vmul.f32 %v741_v34, %v3065_v9 }
 0x2a3   : > { %v2982_v16 = vpop.permute.xlu0 %1206  ;;  %v769_v19 = vpop.permute.xlu1 %768 }
 0x2a4   : > { %4029 = vst [vmem:[#allocation23_spill] sm:$0xff] %v2982_v16  ;;  %v737_v16 = vrot.slane %v2942_v31, %v2877_v25 }
 0x2a7   : > { %v3021_v53 = vpop.permute.xlu0 %1294  ;;  %v3027_v21 = vpop.permute.xlu1 %808 }
 0x2a8   : > { %4030 = vst [vmem:[#allocation24_spill] sm:$0xff] %v3021_v53  ;;  %v3050_v53 = vsel %vm682_vm4, %v2790_v58, %v681_v45  ;;  %v749_v58 = vrot.slane %v2942_v31, %v2933_v52  ;;  %v3077_v45 = vsel %vm639_vm3, %v2897_v30, %v2788_v57  ;;  %vm1302_vm4 = vcmp.lt.s32.totalorder %v2866_v22, 120 }
 0x2a9   : > { %4032 = vst [vmem:[#allocation26_spill] sm:$0xff] %v3050_v53  ;;  %v713_v7 = vmul.f32 %v705_v46, %v3050_v53  ;;  %v3129_v53 = vsel %vm770_vm6, %v2798_v60, %v769_v19 }
 0x2aa   : > { %4036 = vst [vmem:[#allocation29_spill] sm:$0xff] %v3129_v53 }
 0x2ab   : > { %v636_v63 = vpop.permute.xlu0 %635  ;;  %v853_v47 = vpop.permute.xlu1 %852 }
 0x2ac   : > { %v3088_v55 = vsel %vm639_vm3, %v2788_v57, %v636_v63  ;;  %v3093_v30 = vsel %vm639_vm3, %v636_v63, %v2782_v56  ;;  %v3101_v41 = vsel %vm858_vm8, %v2827_v4, %v853_v47  ;;  %v4035_v57 = vrot.slane %v2871_v23, %v2930_v51 }
 0x2ad   : > { %4034 = vst [vmem:[#allocation28_spill] sm:$0xff] %v3088_v55  ;;  %v666_v35 = vmul.f32 %v649_v49, %v3093_v30  ;;  %v669_v18 = vmul.f32 %v661_v42, %v3088_v55  ;;  %v3111_v56 = vsel %vm770_vm6, %v2937_v11, %v2798_v60  ;;  %v3116_v49 = vsel %vm770_vm6, %v769_v19, %v2804_v61 }
 0x2ae   : > { %v668_v46 = vmul.f32 %v4035_v57, %v3077_v45  ;;  %v837_v42 = vrot.slane %v2987_v43, %v2933_v52  ;;  %v3124_v23 = vsel %vm814_vm7, %v2821_v2, %v3027_v21  ;;  %v1774_v11 = vpack.c.bf16 %v799_v13, %v755_v40  ;;  %v3184_v40 = vld [vmem:[%s3949_s2 + $0x7] ss:$8 sm:$0xf] }
 0x2af   : > { %v1769_v63 = vpack.c.bf16 %v710_v44, %v666_v35  ;;  %v725_v34 = vpop.permute.xlu0 %724  ;;  %v857_v57 = vpop.permute.xlu1 %856  ;;  %v1772_v9 = vpack.c.bf16 %v713_v7, %v669_v18  ;;  %v887_v61 = vmul.f32 %v873_v50, %v3101_v41  ;;  %v3146_v7 = vsel %vm726_vm5, %v2927_v48, %v2815_v0 }
 0x2b0   : > { %v3135_v55 = vsel %vm726_vm5, %v2815_v0, %v725_v34  ;;  %v3140_v44 = vsel %vm726_vm5, %v725_v34, %v2796_v59  ;;  %v1771_v35 = vpack.c.bf16 %v712_v15, %v668_v46  ;;  %v798_v60 = vmul.f32 %v781_v10, %v3116_v49 }
 0x2b1   : > { %v754_v50 = vmul.f32 %v737_v16, %v3140_v44  ;;  %1859 = vmatpush1.bf16.msra.mxu0 %v1769_v63  ;;  %v843_v13 = vmul.f32 %v829_v28, %v3124_v23  ;;  %v757_v18 = vmul.f32 %v749_v58, %v3135_v55  ;;  %v3155_v59 = vsel %vm858_vm8, %v857_v57, %v2827_v4  ;;  %v3193_v63 = vld [vmem:[%s3949_s2 + $0x47] ss:$8 sm:$0xf] }
 0x2b2   : > { %4037 = vst [vmem:[#allocation30_spill] sm:$0xff] %v3155_v59  ;;  %1899 = vmatprep.subr.bf16.mxu1 %v1772_v9  ;;  %1860 = vmatprep.subr.bf16.mxu0 %v1774_v11  ;;  %v4038_v0 = vrot.slane %v2960_v39, %v2930_v51  ;;  %v4039_v10 = vrot.slane %v2960_v39, %v2933_v52  ;;  %vm1346_vm3 = vcmp.lt.s32.totalorder %v2866_v22, 119  ;;  %vm1940_vm5 = vcmask 1042432  }
 0x2b3   : > { %v1773_v19 = vpack.c.bf16 %v798_v60, %v754_v50  ;;  %1900 = vmatpush1.bf16.msra.mxu1 %v1771_v35  ;;  %v813_v28 = vpop.permute.xlu0 %812  ;;  %v897_v48 = vpop.permute.xlu1 %896  ;;  %v3169_v4 = vsel %vm858_vm8, %v853_v47, %v2806_v62  ;;  %v1778_v58 = vpack.c.bf16 %v887_v61, %v843_v13  ;;  %v4041_v47 = vrot.slane %v2942_v31, %v2930_v51  ;;  %v3212_v35 = vld [vmem:[%s3949_s2 + $0x6] ss:$8 sm:$0xf] }
 0x2b4   : > { %v800_v15 = vmul.f32 %v4038_v0, %v3111_v56  ;;  %v801_v16 = vmul.f32 %v4039_v10, %v3129_v53  ;;  %v3174_v9 = vsel %vm814_vm7, %v2831_v6, %v813_v28  ;;  %v3179_v39 = vsel %vm814_vm7, %v813_v28, %v2821_v2  ;;  %v4066_v53 = vld [vmem:[#allocation11_spill] sm:$0xff] }
 0x2b5   : > { %4040 = vst [vmem:[#allocation31_spill] sm:$0xff] %v3174_v9  ;;  %v756_v46 = vmul.f32 %v4041_v47, %v3146_v7  ;;  %v3198_v2 = vsel %vm858_vm8, %v2806_v62, %v857_v57  ;;  %v886_v34 = vmul.f32 %v869_v54, %v3155_v59  ;;  %v842_v11 = vmul.f32 %v825_v5, %v3179_v39 }
 0x2b6   : > { %4042 = vst [vmem:[#allocation32_spill] sm:$0xff] %v3198_v2  ;;  %1861 = vmatpush1.bf16.msra.mxu0 %v1773_v19  ;;  %v3206_v31 = vsel %vm814_vm7, %v3027_v21, %v2831_v6  ;;  %v845_v61 = vmul.f32 %v837_v42, %v3174_v9  ;;  %v1776_v62 = vpack.c.bf16 %v801_v16, %v757_v18 }
 0x2b7   : > { %1862 = vmatprep.subr.bf16.mxu0 %v1778_v58  ;;  %v1775_v54 = vpack.c.bf16 %v800_v15, %v756_v46  ;;  %v4043_v5 = vrot.slane %v3012_v33, %v2930_v51  ;;  %v1777_v60 = vpack.c.bf16 %v886_v34, %v842_v11  ;;  %v901_v6 = vpop.permute.xlu0 %900  ;;  %v961_v21 = vrot.slane %v3184_v40, %v2874_v24  ;;  %v941_v42 = vpop.permute.xlu1 %940 }
 0x2b8   : > { %v4044_v0 = vrot.slane %v3012_v33, %v2933_v52  ;;  %1901 = vmatprep.subr.bf16.mxu1 %v1776_v62  ;;  %v4045_v10 = vrot.slane %v2987_v43, %v2930_v51  ;;  %v917_v28 = vrot.slane %v3212_v35, %v2874_v24  ;;  %v913_v58 = vrot.slane %v3212_v35, %v2877_v25 }
 0x2b9   : > { %v888_v57 = vmul.f32 %v4043_v5, %v3169_v4  ;;  %1902 = vmatpush1.bf16.msra.mxu1 %v1775_v54  ;;  %v3244_v33 = vsel %vm902_vm9, %v2835_v8, %v897_v48  ;;  %v3249_v43 = vsel %vm946_vm10, %v2846_v12, %v941_v42  ;;  %v957_v46 = vrot.slane %v3184_v40, %v2877_v25 }
 0x2ba   : > { %v889_v15 = vmul.f32 %v4044_v0, %v3198_v2  ;;  %v844_v16 = vmul.f32 %v4045_v10, %v3206_v31  ;;  %4046 = vst [vmem:[#allocation33_spill] sm:$0xff] %v3244_v33  ;;  %4047 = vst [vmem:[#allocation34_spill] sm:$0xff] %v3249_v43  ;;  %1863 = vmatpush1.bf16.msra.mxu0 %v1777_v60  ;;  %v3256_v11 = vsel %vm902_vm9, %v901_v6, %v2835_v8 }
 0x2bb   : > { %4048 = vst [vmem:[#allocation35_spill] sm:$0xff] %v3256_v11  ;;  %v975_v62 = vmul.f32 %v961_v21, %v3249_v43  ;;  %v3259_v54 = vpop.permute.xlu0 %988  ;;  %v969_v5 = vrot.slane %v3184_v40, %v2933_v52  ;;  %v945_v0 = vpop.permute.xlu1 %944  ;;  %v965_v60 = vrot.slane %v3184_v40, %v2930_v51  ;;  %v925_v10 = vrot.slane %v3212_v35, %v2933_v52 }
 0x2bc   : > { %v1780_v47 = vpack.c.bf16 %v889_v15, %v845_v61  ;;  %v1779_v34 = vpack.c.bf16 %v888_v57, %v844_v16  ;;  %v3270_v8 = vsel %vm946_vm10, %v2817_v1, %v945_v0  ;;  %v3275_v57 = vsel %vm946_vm10, %v945_v0, %v2846_v12  ;;  %v3292_v12 = vld [vmem:[%s3949_s2 + $0x60] ss:$8 sm:$0xf] }
 0x2bd   : > { %4049 = vst [vmem:[#allocation36_spill] sm:$0xff] %v3270_v8  ;;  %4050 = vst [vmem:[#allocation37_spill] sm:$0xff] %v3275_v57  ;;  %v931_v15 = vmul.f32 %v917_v28, %v3244_v33  ;;  %v3285_v40 = vsel %vm946_vm10, %v941_v42, %v2817_v1  ;;  %v921_v16 = vrot.slane %v3212_v35, %v2930_v51  ;;  %v2382_v33 = vld [vmem:[%s3949_s2 + $0x23] ss:$8 sm:$0xf] }
 0x2be   : > { %1903 = vmatprep.subr.bf16.mxu1 %v1780_v47  ;;  %4051 = vst [vmem:[#allocation38_spill] sm:$0xff] %v3285_v40  ;;  %v3297_v28 = vsel %vm902_vm9, %v2850_v14, %v901_v6  ;;  %v930_v47 = vmul.f32 %v913_v58, %v3256_v11  ;;  %v974_v0 = vmul.f32 %v957_v46, %v3275_v57  ;;  %v2380_v6 = vld [vmem:[%s3949_s2 + $0x21] ss:$8 sm:$0xf] }
 0x2bf   : > { %1904 = vmatpush1.bf16.msra.mxu1 %v1779_v34  ;;  %4052 = vst [vmem:[#allocation39_spill] sm:$0xff] %v3297_v28  ;;  %v3306_v35 = vsel %vm902_vm9, %v897_v48, %v2850_v14  ;;  %v977_v42 = vmul.f32 %v969_v5, %v3270_v8  ;;  %v1782_v34 = vpack.c.bf16 %v975_v62, %v931_v15  ;;  %v3309_v21 = vpop.permute.xlu0 %1076  ;;  %v985_v19 = vpop.permute.xlu1 %984  ;;  %v2379_v14 = vld [vmem:[%s3949_s2 + $0x20] ss:$8 sm:$0xf] }
 0x2c0   : > { %4053 = vst [vmem:[#allocation40_spill] sm:$0xff] %v3306_v35  ;;  %v976_v50 = vmul.f32 %v965_v60, %v3285_v40  ;;  %v1781_v48 = vpack.c.bf16 %v974_v0, %v930_v47  ;;  %v933_v58 = vmul.f32 %v925_v10, %v3297_v28  ;;  %v3332_v60 = vld [vmem:[%s3949_s2 + $0x22] ss:$8 sm:$0xf]  ;;  %v932_v0 = vmul.f32 %v921_v16, %v3306_v35 }
 0x2c1   : > { %1864 = vmatprep.subr.bf16.mxu0 %v1782_v34  ;;  %v1049_v62 = vrot.slane %v2380_v6, %v2874_v24  ;;  %v1001_v10 = vrot.slane %v2379_v14, %v2877_v25  ;;  %v1013_v34 = vrot.slane %v2379_v14, %v2933_v52  ;;  %v1005_v16 = vrot.slane %v2379_v14, %v2874_v24  ;;  %v4061_v57 = vld [vmem:[#allocation20_spill] sm:$0xff] }
 0x2c2   : > { %1865 = vmatpush1.bf16.msra.mxu0 %v1781_v48  ;;  %v1784_v15 = vpack.c.bf16 %v977_v42, %v933_v58  ;;  %v1783_v1 = vpack.c.bf16 %v976_v50, %v932_v0  ;;  %v1053_v48 = vrot.slane %v2380_v6, %v2930_v51  ;;  %v3352_v61 = vsel %vm990_vm12, %v2854_v17, %v985_v19  ;;  %v3357_v42 = vld [vmem:[%s3949_s2 + $0x24] ss:$8 sm:$0xf] }
 0x2c3   : > { %v3342_v46 = vpop.permute.xlu0 %1164  ;;  %v1029_v5 = vpop.permute.xlu1 %1028  ;;  %4054 = vst [vmem:[#allocation41_spill] sm:$0xff] %v3352_v61  ;;  %v1057_v0 = vrot.slane %v2380_v6, %v2933_v52  ;;  %v1009_v13 = vrot.slane %v2379_v14, %v2930_v51  ;;  %v1045_v47 = vrot.slane %v2380_v6, %v2877_v25  ;;  %v3378_v28 = vsel %vm990_vm12, %v3259_v54, %v2854_v17 }
 0x2c4   : > { %1905 = vmatprep.subr.bf16.mxu1 %v1784_v15  ;;  %v1036_v50 = vsel %vm1034_vm11, %v1029_v5, %v2823_v3  ;;  %v1037_v58 = vsel %vm1034_vm11, %v2861_v20, %v1029_v5  ;;  %v3370_v15 = vsel %vm990_vm12, %v2894_v29, %v3259_v54  ;;  %4056 = vst [vmem:[#allocation43_spill] sm:$0xff] %v3378_v28  ;;  %v3396_v54 = vld [vmem:[%s3949_s2 + $0x26] ss:$8 sm:$0xf] }
 0x2c5   : > { %4055 = vst [vmem:[#allocation42_spill] sm:$0xff] %v3370_v15  ;;  %1906 = vmatpush1.bf16.msra.mxu1 %v1783_v1  ;;  %v1063_v18 = vmul.f32 %v1049_v62, %v1037_v58  ;;  %v3385_v8 = vsel %vm990_vm12, %v985_v19, %v2894_v29  ;;  %v1019_v6 = vmul.f32 %v1005_v16, %v3352_v61  ;;  %v3404_v19 = vld [vmem:[%s3949_s2 + $0x27] ss:$8 sm:$0xf] }
 0x2c6   : > { %4057 = vst [vmem:[#allocation44_spill] sm:$0xff] %v3385_v8  ;;  %v1064_v17 = vmul.f32 %v1053_v48, %v1036_v50  ;;  %v1021_v16 = vmul.f32 %v1013_v34, %v3370_v15  ;;  %v1189_v58 = vrot.slane %v3357_v42, %v2933_v52  ;;  %v1018_v62 = vmul.f32 %v1001_v10, %v3378_v28  ;;  %v4059_v15 = vld [vmem:[#allocation19_spill] sm:$0xff] }
 0x2c7   : > { %v3388_v1 = vpop.permute.xlu0 %1208  ;;  %v1033_v14 = vpop.permute.xlu1 %1032  ;;  %v1020_v5 = vmul.f32 %v1009_v13, %v3385_v8  ;;  %v1786_v11 = vpack.c.bf16 %v1063_v18, %v1019_v6  ;;  %v1093_v6 = vrot.slane %v3332_v60, %v2874_v24  ;;  %v4060_v8 = vld [vmem:[#allocation7_spill] sm:$0xff]  ;;  %v1079_v43 = vsel %vm1078_vm13, %v4061_v57, %v3309_v21 }
 0x2c8   : > { %v1035_v29 = vsel %vm1034_vm11, %v2823_v3, %v1033_v14  ;;  %v1038_v48 = vsel %vm1034_vm11, %v1033_v14, %v2861_v20 }
 0x2c9   : > { %v1065_v50 = vmul.f32 %v1057_v0, %v1035_v29  ;;  %v1062_v3 = vmul.f32 %v1045_v47, %v1038_v48  ;;  %v1787_v13 = vpack.c.bf16 %v1064_v17, %v1020_v5  ;;  %1866 = vmatprep.subr.bf16.mxu0 %v1786_v11  ;;  %v3433_v29 = vld [vmem:[%s3949_s2 + $0x40] ss:$8 sm:$0xf]  ;;  %v1097_v48 = vrot.slane %v3332_v60, %v2930_v51 }
 0x2ca   : > { %v1137_v11 = vrot.slane %v2382_v33, %v2874_v24  ;;  %v1145_v47 = vrot.slane %v2382_v33, %v2933_v52 }
 0x2cb   : > { %v3423_v0 = vpop.permute.xlu0 %1252  ;;  %v1073_v10 = vpop.permute.xlu1 %1072  ;;  %v1788_v14 = vpack.c.bf16 %v1065_v50, %v1021_v16  ;;  %v1785_v18 = vpack.c.bf16 %v1062_v3, %v1018_v62  ;;  %v3444_v62 = vld [vmem:[%s3949_s2 + $0x41] ss:$8 sm:$0xf]  ;;  %v1141_v50 = vrot.slane %v2382_v33, %v2930_v51 }
 0x2cc   : > { %v1081_v17 = vsel %vm1078_vm13, %v2912_v36, %v1073_v10  ;;  %v4058_v3 = vld [vmem:[#allocation8_spill] sm:$0xff]  ;;  %v1361_v28 = vrot.slane %v3444_v62, %v2874_v24 }
 0x2cd   : > { %1907 = vmatprep.subr.bf16.mxu1 %v1788_v14  ;;  %1867 = vmatpush1.bf16.msra.mxu0 %v1785_v18  ;;  %v1167_v14 = vsel %vm1166_vm14, %v4058_v3, %v3342_v46  ;;  %v1107_v2 = vmul.f32 %v1093_v6, %v1081_v17  ;;  %v1181_v18 = vrot.slane %v3357_v42, %v2874_v24  ;;  %v4062_v17 = vld [vmem:[#allocation21_spill] sm:$0xff] }
 0x2ce   : > { %1908 = vmatpush1.bf16.msra.mxu1 %v1787_v13  ;;  %v1133_v13 = vrot.slane %v2382_v33, %v2877_v25  ;;  %v1082_v33 = vsel %vm1078_vm13, %v3309_v21, %v2912_v36  ;;  %v1197_v9 = vmul.f32 %v1189_v58, %v1167_v14  ;;  %v1185_v6 = vrot.slane %v3357_v42, %v2930_v51 }
 0x2cf   : > { %v3457_v5 = vpop.permute.xlu0 %1212  ;;  %v1117_v34 = vpop.permute.xlu1 %1116 }
 0x2d0   : > { %v1125_v16 = vsel %vm1122_vm1, %v4059_v15, %v1117_v34  ;;  %v1124_v20 = vsel %vm1122_vm1, %v1117_v34, %v4060_v8  ;;  %v1170_v34 = vsel %vm1166_vm14, %v3342_v46, %v4062_v17  ;;  %v4067_v46 = vld [vmem:[#allocation6_spill] sm:$0xff] }
 0x2d1   : > { %v1151_v61 = vmul.f32 %v1137_v11, %v1125_v16  ;;  %v1080_v11 = vsel %vm1078_vm13, %v1073_v10, %v4061_v57  ;;  %v1152_v36 = vmul.f32 %v1141_v50, %v1124_v20  ;;  %v4063_v57 = vrot.slane %v3332_v60, %v2877_v25 }
 0x2d2   : > { %v1796_v40 = vpack.c.bf16 %v4067_v46, %v1197_v9 }
 0x2d3   : > { %v1297_v16 = vpop.permute.xlu0 %1296  ;;  %v1121_v35 = vpop.permute.xlu1 %1120  ;;  %v1790_v59 = vpack.c.bf16 %v1151_v61, %v1107_v2  ;;  %v1106_v10 = vmul.f32 %v4063_v57, %v1082_v33  ;;  %v4064_v2 = vrot.slane %v3332_v60, %v2933_v52  ;;  %v4068_v33 = vld [vmem:[#allocation9_spill] sm:$0xff]  ;;  %v4069_v60 = vld [vmem:[#allocation23_spill] sm:$0xff] }
 0x2d4   : > { %v1123_v21 = vsel %vm1122_vm1, %v4060_v8, %v1121_v35  ;;  %v1126_v58 = vsel %vm1122_vm1, %v1121_v35, %v4059_v15  ;;  %v4065_v8 = vrot.slane %v3357_v42, %v2877_v25  ;;  %v1260_v35 = vsel %vm1258_vm2, %v3423_v0, %v4066_v53 }
 0x2d5   : > { %v1109_v61 = vmul.f32 %v4064_v2, %v1079_v43  ;;  %v1150_v20 = vmul.f32 %v1133_v13, %v1126_v58  ;;  %v1153_v50 = vmul.f32 %v1145_v47, %v1123_v21  ;;  %1868 = vmatprep.subr.bf16.mxu0 %v1790_v59  ;;  %v1108_v15 = vmul.f32 %v1097_v48, %v1080_v11  ;;  %v4070_v21 = vld [vmem:[#allocation12_spill] sm:$0xff] }
 0x2d6   : > { %v1194_v14 = vmul.f32 %v4065_v8, %v1170_v34  ;;  %v1216_v43 = vsel %vm1214_vm15, %v3388_v1, %v4068_v33  ;;  %v1217_v59 = vsel %vm1214_vm15, %v4069_v60, %v3388_v1  ;;  %v1261_v48 = vsel %vm1258_vm2, %v4070_v21, %v3423_v0  ;;  %v4072_v0 = vld [vmem:[#allocation15_spill] sm:$0xff] }
 0x2d7   : > { %v1789_v42 = vpack.c.bf16 %v1150_v20, %v1106_v10  ;;  %v1341_v47 = vpop.permute.xlu0 %1340  ;;  %v1161_v13 = vpop.permute.xlu1 %1160  ;;  %v1792_v34 = vpack.c.bf16 %v1153_v50, %v1109_v61  ;;  %v1791_v9 = vpack.c.bf16 %v1152_v36, %v1108_v15  ;;  %v4071_v1 = vrot.slane %v3404_v19, %v2874_v24  ;;  %v4075_v50 = vld [vmem:[#allocation4_spill] sm:$0xff]  ;;  %v4076_v15 = vld [vmem:[#allocation5_spill] sm:$0xff] }
 0x2d8   : > { %v1168_v11 = vsel %vm1166_vm14, %v1161_v13, %v4058_v3  ;;  %v1169_v58 = vsel %vm1166_vm14, %v4062_v17, %v1161_v13  ;;  %v1348_v36 = vsel %vm1346_vm3, %v1341_v47, %v4072_v0  ;;  %v1357_v3 = vrot.slane %v3444_v62, %v2877_v25  ;;  %v4077_v13 = vld [vmem:[#allocation3_spill] sm:$0xff] }
 0x2d9   : > { %v1287_v46 = vmul.f32 %v4071_v1, %v1260_v35  ;;  %v1195_v57 = vmul.f32 %v1181_v18, %v1169_v58  ;;  %v1196_v10 = vmul.f32 %v1185_v6, %v1168_v11  ;;  %1869 = vmatpush1.bf16.msra.mxu0 %v1789_v42  ;;  %1909 = vmatprep.subr.bf16.mxu1 %v1792_v34  ;;  %v4079_v58 = vld [vmem:[#allocation13_spill] sm:$0xff] }
 0x2da   : > { %1910 = vmatpush1.bf16.msra.mxu1 %v1791_v9  ;;  %v1277_v17 = vrot.slane %v3404_v19, %v2930_v51  ;;  %v1281_v2 = vrot.slane %v3404_v19, %v2933_v52  ;;  %v4073_v18 = vrot.slane %v3396_v54, %v2874_v24  ;;  %v4074_v61 = vrot.slane %v3404_v19, %v2877_v25 }
 0x2db   : > { %v1795_v8 = vpack.c.bf16 %v4075_v50, %v1196_v10  ;;  %1911 = vmatprep.subr.bf16.mxu1 %v1796_v40  ;;  %v1339_v35 = vpop.permute.xlu1 %1338  ;;  %v1794_v42 = vpack.c.bf16 %v4076_v15, %v1195_v57  ;;  %v1793_v34 = vpack.c.bf16 %v4077_v13, %v1194_v14  ;;  %v4078_v9 = vrot.slane %v3396_v54, %v2877_v25 }
 0x2dc   : > { %v1243_v6 = vmul.f32 %v4073_v18, %v1216_v43  ;;  %v1286_v20 = vmul.f32 %v4074_v61, %v1261_v48  ;;  %v1304_v43 = vsel %vm1302_vm4, %v1297_v16, %v4079_v58  ;;  %v1365_v19 = vrot.slane %v3444_v62, %v2930_v51  ;;  %v4083_v18 = vld [vmem:[#allocation24_spill] sm:$0xff] }
 0x2dd   : > { %v1242_v11 = vmul.f32 %v4078_v9, %v1217_v59  ;;  %v1215_v40 = vsel %vm1214_vm15, %v4068_v33, %v3457_v5  ;;  %v1375_v48 = vmul.f32 %v1361_v28, %v1348_v36  ;;  %v1349_v14 = vsel %vm1346_vm3, %v1339_v35, %v1341_v47  ;;  %1870 = vmatprep.subr.bf16.mxu0 %v1794_v42  ;;  %v4081_v33 = vld [vmem:[#allocation16_spill] sm:$0xff] }
 0x2de   : > { %v1798_v1 = vpack.c.bf16 %v1287_v46, %v1243_v6  ;;  %v4080_v59 = vrot.slane %v2882_v26, %v2874_v24  ;;  %v1218_v10 = vsel %vm1214_vm15, %v3457_v5, %v4069_v60  ;;  %1871 = vmatpush1.bf16.msra.mxu0 %v1793_v34  ;;  %1912 = vmatpush1.bf16.msra.mxu1 %v1795_v8  ;;  %v1301_v5 = vpop.permute.xlu0 %1300 }
 0x2df   : > { %v1369_v28 = vrot.slane %v3444_v62, %v2933_v52  ;;  %v4082_v47 = vrot.slane %v4081_v33, %v2874_v24  ;;  %v1797_v36 = vpack.c.bf16 %v1286_v20, %v1242_v11  ;;  %v4084_v6 = vrot.slane %v3433_v29, %v2874_v24  ;;  %v1257_v60 = vpop.permute.xlu1 %1256 }
 0x2e0   : > { %v1406_v57 = vmul.f32 %v4080_v59, %v3077_v45  ;;  %v1305_v45 = vsel %vm1302_vm4, %v4083_v18, %v1297_v16  ;;  %1872 = vmatprep.subr.bf16.mxu0 %v1798_v1  ;;  %v4085_v62 = vrot.slane %v3396_v54, %v2930_v51  ;;  %v1374_v8 = vmul.f32 %v1357_v3, %v1349_v14 }
 0x2e1   : > { %v1437_v46 = vmul.f32 %v4082_v47, %v3036_v38  ;;  %v1331_v61 = vmul.f32 %v4084_v6, %v1304_v43  ;;  %v1259_v38 = vsel %vm1258_vm2, %v4066_v53, %v1257_v60  ;;  %v1262_v16 = vsel %vm1258_vm2, %v1257_v60, %v4070_v21  ;;  %v3621_v43 = vld [vmem:[%s3949_s2 + $0x61] ss:$8 sm:$0xf] }
 0x2e2   : > { %v1244_v50 = vmul.f32 %v4085_v62, %v1215_v40  ;;  %v4086_v20 = vrot.slane %v3396_v54, %v2933_v52  ;;  %v1288_v42 = vmul.f32 %v1277_v17, %v1259_v38  ;;  %v1289_v13 = vmul.f32 %v1281_v2, %v1262_v16  ;;  %1873 = vmatpush1.bf16.msra.mxu0 %v1797_v36  ;;  %v4088_v54 = vld [vmem:[#allocation22_spill] sm:$0xff]  ;;  %v4097_v16 = vld [vmem:[#allocation28_spill] sm:$0xff] }
 0x2e3   : > { %v1802_v34 = vpack.c.bf16 %v1375_v48, %v1331_v61  ;;  %v1586_v9 = vrot.slane %v3292_v12, %v2933_v52  ;;  %v4087_v3 = vrot.slane %v3433_v29, %v2877_v25  ;;  %v1303_v53 = vsel %vm1302_vm4, %v4079_v58, %v1301_v5  ;;  %v3626_v40 = vld [vmem:[%s3949_s2 + $0x62] ss:$8 sm:$0xf]  ;;  %v1345_v48 = vpop.permute.xlu1 %1344 }
 0x2e4   : > { %v1245_v15 = vmul.f32 %v4086_v20, %v1218_v10  ;;  %v1306_v21 = vsel %vm1302_vm4, %v1301_v5, %v4083_v18  ;;  %v4089_v17 = vrot.slane %v4088_v54, %v2874_v24  ;;  %v1799_v58 = vpack.c.bf16 %v1288_v42, %v1244_v50  ;;  %v4095_v50 = vld [vmem:[#allocation25_spill] sm:$0xff] }
 0x2e5   : > { %v1330_v11 = vmul.f32 %v4087_v3, %v1305_v45  ;;  %1874 = vmatprep.subr.bf16.mxu0 %v1802_v34  ;;  %v1806_v1 = vpack.c.bf16 %v1437_v46, %v1406_v57  ;;  %v4090_v59 = vrot.slane %v2882_v26, %v2933_v52  ;;  %v1347_v47 = vsel %vm1346_vm3, %v4072_v0, %v1345_v48 }
 0x2e6   : > { %v1499_v2 = vmul.f32 %v4089_v17, %v3111_v56  ;;  %v1800_v14 = vpack.c.bf16 %v1289_v13, %v1245_v15  ;;  %v1350_v36 = vsel %vm1346_vm3, %v1345_v48, %v1339_v35  ;;  %v4091_v18 = vrot.slane %v3433_v29, %v2930_v51 }
 0x2e7   : > { %v1408_v56 = vmul.f32 %v4090_v59, %v3093_v30  ;;  %v1801_v10 = vpack.c.bf16 %v1374_v8, %v1330_v11  ;;  %v4092_v57 = vrot.slane %v3433_v29, %v2933_v52  ;;  %v1376_v6 = vmul.f32 %v1365_v19, %v1347_v47  ;;  %v4106_v59 = vld [vmem:[#allocation17_spill] sm:$0xff] }
 0x2e8   : > { %v1332_v45 = vmul.f32 %v4091_v18, %v1303_v53  ;;  %v1377_v61 = vmul.f32 %v1369_v28, %v1350_v36  ;;  %1913 = vmatprep.subr.bf16.mxu1 %v1800_v14  ;;  %v1605_v30 = vrot.slane %v3621_v43, %v2877_v25  ;;  %v1609_v0 = vrot.slane %v3621_v43, %v2874_v24  ;;  %v4101_v53 = vld [vmem:[#allocation26_spill] sm:$0xff] }
 0x2e9   : > { %v1333_v46 = vmul.f32 %v4092_v57, %v1306_v21  ;;  %v1644_v35 = vrot.slane %v3626_v40, %v2930_v51  ;;  %1875 = vmatpush1.bf16.msra.mxu0 %v1801_v10  ;;  %1914 = vmatpush1.bf16.msra.mxu1 %v1799_v58  ;;  %v4093_v5 = vrot.slane %v4081_v33, %v2933_v52  ;;  %v4103_v58 = vld [vmem:[#allocation27_spill] sm:$0xff] }
 0x2ea   : > { %v4094_v19 = vrot.slane %v2947_v32, %v2874_v24  ;;  %v1803_v60 = vpack.c.bf16 %v1376_v6, %v1332_v45  ;;  %1876 = vmatprep.subr.bf16.mxu0 %v1806_v1  ;;  %v4096_v8 = vrot.slane %v4088_v54, %v2877_v25  ;;  %v4098_v20 = vrot.slane %v2882_v26, %v2930_v51  ;;  %v4105_v1 = vld [vmem:[#allocation18_spill] sm:$0xff] }
 0x2eb   : > { %v1439_v29 = vmul.f32 %v4093_v5, %v3055_v37  ;;  %v1804_v62 = vpack.c.bf16 %v1377_v61, %v1333_v46  ;;  %v1617_v37 = vrot.slane %v3621_v43, %v2933_v52  ;;  %v1636_v42 = vrot.slane %v3626_v40, %v2877_v25 }
 0x2ec   : > { %v1468_v28 = vmul.f32 %v4094_v19, %v3146_v7  ;;  %v1498_v38 = vmul.f32 %v4096_v8, %v4095_v50  ;;  %v1407_v15 = vmul.f32 %v4098_v20, %v4097_v16  ;;  %v4099_v7 = vrot.slane %v3193_v63, %v2874_v24  ;;  %v4117_v50 = vld [vmem:[#allocation30_spill] sm:$0xff]  ;;  %v4119_v8 = vld [vmem:[#allocation40_spill] sm:$0xff]  ;;  %v4121_v20 = vld [vmem:[#allocation31_spill] sm:$0xff] }
 0x2ed   : > { %v4100_v34 = vrot.slane %v2947_v32, %v2933_v52  ;;  %1915 = vmatprep.subr.bf16.mxu1 %v1804_v62  ;;  %v1808_v26 = vpack.c.bf16 %v1439_v29, %v1408_v56  ;;  %v4102_v21 = vrot.slane %v4081_v33, %v2930_v51  ;;  %v4104_v48 = vrot.slane %v2947_v32, %v2877_v25 }
 0x2ee   : > { %v1561_v13 = vmul.f32 %v4099_v7, %v3169_v4  ;;  %v1810_v11 = vpack.c.bf16 %v1499_v2, %v1468_v28  ;;  %v1640_v4 = vrot.slane %v3626_v40, %v2874_v24  ;;  %v4107_v10 = vpack.c.bf16 %v4105_v1, %v4106_v59  ;;  %1916 = vmatpush1.bf16.msra.mxu1 %v1803_v60  ;;  %v4115_v28 = vld [vmem:[#allocation29_spill] sm:$0xff]  ;;  %v4123_v7 = vld [vmem:[#allocation34_spill] sm:$0xff] }
 0x2ef   : > { %v1470_v3 = vmul.f32 %v4100_v34, %v3140_v44  ;;  %v1438_v17 = vmul.f32 %v4102_v21, %v4101_v53  ;;  %v1467_v14 = vmul.f32 %v4104_v48, %v4103_v58  ;;  %v4108_v44 = vrot.slane %v4088_v54, %v2933_v52  ;;  %1917 = vmatprep.subr.bf16.mxu1 %v1808_v26  ;;  %v4124_v34 = vld [vmem:[#allocation37_spill] sm:$0xff]  ;;  %v4126_v53 = vld [vmem:[#allocation44_spill] sm:$0xff] }
 0x2f0   : > { %1877 = vmatpush1.bf16.msra.mxu0 %v4107_v10  ;;  %v4109_v33 = vrot.slane %v2999_v27, %v2874_v24  ;;  %v4110_v47 = vrot.slane %v3193_v63, %v2877_v25  ;;  %v4111_v45 = vrot.slane %v2999_v27, %v2877_v25  ;;  %v4116_v60 = vrot.slane %v4088_v54, %v2930_v51  ;;  %v4127_v48 = vld [vmem:[#allocation32_spill] sm:$0xff]  ;;  %v4129_v59 = vld [vmem:[#allocation33_spill] sm:$0xff] }
 0x2f1   : > { %v1501_v2 = vmul.f32 %v4108_v44, %v3116_v49  ;;  %1878 = vmatprep.subr.bf16.mxu0 %v1810_v11  ;;  %v1809_v18 = vpack.c.bf16 %v1498_v38, %v1467_v14  ;;  %v1807_v46 = vpack.c.bf16 %v1438_v17, %v1407_v15  ;;  %v4112_v49 = vrot.slane %v2947_v32, %v2930_v51  ;;  %v4125_v11 = vld [vmem:[#allocation41_spill] sm:$0xff]  ;;  %v4132_v44 = vld [vmem:[#allocation42_spill] sm:$0xff] }
 0x2f2   : > { %v1530_v56 = vmul.f32 %v4109_v33, %v3206_v31  ;;  %v1560_v36 = vmul.f32 %v4110_v47, %v3101_v41  ;;  %v1529_v57 = vmul.f32 %v4111_v45, %v3124_v23  ;;  %v4113_v31 = vrot.slane %v2999_v27, %v2933_v52  ;;  %v4114_v41 = vld [vmem:[#allocation38_spill] sm:$0xff]  ;;  %v4133_v33 = vld [vmem:[#allocation36_spill] sm:$0xff]  ;;  %v4134_v47 = vld [vmem:[#allocation43_spill] sm:$0xff] }
 0x2f3   : > { %v1469_v6 = vmul.f32 %v4112_v49, %v3135_v55  ;;  %v1623_v5 = vmul.f32 %v1609_v0, %v4114_v41  ;;  %v1812_v19 = vpack.c.bf16 %v1501_v2, %v1470_v3  ;;  %v1500_v23 = vmul.f32 %v4116_v60, %v4115_v28  ;;  %1918 = vmatpush1.bf16.msra.mxu1 %v1807_v46  ;;  %v4135_v46 = vld [vmem:[#allocation39_spill] sm:$0xff] }
 0x2f4   : > { %v1532_v61 = vmul.f32 %v4113_v31, %v3179_v39  ;;  %v1814_v29 = vpack.c.bf16 %v1561_v13, %v1530_v56  ;;  %v1648_v62 = vrot.slane %v3626_v40, %v2933_v52  ;;  %v1613_v32 = vrot.slane %v3621_v43, %v2930_v51  ;;  %1879 = vmatpush1.bf16.msra.mxu0 %v1809_v18 }
 0x2f5   : > { %v1813_v55 = vpack.c.bf16 %v1560_v36, %v1529_v57  ;;  %v4118_v39 = vrot.slane %v3193_v63, %v2933_v52  ;;  %v4120_v38 = vrot.slane %v3292_v12, %v2874_v24  ;;  %1919 = vmatprep.subr.bf16.mxu1 %v1812_v19  ;;  %v1811_v16 = vpack.c.bf16 %v1500_v23, %v1469_v6 }
 0x2f6   : > { %1880 = vmatprep.subr.bf16.mxu0 %v1814_v29  ;;  %v4122_v43 = vrot.slane %v2999_v27, %v2930_v51  ;;  %v1622_v13 = vmul.f32 %v1605_v30, %v4123_v7  ;;  %v1625_v3 = vmul.f32 %v1617_v37, %v4124_v34  ;;  %v1653_v26 = vmul.f32 %v1636_v42, %v4125_v11  ;;  %v4131_v37 = vld [vmem:[#allocation35_spill] sm:$0xff] }
 0x2f7   : > { %v1563_v0 = vmul.f32 %v4118_v39, %v4117_v50  ;;  %v1592_v54 = vmul.f32 %v4120_v38, %v4119_v8  ;;  %v1654_v21 = vmul.f32 %v1640_v4, %v4126_v53  ;;  %v4128_v14 = vrot.slane %v3193_v63, %v2930_v51  ;;  %1920 = vmatpush1.bf16.msra.mxu1 %v1811_v16 }
 0x2f8   : > { %v1531_v15 = vmul.f32 %v4122_v43, %v4121_v20  ;;  %v4130_v27 = vrot.slane %v3292_v12, %v2877_v25  ;;  %v1582_v30 = vrot.slane %v3292_v12, %v2930_v51  ;;  %1881 = vmatpush1.bf16.msra.mxu0 %v1813_v55  ;;  %v1594_v42 = vmul.f32 %v1586_v9, %v4131_v37 }
 0x2f9   : > { %v1818_v17 = vpack.c.bf16 %v1623_v5, %v1592_v54  ;;  %v1816_v58 = vpack.c.bf16 %v1563_v0, %v1532_v61  ;;  %v1562_v1 = vmul.f32 %v4128_v14, %v4127_v48  ;;  %v1655_v2 = vmul.f32 %v1644_v35, %v4132_v44  ;;  %v4136_v35 = vld [vmem:[#allocation10_spill] sm:$0xff]  ;;  %v1830_v61 = vpop.permute.xlu0 %1829 }
 0x2fa   : > { %v1591_v10 = vmul.f32 %v4130_v27, %v4129_v59  ;;  %v1624_v56 = vmul.f32 %v1613_v32, %v4133_v33  ;;  %v1656_v36 = vmul.f32 %v1648_v62, %v4134_v47  ;;  %v1821_v18 = vpack.c.bf16 %v1653_v26, %v1653_v26  ;;  %v3800_v47 = vld [vmem:[%s3949_s2 + $0x46] ss:$8 sm:$0xf] }
 0x2fb   : > { %1882 = vmatprep.subr.bf16.mxu0 %v1818_v17  ;;  %1921 = vmatprep.subr.bf16.mxu1 %v1816_v58  ;;  %v1815_v4 = vpack.c.bf16 %v1562_v1, %v1531_v15  ;;  %v1822_v45 = vpack.c.bf16 %v1654_v21, %v1654_v21  ;;  %v1820_v57 = vpack.c.bf16 %v1625_v3, %v1594_v42 }
 0x2fc   : > { %v1817_v63 = vpack.c.bf16 %v1622_v13, %v1591_v10  ;;  %v1593_v49 = vmul.f32 %v1582_v30, %v4135_v46  ;;  %v1823_v9 = vpack.c.bf16 %v1655_v2, %v1655_v2  ;;  %v1824_v6 = vpack.c.bf16 %v1656_v36, %v1656_v36 }
 0x2fd   : > { %1922 = vmatpush1.bf16.msra.mxu1 %v1815_v4  ;;  %v1847_v40 = vsel %vm418_vm0, %v1821_v18, 0 }
 0x2fe   : > { %1883 = vmatpush1.bf16.msra.mxu0 %v1817_v63  ;;  %1923 = vmatprep.subr.bf16.mxu1 %v1820_v57  ;;  %v1819_v12 = vpack.c.bf16 %v1624_v56, %v1593_v49  ;;  %v1853_v31 = vsel %vm418_vm0, %v1823_v9, 0  ;;  %v2402_v56 = vld [vmem:[%s3949_s2 + $0x4] ss:$8 sm:$0xf]  ;;  %v1999_v57 = vrot.slane %v3800_v47, %v2877_v25  ;;  %v2003_v49 = vrot.slane %v3800_v47, %v2874_v24 }
 0x2ff   : > { %2398 = vmatprep.subr.msk.bf16.mxu0 %vm418_vm0, %v1822_v45  ;;  %v1977_v18 = vrot.slane %v2402_v56, %v2874_v24  ;;  %v3806_v45 = vld [vmem:[%s3949_s2 + $0x22] ss:$8 sm:$0xf]  ;;  %v1981_v46 = vrot.slane %v2402_v56, %v2930_v51  ;;  %v1973_v9 = vrot.slane %v2402_v56, %v2877_v25 }
 0x301   : > { %1924 = vmatpush1.bf16.msra.mxu1 %v1819_v12  ;;  %v3816_v12 = vld [vmem:[%s3949_s2 + $0x40] ss:$8 sm:$0xf] }
 0x302   : > { %1885 = vmatpush1.bf16.msra.mxu0 %v1847_v40  ;;  %2400 = vmatprep.subr.msk.bf16.mxu1 %vm418_vm0, %v1824_v6  ;;  %v1985_v6 = vrot.slane %v2402_v56, %v2933_v52  ;;  %v2007_v40 = vrot.slane %v3800_v47, %v2930_v51 }
 0x305   : > { %1891 = vmatmul.mubr.bf16.vlgmr.msra.gmra.mrb[8].mxu0 %v4136_v35  ;;  %1926 = vmatpush1.bf16.msra.mxu1 %v1853_v31  ;;  %v3827_v31 = vld [vmem:[%s3949_s2 + $0x24] ss:$8 sm:$0xf] }
 0x308   : > { %1932 = vmatmul.mubr.bf16.vlgmr.msra.gmra.mrb[8].mxu1 %v4136_v35  ;;  %v2011_v35 = vrot.slane %v3800_v47, %v2933_v52 }
 0x3d8   : > { %v1892_v41 = vpop.f32.mrb[8].mxu0 }
 0x3d9   : > { %v1893_v5 = vadd.f32 %v1892_v41, %v1830_v61  ;;  %v1894_v29 = vpop.f32.mrb[9].mxu0  ;;  %v2057_v41 = vrot.slane %v3806_v45, %v2874_v24 }
 0x3da   : > { %v1895_v19 = vadd.f32 %v1894_v29, %v1830_v61  ;;  %v1896_v28 = vpop.f32.mrb[10].mxu0  ;;  %v2053_v29 = vrot.slane %v3806_v45, %v2877_v25 }
 0x3db   : > { %v1941_v60 = vsel %vm1940_vm5, %v1893_v5, 0.0  ;;  %v1897_v23 = vpop.f32.mrb[11].mxu0  ;;  %v1933_v32 = vpop.f32.mrb[8].mxu1 }
 0x3dc   : > { %v1942_v62 = vsel %vm1940_vm5, %v1895_v19, 0.0  ;;  %v1934_v50 = vadd.f32 %v1933_v32, %v1830_v61  ;;  %v1935_v39 = vpop.f32.mrb[9].mxu1  ;;  %v2095_v32 = vrot.slane %v3816_v12, %v2874_v24 }
 0x3dd   : > { %v1943_v55 = vadd.f32 %v1942_v62, %v1941_v60  ;;  %v1936_v0 = vadd.f32 %v1935_v39, %v1830_v61  ;;  %v1937_v8 = vpop.f32.mrb[10].mxu1  ;;  %v3842_v60 = vld [vmem:[%s3949_s2 + $0x26] ss:$8 sm:$0xf]  ;;  %v2091_v62 = vrot.slane %v3816_v12, %v2877_v25  ;;  %v2099_v39 = vrot.slane %v3816_v12, %v2930_v51 }
 0x3de   : > { %v1944_v38 = vsel %vm1940_vm5, %v1934_v50, 0.0  ;;  %v1938_v54 = vpop.f32.mrb[11].mxu1  ;;  %v2149_v8 = vrot.slane %v3827_v31, %v2874_v24 }
 0x3df   : > { %v1945_v16 = vadd.f32 %v1944_v38, %v1943_v55  ;;  %v1946_v20 = vsel %vm1940_vm5, %v1936_v0, 0.0  ;;  %v2545_v55 = vmov 1966171168   ;;  %v2153_v38 = vrot.slane %v3827_v31, %v2930_v51 }
 0x3e1   : > { %v1947_v43 = vadd.f32 %v1946_v20, %v1945_v16  ;;  %v2145_v16 = vrot.slane %v3827_v31, %v2877_v25  ;;  %v2157_v20 = vrot.slane %v3827_v31, %v2933_v52 }
 0x3e3   : > { %1948 = vadd.xlane.f32.xlu1 %v1947_v43  ;;  %v2183_v43 = vrot.slane %v3842_v60, %v2877_v25 }
 0x470   : > { %v1949_v15 = vpop.xlane.xlu1 %1948 }
 0x471   : > { %v1951_v7 = vmul.f32 0.001953125, %v1949_v15 }
 0x473   : > { %v1952_v13 = vsub.f32 %v1893_v5, %v1951_v7  ;;  %v1953_v34 = vsub.f32 %v1895_v19, %v1951_v7  ;;  %v1954_v11 = vsub.f32 %v1934_v50, %v1951_v7  ;;  %v1955_v21 = vsub.f32 %v1936_v0, %v1951_v7 }
 0x474   : > { %v2061_v5 = vrot.slane %v3806_v45, %v2930_v51  ;;  %v2065_v19 = vrot.slane %v3806_v45, %v2933_v52  ;;  %v3850_v50 = vunpack.c.l.s4 %v2545_v55  ;;  %v2103_v0 = vrot.slane %v3816_v12, %v2933_v52 }
 0x475   : > { %1956 = vrot.lane.b32.xlu0 %v1952_v13, %s2534_s21  ;;  %v2029_v3 = vrot.slane %v1953_v34, 1  ;;  %v2122_v26 = vrot.slane %v1954_v11, 2  ;;  %v2120_v53 = vrot.slane %v1952_v13, 2  ;;  %v2028_v17 = vrot.slane %v1952_v13, 1 }
 0x476   : > { %v2030_v58 = vrot.slane %v1954_v11, 1  ;;  %v2031_v48 = vrot.slane %v1955_v21, 1  ;;  %v2121_v14 = vrot.slane %v1953_v34, 2  ;;  %v2123_v1 = vrot.slane %v1955_v21, 2 }
 0x477   : > { %2076 = vrot.lane.b32.xlu1 %v2029_v3, %s2542_s30  ;;  %v2221_v25 = vunpack.c.0.s8 %v3850_v50 }
 0x479   : > { %1958 = vrot.lane.b32.xlu0 %v1953_v34, %s2534_s21 }
 0x47b   : > { %2132 = vrot.lane.b32.xlu1 %v2122_v26, %s2537_s25 }
 0x47d   : > { %1960 = vrot.lane.b32.xlu0 %v1954_v11, %s2534_s21 }
 0x47f   : > { %2166 = vrot.lane.b32.xlu1 %v2120_v53, %s2539_s27 }
 0x481   : > { %1962 = vrot.lane.b32.xlu0 %v1955_v21, %s2534_s21 }
 0x483   : > { %2170 = vrot.lane.b32.xlu1 %v2122_v26, %s2539_s27  ;;  %v2187_v26 = vrot.slane %v3842_v60, %v2874_v24 }
 0x485   : > { %2036 = vrot.lane.b32.xlu0 %v2028_v17, %s2544_s28 }
 0x489   : > { %2038 = vrot.lane.b32.xlu0 %v2029_v3, %s2544_s28 }
 0x48d   : > { %2040 = vrot.lane.b32.xlu0 %v2030_v58, %s2544_s28 }
 0x491   : > { %2042 = vrot.lane.b32.xlu0 %v2031_v48, %s2544_s28 }
 0x495   : > { %2074 = vrot.lane.b32.xlu0 %v2028_v17, %s2542_s30 }
 0x499   : > { %2078 = vrot.lane.b32.xlu0 %v2030_v58, %s2542_s30 }
 0x49d   : > { %2080 = vrot.lane.b32.xlu0 %v2031_v48, %s2542_s30 }
 0x4a1   : > { %2128 = vrot.lane.b32.xlu0 %v2120_v53, %s2537_s25  ;;  %v2191_v53 = vrot.slane %v3842_v60, %v2930_v51 }
 0x4a5   : > { %2130 = vrot.lane.b32.xlu0 %v2121_v14, %s2537_s25 }
 0x4a9   : > { %2134 = vrot.lane.b32.xlu0 %v2123_v1, %s2537_s25  ;;  %s397_s25 = scalar_lea.vmem %s3956_s9, %s2632_s22 }
 0x4ad   : > { %2168 = vrot.lane.b32.xlu0 %v2121_v14, %s2539_s27  ;;  %v2195_v14 = vrot.slane %v3842_v60, %v2933_v52 }
 0x4b1   : > { %2172 = vrot.lane.b32.xlu0 %v2123_v1, %s2539_s27 }
 0x4e7   : > { %v1957_v59 = vpop.permute.xlu0 %1956 }
 0x4e9   : > { %v2077_v33 = vpop.permute.xlu1 %2076 }
 0x4eb   : > { %v1959_v27 = vpop.permute.xlu0 %1958 }
 0x4ec   : > { %v1966_v54 = vsel %vm814_vm7, %v1957_v59, %v1959_v27 }
 0x4ed   : > { %v3829_v61 = vpop.permute.xlu1 %2132  ;;  %v1991_v21 = vmul.f32 %v1977_v18, %v1966_v54  ;;  %v2016_v17 = vmul.f32 %v1999_v57, %v1966_v54 }
 0x4ef   : > { %v1961_v10 = vpop.permute.xlu0 %1960 }
 0x4f0   : > { %v1965_v23 = vsel %vm814_vm7, %v1959_v27, %v1961_v10 }
 0x4f1   : > { %v2017_v15 = vmul.f32 %v2003_v49, %v1965_v23  ;;  %v2167_v58 = vpop.permute.xlu1 %2166 }
 0x4f3   : > { %v1963_v30 = vpop.permute.xlu0 %1962  ;;  %v2021_v56 = vsub.f32 %v1991_v21, %v2017_v15 }
 0x4f4   : > { %v1967_v7 = vsel %vm814_vm7, %v1963_v30, %v1957_v59  ;;  %v1964_v1 = vsel %vm814_vm7, %v1961_v10, %v1963_v30 }
 0x4f5   : > { %v1990_v59 = vmul.f32 %v1973_v9, %v1967_v7  ;;  %v1993_v30 = vmul.f32 %v1985_v6, %v1964_v1  ;;  %v2019_v49 = vmul.f32 %v2011_v35, %v1967_v7 }
 0x4f7   : > { %v2037_v37 = vpop.permute.xlu0 %2036  ;;  %v2023_v55 = vsub.f32 %v1993_v30, %v2019_v49 }
 0x4fb   : > { %v2039_v42 = vpop.permute.xlu0 %2038 }
 0x4fc   : > { %v2046_v11 = vsel %vm1078_vm13, %v2037_v37, %v2039_v42 }
 0x4fd   : > { %v2071_v47 = vmul.f32 %v2057_v41, %v2046_v11 }
 0x4ff   : > { %v3790_v4 = vpop.permute.xlu0 %2040 }
 0x500   : > { %v2045_v18 = vsel %vm1078_vm13, %v2039_v42, %v3790_v4  ;;  %v2020_v42 = vsub.f32 %v1990_v59, %v2016_v17 }
 0x503   : > { %v2043_v63 = vpop.permute.xlu0 %2042 }
 0x504   : > { %v2047_v48 = vsel %vm1078_vm13, %v2043_v63, %v2037_v37  ;;  %v2044_v37 = vsel %vm1078_vm13, %v3790_v4, %v2043_v63  ;;  %v2171_v63 = vpop.permute.xlu1 %2170 }
 0x505   : > { %v2070_v57 = vmul.f32 %v2053_v29, %v2047_v48  ;;  %v2072_v29 = vmul.f32 %v2061_v5, %v2045_v18  ;;  %v2073_v60 = vmul.f32 %v2065_v19, %v2044_v37 }
 0x507   : > { %v3792_v44 = vpop.permute.xlu0 %2074 }
 0x508   : > { %v2084_v13 = vsel %vm1302_vm4, %v3792_v44, %v2077_v33 }
 0x509   : > { %v2108_v27 = vmul.f32 %v2091_v62, %v2084_v13 }
 0x50b   : > { %v2079_v2 = vpop.permute.xlu0 %2078  ;;  %v2112_v9 = vsub.f32 %v2070_v57, %v2108_v27  ;;  %v4137_v27 = vld [vmem:[#allocation14_spill] sm:$0xff] }
 0x50c   : > { %v2083_v34 = vsel %vm1302_vm4, %v2077_v33, %v2079_v2  ;;  %v1992_v33 = vmul.f32 %v1981_v46, %v1965_v23  ;;  %v2018_v46 = vmul.f32 %v2007_v40, %v1964_v1  ;;  %v2224_v51 = vsub.s32 %v2221_v25, %v4137_v27 }
 0x50d   : > { %v2109_v24 = vmul.f32 %v2095_v32, %v2083_v34 }
 0x50e   : > { %v2022_v32 = vsub.f32 %v1992_v33, %v2018_v46 }
 0x50f   : > { %v2081_v36 = vpop.permute.xlu0 %2080  ;;  %v2113_v41 = vsub.f32 %v2071_v47, %v2109_v24 }
 0x510   : > { %v2082_v52 = vsel %vm1302_vm4, %v2079_v2, %v2081_v36  ;;  %v2085_v10 = vsel %vm1302_vm4, %v2081_v36, %v3792_v44 }
 0x511   : > { %v2110_v2 = vmul.f32 %v2099_v39, %v2082_v52  ;;  %v2111_v23 = vmul.f32 %v2103_v0, %v2085_v10  ;;  %v2116_v39 = vadd.f32 %v2112_v9, %v2020_v42  ;;  %v2117_v0 = vadd.f32 %v2113_v41, %v2021_v56 }
 0x512   : > { %v4138_v56 = vlaneseq }
 0x513   : > { %v2129_v28 = vpop.permute.xlu0 %2128  ;;  %v2114_v54 = vsub.f32 %v2072_v29, %v2110_v2  ;;  %v2115_v15 = vsub.f32 %v2073_v60, %v2111_v23 }
 0x514   : > { %vm2245_vm0 = vcmp.lt.s32.totalorder %v4138_v56, 512 }
 0x515   : > { %v2118_v17 = vadd.f32 %v2114_v54, %v2022_v32  ;;  %v2119_v48 = vadd.f32 %v2115_v15, %v2023_v55 }
 0x517   : > { %v2131_v3 = vpop.permute.xlu0 %2130 }
 0x518   : > { %v2138_v12 = vsel %vm1166_vm14, %v2129_v28, %v2131_v3  ;;  %v2137_v44 = vsel %vm1166_vm14, %v2131_v3, %v3829_v61 }
 0x519   : > { %v2163_v36 = vmul.f32 %v2149_v8, %v2138_v12  ;;  %v2164_v34 = vmul.f32 %v2153_v38, %v2137_v44 }
 0x51b   : > { %v2135_v45 = vpop.permute.xlu0 %2134 }
 0x51c   : > { %v2139_v4 = vsel %vm1166_vm14, %v2135_v45, %v2129_v28  ;;  %v2136_v35 = vsel %vm1166_vm14, %v3829_v61, %v2135_v45 }
 0x51d   : > { %v2162_v5 = vmul.f32 %v2145_v16, %v2139_v4  ;;  %v2165_v3 = vmul.f32 %v2157_v20, %v2136_v35 }
 0x51f   : > { %v2169_v62 = vpop.permute.xlu0 %2168 }
 0x520   : > { %v2175_v6 = vsel %vm1214_vm15, %v2169_v62, %v2171_v63  ;;  %v2176_v40 = vsel %vm1214_vm15, %v2167_v58, %v2169_v62 }
 0x521   : > { %v2200_v19 = vmul.f32 %v2183_v43, %v2176_v40  ;;  %v2201_v28 = vmul.f32 %v2187_v26, %v2175_v6 }
 0x523   : > { %v2204_v8 = vsub.f32 %v2162_v5, %v2200_v19  ;;  %v2205_v7 = vsub.f32 %v2163_v36, %v2201_v28  ;;  %v2173_v13 = vpop.permute.xlu0 %2172 }
 0x524   : > { %v2174_v61 = vsel %vm1214_vm15, %v2171_v63, %v2173_v13  ;;  %v2177_v16 = vsel %vm1214_vm15, %v2173_v13, %v2167_v58 }
 0x525   : > { %v2208_v43 = vadd.f32 %v2204_v8, %v2116_v39  ;;  %v2209_v11 = vadd.f32 %v2205_v7, %v2117_v0  ;;  %v2202_v26 = vmul.f32 %v2191_v53, %v2174_v61  ;;  %v2203_v21 = vmul.f32 %v2195_v14, %v2177_v16  ;;  %v2212_v14 = vld [vmem:[%s389_s24] sm:$0xf] }
 0x527   : > { %v2206_v1 = vsub.f32 %v2164_v34, %v2202_v26  ;;  %v2207_v59 = vsub.f32 %v2165_v3, %v2203_v21  ;;  %v2217_v31 = vcombine.low %v2208_v43, %v2209_v11 }
 0x529   : > { %v2210_v38 = vadd.f32 %v2206_v1, %v2118_v17  ;;  %v2211_v20 = vadd.f32 %v2207_v59, %v2119_v48  ;;  %v2225_v22 = vrot.slane %v2217_v31, %v2224_v51 }
 0x52b   : > { %v2218_v24 = vcombine.low %v2210_v38, %v2211_v20 }
 0x52d   : > { %v2232_v53 = vrot.slane %v2218_v24, %v2224_v51 }
 0x52f   : > { %v2233_v58 = vcombine.low %v2225_v22, %v2232_v53 }
 0x531   : > { %v2240_v33 = vrot.slane %v2233_v58, %v2224_v51 }
 0x533   : > { %v2242_v50 = vadd.f32 %v2240_v33, %v2212_v14 }
 0x535   : > { %2247 = vst.msk [vmem:[%s397_s25] sm:$0xf] %vm2245_vm0, %v2242_v50 }
 0x536 PF: > { %s19_s13 = sadd.s32 1, %s2525_s13   ;;  %s4139_s30 = smov %s2517_s11 }
 0x537   : > { %p16_p7 = scmp.ge.s32.totalorder %s19_s13, 8   ;;  %s4140_s10 = smov %s2521_s12 }
 0x538   : > { %s4141_s11 = smov %s4144_s14  ;;  %s4142_s12 = smov %s4148_s15 }
 0x539   :  { %18 = sbr.rel (!%p16_p7) target bundleno = 3 (0x3), region = 114 }

// kernel: convgru3d_forward.6
= control target key start
LH: loop header
LB: loop body
LE: loop exit
PB: predicated region body
PF: predicated region fallthrough
CT: control target
= control target key end

     0   :  { %s3730_s13 = smov 0   ;;  %s3732_s14 = smov 0   ;;  %s5176_s0 = inlined_call_operand.vmem [shape: f32[2,3,24,512], index: 0, kind: input, shape index: {}]   ;;  %s5177_s1 = inlined_call_operand.vmem [shape: f32[27,512], index: 1, kind: input, shape index: {}]   ;;  %s5178_s2 = inlined_call_operand.vmem [shape: bf16[16,216], index: 2, kind: input, shape index: {}]   ;;  %s5179_s3 = inlined_call_operand.vmem [shape: f32[16,1], index: 3, kind: input, shape index: {}]   ;;  %s5180_s4 = inlined_call_operand.vmem [shape: bf16[16,16], index: 4, kind: input, shape index: {}]   ;;  %s5181_s5 = inlined_call_operand.vmem [shape: f32[16,1], index: 5, kind: input, shape index: {}]   ;;  %s5182_s6 = inlined_call_operand.vmem [shape: bf16[8,216], index: 6, kind: input, shape index: {}]   ;;  %s5183_s7 = inlined_call_operand.vmem [shape: f32[8,1], index: 7, kind: input, shape index: {}]   ;;  %s5184_s8 = inlined_call_operand.vmem [shape: bf16[8,8], index: 8, kind: input, shape index: {}]   ;;  %s5185_s9 = inlined_call_operand.vmem [shape: f32[8,1], index: 9, kind: input, shape index: {}]   ;;  %s5186_s10 = inlined_call_operand.vmem [shape: f32[2,3,8,512], index: 10, kind: output, shape index: {}]  }
   0x1   :  { %s3734_s15 = smov 0   ;;  %s3736_s16 = smov 0  }
   0x2   :  { %s3738_s17 = smov 0  }
   0x3 LB: > { %s29_s18 = sadd.s32 1, %s3646_s15  ;;  %s32_s19 = sadd.s32 1, %s3650_s16  ;;  %s3654_s17 = sphi %s3738_s17, %s20_s17   ;;  %s3650_s16 = sphi %s3736_s16, %s5362_s16   ;;  %s3646_s15 = sphi %s3734_s15, %s5361_s15   ;;  %s3642_s14 = sphi %s3732_s14, %s5360_s14   ;;  %s3638_s13 = sphi %s3730_s13, %s5359_s13  }
   0x4   : > { %p30_p0 = scmp.ge.s32.totalorder %s29_s18, 3  ;;  %p3414_p1 = scmp.ge.s32.totalorder %s3654_s17, 1 }
   0x5   : > { %p332_p2 = scmp.lt.s32.totalorder %s3654_s17, 7 }
   0x6   : > { %s5364_s18 = smov (%p30_p0, %s29_s18), 0  ;;  %s5366_s19 = smov (!%p30_p0, %s32_s19), %s3650_s16 }
   0x7   : > { %5239 = sst [smem:[#allocation4_spill]] %s5364_s18  ;;  %p333_p3 = pnand %p3414_p1, %p332_p2 }
   0x8   : > { %p34_p4 = scmp.ge.s32.totalorder %s5366_s19, 2 }
   0x9   : > { %336 = sbr.rel (%p333_p3) target bundleno = 1522 (0x5f2), region = 60 }
   0xa   : > { %s5368_s19 = smov (%p34_p4, %s5366_s19), 0 }
   0xb   : > { %5240 = sst [smem:[#allocation5_spill]] %s5368_s19 }
  0x10   : > { %p378_p5 = scmp.lt.s32.totalorder %s3642_s14, 1  ;;  %p380_p6 = scmp.lt.s32.totalorder %s3638_s13, 2 }
  0x11   : > { %p3418_p7 = scmp.ne.s32.totalorder %s3638_s13, 0 }
  0x12   : > { %s5370_s14 = smov (!%p378_p5, %s3642_s14), 1  ;;  %v3656_v0 = vmov (!%p3418_p7), 0.0  }
  0x13   : > { %s381_s20 = scalar_select %p380_p6, %s3638_s13, 2 }
  0x14   : > { %s3491_s21 = smul.u32 36, %s5370_s14  ;;  %401 = vst [vmem:[#allocation2] sm:$0xff] (!%p3418_p7), %v3656_v0  ;;  %402 = vst [vmem:[#allocation2 + $0x8] sm:$0xff] (!%p3418_p7), %v3656_v0 }
  0x15   : > { %s3490_s22 = smul.u32 12, %s381_s20  ;;  %s3416_s23 = sshll.u32 %s381_s20, 2  ;;  %403 = vst [vmem:[#allocation2 + $0x10] sm:$0xff] (!%p3418_p7), %v3656_v0  ;;  %404 = vst [vmem:[#allocation2 + $0x18] sm:$0xff] (!%p3418_p7), %v3656_v0 }
  0x16   : > { %s3492_s24 = smul.u32 12, %s5370_s14 }
  0x17   : > { %s384_s25 = sadd.s32 %s3491_s21, %s3490_s22  ;;  %400 = sbr.rel (%p3418_p7) target bundleno = 30 (0x1e), region = 64 }
  0x18   : > { %s3415_s26 = sshll.u32 %s384_s25, 3  ;;  %s393_s27 = sadd.s32 %s3492_s24, %s3416_s23 }
  0x19   : > { %s3767_s30 = scalar_lea.vmem %s5176_s0, %s3415_s26  ;;  %s3417_s11 = sshll.u32 %s393_s27, 3 }
  0x1a   : > { %s3772_s18 = scalar_lea.vmem %s5186_s10, %s3417_s11 }
  0x1e PF: > { %v3775_v1 = vld [vmem:[#allocation2 + $0x10] sm:$0xff]  ;;  %v3777_v2 = vld [vmem:[#allocation2] sm:$0xff]  ;;  %s3657_s14 = smov 73   ;;  %v3783_v3 = vld [vmem:[#allocation2 + $0x18] sm:$0xff]  ;;  %s3658_s13 = smov 72   ;;  %v429_v5 = vlaneseq  ;;  %vm1640_vm4 = vcmask 719872  }
  0x1f   : > { %425 = vrot.lane.b32.xlu1 %v3775_v1, %s3657_s14  ;;  %421 = vrot.lane.b32.xlu0 %v3777_v2, %s3657_s14  ;;  %v3785_v4 = vld [vmem:[#allocation2 + $0x8] sm:$0xff]  ;;  %s3659_s19 = smov 71   ;;  %s3660_s20 = smov 65  }
  0x20   : > { %s3661_s21 = smov 64   ;;  %s5209_s22 = smov 63   ;;  %v439_v6 = vshrl.u32 %v429_v5, 7  ;;  %v3899_v7 = vand.u32 127, %v429_v5 }
  0x21   : > { %s5205_s23 = smov 57   ;;  %s5203_s24 = smov 56   ;;  %v3435_v11 = vld [vmem:[%s5177_s1 + $0x42] ss:$8 sm:$0xf] }
  0x22   : > { %s5197_s25 = smov 55   ;;  %s5195_s26 = smov 9   ;;  %v3901_v10 = vsub.s32 3, %v439_v6  ;;  %v3906_v12 = vsub.s32 1, %v439_v6  ;;  %v3917_v14 = vsub.s32 0, %v439_v6  ;;  %vm431_vm0 = vcmp.lt.s32.totalorder %v3899_v7, 73 }
  0x23   : > { %427 = vrot.lane.b32.xlu1 %v3783_v3, %s3657_s14  ;;  %423 = vrot.lane.b32.xlu0 %v3785_v4, %s3657_s14  ;;  %s5193_s27 = smov 8   ;;  %s5189_s28 = smov 7   ;;  %v3911_v13 = vld [vmem:[%s5177_s1] ss:$8 sm:$0xf]  ;;  %v3927_v20 = vsub.s32 2, %v439_v6 }
  0x24   : > { %s5187_s29 = smov 1   ;;  %s5191_s11 = smov 127   ;;  %v3419_v15 = vld [vmem:[%s5177_s1 + $0x1] ss:$8 sm:$0xf]  ;;  %v1192_v17 = vrot.slane %v3435_v11, %v3901_v10  ;;  %v1184_v21 = vrot.slane %v3435_v11, %v3906_v12  ;;  %v445_v23 = vrot.slane %v3911_v13, %v3906_v12  ;;  %vm474_vm1 = vcmp.lt.s32.totalorder %v3899_v7, 72 }
  0x25   : > { %s5201_s12 = smov 121   ;;  %v3436_v16 = vld [vmem:[%s5177_s1 + $0x43] ss:$8 sm:$0xf]  ;;  %v489_v24 = vrot.slane %v3419_v15, %v3906_v12  ;;  %v1180_v26 = vrot.slane %v3435_v11, %v3917_v14  ;;  %v441_v29 = vrot.slane %v3911_v13, %v3917_v14  ;;  %v485_v30 = vrot.slane %v3419_v15, %v3917_v14 }
  0x26   : > { %v1223_v22 = vrot.slane %v3436_v16, %v3901_v10  ;;  %v1211_v27 = vrot.slane %v3436_v16, %v3917_v14  ;;  %v1215_v28 = vrot.slane %v3436_v16, %v3906_v12  ;;  %v453_v31 = vrot.slane %v3911_v13, %v3901_v10 }
  0x27   : > { %468 = vrot.lane.b32.xlu1 %v3785_v4, %s3658_s13  ;;  %466 = vrot.lane.b32.xlu0 %v3777_v2, %s3658_s13  ;;  %v497_v36 = vrot.slane %v3419_v15, %v3901_v10  ;;  %v1188_v37 = vrot.slane %v3435_v11, %v3927_v20  ;;  %v1219_v41 = vrot.slane %v3436_v16, %v3927_v20  ;;  %vm518_vm2 = vcmp.lt.s32.totalorder %v3899_v7, 71 }
  0x28   : > { %v449_v47 = vrot.slane %v3911_v13, %v3927_v20  ;;  %v493_v48 = vrot.slane %v3419_v15, %v3927_v20  ;;  %vm562_vm3 = vcmp.lt.s32.totalorder %v3899_v7, 65  ;;  %vm606_vm5 = vcmp.lt.s32.totalorder %v3899_v7, 64 }
  0x29   : > { %vm650_vm6 = vcmp.lt.s32.totalorder %v3899_v7, 63  ;;  %vm694_vm7 = vcmp.lt.s32.totalorder %v3899_v7, 57  ;;  %vm738_vm8 = vcmp.lt.s32.totalorder %v3899_v7, 56  ;;  %vm782_vm9 = vcmp.lt.s32.totalorder %v3899_v7, 55 }
  0x2a   : > { %vm826_vm10 = vcmp.lt.s32.totalorder %v3899_v7, 9  ;;  %vm870_vm11 = vcmp.lt.s32.totalorder %v3899_v7, 8  ;;  %vm914_vm12 = vcmp.lt.s32.totalorder %v3899_v7, 7  ;;  %vm958_vm13 = vcmp.lt.s32.totalorder %v3899_v7, 1 }
  0x2b   : > { %472 = vrot.lane.b32.xlu1 %v3783_v3, %s3658_s13  ;;  %470 = vrot.lane.b32.xlu0 %v3775_v1, %s3658_s13  ;;  %vm5222_vm14 = vcmp.lt.s32.totalorder %v3899_v7, 121  ;;  %vm5223_vm15 = vcmp.lt.s32.totalorder %v3899_v7, 127 }
  0x2f   : > { %512 = vrot.lane.b32.xlu1 %v3785_v4, %s3659_s19  ;;  %510 = vrot.lane.b32.xlu0 %v3777_v2, %s3659_s19 }
  0x33   : > { %516 = vrot.lane.b32.xlu1 %v3783_v3, %s3659_s19  ;;  %514 = vrot.lane.b32.xlu0 %v3775_v1, %s3659_s19 }
  0x37   : > { %556 = vrot.lane.b32.xlu1 %v3785_v4, %s3660_s20  ;;  %554 = vrot.lane.b32.xlu0 %v3777_v2, %s3660_s20 }
  0x3b   : > { %560 = vrot.lane.b32.xlu1 %v3783_v3, %s3660_s20  ;;  %558 = vrot.lane.b32.xlu0 %v3775_v1, %s3660_s20 }
  0x3f   : > { %600 = vrot.lane.b32.xlu1 %v3785_v4, %s3661_s21  ;;  %598 = vrot.lane.b32.xlu0 %v3777_v2, %s3661_s21 }
  0x43   : > { %604 = vrot.lane.b32.xlu1 %v3783_v3, %s3661_s21  ;;  %602 = vrot.lane.b32.xlu0 %v3775_v1, %s3661_s21 }
  0x47   : > { %644 = vrot.lane.b32.xlu1 %v3785_v4, %s5209_s22  ;;  %642 = vrot.lane.b32.xlu0 %v3777_v2, %s5209_s22 }
  0x4b   : > { %648 = vrot.lane.b32.xlu1 %v3783_v3, %s5209_s22  ;;  %646 = vrot.lane.b32.xlu0 %v3775_v1, %s5209_s22 }
  0x4f   : > { %688 = vrot.lane.b32.xlu1 %v3785_v4, %s5205_s23  ;;  %686 = vrot.lane.b32.xlu0 %v3777_v2, %s5205_s23 }
  0x53   : > { %692 = vrot.lane.b32.xlu1 %v3783_v3, %s5205_s23  ;;  %690 = vrot.lane.b32.xlu0 %v3775_v1, %s5205_s23  ;;  %s5287_s23 = smov 1  }
  0x57   : > { %732 = vrot.lane.b32.xlu1 %v3785_v4, %s5203_s24  ;;  %730 = vrot.lane.b32.xlu0 %v3777_v2, %s5203_s24 }
  0x5b   : > { %736 = vrot.lane.b32.xlu1 %v3783_v3, %s5203_s24  ;;  %734 = vrot.lane.b32.xlu0 %v3775_v1, %s5203_s24  ;;  %s5288_s24 = smov 127  }
  0x5f   : > { %776 = vrot.lane.b32.xlu1 %v3785_v4, %s5197_s25  ;;  %774 = vrot.lane.b32.xlu0 %v3777_v2, %s5197_s25 }
  0x63   : > { %780 = vrot.lane.b32.xlu1 %v3783_v3, %s5197_s25  ;;  %778 = vrot.lane.b32.xlu0 %v3775_v1, %s5197_s25  ;;  %s5199_s25 = smov 120  }
  0x67   : > { %820 = vrot.lane.b32.xlu1 %v3785_v4, %s5195_s26  ;;  %818 = vrot.lane.b32.xlu0 %v3777_v2, %s5195_s26 }
  0x6b   : > { %824 = vrot.lane.b32.xlu1 %v3783_v3, %s5195_s26  ;;  %822 = vrot.lane.b32.xlu0 %v3775_v1, %s5195_s26  ;;  %s5207_s26 = smov 119  }
  0x6f   : > { %864 = vrot.lane.b32.xlu1 %v3785_v4, %s5193_s27  ;;  %862 = vrot.lane.b32.xlu0 %v3777_v2, %s5193_s27 }
  0x73   : > { %868 = vrot.lane.b32.xlu1 %v3783_v3, %s5193_s27  ;;  %866 = vrot.lane.b32.xlu0 %v3775_v1, %s5193_s27 }
  0x77   : > { %908 = vrot.lane.b32.xlu1 %v3785_v4, %s5189_s28  ;;  %906 = vrot.lane.b32.xlu0 %v3777_v2, %s5189_s28 }
  0x7b   : > { %912 = vrot.lane.b32.xlu1 %v3783_v3, %s5189_s28  ;;  %910 = vrot.lane.b32.xlu0 %v3775_v1, %s5189_s28  ;;  %s5285_s28 = smov 8  }
  0x7f   : > { %952 = vrot.lane.b32.xlu1 %v3785_v4, %s5187_s29  ;;  %950 = vrot.lane.b32.xlu0 %v3777_v2, %s5187_s29 }
  0x83   : > { %956 = vrot.lane.b32.xlu1 %v3783_v3, %s5187_s29  ;;  %954 = vrot.lane.b32.xlu0 %v3775_v1, %s5187_s29  ;;  %s5286_s29 = smov 7  }
  0x87   : > { %1000 = vrot.lane.b32.xlu1 %v3785_v4, %s5191_s11  ;;  %998 = vrot.lane.b32.xlu0 %v3777_v2, %s5191_s11 }
  0x8b   : > { %1004 = vrot.lane.b32.xlu1 %v3783_v3, %s5191_s11  ;;  %1002 = vrot.lane.b32.xlu0 %v3775_v1, %s5191_s11 }
  0x8f   : > { %1044 = vrot.lane.b32.xlu1 %v3785_v4, %s5201_s12  ;;  %1042 = vrot.lane.b32.xlu0 %v3777_v2, %s5201_s12 }
  0x91   : > { %v426_v8 = vpop.permute.xlu1 %425  ;;  %v422_v9 = vpop.permute.xlu0 %421 }
  0x93   : > { %1048 = vrot.lane.b32.xlu1 %v3783_v3, %s5201_s12  ;;  %1046 = vrot.lane.b32.xlu0 %v3775_v1, %s5201_s12  ;;  %s5289_s12 = smov 121  }
  0x95   : > { %v428_v18 = vpop.permute.xlu1 %427  ;;  %v424_v19 = vpop.permute.xlu0 %423 }
  0x96   : > { %v434_v25 = vsel %vm431_vm0, %v422_v9, %v424_v19  ;;  %v435_v32 = vsel %vm431_vm0, %v428_v18, %v422_v9  ;;  %v433_v33 = vsel %vm431_vm0, %v424_v19, %v426_v8  ;;  %v432_v40 = vsel %vm431_vm0, %v426_v8, %v428_v18  ;;  %v3420_v18 = vld [vmem:[%s5177_s1 + $0x2] ss:$8 sm:$0xf]  ;;  %v3437_v19 = vld [vmem:[%s5177_s1 + $0x44] ss:$8 sm:$0xf] }
  0x97   : > { %1088 = vrot.lane.b32.xlu1 %v3785_v4, %s5199_s25  ;;  %1086 = vrot.lane.b32.xlu0 %v3777_v2, %s5199_s25  ;;  %v459_v38 = vmul.f32 %v445_v23, %v434_v25  ;;  %v3964_v43 = vmul.f32 %v1180_v26, %v434_v25  ;;  %v3968_v45 = vmul.f32 %v1192_v17, %v435_v32 }
  0x98   : > { %v3970_v46 = vmul.f32 %v1184_v21, %v433_v33  ;;  %v458_v52 = vmul.f32 %v441_v29, %v435_v32  ;;  %v461_v53 = vmul.f32 %v453_v31, %v432_v40  ;;  %v3983_v58 = vmul.f32 %v1188_v37, %v432_v40  ;;  %v3421_v21 = vld [vmem:[%s5177_s1 + $0x3] ss:$8 sm:$0xf] }
  0x99   : > { %v469_v34 = vpop.permute.xlu1 %468  ;;  %v467_v35 = vpop.permute.xlu0 %466  ;;  %v460_v0 = vmul.f32 %v449_v47, %v433_v33  ;;  %v533_v25 = vrot.slane %v3420_v18, %v3906_v12  ;;  %v1242_v26 = vrot.slane %v3437_v19, %v3917_v14  ;;  %v537_v29 = vrot.slane %v3420_v18, %v3927_v20 }
  0x9a   : > { %v477_v39 = vsel %vm474_vm1, %v467_v35, %v469_v34  ;;  %v541_v33 = vrot.slane %v3420_v18, %v3901_v10 }
  0x9b   : > { %1092 = vrot.lane.b32.xlu1 %v3783_v3, %s5199_s25  ;;  %1090 = vrot.lane.b32.xlu0 %v3775_v1, %s5199_s25  ;;  %v503_v42 = vmul.f32 %v489_v24, %v477_v39  ;;  %v3966_v44 = vmul.f32 %v1211_v27, %v477_v39  ;;  %v529_v27 = vrot.slane %v3420_v18, %v3917_v14 }
  0x9c   : > { %v573_v39 = vrot.slane %v3421_v21, %v3917_v14 }
  0x9d   : > { %v473_v49 = vpop.permute.xlu1 %472  ;;  %v471_v50 = vpop.permute.xlu0 %470  ;;  %v1562_v51 = vpack.c.bf16 %v503_v42, %v459_v38 }
  0x9e   : > { %v478_v55 = vsel %vm474_vm1, %v473_v49, %v467_v35  ;;  %v476_v56 = vsel %vm474_vm1, %v469_v34, %v471_v50  ;;  %v475_v57 = vsel %vm474_vm1, %v471_v50, %v473_v49  ;;  %v1246_v34 = vrot.slane %v3437_v19, %v3906_v12 }
  0x9f   : > { %v3985_v59 = vmul.f32 %v1223_v22, %v478_v55  ;;  %v3987_v60 = vmul.f32 %v1215_v28, %v476_v56  ;;  %1132 = vrot.lane.b32.xlu1 %v3785_v4, %s5207_s26  ;;  %1130 = vrot.lane.b32.xlu0 %v3777_v2, %s5207_s26  ;;  %v502_v61 = vmul.f32 %v485_v30, %v478_v55  ;;  %v3438_v22 = vld [vmem:[%s5177_s1 + $0x45] ss:$8 sm:$0xf] }
  0xa0   : > { %1657 = vmatprep.subr.bf16.mxu0 %v1562_v51  ;;  %v505_v62 = vmul.f32 %v497_v36, %v475_v57  ;;  %v3993_v63 = vmul.f32 %v1219_v41, %v475_v57  ;;  %v504_v5 = vmul.f32 %v493_v48, %v476_v56  ;;  %v1254_v28 = vrot.slane %v3437_v19, %v3901_v10 }
  0xa1   : > { %v513_v6 = vpop.permute.xlu1 %512  ;;  %v511_v8 = vpop.permute.xlu0 %510  ;;  %v1561_v9 = vpack.c.bf16 %v502_v61, %v458_v52  ;;  %v577_v30 = vrot.slane %v3421_v21, %v3906_v12  ;;  %v1273_v31 = vrot.slane %v3438_v22, %v3917_v14  ;;  %v1250_v35 = vrot.slane %v3437_v19, %v3927_v20 }
  0xa2   : > { %v1564_v15 = vpack.c.bf16 %v505_v62, %v461_v53  ;;  %v1563_v16 = vpack.c.bf16 %v504_v5, %v460_v0  ;;  %v521_v32 = vsel %vm518_vm2, %v511_v8, %v513_v6  ;;  %v1285_v40 = vrot.slane %v3438_v22, %v3901_v10 }
  0xa3   : > { %1136 = vrot.lane.b32.xlu1 %v3783_v3, %s5207_s26  ;;  %1134 = vrot.lane.b32.xlu0 %v3775_v1, %s5207_s26  ;;  %v581_v41 = vrot.slane %v3421_v21, %v3927_v20  ;;  %v585_v49 = vrot.slane %v3421_v21, %v3901_v10  ;;  %v547_v50 = vmul.f32 %v533_v25, %v521_v32 }
  0xa4   : > { %1658 = vmatpush1.bf16.msra.mxu0 %v1561_v9  ;;  %1700 = vmatprep.subr.bf16.mxu1 %v1564_v15  ;;  %v4043_v51 = vmul.f32 %v1242_v26, %v521_v32  ;;  %v1277_v57 = vrot.slane %v3438_v22, %v3906_v12  ;;  %v1281_v61 = vrot.slane %v3438_v22, %v3927_v20 }
  0xa5   : > { %1701 = vmatpush1.bf16.msra.mxu1 %v1563_v16  ;;  %v517_v23 = vpop.permute.xlu1 %516  ;;  %v515_v24 = vpop.permute.xlu0 %514 }
  0xa6   : > { %v522_v36 = vsel %vm518_vm2, %v517_v23, %v511_v8  ;;  %v519_v42 = vsel %vm518_vm2, %v515_v24, %v517_v23  ;;  %v520_v47 = vsel %vm518_vm2, %v513_v6, %v515_v24 }
  0xa7   : > { %v546_v55 = vmul.f32 %v529_v27, %v522_v36  ;;  %v4047_v56 = vmul.f32 %v1254_v28, %v522_v36  ;;  %v548_v62 = vmul.f32 %v537_v29, %v520_v47  ;;  %v549_v0 = vmul.f32 %v541_v33, %v519_v42  ;;  %v3556_v28 = vld [vmem:[%s5178_s2 + $0x4] ss:$8 sps:$4 sm:$0xff]  }
  0xa8   : > { %v4053_v15 = vmul.f32 %v1246_v34, %v520_v47  ;;  %v4063_v25 = vmul.f32 %v1250_v35, %v519_v42  ;;  %v3422_v35 = vld [vmem:[%s5177_s1 + $0x4] ss:$8 sm:$0xf]  ;;  %3447 = vmatprep.mubr.msk.bf16.mxu0 %vm1640_vm4, %v3556_v28  ;;  %3449 = vmatprep.mubr.msk.bf16.mxu1 %vm1640_vm4, %v3556_v28  ;;  %v3440_v42 = vld [vmem:[%s5177_s1 + $0x47] ss:$8 sm:$0xf] }
  0xa9   : > { %v557_v37 = vpop.permute.xlu1 %556  ;;  %v555_v38 = vpop.permute.xlu0 %554  ;;  %v5211_v47 = vmov 0  }
  0xaa   : > { %v565_v48 = vsel %vm562_vm3, %v555_v38, %v557_v37  ;;  %3553 = vset.pattern.permute.xlu1 %v5211_v47  ;;  %3552 = vset.pattern.permute.xlu0 %v5211_v47 }
  0xab   : > { %v591_v52 = vmul.f32 %v577_v30, %v565_v48  ;;  %v4045_v53 = vmul.f32 %v1273_v31, %v565_v48 }
  0xad   : > { %v561_v5 = vpop.permute.xlu1 %560  ;;  %v559_v6 = vpop.permute.xlu0 %558  ;;  %v1566_v8 = vpack.c.bf16 %v591_v52, %v547_v50  ;;  %v621_v50 = vrot.slane %v3422_v35, %v3906_v12 }
  0xae   : > { %v566_v16 = vsel %vm562_vm3, %v561_v5, %v555_v38  ;;  %v563_v18 = vsel %vm562_vm3, %v559_v6, %v561_v5  ;;  %v564_v19 = vsel %vm562_vm3, %v557_v37, %v559_v6  ;;  %v4087_v38 = vld [vmem:[%s5177_s1 + $0x46] ss:$8 sm:$0xf]  ;;  %v625_v6 = vrot.slane %v3422_v35, %v3927_v20 }
  0xaf   : > { %v590_v21 = vmul.f32 %v573_v39, %v566_v16  ;;  %v4061_v22 = vmul.f32 %v1285_v40, %v566_v16  ;;  %v592_v23 = vmul.f32 %v581_v41, %v564_v19  ;;  %v593_v24 = vmul.f32 %v585_v49, %v563_v18  ;;  %1659 = vmatprep.subr.bf16.mxu0 %v1566_v8  ;;  %v1620_v39 = vld [vmem:[%s5179_s3 + $0x8] sm:$0xff]  ;;  %v1619_v40 = vld [vmem:[%s5179_s3] sm:$0xff] }
  0xb0   : > { %v4065_v26 = vmul.f32 %v1277_v57, %v564_v19  ;;  %v4067_v27 = vmul.f32 %v1281_v61, %v563_v18  ;;  %v3423_v41 = vld [vmem:[%s5177_s1 + $0x5] ss:$8 sm:$0xf]  ;;  %1628 = vperm.xlu1 %3553, %v1620_v39   ;;  %v1304_v52 = vrot.slane %v4087_v38, %v3917_v14  ;;  %1623 = vperm.xlu0 %3552, %v1619_v40  }
  0xb1   : > { %v601_v29 = vpop.permute.xlu1 %600  ;;  %v599_v30 = vpop.permute.xlu0 %598  ;;  %v1565_v31 = vpack.c.bf16 %v590_v21, %v546_v55  ;;  %v1568_v32 = vpack.c.bf16 %v593_v24, %v549_v0  ;;  %v1567_v33 = vpack.c.bf16 %v592_v23, %v548_v62  ;;  %v617_v55 = vrot.slane %v3422_v35, %v3917_v14  ;;  %v1757_v57 = vld [vmem:[%s5181_s5] sm:$0xff] }
  0xb2   : > { %v609_v61 = vsel %vm606_vm5, %v599_v30, %v601_v29  ;;  %v665_v62 = vrot.slane %v3423_v41, %v3906_v12  ;;  %v1335_v0 = vrot.slane %v3440_v42, %v3917_v14  ;;  %v1316_v5 = vrot.slane %v4087_v38, %v3901_v10 }
  0xb3   : > { %1660 = vmatpush1.bf16.msra.mxu0 %v1565_v31  ;;  %1702 = vmatprep.subr.bf16.mxu1 %v1568_v32  ;;  %v629_v8 = vrot.slane %v3422_v35, %v3901_v10  ;;  %v1308_v16 = vrot.slane %v4087_v38, %v3906_v12  ;;  %v661_v23 = vrot.slane %v3423_v41, %v3917_v14 }
  0xb4   : > { %1703 = vmatpush1.bf16.msra.mxu1 %v1567_v33  ;;  %v1347_v24 = vrot.slane %v3440_v42, %v3901_v10  ;;  %v669_v28 = vrot.slane %v3423_v41, %v3927_v20  ;;  %1761 = vperm.xlu1 %3553, %v1757_v57   ;;  %v635_v31 = vmul.f32 %v621_v50, %v609_v61 }
  0xb5   : > { %v605_v48 = vpop.permute.xlu1 %604  ;;  %v603_v49 = vpop.permute.xlu0 %602  ;;  %v673_v35 = vrot.slane %v3423_v41, %v3901_v10  ;;  %v4131_v39 = vmul.f32 %v1304_v52, %v609_v61  ;;  %v1312_v50 = vrot.slane %v4087_v38, %v3927_v20  ;;  %v1339_v57 = vrot.slane %v3440_v42, %v3906_v12 }
  0xb6   : > { %v610_v18 = vsel %vm606_vm5, %v605_v48, %v599_v30  ;;  %v608_v32 = vsel %vm606_vm5, %v601_v29, %v603_v49  ;;  %v607_v30 = vsel %vm606_vm5, %v603_v49, %v605_v48  ;;  %v1343_v29 = vrot.slane %v3440_v42, %v3927_v20 }
  0xb7   : > { %5241 = vst [vmem:[#allocation6_spill] sm:$0xff] %v4131_v39  ;;  %v634_v37 = vmul.f32 %v617_v55, %v610_v18  ;;  %v4141_v9 = vmul.f32 %v1316_v5, %v610_v18  ;;  %v636_v34 = vmul.f32 %v625_v6, %v608_v32  ;;  %v637_v49 = vmul.f32 %v629_v8, %v607_v30 }
  0xb8   : > { %v4153_v18 = vmul.f32 %v1308_v16, %v608_v32 }
  0xb9   : > { %v645_v19 = vpop.permute.xlu1 %644  ;;  %v643_v21 = vpop.permute.xlu0 %642 }
  0xba   : > { %v653_v33 = vsel %vm650_vm6, %v643_v21, %v645_v19 }
  0xbb   : > { %v679_v40 = vmul.f32 %v665_v62, %v653_v33  ;;  %v4135_v47 = vmul.f32 %v1335_v0, %v653_v33 }
  0xbd   : > { %5242 = vst [vmem:[#allocation7_spill] sm:$0xff] %v4135_v47  ;;  %v649_v41 = vpop.permute.xlu1 %648  ;;  %v647_v52 = vpop.permute.xlu0 %646  ;;  %v1570_v61 = vpack.c.bf16 %v679_v40, %v635_v31  ;;  %v4155_v31 = vmul.f32 %v1312_v50, %v607_v30 }
  0xbe   : > { %v654_v55 = vsel %vm650_vm6, %v649_v41, %v643_v21  ;;  %v651_v38 = vsel %vm650_vm6, %v647_v52, %v649_v41  ;;  %v652_v62 = vsel %vm650_vm6, %v645_v19, %v647_v52 }
  0xbf   : > { %v678_v42 = vmul.f32 %v661_v23, %v654_v55  ;;  %v4151_v0 = vmul.f32 %v1347_v24, %v654_v55  ;;  %v680_v5 = vmul.f32 %v669_v28, %v652_v62  ;;  %v681_v6 = vmul.f32 %v673_v35, %v651_v38  ;;  %1661 = vmatprep.subr.bf16.mxu0 %v1570_v61  ;;  %v3424_v24 = vld [vmem:[%s5177_s1 + $0x6] ss:$8 sm:$0xf]  ;;  %v3442_v28 = vld [vmem:[%s5177_s1 + $0x61] ss:$8 sm:$0xf] }
  0xc0   : > { %5243 = vst [vmem:[#allocation8_spill] sm:$0xff] %v4155_v31  ;;  %v4157_v8 = vmul.f32 %v1339_v57, %v652_v62  ;;  %v4159_v33 = vmul.f32 %v1343_v29, %v651_v38  ;;  %v709_v30 = vrot.slane %v3424_v24, %v3906_v12  ;;  %v705_v57 = vrot.slane %v3424_v24, %v3917_v14 }
  0xc1   : > { %v689_v21 = vpop.permute.xlu1 %688  ;;  %v687_v40 = vpop.permute.xlu0 %686  ;;  %v1569_v41 = vpack.c.bf16 %v678_v42, %v634_v37  ;;  %v1572_v48 = vpack.c.bf16 %v681_v6, %v637_v49  ;;  %v1571_v36 = vpack.c.bf16 %v680_v5, %v636_v34  ;;  %v3441_v37 = vld [vmem:[%s5177_s1 + $0x60] ss:$8 sm:$0xf]  ;;  %v3425_v34 = vld [vmem:[%s5177_s1 + $0x7] ss:$8 sm:$0xf]  ;;  %v1397_v52 = vrot.slane %v3442_v28, %v3917_v14 }
  0xc2   : > { %5244 = vst [vmem:[#allocation9_spill] sm:$0xff] %v4159_v33  ;;  %v1366_v50 = vrot.slane %v3441_v37, %v3917_v14  ;;  %v697_v29 = vsel %vm694_vm7, %v687_v40, %v689_v21  ;;  %v1378_v61 = vrot.slane %v3441_v37, %v3901_v10  ;;  %v717_v49 = vrot.slane %v3424_v24, %v3901_v10 }
  0xc3   : > { %1662 = vmatpush1.bf16.msra.mxu0 %v1569_v41  ;;  %1704 = vmatprep.subr.bf16.mxu1 %v1572_v48  ;;  %v713_v48 = vrot.slane %v3424_v24, %v3927_v20  ;;  %v1370_v55 = vrot.slane %v3441_v37, %v3906_v12  ;;  %v749_v5 = vrot.slane %v3425_v34, %v3917_v14 }
  0xc4   : > { %1705 = vmatpush1.bf16.msra.mxu1 %v1571_v36  ;;  %v753_v36 = vrot.slane %v3425_v34, %v3906_v12  ;;  %v1409_v6 = vrot.slane %v3442_v28, %v3901_v10  ;;  %v757_v41 = vrot.slane %v3425_v34, %v3927_v20  ;;  %v723_v23 = vmul.f32 %v709_v30, %v697_v29 }
  0xc5   : > { %v693_v32 = vpop.permute.xlu1 %692  ;;  %v691_v35 = vpop.permute.xlu0 %690  ;;  %v761_v16 = vrot.slane %v3425_v34, %v3901_v10  ;;  %v4202_v17 = vmul.f32 %v1366_v50, %v697_v29  ;;  %v1374_v31 = vrot.slane %v3441_v37, %v3927_v20  ;;  %v1401_v30 = vrot.slane %v3442_v28, %v3906_v12 }
  0xc6   : > { %v698_v38 = vsel %vm694_vm7, %v693_v32, %v687_v40  ;;  %v696_v19 = vsel %vm694_vm7, %v689_v21, %v691_v35  ;;  %v695_v40 = vsel %vm694_vm7, %v691_v35, %v693_v32  ;;  %v1405_v21 = vrot.slane %v3442_v28, %v3927_v20 }
  0xc7   : > { %5245 = vst [vmem:[#allocation10_spill] sm:$0xff] %v4202_v17  ;;  %v722_v11 = vmul.f32 %v705_v57, %v698_v38  ;;  %v4211_v33 = vmul.f32 %v1378_v61, %v698_v38  ;;  %v724_v39 = vmul.f32 %v713_v48, %v696_v19  ;;  %v725_v32 = vmul.f32 %v717_v49, %v695_v40 }
  0xc9   : > { %v733_v62 = vpop.permute.xlu1 %732  ;;  %v731_v42 = vpop.permute.xlu0 %730  ;;  %5247 = vst [vmem:[#allocation12_spill] sm:$0xff] %v4211_v33 }
  0xca   : > { %v741_v24 = vsel %vm738_vm8, %v731_v42, %v733_v62 }
  0xcb   : > { %v767_v54 = vmul.f32 %v753_v36, %v741_v24  ;;  %v4206_v13 = vmul.f32 %v1397_v52, %v741_v24 }
  0xcd   : > { %5246 = vst [vmem:[#allocation11_spill] sm:$0xff] %v4206_v13  ;;  %v737_v47 = vpop.permute.xlu1 %736  ;;  %v735_v34 = vpop.permute.xlu0 %734  ;;  %v1574_v50 = vpack.c.bf16 %v767_v54, %v723_v23  ;;  %v4223_v54 = vmul.f32 %v1370_v55, %v696_v19  ;;  %v4225_v23 = vmul.f32 %v1374_v31, %v695_v40  ;;  %v3426_v31 = vld [vmem:[%s5177_s1 + $0x20] ss:$8 sm:$0xf] }
  0xce   : > { %v742_v35 = vsel %vm738_vm8, %v737_v47, %v731_v42  ;;  %v739_v37 = vsel %vm738_vm8, %v735_v34, %v737_v47  ;;  %v740_v57 = vsel %vm738_vm8, %v733_v62, %v735_v34  ;;  %v793_v40 = vrot.slane %v3426_v31, %v3917_v14 }
  0xcf   : > { %v766_v28 = vmul.f32 %v749_v5, %v742_v35  ;;  %v4221_v36 = vmul.f32 %v1409_v6, %v742_v35  ;;  %v768_v52 = vmul.f32 %v757_v41, %v740_v57  ;;  %v769_v61 = vmul.f32 %v761_v16, %v739_v37  ;;  %1663 = vmatprep.subr.bf16.mxu0 %v1574_v50 }
  0xd0   : > { %5248 = vst [vmem:[#allocation13_spill] sm:$0xff] %v4225_v23  ;;  %v4227_v48 = vmul.f32 %v1401_v30, %v740_v57  ;;  %v4229_v49 = vmul.f32 %v1405_v21, %v739_v37  ;;  %v797_v5 = vrot.slane %v3426_v31, %v3906_v12  ;;  %v801_v30 = vrot.slane %v3426_v31, %v3927_v20 }
  0xd1   : > { %v777_v38 = vpop.permute.xlu1 %776  ;;  %v775_v42 = vpop.permute.xlu0 %774  ;;  %v1573_v47 = vpack.c.bf16 %v766_v28, %v722_v11  ;;  %v1576_v24 = vpack.c.bf16 %v769_v61, %v725_v32  ;;  %v1575_v29 = vpack.c.bf16 %v768_v52, %v724_v39  ;;  %v3427_v11 = vld [vmem:[%s5177_s1 + $0x21] ss:$8 sm:$0xf]  ;;  %v805_v21 = vrot.slane %v3426_v31, %v3901_v10 }
  0xd2   : > { %5249 = vst [vmem:[#allocation14_spill] sm:$0xff] %v4229_v49  ;;  %v841_v6 = vrot.slane %v3427_v11, %v3906_v12  ;;  %v4249_v41 = vsel %vm782_vm9, %v775_v42, %v777_v38  ;;  %v837_v35 = vrot.slane %v3427_v11, %v3917_v14  ;;  %v845_v37 = vrot.slane %v3427_v11, %v3927_v20 }
  0xd3   : > { %1664 = vmatpush1.bf16.msra.mxu0 %v1573_v47  ;;  %1706 = vmatprep.subr.bf16.mxu1 %v1576_v24  ;;  %v811_v57 = vmul.f32 %v797_v5, %v4249_v41  ;;  %v849_v61 = vrot.slane %v3427_v11, %v3901_v10 }
  0xd4   : > { %1707 = vmatpush1.bf16.msra.mxu1 %v1575_v29 }
  0xd5   : > { %v781_v39 = vpop.permute.xlu1 %780  ;;  %v779_v55 = vpop.permute.xlu0 %778 }
  0xd6   : > { %v4256_v29 = vsel %vm782_vm9, %v781_v39, %v775_v42  ;;  %v4265_v28 = vsel %vm782_vm9, %v777_v38, %v779_v55  ;;  %v4270_v42 = vsel %vm782_vm9, %v779_v55, %v781_v39 }
  0xd7   : > { %v810_v47 = vmul.f32 %v793_v40, %v4256_v29  ;;  %v812_v62 = vmul.f32 %v801_v30, %v4265_v28 }
  0xd9   : > { %v821_v34 = vpop.permute.xlu1 %820  ;;  %v819_v50 = vpop.permute.xlu0 %818 }
  0xda   : > { %v829_v32 = vsel %vm826_vm10, %v819_v50, %v821_v34 }
  0xdb   : > { %v855_v52 = vmul.f32 %v841_v6, %v829_v32  ;;  %v813_v6 = vmul.f32 %v805_v21, %v4270_v42  ;;  %v3429_v21 = vld [vmem:[%s5177_s1 + $0x23] ss:$8 sm:$0xf] }
  0xdd   : > { %v825_v24 = vpop.permute.xlu1 %824  ;;  %v823_v31 = vpop.permute.xlu0 %822  ;;  %v1578_v19 = vpack.c.bf16 %v855_v52, %v811_v57 }
  0xde   : > { %v830_v5 = vsel %vm826_vm10, %v825_v24, %v819_v50  ;;  %v827_v38 = vsel %vm826_vm10, %v823_v31, %v825_v24  ;;  %v828_v11 = vsel %vm826_vm10, %v821_v34, %v823_v31  ;;  %v3428_v50 = vld [vmem:[%s5177_s1 + $0x22] ss:$8 sm:$0xf] }
  0xdf   : > { %v854_v39 = vmul.f32 %v837_v35, %v830_v5  ;;  %v856_v55 = vmul.f32 %v845_v37, %v828_v11  ;;  %v857_v32 = vmul.f32 %v849_v61, %v827_v38  ;;  %1665 = vmatprep.subr.bf16.mxu0 %v1578_v19  ;;  %v885_v35 = vrot.slane %v3428_v50, %v3906_v12 }
  0xe0   : > { %v881_v61 = vrot.slane %v3428_v50, %v3917_v14  ;;  %v893_v24 = vrot.slane %v3428_v50, %v3901_v10 }
  0xe1   : > { %v865_v40 = vpop.permute.xlu1 %864  ;;  %v863_v16 = vpop.permute.xlu0 %862  ;;  %v1577_v57 = vpack.c.bf16 %v854_v39, %v810_v47  ;;  %v1580_v52 = vpack.c.bf16 %v857_v32, %v813_v6  ;;  %v1579_v30 = vpack.c.bf16 %v856_v55, %v812_v62  ;;  %v929_v62 = vrot.slane %v3429_v21, %v3906_v12  ;;  %v3430_v55 = vld [vmem:[%s5177_s1 + $0x24] ss:$8 sm:$0xf] }
  0xe2   : > { %v873_v37 = vsel %vm870_vm11, %v863_v16, %v865_v40  ;;  %v889_v47 = vrot.slane %v3428_v50, %v3927_v20  ;;  %v925_v6 = vrot.slane %v3429_v21, %v3917_v14  ;;  %v933_v39 = vrot.slane %v3429_v21, %v3927_v20 }
  0xe3   : > { %1666 = vmatpush1.bf16.msra.mxu0 %v1577_v57  ;;  %1708 = vmatprep.subr.bf16.mxu1 %v1580_v52  ;;  %v899_v32 = vmul.f32 %v885_v35, %v873_v37  ;;  %v973_v13 = vrot.slane %v3430_v55, %v3906_v12 }
  0xe4   : > { %1709 = vmatpush1.bf16.msra.mxu1 %v1579_v30  ;;  %v937_v30 = vrot.slane %v3429_v21, %v3901_v10 }
  0xe5   : > { %v869_v34 = vpop.permute.xlu1 %868  ;;  %v867_v19 = vpop.permute.xlu0 %866 }
  0xe6   : > { %v874_v38 = vsel %vm870_vm11, %v869_v34, %v863_v16  ;;  %v872_v57 = vsel %vm870_vm11, %v865_v40, %v867_v19  ;;  %v871_v16 = vsel %vm870_vm11, %v867_v19, %v869_v34 }
  0xe7   : > { %v898_v50 = vmul.f32 %v881_v61, %v874_v38  ;;  %v900_v33 = vmul.f32 %v889_v47, %v872_v57 }
  0xe9   : > { %v909_v31 = vpop.permute.xlu1 %908  ;;  %v907_v5 = vpop.permute.xlu0 %906 }
  0xea   : > { %v917_v11 = vsel %vm914_vm12, %v907_v5, %v909_v31 }
  0xeb   : > { %v943_v52 = vmul.f32 %v929_v62, %v917_v11  ;;  %v901_v62 = vmul.f32 %v893_v24, %v871_v16 }
  0xed   : > { %v913_v23 = vpop.permute.xlu1 %912  ;;  %v911_v49 = vpop.permute.xlu0 %910  ;;  %v1582_v17 = vpack.c.bf16 %v943_v52, %v899_v32 }
  0xee   : > { %v918_v35 = vsel %vm914_vm12, %v913_v23, %v907_v5  ;;  %v915_v40 = vsel %vm914_vm12, %v911_v49, %v913_v23  ;;  %v916_v21 = vsel %vm914_vm12, %v909_v31, %v911_v49  ;;  %v969_v5 = vrot.slane %v3430_v55, %v3917_v14 }
  0xef   : > { %v942_v34 = vmul.f32 %v925_v6, %v918_v35  ;;  %v944_v19 = vmul.f32 %v933_v39, %v916_v21  ;;  %v945_v37 = vmul.f32 %v937_v30, %v915_v40  ;;  %1667 = vmatprep.subr.bf16.mxu0 %v1582_v17  ;;  %v977_v23 = vrot.slane %v3430_v55, %v3927_v20 }
  0xf0   : > { %v981_v49 = vrot.slane %v3430_v55, %v3901_v10 }
  0xf1   : > { %v953_v61 = vpop.permute.xlu1 %952  ;;  %v951_v38 = vpop.permute.xlu0 %950  ;;  %v1581_v11 = vpack.c.bf16 %v942_v34, %v898_v50  ;;  %v1584_v32 = vpack.c.bf16 %v945_v37, %v901_v62  ;;  %v1583_v52 = vpack.c.bf16 %v944_v19, %v900_v33  ;;  %v3432_v34 = vld [vmem:[%s5177_s1 + $0x27] ss:$8 sm:$0xf]  ;;  %v3431_v19 = vld [vmem:[%s5177_s1 + $0x26] ss:$8 sm:$0xf] }
  0xf2   : > { %v961_v47 = vsel %vm958_vm13, %v951_v38, %v953_v61 }
  0xf3   : > { %v987_v57 = vmul.f32 %v973_v13, %v961_v47  ;;  %1668 = vmatpush1.bf16.msra.mxu0 %v1581_v11  ;;  %1710 = vmatprep.subr.bf16.mxu1 %v1584_v32  ;;  %v1061_v32 = vrot.slane %v3432_v34, %v3917_v14  ;;  %v1073_v47 = vrot.slane %v3432_v34, %v3901_v10 }
  0xf4   : > { %1711 = vmatpush1.bf16.msra.mxu1 %v1583_v52 }
  0xf5   : > { %v957_v24 = vpop.permute.xlu1 %956  ;;  %v955_v17 = vpop.permute.xlu0 %954  ;;  %v1586_v31 = vpack.c.bf16 %v3785_v4, %v987_v57  ;;  %v1069_v57 = vrot.slane %v3432_v34, %v3927_v20 }
  0xf6   : > { %v962_v33 = vsel %vm958_vm13, %v957_v24, %v951_v38  ;;  %v959_v6 = vsel %vm958_vm13, %v955_v17, %v957_v24  ;;  %v960_v13 = vsel %vm958_vm13, %v953_v61, %v955_v17  ;;  %v1025_v38 = vrot.slane %v3431_v19, %v3927_v20 }
  0xf7   : > { %v986_v39 = vmul.f32 %v969_v5, %v962_v33  ;;  %v988_v30 = vmul.f32 %v977_v23, %v960_v13  ;;  %v989_v16 = vmul.f32 %v981_v49, %v959_v6  ;;  %1669 = vmatprep.subr.bf16.mxu0 %v1586_v31  ;;  %v1065_v5 = vrot.slane %v3432_v34, %v3906_v12 }
  0xf8   : > { %v1017_v23 = vrot.slane %v3431_v19, %v3917_v14 }
  0xf9   : > { %v1001_v50 = vpop.permute.xlu1 %1000  ;;  %v999_v55 = vpop.permute.xlu0 %998  ;;  %v1585_v35 = vpack.c.bf16 %v3777_v2, %v986_v39  ;;  %v1588_v40 = vpack.c.bf16 %v3783_v3, %v989_v16  ;;  %v1587_v4 = vpack.c.bf16 %v3775_v1, %v988_v30  ;;  %v1029_v2 = vrot.slane %v3431_v19, %v3901_v10 }
  0xfa   : > { %v1021_v1 = vrot.slane %v3431_v19, %v3906_v12  ;;  %v1009_v24 = vsel %vm5223_vm15, %v999_v55, %v1001_v50 }
  0xfb   : > { %1670 = vmatpush1.bf16.msra.mxu0 %v1585_v35  ;;  %1712 = vmatprep.subr.bf16.mxu1 %v1588_v40 }
  0xfc   : > { %1713 = vmatpush1.bf16.msra.mxu1 %v1587_v4 }
  0xfd   : > { %v1005_v21 = vpop.permute.xlu1 %1004  ;;  %v1003_v62 = vpop.permute.xlu0 %1002 }
  0xfe   : > { %v1010_v61 = vsel %vm5223_vm15, %v1005_v21, %v999_v55  ;;  %v1008_v11 = vsel %vm5223_vm15, %v1001_v50, %v1003_v62  ;;  %v1007_v49 = vsel %vm5223_vm15, %v1003_v62, %v1005_v21  ;;  %v1034_v62 = vmul.f32 %v1017_v23, %v1009_v24 }
  0xff   : > { %v1037_v17 = vmul.f32 %v1029_v2, %v1010_v61  ;;  %v1035_v31 = vmul.f32 %v1021_v1, %v1008_v11  ;;  %v1036_v35 = vmul.f32 %v1025_v38, %v1007_v49  ;;  %v3433_v38 = vld [vmem:[%s5177_s1 + $0x40] ss:$8 sm:$0xf]  ;;  %vm1094_vm15 = vcmp.lt.s32.totalorder %v3899_v7, 120 }
 0x100   : > { %v1117_v11 = vrot.slane %v3433_v38, %v3901_v10 }
 0x101   : > { %v1045_v3 = vpop.permute.xlu1 %1044  ;;  %v1043_v37 = vpop.permute.xlu0 %1042 }
 0x102   : > { %v1053_v52 = vsel %vm5222_vm14, %v1043_v37, %v1045_v3 }
 0x103   : > { %v1078_v13 = vmul.f32 %v1061_v32, %v1053_v52  ;;  %v1109_v32 = vrot.slane %v3433_v38, %v3906_v12 }
 0x105   : > { %v1049_v33 = vpop.permute.xlu1 %1048  ;;  %v1047_v6 = vpop.permute.xlu0 %1046  ;;  %v1589_v1 = vpack.c.bf16 %v1078_v13, %v1034_v62 }
 0x106   : > { %v1054_v39 = vsel %vm5222_vm14, %v1049_v33, %v1043_v37  ;;  %v1051_v30 = vsel %vm5222_vm14, %v1047_v6, %v1049_v33  ;;  %v1052_v16 = vsel %vm5222_vm14, %v1045_v3, %v1047_v6  ;;  %v3434_v3 = vld [vmem:[%s5177_s1 + $0x41] ss:$8 sm:$0xf]  ;;  %vm5224_vm14 = vcmp.lt.s32.totalorder %v3899_v7, 119 }
 0x107   : > { %v1081_v40 = vmul.f32 %v1073_v47, %v1054_v39  ;;  %v1079_v4 = vmul.f32 %v1065_v5, %v1052_v16  ;;  %v1080_v21 = vmul.f32 %v1069_v57, %v1051_v30  ;;  %v1113_v57 = vrot.slane %v3433_v38, %v3927_v20 }
 0x108   : > { %v1149_v49 = vrot.slane %v3434_v3, %v3917_v14  ;;  %v1157_v33 = vrot.slane %v3434_v3, %v3927_v20  ;;  %v1105_v6 = vrot.slane %v3433_v38, %v3917_v14 }
 0x109   : > { %v1089_v50 = vpop.permute.xlu1 %1088  ;;  %v1087_v55 = vpop.permute.xlu0 %1086  ;;  %v1590_v34 = vpack.c.bf16 %v1079_v4, %v1035_v31  ;;  %v1592_v19 = vpack.c.bf16 %v1081_v40, %v1037_v17  ;;  %v1591_v2 = vpack.c.bf16 %v1080_v21, %v1036_v35  ;;  %v1161_v17 = vrot.slane %v3434_v3, %v3901_v10 }
 0x10a   : > { %v1153_v31 = vrot.slane %v3434_v3, %v3906_v12  ;;  %v1097_v39 = vsel %vm1094_vm15, %v1087_v55, %v1089_v50 }
 0x10b   : > { %1671 = vmatprep.subr.bf16.mxu0 %v1590_v34  ;;  %1714 = vmatprep.subr.bf16.mxu1 %v1592_v19 }
 0x10c   : > { %1672 = vmatpush1.bf16.msra.mxu0 %v1589_v1  ;;  %1715 = vmatpush1.bf16.msra.mxu1 %v1591_v2 }
 0x10d   : > { %v1093_v37 = vpop.permute.xlu1 %1092  ;;  %v1091_v61 = vpop.permute.xlu0 %1090 }
 0x10e   : > { %v1098_v5 = vsel %vm1094_vm15, %v1093_v37, %v1087_v55  ;;  %v1096_v23 = vsel %vm1094_vm15, %v1089_v50, %v1091_v61  ;;  %v1095_v13 = vsel %vm1094_vm15, %v1091_v61, %v1093_v37  ;;  %v1122_v61 = vmul.f32 %v1105_v6, %v1097_v39  ;;  %v5273_v6 = vld [vmem:[#allocation13_spill] sm:$0xff] }
 0x10f   : > { %v1125_v30 = vmul.f32 %v1117_v11, %v1098_v5  ;;  %v1123_v16 = vmul.f32 %v1109_v32, %v1096_v23  ;;  %v1124_v19 = vmul.f32 %v1113_v57, %v1095_v13  ;;  %v5250_v11 = vpack.c.bf16 %v3987_v60, %v3970_v46  ;;  %v5261_v23 = vld [vmem:[#allocation6_spill] sm:$0xff] }
 0x110   : > { %v5251_v32 = vpack.c.bf16 %v3985_v59, %v3968_v45  ;;  %v5253_v5 = vpack.c.bf16 %v3993_v63, %v3983_v58  ;;  %v5254_v46 = vpack.c.bf16 %v4065_v26, %v4053_v15  ;;  %v5255_v45 = vpack.c.bf16 %v4061_v22, %v4047_v56 }
 0x111   : > { %v1133_v52 = vpop.permute.xlu1 %1132  ;;  %v1131_v47 = vpop.permute.xlu0 %1130  ;;  %v5257_v58 = vpack.c.bf16 %v4067_v27, %v4063_v25  ;;  %v5258_v63 = vpack.c.bf16 %v4157_v8, %v4153_v18  ;;  %v5259_v56 = vpack.c.bf16 %v4151_v0, %v4141_v9  ;;  %v5263_v27 = vld [vmem:[#allocation9_spill] sm:$0xff]  ;;  %v5266_v9 = vpack.c.bf16 %v4227_v48, %v4223_v54  ;;  %v5267_v0 = vld [vmem:[#allocation12_spill] sm:$0xff]  ;;  %v3554_v48 = vld [vmem:[%s5178_s2] ss:$8 sps:$4 sm:$0xff]  }
 0x112   : > { %v1141_v24 = vsel %vm5224_vm14, %v1131_v47, %v1133_v52  ;;  %v5268_v8 = vpack.c.bf16 %v4221_v36, %v5267_v0  ;;  %v5275_v39 = vmov 0  }
 0x113   : > { %v1166_v4 = vmul.f32 %v1149_v49, %v1141_v24  ;;  %v5264_v49 = vld [vmem:[#allocation8_spill] sm:$0xff]  ;;  %v5269_v24 = vld [vmem:[#allocation11_spill] sm:$0xff] }
 0x114   : > { %v5265_v18 = vpack.c.bf16 %v5263_v27, %v5264_v49 }
 0x115   : > { %v1137_v35 = vpop.permute.xlu1 %1136  ;;  %v1135_v40 = vpop.permute.xlu0 %1134  ;;  %v1593_v38 = vpack.c.bf16 %v1166_v4, %v1122_v61 }
 0x116   : > { %v1142_v21 = vsel %vm5224_vm14, %v1137_v35, %v1131_v47  ;;  %v1139_v62 = vsel %vm5224_vm14, %v1135_v40, %v1137_v35  ;;  %v1140_v34 = vsel %vm5224_vm14, %v1133_v52, %v1135_v40  ;;  %v3443_v52 = vld [vmem:[%s5177_s1 + $0x62] ss:$8 sm:$0xf]  ;;  %v5252_v47 = vpack.c.bf16 %v3966_v44, %v3964_v43 }
 0x117   : > { %v1169_v2 = vmul.f32 %v1161_v17, %v1142_v21  ;;  %v1167_v1 = vmul.f32 %v1153_v31, %v1140_v34  ;;  %v1168_v37 = vmul.f32 %v1157_v33, %v1139_v62  ;;  %v1440_v59 = vrot.slane %v3443_v52, %v3901_v10  ;;  %v5270_v17 = vld [vmem:[#allocation10_spill] sm:$0xff] }
 0x118   : > { %v1432_v60 = vrot.slane %v3443_v52, %v3906_v12  ;;  %v1428_v57 = vrot.slane %v3443_v52, %v3917_v14  ;;  %v1436_v43 = vrot.slane %v3443_v52, %v3927_v20  ;;  %v5256_v44 = vpack.c.bf16 %v4045_v53, %v4043_v51  ;;  %v5260_v53 = vld [vmem:[#allocation7_spill] sm:$0xff]  ;;  %v5272_v33 = vld [vmem:[#allocation14_spill] sm:$0xff] }
 0x119   : > { %v1594_v50 = vpack.c.bf16 %v1167_v1, %v1123_v16  ;;  %v1596_v55 = vpack.c.bf16 %v1169_v2, %v1125_v30  ;;  %v1595_v3 = vpack.c.bf16 %v1168_v37, %v1124_v19  ;;  %v1448_v15 = vmul.f32 %v1440_v59, %v4256_v29 }
 0x11a   : > { %v1446_v22 = vmul.f32 %v1432_v60, %v4265_v28  ;;  %v1445_v26 = vmul.f32 %v1428_v57, %v4249_v41  ;;  %v1447_v51 = vmul.f32 %v1436_v43, %v4270_v42  ;;  %v5262_v25 = vpack.c.bf16 %v5260_v53, %v5261_v23  ;;  %v410_v23 = vld [vmem:[%s3767_s30 + $0x8] sm:$0xff] }
 0x11b   : > { %1673 = vmatprep.subr.bf16.mxu0 %v1594_v50  ;;  %1716 = vmatprep.subr.bf16.mxu1 %v1596_v55  ;;  %v1616_v29 = vpack.c.bf16 %v1448_v15, %v1448_v15  ;;  %v5271_v31 = vpack.c.bf16 %v5269_v24, %v5270_v17  ;;  %v5274_v13 = vpack.c.bf16 %v5272_v33, %v5273_v6  ;;  %vm5225_vm14 = vcmask 1043456   ;;  %v409_v15 = vld [vmem:[%s3767_s30] sm:$0xff] }
 0x11c   : > { %1674 = vmatpush1.bf16.msra.mxu0 %v1593_v38  ;;  %1717 = vmatpush1.bf16.msra.mxu1 %v1595_v3  ;;  %v1614_v41 = vpack.c.bf16 %v1446_v22, %v1446_v22  ;;  %v1613_v28 = vpack.c.bf16 %v1445_v26, %v1445_v26  ;;  %v1615_v42 = vpack.c.bf16 %v1447_v51, %v1447_v51  ;;  %v411_v51 = vld [vmem:[%s3767_s30 + $0x10] sm:$0xff] }
 0x11d   : > { %1675 = vmatprep.subr.bf16.mxu0 %v5250_v11  ;;  %1718 = vmatprep.subr.bf16.mxu1 %v5251_v32 }
 0x11e   : > { %v1646_v36 = vsel %vm5225_vm14, %v1613_v28, 0  ;;  %v1652_v54 = vsel %vm5225_vm14, %v1615_v42, 0 }
 0x120   : > { %1676 = vmatpush1.bf16.msra.mxu0 %v5252_v47  ;;  %1719 = vmatpush1.bf16.msra.mxu1 %v5253_v5 }
 0x121   : > { %1677 = vmatprep.subr.bf16.mxu0 %v5254_v46  ;;  %1720 = vmatprep.subr.bf16.mxu1 %v5255_v45 }
 0x124   : > { %1678 = vmatpush1.bf16.msra.mxu0 %v5256_v44  ;;  %1721 = vmatpush1.bf16.msra.mxu1 %v5257_v58 }
 0x125   : > { %1679 = vmatprep.subr.bf16.mxu0 %v5258_v63  ;;  %1722 = vmatprep.subr.bf16.mxu1 %v5259_v56  ;;  %v3557_v63 = vld [vmem:[%s5180_s4] sm:$0xff]  }
 0x128   : > { %1680 = vmatpush1.bf16.msra.mxu0 %v5262_v25  ;;  %1723 = vmatpush1.bf16.msra.mxu1 %v5265_v18  ;;  %v412_v18 = vld [vmem:[%s3767_s30 + $0x18] sm:$0xff] }
 0x129   : > { %1681 = vmatprep.subr.bf16.mxu0 %v5266_v9  ;;  %1724 = vmatprep.subr.bf16.mxu1 %v5268_v8 }
 0x12c   : > { %1682 = vmatpush1.bf16.msra.mxu0 %v5271_v31  ;;  %1725 = vmatpush1.bf16.msra.mxu1 %v5274_v13 }
 0x12d   : > { %3446 = vmatprep.subr.msk.bf16.mxu0 %vm5225_vm14, %v1614_v41  ;;  %3448 = vmatprep.subr.msk.bf16.mxu1 %vm5225_vm14, %v1616_v29  ;;  %vm1774_vm14 = vcmask 130048  }
 0x12f   : > { %v1624_v30 = vpop.permute.xlu0 %1623  ;;  %v1629_v16 = vpop.permute.xlu1 %1628 }
 0x130   : > { %1684 = vmatpush1.bf16.msra.mxu0 %v1646_v36  ;;  %1727 = vmatpush1.bf16.msra.mxu1 %v1652_v54 }
 0x133   : > { %1690 = vmatmul.mubr.bf16.vlgmr.msra.gmra.mrb[0].mxu0 %v3554_v48  ;;  %1733 = vmatmul.mubr.bf16.vlgmr.msra.gmra.mrb[0].mxu1 %v3554_v48  ;;  %v1762_v56 = vpop.permute.xlu1 %1761 }
 0x134   : > { %1810 = vmatprep.mubr.bf16.mxu0 %v5275_v39  ;;  %1853 = vmatprep.mubr.bf16.mxu1 %v5275_v39 }
 0x206   : > { %v1691_v35 = vpop.f32.mrb[0].mxu0  ;;  %v1734_v40 = vpop.f32.mrb[0].mxu1 }
 0x207   : > { %v1692_v4 = vadd.f32 %v1691_v35, %v1624_v30  ;;  %v1735_v21 = vadd.f32 %v1734_v40, %v1624_v30  ;;  %v1693_v62 = vpop.f32.mrb[1].mxu0  ;;  %v1736_v34 = vpop.f32.mrb[1].mxu1 }
 0x208   : > { %v1694_v19 = vadd.f32 %v1693_v62, %v1624_v30  ;;  %v1737_v2 = vadd.f32 %v1736_v34, %v1624_v30  ;;  %v1695_v1 = vpop.f32.mrb[2].mxu0  ;;  %v1738_v37 = vpop.f32.mrb[2].mxu1  ;;  %v3608_v34 = vld [vmem:[#allocation2] sm:$0xff] }
 0x209   : > { %3560 = vtanh.f32 %v1692_v4  ;;  %v1696_v61 = vadd.f32 %v1695_v1, %v1629_v16  ;;  %v1697_v50 = vpop.f32.mrb[3].mxu0  ;;  %v1740_v55 = vpop.f32.mrb[3].mxu1  ;;  %v1739_v3 = vadd.f32 %v1738_v37, %v1629_v16  ;;  %v3609_v37 = vld [vmem:[#allocation2 + $0x8] sm:$0xff] }
 0x20a   : > { %3562 = vtanh.f32 %v1735_v21  ;;  %v1698_v38 = vadd.f32 %v1697_v50, %v1629_v16  ;;  %v1741_v11 = vadd.f32 %v1740_v55, %v1629_v16  ;;  %v3610_v55 = vld [vmem:[#allocation2 + $0x10] sm:$0xff] }
 0x20b   : > { %3564 = vtanh.f32 %v1694_v19 }
 0x20c   : > { %3566 = vtanh.f32 %v1737_v2 }
 0x20d   : > { %3568 = vtanh.f32 %v1696_v61 }
 0x20e   : > { %3570 = vtanh.f32 %v1739_v3 }
 0x20f   : > { %3572 = vtanh.f32 %v1698_v38  ;;  %v3611_v38 = vld [vmem:[#allocation2 + $0x18] sm:$0xff] }
 0x210   : > { %3574 = vtanh.f32 %v1741_v11 }
 0x213   : > { %v3561_v32 = vpop.eup %3560 }
 0x214   : > { %v3563_v52 = vpop.eup %3562 }
 0x215   : > { %v3565_v47 = vpop.eup %3564 }
 0x216   : > { %v3567_v5 = vpop.eup %3566 }
 0x217   : > { %v3569_v46 = vpop.eup %3568 }
 0x218   : > { %v3571_v45 = vpop.eup %3570  ;;  %v1753_v59 = vpack.c.bf16 %v3569_v46, %v3561_v32 }
 0x219   : > { %v3573_v60 = vpop.eup %3572  ;;  %v1755_v57 = vpack.c.bf16 %v3571_v45, %v3563_v52  ;;  %v3453_v45 = vld [vmem:[%s5177_s1 + $0x1] ss:$8 sm:$0xf] }
 0x21a   : > { %v3575_v43 = vpop.eup %3574  ;;  %v1754_v44 = vpack.c.bf16 %v3573_v60, %v3565_v47  ;;  %v1920_v47 = vld [vmem:[%s5177_s1] ss:$8 sm:$0xf] }
 0x21b   : > { %v1756_v58 = vpack.c.bf16 %v3575_v43, %v3567_v5  ;;  %v3469_v5 = vld [vmem:[%s5177_s1 + $0x42] ss:$8 sm:$0xf] }
 0x21c   : > { %1778 = vmatprep.subr.bf16.mxu0 %v1754_v44  ;;  %v2631_v43 = vrot.slane %v3469_v5, %v3917_v14  ;;  %v1933_v44 = vrot.slane %v1920_v47, %v3927_v20 }
 0x21d   : > { %1821 = vmatprep.subr.bf16.mxu1 %v1756_v58  ;;  %1779 = vmatpush1.bf16.msra.mxu0 %v1753_v59  ;;  %v3470_v59 = vld [vmem:[%s5177_s1 + $0x43] ss:$8 sm:$0xf] }
 0x21e   : > { %1822 = vmatpush1.bf16.msra.mxu1 %v1755_v57  ;;  %v1929_v57 = vrot.slane %v1920_v47, %v3906_v12 }
 0x220   : > { %3451 = vmatmul.mubr.msk.bf16.vlgmr.msra.gmra.mrb[4].mxu0 %vm1774_vm14, %v3557_v63 }
 0x221   : > { %3452 = vmatmul.mubr.msk.bf16.vlgmr.msra.gmra.mrb[4].mxu1 %vm1774_vm14, %v3557_v63  ;;  %v2635_v63 = vrot.slane %v3469_v5, %v3906_v12 }
 0x2f3   : > { %v1812_v22 = vpop.f32.mrb[4].mxu0 }
 0x2f4   : > { %v1813_v26 = vadd.f32 %v1812_v22, %v1762_v56  ;;  %v1855_v53 = vpop.f32.mrb[4].mxu1  ;;  %v1814_v25 = vpop.f32.mrb[5].mxu0  ;;  %v2661_v22 = vrot.slane %v3470_v59, %v3917_v14 }
 0x2f5   : > { %v1856_v27 = vadd.f32 %v1855_v53, %v1762_v56  ;;  %v1815_v49 = vadd.f32 %v1814_v25, %v1762_v56  ;;  %v1857_v9 = vpop.f32.mrb[5].mxu1  ;;  %v4472_v0 = vpop.f32.mrb[6].mxu0  ;;  %v2639_v53 = vrot.slane %v3469_v5, %v3927_v20 }
 0x2f6   : > { %5276 = vst [vmem:[#allocation7_spill] sm:$0xff] %v4472_v0  ;;  %v1864_v8 = vadd.f32 %v1813_v26, %v409_v15  ;;  %v1858_v29 = vadd.f32 %v1857_v9, %v1762_v56  ;;  %v4474_v41 = vpop.f32.mrb[7].mxu0  ;;  %v4476_v28 = vpop.f32.mrb[6].mxu1  ;;  %v1971_v15 = vrot.slane %v3453_v45, %v3906_v12  ;;  %v1925_v26 = vrot.slane %v1920_v47, %v3917_v14 }
 0x2f7   : > { %5277 = vst [vmem:[#allocation6_spill] sm:$0xff] %v4474_v41  ;;  %5278 = vst [vmem:[#allocation9_spill] sm:$0xff] %v4476_v28  ;;  %v1866_v42 = vadd.f32 %v1856_v27, %v411_v51  ;;  %v1865_v24 = vadd.f32 %v1815_v49, %v410_v23  ;;  %v4478_v17 = vpop.f32.mrb[7].mxu1  ;;  %v1937_v51 = vrot.slane %v1920_v47, %v3901_v10 }
 0x2f8   : > { %5279 = vst [vmem:[#allocation8_spill] sm:$0xff] %v4478_v17  ;;  %v1868_v31 = vmul.f32 0.5, %v1864_v8  ;;  %v1867_v33 = vadd.f32 %v1858_v29, %v412_v18  ;;  %v1975_v23 = vrot.slane %v3453_v45, %v3927_v20  ;;  %v2665_v49 = vrot.slane %v3470_v59, %v3906_v12 }
 0x2f9   : > { %v1870_v6 = vmul.f32 0.5, %v1866_v42  ;;  %v1869_v13 = vmul.f32 0.5, %v1865_v24  ;;  %v1967_v18 = vrot.slane %v3453_v45, %v3917_v14  ;;  %v1979_v9 = vrot.slane %v3453_v45, %v3901_v10 }
 0x2fa   : > { %3576 = vtanh.f32 %v1868_v31  ;;  %v1871_v36 = vmul.f32 0.5, %v1867_v33  ;;  %v2669_v24 = vrot.slane %v3470_v59, %v3927_v20 }
 0x2fb   : > { %3578 = vtanh.f32 %v1870_v6 }
 0x2fc   : > { %3580 = vtanh.f32 %v1869_v13 }
 0x2fd   : > { %3582 = vtanh.f32 %v1871_v36 }
 0x304   : > { %v3577_v54 = vpop.eup %3576 }
 0x305   : > { %v3579_v48 = vpop.eup %3578  ;;  %v1876_v30 = vmul.f32 0.5, %v3577_v54 }
 0x306   : > { %v3581_v16 = vpop.eup %3580  ;;  %v1878_v35 = vmul.f32 0.5, %v3579_v48  ;;  %v2643_v48 = vrot.slane %v3469_v5, %v3901_v10 }
 0x307   : > { %v3583_v40 = vpop.eup %3582  ;;  %v1880_v4 = vadd.f32 0.5, %v1876_v30  ;;  %v1877_v21 = vmul.f32 0.5, %v3581_v16  ;;  %v2673_v16 = vrot.slane %v3470_v59, %v3901_v10 }
 0x308   : > { %v1879_v62 = vmul.f32 0.5, %v3583_v40  ;;  %v1882_v2 = vadd.f32 0.5, %v1878_v35 }
 0x309   : > { %v4480_v19 = vmul.f32 %v3608_v34, %v1880_v4  ;;  %v1881_v1 = vadd.f32 0.5, %v1877_v21 }
 0x30a   : > { %v1883_v50 = vadd.f32 0.5, %v1879_v62  ;;  %v4486_v3 = vmul.f32 %v3610_v55, %v1882_v2 }
 0x30b   : > { %v4482_v61 = vmul.f32 %v3609_v37, %v1881_v1  ;;  %1908 = vrot.lane.b32.xlu0 %v4480_v19, %s3657_s14 }
 0x30c   : > { %v4490_v11 = vmul.f32 %v3611_v38, %v1883_v50 }
 0x30d   : > { %1910 = vrot.lane.b32.xlu1 %v4482_v61, %s3657_s14 }
 0x30f   : > { %1912 = vrot.lane.b32.xlu0 %v4486_v3, %s3657_s14 }
 0x311   : > { %1914 = vrot.lane.b32.xlu1 %v4490_v11, %s3657_s14  ;;  %s5280_s14 = smov 63  }
 0x313   : > { %1950 = vrot.lane.b32.xlu0 %v4480_v19, %s3658_s13 }
 0x315   : > { %1952 = vrot.lane.b32.xlu1 %v4482_v61, %s3658_s13 }
 0x317   : > { %1954 = vrot.lane.b32.xlu0 %v4486_v3, %s3658_s13 }
 0x319   : > { %1956 = vrot.lane.b32.xlu1 %v4490_v11, %s3658_s13  ;;  %s5281_s13 = smov 57  }
 0x31b   : > { %1992 = vrot.lane.b32.xlu0 %v4480_v19, %s3659_s19 }
 0x31d   : > { %1994 = vrot.lane.b32.xlu1 %v4482_v61, %s3659_s19 }
 0x31f   : > { %1996 = vrot.lane.b32.xlu0 %v4486_v3, %s3659_s19 }
 0x321   : > { %1998 = vrot.lane.b32.xlu1 %v4490_v11, %s3659_s19  ;;  %s5282_s19 = smov 56  }
 0x323   : > { %2034 = vrot.lane.b32.xlu0 %v4480_v19, %s3660_s20 }
 0x325   : > { %2036 = vrot.lane.b32.xlu1 %v4482_v61, %s3660_s20 }
 0x327   : > { %2038 = vrot.lane.b32.xlu0 %v4486_v3, %s3660_s20 }
 0x329   : > { %2040 = vrot.lane.b32.xlu1 %v4490_v11, %s3660_s20  ;;  %s5283_s20 = smov 55  }
 0x32b   : > { %2076 = vrot.lane.b32.xlu0 %v4480_v19, %s3661_s21 }
 0x32d   : > { %2078 = vrot.lane.b32.xlu1 %v4482_v61, %s3661_s21 }
 0x32f   : > { %2080 = vrot.lane.b32.xlu0 %v4486_v3, %s3661_s21 }
 0x331   : > { %2082 = vrot.lane.b32.xlu1 %v4490_v11, %s3661_s21  ;;  %s5284_s21 = smov 9  }
 0x333   : > { %2118 = vrot.lane.b32.xlu0 %v4480_v19, %s5280_s14 }
 0x335   : > { %2120 = vrot.lane.b32.xlu1 %v4482_v61, %s5280_s14 }
 0x337   : > { %2122 = vrot.lane.b32.xlu0 %v4486_v3, %s5280_s14 }
 0x339   : > { %2124 = vrot.lane.b32.xlu1 %v4490_v11, %s5280_s14 }
 0x33b   : > { %2160 = vrot.lane.b32.xlu0 %v4480_v19, %s5281_s13 }
 0x33d   : > { %2162 = vrot.lane.b32.xlu1 %v4482_v61, %s5281_s13 }
 0x33f   : > { %2164 = vrot.lane.b32.xlu0 %v4486_v3, %s5281_s13 }
 0x341   : > { %2166 = vrot.lane.b32.xlu1 %v4490_v11, %s5281_s13 }
 0x343   : > { %2202 = vrot.lane.b32.xlu0 %v4480_v19, %s5282_s19 }
 0x345   : > { %2204 = vrot.lane.b32.xlu1 %v4482_v61, %s5282_s19 }
 0x347   : > { %2206 = vrot.lane.b32.xlu0 %v4486_v3, %s5282_s19 }
 0x349   : > { %2208 = vrot.lane.b32.xlu1 %v4490_v11, %s5282_s19 }
 0x34b   : > { %2244 = vrot.lane.b32.xlu0 %v4480_v19, %s5283_s20 }
 0x34d   : > { %2246 = vrot.lane.b32.xlu1 %v4482_v61, %s5283_s20 }
 0x34f   : > { %2248 = vrot.lane.b32.xlu0 %v4486_v3, %s5283_s20 }
 0x351   : > { %2250 = vrot.lane.b32.xlu1 %v4490_v11, %s5283_s20  ;;  %s5290_s20 = smov 120  }
 0x353   : > { %2286 = vrot.lane.b32.xlu0 %v4480_v19, %s5284_s21 }
 0x355   : > { %2288 = vrot.lane.b32.xlu1 %v4482_v61, %s5284_s21 }
 0x357   : > { %2290 = vrot.lane.b32.xlu0 %v4486_v3, %s5284_s21 }
 0x359   : > { %2292 = vrot.lane.b32.xlu1 %v4490_v11, %s5284_s21  ;;  %s5291_s21 = smov 119  }
 0x35b   : > { %2328 = vrot.lane.b32.xlu0 %v4480_v19, %s5285_s28 }
 0x35d   : > { %2330 = vrot.lane.b32.xlu1 %v4482_v61, %s5285_s28 }
 0x35f   : > { %2332 = vrot.lane.b32.xlu0 %v4486_v3, %s5285_s28 }
 0x361   : > { %2334 = vrot.lane.b32.xlu1 %v4490_v11, %s5285_s28 }
 0x363   : > { %2370 = vrot.lane.b32.xlu0 %v4480_v19, %s5286_s29 }
 0x365   : > { %2372 = vrot.lane.b32.xlu1 %v4482_v61, %s5286_s29 }
 0x367   : > { %2374 = vrot.lane.b32.xlu0 %v4486_v3, %s5286_s29 }
 0x369   : > { %2376 = vrot.lane.b32.xlu1 %v4490_v11, %s5286_s29 }
 0x36b   : > { %2412 = vrot.lane.b32.xlu0 %v4480_v19, %s5287_s23 }
 0x36d   : > { %2414 = vrot.lane.b32.xlu1 %v4482_v61, %s5287_s23 }
 0x36f   : > { %2416 = vrot.lane.b32.xlu0 %v4486_v3, %s5287_s23 }
 0x371   : > { %2418 = vrot.lane.b32.xlu1 %v4490_v11, %s5287_s23 }
 0x373   : > { %2458 = vrot.lane.b32.xlu0 %v4480_v19, %s5288_s24 }
 0x375   : > { %2460 = vrot.lane.b32.xlu1 %v4482_v61, %s5288_s24 }
 0x377   : > { %2462 = vrot.lane.b32.xlu0 %v4486_v3, %s5288_s24 }
 0x379   : > { %2464 = vrot.lane.b32.xlu1 %v4490_v11, %s5288_s24 }
 0x37b   : > { %2500 = vrot.lane.b32.xlu0 %v4480_v19, %s5289_s12 }
 0x37d   : > { %2502 = vrot.lane.b32.xlu1 %v4482_v61, %s5289_s12  ;;  %v1909_v32 = vpop.permute.xlu0 %1908 }
 0x37f   : > { %v1911_v52 = vpop.permute.xlu1 %1910  ;;  %2504 = vrot.lane.b32.xlu0 %v4486_v3, %s5289_s12 }
 0x380   : > { %v1918_v58 = vsel %vm431_vm0, %v1909_v32, %v1911_v52 }
 0x381   : > { %2506 = vrot.lane.b32.xlu1 %v4490_v11, %s5289_s12  ;;  %v1913_v46 = vpop.permute.xlu0 %1912  ;;  %v1943_v8 = vmul.f32 %v1929_v57, %v1918_v58  ;;  %v4648_v31 = vmul.f32 %v2631_v43, %v1918_v58  ;;  %v4691_v58 = vld [vmem:[%s5177_s1 + $0x2] ss:$8 sm:$0xf] }
 0x382   : > { %v1917_v25 = vsel %vm431_vm0, %v1911_v52, %v1913_v46 }
 0x383   : > { %v1915_v60 = vpop.permute.xlu1 %1914  ;;  %2542 = vrot.lane.b32.xlu0 %v4480_v19, %s5290_s20  ;;  %v4656_v54 = vmul.f32 %v2635_v63, %v1917_v25  ;;  %v1944_v45 = vmul.f32 %v1933_v44, %v1917_v25  ;;  %v3061_v63 = vld [vmem:[%s5183_s7] sm:$0xff]  ;;  %v2013_v25 = vrot.slane %v4691_v58, %v3906_v12 }
 0x384   : > { %v1919_v29 = vsel %vm431_vm0, %v1915_v60, %v1909_v32  ;;  %v1916_v33 = vsel %vm431_vm0, %v1913_v46, %v1915_v60  ;;  %vm5304_vm0 = vcmp.lt.s32.totalorder %v3899_v7, 127 }
 0x385   : > { %2544 = vrot.lane.b32.xlu1 %v4482_v61, %s5290_s20  ;;  %v1951_v56 = vpop.permute.xlu0 %1950  ;;  %v1942_v35 = vmul.f32 %v1925_v26, %v1919_v29  ;;  %v1945_v34 = vmul.f32 %v1937_v51, %v1916_v33  ;;  %v4668_v2 = vmul.f32 %v2639_v53, %v1916_v33  ;;  %v4678_v47 = vmul.f32 %v2643_v48, %v1919_v29  ;;  %v1758_v26 = vld [vmem:[%s5181_s5 + $0x8] sm:$0xff] }
 0x386   : > { %v3455_v51 = vld [vmem:[%s5177_s1 + $0x3] ss:$8 sm:$0xf]  ;;  %v3472_v53 = vld [vmem:[%s5177_s1 + $0x45] ss:$8 sm:$0xf]  ;;  %v2009_v33 = vrot.slane %v4691_v58, %v3917_v14 }
 0x387   : > { %v1953_v27 = vpop.permute.xlu1 %1952  ;;  %2546 = vrot.lane.b32.xlu0 %v4486_v3, %s5290_s20  ;;  %v2059_v48 = vrot.slane %v3455_v51, %v3927_v20 }
 0x388   : > { %v1960_v42 = vsel %vm474_vm1, %v1951_v56, %v1953_v27 }
 0x389   : > { %v1985_v6 = vmul.f32 %v1971_v15, %v1960_v42  ;;  %v4652_v13 = vmul.f32 %v2661_v22, %v1960_v42  ;;  %2548 = vrot.lane.b32.xlu1 %v4490_v11, %s5290_s20  ;;  %v1955_v36 = vpop.permute.xlu0 %1954  ;;  %v3471_v15 = vld [vmem:[%s5177_s1 + $0x44] ss:$8 sm:$0xf]  ;;  %v2055_v42 = vrot.slane %v3455_v51, %v3906_v12 }
 0x38a   : > { %v1959_v30 = vsel %vm474_vm1, %v1953_v27, %v1955_v36  ;;  %v2691_v27 = vrot.slane %v3471_v15, %v3917_v14 }
 0x38b   : > { %v4664_v4 = vmul.f32 %v2665_v49, %v1959_v30  ;;  %v1957_v21 = vpop.permute.xlu1 %1956  ;;  %2584 = vrot.lane.b32.xlu0 %v4480_v19, %s5291_s21  ;;  %v3005_v62 = vpack.c.bf16 %v1985_v6, %v1943_v8  ;;  %v1986_v50 = vmul.f32 %v1975_v23, %v1959_v30  ;;  %v2017_v49 = vrot.slane %v4691_v58, %v3927_v20 }
 0x38c   : > { %v1958_v1 = vsel %vm474_vm1, %v1955_v36, %v1957_v21  ;;  %v1961_v37 = vsel %vm474_vm1, %v1957_v21, %v1951_v56  ;;  %v2695_v8 = vrot.slane %v3471_v15, %v3906_v12  ;;  %v2021_v6 = vrot.slane %v4691_v58, %v3901_v10 }
 0x38d   : > { %v1984_v55 = vmul.f32 %v1967_v18, %v1961_v37  ;;  %v1987_v38 = vmul.f32 %v1979_v9, %v1958_v1  ;;  %v4674_v32 = vmul.f32 %v2669_v24, %v1958_v1  ;;  %2586 = vrot.lane.b32.xlu1 %v4482_v61, %s5291_s21  ;;  %v1993_v52 = vpop.permute.xlu0 %1992  ;;  %v4680_v5 = vmul.f32 %v2673_v16, %v1961_v37  ;;  %v3179_v18 = vld [vmem:[%s5185_s9] sm:$0xff] }
 0x38e   : > { %3088 = vmatprep.subr.bf16.mxu0 %v3005_v62  ;;  %v3006_v56 = vpack.c.bf16 %v1986_v50, %v1944_v45  ;;  %v2721_v24 = vrot.slane %v3472_v53, %v3917_v14  ;;  %v2699_v36 = vrot.slane %v3471_v15, %v3927_v20  ;;  %v2051_v21 = vrot.slane %v3455_v51, %v3917_v14 }
 0x38f   : > { %v3004_v59 = vpack.c.bf16 %v1984_v55, %v1942_v35  ;;  %v1995_v57 = vpop.permute.xlu1 %1994  ;;  %2588 = vrot.lane.b32.xlu0 %v4486_v3, %s5291_s21  ;;  %v3007_v43 = vpack.c.bf16 %v1987_v38, %v1945_v34  ;;  %v2725_v35 = vrot.slane %v3472_v53, %v3906_v12  ;;  %v2063_v62 = vrot.slane %v3455_v51, %v3901_v10 }
 0x390   : > { %v2002_v9 = vsel %vm518_vm2, %v1993_v52, %v1995_v57  ;;  %v2729_v50 = vrot.slane %v3472_v53, %v3927_v20  ;;  %v2703_v58 = vrot.slane %v3471_v15, %v3901_v10  ;;  %vm5305_vm1 = vcmp.lt.s32.totalorder %v3899_v7, 121 }
 0x391   : > { %2590 = vrot.lane.b32.xlu1 %v4490_v11, %s5291_s21  ;;  %3089 = vmatpush1.bf16.msra.mxu0 %v3004_v59  ;;  %v1997_v22 = vpop.permute.xlu0 %1996  ;;  %v2027_v34 = vmul.f32 %v2013_v25, %v2002_v9  ;;  %v4741_v55 = vmul.f32 %v2691_v27, %v2002_v9 }
 0x392   : > { %3129 = vmatprep.subr.bf16.mxu1 %v3007_v43  ;;  %v2001_v30 = vsel %vm518_vm2, %v1995_v57, %v1997_v22 }
 0x393   : > { %3130 = vmatpush1.bf16.msra.mxu1 %v3006_v56  ;;  %v1999_v23 = vpop.permute.xlu1 %1998  ;;  %3064 = vperm.xlu0 %3552, %v3061_v63   ;;  %v4747_v43 = vmul.f32 %v2695_v8, %v2001_v30  ;;  %v2733_v63 = vrot.slane %v3472_v53, %v3901_v10 }
 0x394   : > { %v2003_v1 = vsel %vm518_vm2, %v1999_v23, %v1993_v52  ;;  %v2000_v38 = vsel %vm518_vm2, %v1997_v22, %v1999_v23  ;;  %vm5306_vm2 = vmmov %vm5304_vm0 }
 0x395   : > { %1766 = vperm.xlu1 %3553, %v1758_v26   ;;  %v2035_v29 = vpop.permute.xlu0 %2034  ;;  %v2026_v56 = vmul.f32 %v2009_v33, %v2003_v1  ;;  %v2029_v25 = vmul.f32 %v2021_v6, %v2000_v38  ;;  %v4761_v9 = vmul.f32 %v2699_v36, %v2000_v38  ;;  %v2028_v33 = vmul.f32 %v2017_v49, %v2001_v30  ;;  %v3457_v38 = vld [vmem:[%s5177_s1 + $0x5] ss:$8 sm:$0xf] }
 0x397   : > { %v2037_v16 = vpop.permute.xlu1 %2036  ;;  %3182 = vperm.xlu0 %3552, %v3179_v18  }
 0x398   : > { %v2044_v37 = vsel %vm562_vm3, %v2035_v29, %v2037_v16 }
 0x399   : > { %v2069_v45 = vmul.f32 %v2055_v42, %v2044_v37  ;;  %v4745_v59 = vmul.f32 %v2721_v24, %v2044_v37  ;;  %v2039_v57 = vpop.permute.xlu0 %2038  ;;  %v3473_v37 = vld [vmem:[%s5177_s1 + $0x46] ss:$8 sm:$0xf] }
 0x39a   : > { %v2043_v52 = vsel %vm562_vm3, %v2037_v16, %v2039_v57  ;;  %v4765_v16 = vmul.f32 %v2703_v58, %v2003_v1  ;;  %v3456_v1 = vld [vmem:[%s5177_s1 + $0x4] ss:$8 sm:$0xf] }
 0x39b   : > { %v4755_v51 = vmul.f32 %v2725_v35, %v2043_v52  ;;  %v2041_v22 = vpop.permute.xlu1 %2040  ;;  %v3009_v23 = vpack.c.bf16 %v2069_v45, %v2027_v34  ;;  %v2070_v27 = vmul.f32 %v2059_v48, %v2043_v52  ;;  %v3474_v45 = vld [vmem:[%s5177_s1 + $0x47] ss:$8 sm:$0xf]  ;;  %v2097_v58 = vrot.slane %v3456_v1, %v3906_v12 }
 0x39c   : > { %v2042_v18 = vsel %vm562_vm3, %v2039_v57, %v2041_v22  ;;  %v2045_v15 = vsel %vm562_vm3, %v2041_v22, %v2035_v29  ;;  %v2751_v52 = vrot.slane %v3473_v37, %v3917_v14  ;;  %v2755_v22 = vrot.slane %v3473_v37, %v3906_v12  ;;  %vm5307_vm3 = vmmov %vm5304_vm0 }
 0x39d   : > { %v2068_v8 = vmul.f32 %v2051_v21, %v2045_v15  ;;  %v2071_v53 = vmul.f32 %v2063_v62, %v2042_v18  ;;  %v4763_v42 = vmul.f32 %v2729_v50, %v2042_v18  ;;  %3090 = vmatprep.subr.bf16.mxu0 %v3009_v23  ;;  %v2077_v24 = vpop.permute.xlu0 %2076  ;;  %v4767_v35 = vmul.f32 %v2733_v63, %v2045_v15  ;;  %v4776_v21 = vld [vmem:[%s5182_s6] sm:$0xff] }
 0x39e   : > { %5292 = vst [vmem:[#allocation12_spill] sm:$0xff] %v4776_v21  ;;  %v3010_v62 = vpack.c.bf16 %v2070_v27, %v2028_v33  ;;  %v3479_v30 = vcombine.high %v4776_v21, %v4776_v21  ;;  %v2101_v63 = vrot.slane %v3456_v1, %v3927_v20  ;;  %v2781_v27 = vrot.slane %v3474_v45, %v3917_v14 }
 0x39f   : > { %v3008_v48 = vpack.c.bf16 %v2068_v8, %v2026_v56  ;;  %v2079_v36 = vpop.permute.xlu1 %2078  ;;  %v3011_v34 = vpack.c.bf16 %v2071_v53, %v2029_v25  ;;  %v2139_v25 = vrot.slane %v3457_v38, %v3906_v12  ;;  %v2093_v18 = vrot.slane %v3456_v1, %v3917_v14 }
 0x3a0   : > { %3481 = vmatprep.mubr.msk.bf16.mxu0 %vm1640_vm4, %v3479_v30  ;;  %3483 = vmatprep.mubr.msk.bf16.mxu1 %vm1640_vm4, %v3479_v30  ;;  %v2086_v56 = vsel %vm606_vm5, %v2077_v24, %v2079_v36  ;;  %v2105_v15 = vrot.slane %v3456_v1, %v3901_v10  ;;  %v2759_v8 = vrot.slane %v3473_v37, %v3927_v20  ;;  %vm5308_vm4 = vmmov %vm5304_vm0 }
 0x3a1   : > { %3091 = vmatpush1.bf16.msra.mxu0 %v3008_v48  ;;  %3131 = vmatprep.subr.bf16.mxu1 %v3011_v34  ;;  %v2081_v50 = vpop.permute.xlu0 %2080  ;;  %v2143_v53 = vrot.slane %v3457_v38, %v3927_v20  ;;  %v2785_v34 = vrot.slane %v3474_v45, %v3906_v12  ;;  %v2147_v30 = vrot.slane %v3457_v38, %v3901_v10 }
 0x3a2   : > { %3132 = vmatpush1.bf16.msra.mxu1 %v3010_v62  ;;  %v2085_v33 = vsel %vm606_vm5, %v2079_v36, %v2081_v50  ;;  %v2135_v62 = vrot.slane %v3457_v38, %v3917_v14  ;;  %v2111_v29 = vmul.f32 %v2097_v58, %v2086_v56  ;;  %v2789_v49 = vrot.slane %v3474_v45, %v3927_v20 }
 0x3a3   : > { %v2083_v57 = vpop.permute.xlu1 %2082  ;;  %v4818_v60 = vmul.f32 %v2751_v52, %v2086_v56  ;;  %v4824_v46 = vmul.f32 %v2755_v22, %v2085_v33  ;;  %v2763_v38 = vrot.slane %v3473_v37, %v3901_v10  ;;  %v2793_v58 = vrot.slane %v3474_v45, %v3901_v10 }
 0x3a4   : > { %v2087_v26 = vsel %vm606_vm5, %v2083_v57, %v2077_v24  ;;  %v2084_v36 = vsel %vm606_vm5, %v2081_v50, %v2083_v57  ;;  %vm5309_vm5 = vmmov %vm5305_vm1 }
 0x3a5   : > { %v2119_v23 = vpop.permute.xlu0 %2118  ;;  %5293 = vst [vmem:[#allocation11_spill] sm:$0xff] %v4818_v60  ;;  %v2110_v17 = vmul.f32 %v2093_v18, %v2087_v26  ;;  %v4842_v28 = vmul.f32 %v2763_v38, %v2087_v26  ;;  %v3458_v26 = vld [vmem:[%s5177_s1 + $0x6] ss:$8 sm:$0xf] }
 0x3a7   : > { %v2121_v48 = vpop.permute.xlu1 %2120 }
 0x3a8   : > { %v2128_v1 = vsel %vm650_vm6, %v2119_v23, %v2121_v48 }
 0x3a9   : > { %v2153_v6 = vmul.f32 %v2139_v25, %v2128_v1  ;;  %v4822_v40 = vmul.f32 %v2781_v27, %v2128_v1  ;;  %v2123_v44 = vpop.permute.xlu0 %2122  ;;  %v2113_v25 = vmul.f32 %v2105_v15, %v2084_v36  ;;  %v4838_v1 = vmul.f32 %v2759_v8, %v2084_v36 }
 0x3aa   : > { %v2127_v24 = vsel %vm650_vm6, %v2121_v48, %v2123_v44  ;;  %v2181_v36 = vrot.slane %v3458_v26, %v3906_v12 }
 0x3ab   : > { %v4832_v56 = vmul.f32 %v2785_v34, %v2127_v24  ;;  %v2125_v50 = vpop.permute.xlu1 %2124  ;;  %v3013_v57 = vpack.c.bf16 %v2153_v6, %v2111_v29  ;;  %v2154_v27 = vmul.f32 %v2143_v53, %v2127_v24  ;;  %5294 = vst [vmem:[#allocation10_spill] sm:$0xff] %v4838_v1  ;;  %v2112_v34 = vmul.f32 %v2101_v63, %v2085_v33  ;;  %v3475_v63 = vld [vmem:[%s5177_s1 + $0x60] ss:$8 sm:$0xf] }
 0x3ac   : > { %v2126_v22 = vsel %vm650_vm6, %v2123_v44, %v2125_v50  ;;  %v2129_v37 = vsel %vm650_vm6, %v2125_v50, %v2119_v23  ;;  %v3459_v33 = vld [vmem:[%s5177_s1 + $0x7] ss:$8 sm:$0xf]  ;;  %v2811_v38 = vrot.slane %v3475_v63, %v3917_v14  ;;  %v2185_v24 = vrot.slane %v3458_v26, %v3927_v20  ;;  %vm5310_vm6 = vmmov %vm5305_vm1 }
 0x3ad   : > { %v2152_v48 = vmul.f32 %v2135_v62, %v2129_v37  ;;  %v2155_v45 = vmul.f32 %v2147_v30, %v2126_v22  ;;  %v4840_v18 = vmul.f32 %v2789_v49, %v2126_v22  ;;  %3092 = vmatprep.subr.bf16.mxu0 %v3013_v57  ;;  %v2161_v52 = vpop.permute.xlu0 %2160  ;;  %v4844_v6 = vmul.f32 %v2793_v58, %v2129_v37  ;;  %v3476_v62 = vld [vmem:[%s5177_s1 + $0x61] ss:$8 sm:$0xf] }
 0x3ae   : > { %v3014_v53 = vpack.c.bf16 %v2154_v27, %v2112_v34  ;;  %v2815_v50 = vrot.slane %v3475_v63, %v3906_v12  ;;  %v2841_v27 = vrot.slane %v3476_v62, %v3917_v14  ;;  %v2177_v22 = vrot.slane %v3458_v26, %v3917_v14 }
 0x3af   : > { %5295 = vst [vmem:[#allocation14_spill] sm:$0xff] %v4840_v18  ;;  %v3012_v44 = vpack.c.bf16 %v2152_v48, %v2110_v17  ;;  %v2163_v15 = vpop.permute.xlu1 %2162  ;;  %v3015_v8 = vpack.c.bf16 %v2155_v45, %v2113_v25  ;;  %v2223_v25 = vrot.slane %v3459_v33, %v3906_v12  ;;  %v2189_v37 = vrot.slane %v3458_v26, %v3901_v10 }
 0x3b0   : > { %v2170_v58 = vsel %vm694_vm7, %v2161_v52, %v2163_v15  ;;  %v2819_v48 = vrot.slane %v3475_v63, %v3927_v20  ;;  %v2227_v45 = vrot.slane %v3459_v33, %v3927_v20  ;;  %v2231_v23 = vrot.slane %v3459_v33, %v3901_v10 }
 0x3b1   : > { %3093 = vmatpush1.bf16.msra.mxu0 %v3012_v44  ;;  %3133 = vmatprep.subr.bf16.mxu1 %v3015_v8  ;;  %v2165_v17 = vpop.permute.xlu0 %2164  ;;  %v2845_v8 = vrot.slane %v3476_v62, %v3906_v12  ;;  %v2195_v49 = vmul.f32 %v2181_v36, %v2170_v58  ;;  %v2849_v41 = vrot.slane %v3476_v62, %v3927_v20 }
 0x3b2   : > { %3134 = vmatpush1.bf16.msra.mxu1 %v3014_v53  ;;  %v2169_v34 = vsel %vm694_vm7, %v2163_v15, %v2165_v17  ;;  %v2219_v53 = vrot.slane %v3459_v33, %v3917_v14  ;;  %v4886_v0 = vmul.f32 %v2811_v38, %v2170_v58  ;;  %v2823_v33 = vrot.slane %v3475_v63, %v3901_v10 }
 0x3b3   : > { %v2167_v30 = vpop.permute.xlu1 %2166  ;;  %v4892_v18 = vmul.f32 %v2815_v50, %v2169_v34  ;;  %v2853_v36 = vrot.slane %v3476_v62, %v3901_v10 }
 0x3b4   : > { %v2171_v29 = vsel %vm694_vm7, %v2167_v30, %v2161_v52  ;;  %5296 = vst [vmem:[#allocation13_spill] sm:$0xff] %v4886_v0  ;;  %v2168_v15 = vsel %vm694_vm7, %v2165_v17, %v2167_v30  ;;  %vm5311_vm7 = vmmov %vm5305_vm1 }
 0x3b5   : > { %v2203_v57 = vpop.permute.xlu0 %2202  ;;  %5298 = vst [vmem:[#allocation16_spill] sm:$0xff] %v4892_v18  ;;  %v2194_v60 = vmul.f32 %v2177_v22, %v2171_v29  ;;  %v4910_v0 = vmul.f32 %v2823_v33, %v2171_v29  ;;  %v3460_v29 = vld [vmem:[%s5177_s1 + $0x20] ss:$8 sm:$0xf] }
 0x3b7   : > { %v2205_v44 = vpop.permute.xlu1 %2204  ;;  %5302 = vst [vmem:[#allocation20_spill] sm:$0xff] %v4910_v0 }
 0x3b8   : > { %v2212_v26 = vsel %vm738_vm8, %v2203_v57, %v2205_v44 }
 0x3b9   : > { %v2237_v39 = vmul.f32 %v2223_v25, %v2212_v26  ;;  %v4890_v21 = vmul.f32 %v2841_v27, %v2212_v26  ;;  %v2207_v1 = vpop.permute.xlu0 %2206  ;;  %v2197_v25 = vmul.f32 %v2189_v37, %v2168_v15  ;;  %v4906_v26 = vmul.f32 %v2819_v48, %v2168_v15 }
 0x3ba   : > { %v2211_v52 = vsel %vm738_vm8, %v2205_v44, %v2207_v1 }
 0x3bb   : > { %5297 = vst [vmem:[#allocation15_spill] sm:$0xff] %v4890_v21  ;;  %v4900_v58 = vmul.f32 %v2845_v8, %v2211_v52  ;;  %v2209_v17 = vpop.permute.xlu1 %2208  ;;  %v3017_v30 = vpack.c.bf16 %v2237_v39, %v2195_v49  ;;  %v2238_v27 = vmul.f32 %v2227_v45, %v2211_v52  ;;  %5300 = vst [vmem:[#allocation18_spill] sm:$0xff] %v4906_v26 }
 0x3bc   : > { %v2210_v50 = vsel %vm738_vm8, %v2207_v1, %v2209_v17  ;;  %v2213_v63 = vsel %vm738_vm8, %v2209_v17, %v2203_v57  ;;  %v2196_v8 = vmul.f32 %v2185_v24, %v2169_v34  ;;  %v2265_v34 = vrot.slane %v3460_v29, %v3906_v12 }
 0x3bd   : > { %5299 = vst [vmem:[#allocation17_spill] sm:$0xff] %v4900_v58  ;;  %v2236_v44 = vmul.f32 %v2219_v53, %v2213_v63  ;;  %v2239_v62 = vmul.f32 %v2231_v23, %v2210_v50  ;;  %v4908_v22 = vmul.f32 %v2849_v41, %v2210_v50  ;;  %3094 = vmatprep.subr.bf16.mxu0 %v3017_v30  ;;  %v2245_v38 = vpop.permute.xlu0 %2244  ;;  %vm5312_vm8 = vcmp.lt.s32.totalorder %v3899_v7, 119  ;;  %v3477_v7 = vld [vmem:[%s5177_s1 + $0x62] ss:$8 sm:$0xf] }
 0x3be   : > { %v4912_v39 = vmul.f32 %v2853_v36, %v2213_v63  ;;  %v3018_v45 = vpack.c.bf16 %v2238_v27, %v2196_v8  ;;  %v2261_v36 = vrot.slane %v3460_v29, %v3917_v14  ;;  %v2273_v17 = vrot.slane %v3460_v29, %v3901_v10 }
 0x3bf   : > { %5301 = vst [vmem:[#allocation19_spill] sm:$0xff] %v4908_v22  ;;  %v3016_v1 = vpack.c.bf16 %v2236_v44, %v2194_v60  ;;  %v2247_v37 = vpop.permute.xlu1 %2246  ;;  %v3019_v48 = vpack.c.bf16 %v2239_v62, %v2197_v25  ;;  %v3461_v60 = vld [vmem:[%s5177_s1 + $0x21] ss:$8 sm:$0xf]  ;;  %v2269_v8 = vrot.slane %v3460_v29, %v3927_v20 }
 0x3c0   : > { %5303 = vst [vmem:[#allocation21_spill] sm:$0xff] %v4912_v39  ;;  %v2307_v15 = vrot.slane %v3461_v60, %v3906_v12  ;;  %v4930_v33 = vsel %vm782_vm9, %v2245_v38, %v2247_v37  ;;  %v2311_v25 = vrot.slane %v3461_v60, %v3927_v20  ;;  %v2303_v44 = vrot.slane %v3461_v60, %v3917_v14 }
 0x3c1   : > { %3095 = vmatpush1.bf16.msra.mxu0 %v3016_v1  ;;  %3135 = vmatprep.subr.bf16.mxu1 %v3019_v48  ;;  %v2249_v23 = vpop.permute.xlu0 %2248  ;;  %v2279_v27 = vmul.f32 %v2265_v34, %v4930_v33  ;;  %v2315_v62 = vrot.slane %v3461_v60, %v3901_v10 }
 0x3c2   : > { %3136 = vmatpush1.bf16.msra.mxu1 %v3018_v45  ;;  %v4953_v34 = vsel %vm782_vm9, %v2247_v37, %v2249_v23 }
 0x3c3   : > { %v2251_v24 = vpop.permute.xlu1 %2250  ;;  %v2280_v37 = vmul.f32 %v2269_v8, %v4953_v34 }
 0x3c4   : > { %v4943_v1 = vsel %vm782_vm9, %v2249_v23, %v2251_v24  ;;  %v4947_v48 = vsel %vm782_vm9, %v2251_v24, %v2245_v38  ;;  %vm5313_vm9 = vmmov %vm5312_vm8 }
 0x3c5   : > { %v2287_v53 = vpop.permute.xlu0 %2286  ;;  %v2278_v41 = vmul.f32 %v2261_v36, %v4947_v48  ;;  %v2281_v38 = vmul.f32 %v2273_v17, %v4943_v1 }
 0x3c7   : > { %v2289_v52 = vpop.permute.xlu1 %2288 }
 0x3c8   : > { %v2296_v30 = vsel %vm826_vm10, %v2287_v53, %v2289_v52 }
 0x3c9   : > { %v2321_v50 = vmul.f32 %v2307_v15, %v2296_v30  ;;  %v2291_v63 = vpop.permute.xlu0 %2290 }
 0x3ca   : > { %v2295_v45 = vsel %vm826_vm10, %v2289_v52, %v2291_v63 }
 0x3cb   : > { %v2293_v15 = vpop.permute.xlu1 %2292  ;;  %v3021_v30 = vpack.c.bf16 %v2321_v50, %v2279_v27  ;;  %v2322_v60 = vmul.f32 %v2311_v25, %v2295_v45 }
 0x3cc   : > { %v2294_v29 = vsel %vm826_vm10, %v2291_v63, %v2293_v15  ;;  %v2297_v57 = vsel %vm826_vm10, %v2293_v15, %v2287_v53  ;;  %v3462_v53 = vld [vmem:[%s5177_s1 + $0x22] ss:$8 sm:$0xf]  ;;  %vm5314_vm10 = vmmov %vm5312_vm8 }
 0x3cd   : > { %v2320_v24 = vmul.f32 %v2303_v44, %v2297_v57  ;;  %v2323_v49 = vmul.f32 %v2315_v62, %v2294_v29  ;;  %3096 = vmatprep.subr.bf16.mxu0 %v3021_v30  ;;  %v2329_v52 = vpop.permute.xlu0 %2328  ;;  %v3022_v25 = vpack.c.bf16 %v2322_v60, %v2280_v37  ;;  %v3463_v57 = vld [vmem:[%s5177_s1 + $0x23] ss:$8 sm:$0xf]  ;;  %v2349_v17 = vrot.slane %v3462_v53, %v3906_v12  ;;  %v3464_v37 = vld [vmem:[%s5177_s1 + $0x24] ss:$8 sm:$0xf] }
 0x3ce   : > { %v2345_v62 = vrot.slane %v3462_v53, %v3917_v14  ;;  %v2357_v8 = vrot.slane %v3462_v53, %v3901_v10  ;;  %v2395_v15 = vrot.slane %v3463_v57, %v3927_v20  ;;  %v2433_v21 = vrot.slane %v3464_v37, %v3906_v12 }
 0x3cf   : > { %v3020_v23 = vpack.c.bf16 %v2320_v24, %v2278_v41  ;;  %v2331_v26 = vpop.permute.xlu1 %2330  ;;  %v3023_v27 = vpack.c.bf16 %v2323_v49, %v2281_v38  ;;  %v2391_v41 = vrot.slane %v3463_v57, %v3906_v12  ;;  %v2387_v38 = vrot.slane %v3463_v57, %v3917_v14 }
 0x3d0   : > { %v2338_v49 = vsel %vm870_vm11, %v2329_v52, %v2331_v26  ;;  %v2399_v24 = vrot.slane %v3463_v57, %v3901_v10 }
 0x3d1   : > { %3097 = vmatpush1.bf16.msra.mxu0 %v3020_v23  ;;  %3137 = vmatprep.subr.bf16.mxu1 %v3023_v27  ;;  %v2333_v50 = vpop.permute.xlu0 %2332  ;;  %v2363_v30 = vmul.f32 %v2349_v17, %v2338_v49  ;;  %v2353_v23 = vrot.slane %v3462_v53, %v3927_v20 }
 0x3d2   : > { %3138 = vmatpush1.bf16.msra.mxu1 %v3022_v25 }
 0x3d3   : > { %v2335_v36 = vpop.permute.xlu1 %2334 }
 0x3d4   : > { %v2336_v27 = vsel %vm870_vm11, %v2333_v50, %v2335_v36  ;;  %v2339_v25 = vsel %vm870_vm11, %v2335_v36, %v2329_v52 }
 0x3d5   : > { %v2371_v63 = vpop.permute.xlu0 %2370  ;;  %v2362_v0 = vmul.f32 %v2345_v62, %v2339_v25  ;;  %v2365_v39 = vmul.f32 %v2357_v8, %v2336_v27  ;;  %v2429_v62 = vrot.slane %v3464_v37, %v3917_v14 }
 0x3d7   : > { %v2373_v44 = vpop.permute.xlu1 %2372 }
 0x3d8   : > { %v2380_v45 = vsel %vm914_vm12, %v2371_v63, %v2373_v44 }
 0x3d9   : > { %v2405_v60 = vmul.f32 %v2391_v41, %v2380_v45  ;;  %v2375_v29 = vpop.permute.xlu0 %2374  ;;  %v2337_v41 = vsel %vm870_vm11, %v2331_v26, %v2333_v50  ;;  %vm5315_vm11 = vmmov %vm5312_vm8 }
 0x3da   : > { %v2379_v17 = vsel %vm914_vm12, %v2373_v44, %v2375_v29  ;;  %v2364_v18 = vmul.f32 %v2353_v23, %v2337_v41 }
 0x3db   : > { %v2377_v49 = vpop.permute.xlu1 %2376  ;;  %v3025_v57 = vpack.c.bf16 %v2405_v60, %v2363_v30  ;;  %v2406_v45 = vmul.f32 %v2395_v15, %v2379_v17  ;;  %v2437_v60 = vrot.slane %v3464_v37, %v3927_v20 }
 0x3dc   : > { %v2378_v22 = vsel %vm914_vm12, %v2375_v29, %v2377_v49  ;;  %v2381_v53 = vsel %vm914_vm12, %v2377_v49, %v2371_v63  ;;  %v3466_v49 = vld [vmem:[%s5177_s1 + $0x27] ss:$8 sm:$0xf]  ;;  %vm5340_vm12 = vcmask 1043456  }
 0x3dd   : > { %v2404_v52 = vmul.f32 %v2387_v38, %v2381_v53  ;;  %v2407_v36 = vmul.f32 %v2399_v24, %v2378_v22  ;;  %3098 = vmatprep.subr.bf16.mxu0 %v3025_v57  ;;  %v2413_v44 = vpop.permute.xlu0 %2412  ;;  %v3026_v30 = vpack.c.bf16 %v2406_v45, %v2364_v18  ;;  %v2441_v22 = vrot.slane %v3464_v37, %v3901_v10  ;;  %v3465_v57 = vld [vmem:[%s5177_s1 + $0x26] ss:$8 sm:$0xf]  ;;  %vm5345_vm14 = vmmov %vm5340_vm12 }
 0x3df   : > { %v3024_v58 = vpack.c.bf16 %v2404_v52, %v2362_v0  ;;  %v2415_v26 = vpop.permute.xlu1 %2414  ;;  %v3027_v50 = vpack.c.bf16 %v2407_v36, %v2365_v39  ;;  %v2521_v52 = vrot.slane %v3466_v49, %v3906_v12 }
 0x3e0   : > { %v2422_v15 = vsel %vm958_vm13, %v2413_v44, %v2415_v26 }
 0x3e1   : > { %v2447_v29 = vmul.f32 %v2433_v21, %v2422_v15  ;;  %3099 = vmatpush1.bf16.msra.mxu0 %v3024_v58  ;;  %3139 = vmatprep.subr.bf16.mxu1 %v3027_v50  ;;  %v2417_v63 = vpop.permute.xlu0 %2416 }
 0x3e2   : > { %3140 = vmatpush1.bf16.msra.mxu1 %v3026_v30  ;;  %v2421_v0 = vsel %vm958_vm13, %v2415_v26, %v2417_v63  ;;  %v2487_v26 = vrot.slane %v3465_v57, %v3901_v10 }
 0x3e3   : > { %v2419_v8 = vpop.permute.xlu1 %2418  ;;  %v3029_v18 = vpack.c.bf16 %v4482_v61, %v2447_v29  ;;  %v2448_v39 = vmul.f32 %v2437_v60, %v2421_v0  ;;  %v2525_v29 = vrot.slane %v3466_v49, %v3927_v20 }
 0x3e4   : > { %v2420_v38 = vsel %vm958_vm13, %v2417_v63, %v2419_v8  ;;  %v2423_v21 = vsel %vm958_vm13, %v2419_v8, %v2413_v44  ;;  %v2483_v44 = vrot.slane %v3465_v57, %v3927_v20  ;;  %v2529_v63 = vrot.slane %v3466_v49, %v3901_v10  ;;  %vm5344_vm13 = vmmov %vm5340_vm12 }
 0x3e5   : > { %v2446_v58 = vmul.f32 %v2429_v62, %v2423_v21  ;;  %v2449_v24 = vmul.f32 %v2441_v22, %v2420_v38  ;;  %3100 = vmatprep.subr.bf16.mxu0 %v3029_v18  ;;  %v2459_v23 = vpop.permute.xlu0 %2458  ;;  %v3030_v17 = vpack.c.bf16 %v4486_v3, %v2448_v39  ;;  %v2479_v3 = vrot.slane %v3465_v57, %v3906_v12 }
 0x3e7   : > { %v3028_v37 = vpack.c.bf16 %v4480_v19, %v2446_v58  ;;  %v2461_v27 = vpop.permute.xlu1 %2460  ;;  %v3031_v25 = vpack.c.bf16 %v4490_v11, %v2449_v24  ;;  %v2517_v19 = vrot.slane %v3466_v49, %v3917_v14  ;;  %v2475_v11 = vrot.slane %v3465_v57, %v3917_v14 }
 0x3e8   : > { %v2468_v30 = vsel %vm5306_vm2, %v2459_v23, %v2461_v27 }
 0x3e9   : > { %3101 = vmatpush1.bf16.msra.mxu0 %v3028_v37  ;;  %3141 = vmatprep.subr.bf16.mxu1 %v3031_v25  ;;  %v2463_v61 = vpop.permute.xlu0 %2462  ;;  %v2492_v38 = vmul.f32 %v2475_v11, %v2468_v30 }
 0x3ea   : > { %3142 = vmatpush1.bf16.msra.mxu1 %v3030_v17  ;;  %v2467_v36 = vsel %vm5304_vm0, %v2461_v27, %v2463_v61  ;;  %vm5349_vm0 = vmmov %vm5340_vm12 }
 0x3eb   : > { %v2465_v41 = vpop.permute.xlu1 %2464  ;;  %v2493_v8 = vmul.f32 %v2479_v3, %v2467_v36  ;;  %v3468_v3 = vld [vmem:[%s5177_s1 + $0x41] ss:$8 sm:$0xf]  ;;  %vm5351_vm2 = vmmov %vm5349_vm0 }
 0x3ec   : > { %v2466_v15 = vsel %vm5307_vm3, %v2463_v61, %v2465_v41  ;;  %v2469_v62 = vsel %vm5308_vm4, %v2465_v41, %v2459_v23  ;;  %vm3185_vm3 = vcmask 64512   ;;  %vm5352_vm4 = vmmov %vm5349_vm0 }
 0x3ed   : > { %v2501_v45 = vpop.permute.xlu0 %2500  ;;  %v2494_v21 = vmul.f32 %v2483_v44, %v2466_v15  ;;  %v2495_v37 = vmul.f32 %v2487_v26, %v2469_v62 }
 0x3ef   : > { %v2503_v53 = vpop.permute.xlu1 %2502 }
 0x3f0   : > { %v2510_v50 = vsel %vm5305_vm1, %v2501_v45, %v2503_v53  ;;  %vm5350_vm1 = vmmov %vm5349_vm0 }
 0x3f1   : > { %v2505_v60 = vpop.permute.xlu0 %2504  ;;  %v2534_v22 = vmul.f32 %v2517_v19, %v2510_v50  ;;  %v2605_v50 = vrot.slane %v3468_v3, %v3906_v12 }
 0x3f2   : > { %v2509_v0 = vsel %vm5309_vm5, %v2503_v53, %v2505_v60 }
 0x3f3   : > { %v2535_v18 = vmul.f32 %v2521_v52, %v2509_v0  ;;  %v2507_v39 = vpop.permute.xlu1 %2506  ;;  %v3032_v61 = vpack.c.bf16 %v2534_v22, %v2492_v38  ;;  %v2601_v52 = vrot.slane %v3468_v3, %v3917_v14  ;;  %v2609_v0 = vrot.slane %v3468_v3, %v3927_v20 }
 0x3f4   : > { %v2508_v58 = vsel %vm5310_vm6, %v2505_v60, %v2507_v39  ;;  %v2511_v24 = vsel %vm5311_vm7, %v2507_v39, %v2501_v45  ;;  %v3467_v45 = vld [vmem:[%s5177_s1 + $0x40] ss:$8 sm:$0xf] }
 0x3f5   : > { %v2536_v27 = vmul.f32 %v2525_v29, %v2508_v58  ;;  %v2537_v25 = vmul.f32 %v2529_v63, %v2511_v24  ;;  %v2543_v17 = vpop.permute.xlu0 %2542  ;;  %v3033_v23 = vpack.c.bf16 %v2535_v18, %v2493_v8  ;;  %v2559_v36 = vrot.slane %v3467_v45, %v3917_v14 }
 0x3f6   : > { %v2563_v44 = vrot.slane %v3467_v45, %v3906_v12  ;;  %v2567_v15 = vrot.slane %v3467_v45, %v3927_v20  ;;  %v2571_v60 = vrot.slane %v3467_v45, %v3901_v10  ;;  %v2613_v8 = vrot.slane %v3468_v3, %v3901_v10 }
 0x3f7   : > { %v3034_v41 = vpack.c.bf16 %v2536_v27, %v2494_v21  ;;  %v2545_v49 = vpop.permute.xlu1 %2544  ;;  %3102 = vmatprep.subr.bf16.mxu0 %v3033_v23  ;;  %v3035_v57 = vpack.c.bf16 %v2537_v25, %v2495_v37  ;;  %v5316_v3 = vpack.c.bf16 %v4664_v4, %v4656_v54  ;;  %v5317_v45 = vpack.c.bf16 %v4680_v5, %v4678_v47 }
 0x3f8   : > { %3103 = vmatpush1.bf16.msra.mxu0 %v3032_v61  ;;  %v2552_v63 = vsel %vm1094_vm15, %v2543_v17, %v2545_v49  ;;  %v5320_v54 = vpack.c.bf16 %v4674_v32, %v4668_v2  ;;  %v2871_v4 = vrot.slane %v3477_v7, %v3917_v14  ;;  %v2875_v47 = vrot.slane %v3477_v7, %v3906_v12 }
 0x3f9   : > { %3143 = vmatprep.subr.bf16.mxu1 %v3035_v57  ;;  %v2547_v19 = vpop.permute.xlu0 %2546  ;;  %v2576_v37 = vmul.f32 %v2559_v36, %v2552_v63  ;;  %v5321_v5 = vpack.c.bf16 %v4767_v35, %v4765_v16  ;;  %v5323_v2 = vpack.c.bf16 %v4832_v56, %v4824_v46  ;;  %v5324_v14 = vpack.c.bf16 %v4763_v42, %v4761_v9  ;;  %v5329_v16 = vld [vmem:[#allocation16_spill] sm:$0xff]  ;;  %v5331_v42 = vld [vmem:[#allocation14_spill] sm:$0xff] }
 0x3fa   : > { %3144 = vmatpush1.bf16.msra.mxu1 %v3034_v41  ;;  %v2551_v30 = vsel %vm1094_vm15, %v2545_v49, %v2547_v19  ;;  %v2888_v12 = vmul.f32 %v2871_v4, %v4930_v33  ;;  %v2889_v32 = vmul.f32 %v2875_v47, %v4953_v34  ;;  %v5332_v35 = vld [vmem:[#allocation10_spill] sm:$0xff]  ;;  %v5353_v4 = vld [vmem:[#allocation7_spill] sm:$0xff] }
 0x3fb   : > { %v2549_v11 = vpop.permute.xlu1 %2548  ;;  %v2577_v21 = vmul.f32 %v2563_v44, %v2551_v30  ;;  %v5333_v56 = vpack.c.bf16 %v5331_v42, %v5332_v35  ;;  %v5338_v44 = vld [vmem:[#allocation13_spill] sm:$0xff]  ;;  %v5342_v30 = vld [vmem:[#allocation18_spill] sm:$0xff] }
 0x3fc   : > { %v2550_v62 = vsel %vm1094_vm15, %v2547_v19, %v2549_v11  ;;  %v2553_v18 = vsel %vm1094_vm15, %v2549_v11, %v2543_v17  ;;  %v3056_v33 = vpack.c.bf16 %v2888_v12, %v2888_v12  ;;  %v3057_v34 = vpack.c.bf16 %v2889_v32, %v2889_v32  ;;  %vm5347_vm15 = vmmov %vm5340_vm12  ;;  %v415_v12 = vld [vmem:[%s3767_s30 + $0x30] sm:$0xff] }
 0x3fd   : > { %v2585_v53 = vpop.permute.xlu0 %2584  ;;  %v2578_v27 = vmul.f32 %v2567_v15, %v2550_v62  ;;  %v2579_v61 = vmul.f32 %v2571_v60, %v2553_v18  ;;  %v5356_v32 = vld [vmem:[#allocation8_spill] sm:$0xff] }
 0x3fe   : > { %v3077_v60 = vsel %vm5345_vm14, %v3056_v33, 0  ;;  %v417_v33 = vld [vmem:[%s3767_s30 + $0x40] sm:$0xff] }
 0x3ff   : > { %v2587_v26 = vpop.permute.xlu1 %2586 }
 0x400   : > { %v2594_v29 = vsel %vm5312_vm8, %v2585_v53, %v2587_v26 }
 0x401   : > { %v2589_v22 = vpop.permute.xlu0 %2588  ;;  %v2618_v39 = vmul.f32 %v2601_v52, %v2594_v29  ;;  %v5319_v52 = vpack.c.bf16 %v4755_v51, %v4747_v43  ;;  %v2883_v43 = vrot.slane %v3477_v7, %v3901_v10  ;;  %v5328_v51 = vld [vmem:[#allocation17_spill] sm:$0xff]  ;;  %v5346_v29 = vld [vmem:[#allocation12_spill] sm:$0xff] }
 0x402   : > { %v2593_v38 = vsel %vm5313_vm9, %v2587_v26, %v2589_v22  ;;  %v5330_v9 = vpack.c.bf16 %v5328_v51, %v5329_v16  ;;  %v3478_v63 = vcombine.low %v5346_v29, %v5346_v29 }
 0x403   : > { %v2619_v58 = vmul.f32 %v2605_v50, %v2593_v38  ;;  %v2591_v24 = vpop.permute.xlu1 %2590  ;;  %v3036_v17 = vpack.c.bf16 %v2618_v39, %v2576_v37  ;;  %v2891_v46 = vmul.f32 %v2883_v43, %v4947_v48  ;;  %v5341_v50 = vld [vmem:[#allocation19_spill] sm:$0xff] }
 0x404   : > { %v2592_v25 = vsel %vm5314_vm10, %v2589_v22, %v2591_v24  ;;  %v2595_v23 = vsel %vm5315_vm11, %v2591_v24, %v2585_v53  ;;  %v5318_v53 = vpack.c.bf16 %v4652_v13, %v4648_v31  ;;  %v5322_v31 = vpack.c.bf16 %v4745_v59, %v4741_v55  ;;  %v414_v43 = vld [vmem:[%s3767_s30 + $0x28] sm:$0xff] }
 0x405   : > { %v2620_v41 = vmul.f32 %v2609_v0, %v2592_v25  ;;  %v2621_v49 = vmul.f32 %v2613_v8, %v2595_v23  ;;  %v3037_v57 = vpack.c.bf16 %v2619_v58, %v2577_v21  ;;  %v2879_v13 = vrot.slane %v3477_v7, %v3927_v20  ;;  %v5326_v20 = vld [vmem:[#allocation11_spill] sm:$0xff] }
 0x406   : > { %v5325_v55 = vpack.c.bf16 %v4844_v6, %v4842_v28  ;;  %v5327_v59 = vpack.c.bf16 %v4822_v40, %v5326_v20  ;;  %v5334_v28 = vld [vmem:[#allocation21_spill] sm:$0xff]  ;;  %v5335_v6 = vld [vmem:[#allocation20_spill] sm:$0xff]  ;;  %v5337_v40 = vld [vmem:[#allocation15_spill] sm:$0xff]  ;;  %v3059_v48 = vpack.c.bf16 %v2891_v46, %v2891_v46  ;;  %v5343_v15 = vpack.c.bf16 %v5341_v50, %v5342_v30 }
 0x407   : > { %v3038_v19 = vpack.c.bf16 %v2620_v41, %v2578_v27  ;;  %3104 = vmatprep.subr.bf16.mxu0 %v3037_v57  ;;  %v3039_v11 = vpack.c.bf16 %v2621_v49, %v2579_v61  ;;  %v2890_v10 = vmul.f32 %v2879_v13, %v4943_v1  ;;  %v5336_v36 = vpack.c.bf16 %v5334_v28, %v5335_v6  ;;  %v416_v20 = vld [vmem:[%s3767_s30 + $0x38] sm:$0xff]  ;;  %v418_v6 = vld [vmem:[%s3767_s30 + $0x48] sm:$0xff] }
 0x408   : > { %3105 = vmatpush1.bf16.msra.mxu0 %v3036_v17  ;;  %v5339_v26 = vpack.c.bf16 %v5337_v40, %v5338_v44  ;;  %v5348_v22 = vmov 0   ;;  %v419_v44 = vld [vmem:[%s3767_s30 + $0x50] sm:$0xff] }
 0x409   : > { %3145 = vmatprep.subr.bf16.mxu1 %v3039_v11  ;;  %3106 = vmatprep.subr.bf16.mxu0 %v5316_v3  ;;  %v3058_v1 = vpack.c.bf16 %v2890_v10, %v2890_v10 }
 0x40a   : > { %3146 = vmatpush1.bf16.msra.mxu1 %v3038_v19 }
 0x40b   : > { %3147 = vmatprep.subr.bf16.mxu1 %v5317_v45  ;;  %v3083_v62 = vsel %vm5347_vm15, %v3058_v1, 0 }
 0x40c   : > { %3107 = vmatpush1.bf16.msra.mxu0 %v5318_v53 }
 0x40d   : > { %3108 = vmatprep.subr.bf16.mxu0 %v5319_v52  ;;  %v3174_v52 = vld [vmem:[%s5184_s8] sm:$0xf] }
 0x40e   : > { %3148 = vmatpush1.bf16.msra.mxu1 %v5320_v54 }
 0x40f   : > { %3149 = vmatprep.subr.bf16.mxu1 %v5321_v5  ;;  %v413_v5 = vld [vmem:[%s3767_s30 + $0x20] sm:$0xff] }
 0x410   : > { %3109 = vmatpush1.bf16.msra.mxu0 %v5322_v31  ;;  %v5354_v31 = vld [vmem:[#allocation6_spill] sm:$0xff] }
 0x411   : > { %3110 = vmatprep.subr.bf16.mxu0 %v5323_v2  ;;  %v5355_v2 = vld [vmem:[#allocation9_spill] sm:$0xff] }
 0x412   : > { %3150 = vmatpush1.bf16.msra.mxu1 %v5324_v14  ;;  %v3065_v0 = vpop.permute.xlu0 %3064 }
 0x413   : > { %3151 = vmatprep.subr.bf16.mxu1 %v5325_v55 }
 0x414   : > { %3111 = vmatpush1.bf16.msra.mxu0 %v5327_v59  ;;  %v1767_v54 = vpop.permute.xlu1 %1766 }
 0x415   : > { %3112 = vmatprep.subr.bf16.mxu0 %v5330_v9  ;;  %v1817_v47 = vadd.f32 %v5353_v4, %v1767_v54  ;;  %v1819_v13 = vadd.f32 %v5354_v31, %v1767_v54  ;;  %v1860_v14 = vadd.f32 %v5355_v2, %v1767_v54  ;;  %v1862_v55 = vadd.f32 %v5356_v32, %v1767_v54  ;;  %v3613_v54 = vld [vmem:[#allocation2 + $0x8] sm:$0xff]  ;;  %v3614_v31 = vld [vmem:[#allocation2 + $0x10] sm:$0xff] }
 0x416   : > { %3152 = vmatpush1.bf16.msra.mxu1 %v5333_v56  ;;  %v3183_v56 = vpop.permute.xlu0 %3182 }
 0x417   : > { %3153 = vmatprep.subr.bf16.mxu1 %v5336_v36  ;;  %v1884_v59 = vadd.f32 %v1817_v47, %v413_v5  ;;  %v1885_v10 = vadd.f32 %v1819_v13, %v414_v43  ;;  %v1886_v46 = vadd.f32 %v1860_v14, %v415_v12  ;;  %v1887_v51 = vadd.f32 %v1862_v55, %v416_v20  ;;  %v3615_v14 = vld [vmem:[#allocation2 + $0x18] sm:$0xff] }
 0x418   : > { %3113 = vmatpush1.bf16.msra.mxu0 %v5339_v26 }
 0x419   : > { %3480 = vmatprep.subr.msk.bf16.mxu0 %vm5340_vm12, %v3057_v34  ;;  %v1888_v16 = vmul.f32 0.5, %v1884_v59  ;;  %v1889_v9 = vmul.f32 0.5, %v1885_v10  ;;  %v1890_v42 = vmul.f32 0.5, %v1886_v46  ;;  %v1891_v35 = vmul.f32 0.5, %v1887_v51 }
 0x41a   : > { %3154 = vmatpush1.bf16.msra.mxu1 %v5343_v15  ;;  %v420_v15 = vld [vmem:[%s3767_s30 + $0x58] sm:$0xff] }
 0x41b   : > { %3482 = vmatprep.subr.msk.bf16.mxu1 %vm5344_vm13, %v3059_v48 }
 0x41c   : > { %3115 = vmatpush1.bf16.msra.mxu0 %v3077_v60 }
 0x41e   : > { %3156 = vmatpush1.bf16.msra.mxu1 %v3083_v62 }
 0x41f   : > { %3121 = vmatmul.mubr.bf16.vlgmr.msra.gmra.mrb[8].mxu0 %v3478_v63 }
 0x420   : > { %3233 = vmatprep.mubr.bf16.mxu0 %v5348_v22 }
 0x421   : > { %3162 = vmatmul.mubr.bf16.vlgmr.msra.gmra.mrb[8].mxu1 %v3478_v63 }
 0x422   : > { %3274 = vmatprep.mubr.bf16.mxu1 %v5348_v22 }
 0x4f2   : > { %v3122_v8 = vpop.f32.mrb[8].mxu0 }
 0x4f3   : > { %v3123_v18 = vadd.f32 %v3122_v8, %v3065_v0  ;;  %v3124_v39 = vpop.f32.mrb[9].mxu0 }
 0x4f4   : > { %v3125_v38 = vadd.f32 %v3124_v39, %v3065_v0  ;;  %v3163_v21 = vpop.f32.mrb[8].mxu1  ;;  %v3126_v58 = vpop.f32.mrb[10].mxu0 }
 0x4f5   : > { %3584 = vtanh.f32 %v3123_v18  ;;  %v3164_v24 = vadd.f32 %v3163_v21, %v3065_v0  ;;  %v3165_v37 = vpop.f32.mrb[9].mxu1  ;;  %v3127_v27 = vpop.f32.mrb[11].mxu0 }
 0x4f6   : > { %3586 = vtanh.f32 %v3125_v38  ;;  %v3166_v25 = vadd.f32 %v3165_v37, %v3065_v0  ;;  %v3167_v23 = vpop.f32.mrb[10].mxu1 }
 0x4f7   : > { %3588 = vtanh.f32 %v3164_v24  ;;  %v3168_v61 = vpop.f32.mrb[11].mxu1 }
 0x4f8   : > { %3590 = vtanh.f32 %v3166_v25 }
 0x4f9   : > { %3592 = vtanh.f32 %v1888_v16 }
 0x4fa   : > { %3594 = vtanh.f32 %v1889_v9 }
 0x4fb   : > { %3596 = vtanh.f32 %v1890_v42 }
 0x4fc   : > { %3598 = vtanh.f32 %v1891_v35 }
 0x4ff   : > { %v3585_v41 = vpop.eup %3584 }
 0x500   : > { %v3587_v49 = vpop.eup %3586  ;;  %v3175_v57 = vpack.c.bf16 %v3585_v41, %v3585_v41 }
 0x501   : > { %v3589_v17 = vpop.eup %3588  ;;  %v3176_v19 = vpack.c.bf16 %v3587_v49, %v3587_v49 }
 0x502   : > { %v3591_v11 = vpop.eup %3590  ;;  %v3177_v3 = vpack.c.bf16 %v3589_v17, %v3589_v17  ;;  %v3190_v45 = vsel %vm5349_vm0, %v3175_v57, 0 }
 0x503   : > { %v3178_v7 = vpack.c.bf16 %v3591_v11, %v3591_v11  ;;  %3484 = vmatprep.subr.msk.bf16.mxu0 %vm5350_vm1, %v3176_v19  ;;  %v3593_v48 = vpop.eup %3592 }
 0x504   : > { %3202 = vmatpush1.bf16.msra.mxu0 %v3190_v45  ;;  %v3196_v53 = vsel %vm5351_vm2, %v3177_v3, 0  ;;  %v3595_v63 = vpop.eup %3594  ;;  %v1896_v21 = vmul.f32 0.5, %v3593_v48  ;;  %v3612_v3 = vld [vmem:[#allocation2] sm:$0xff] }
 0x505   : > { %3486 = vmatprep.subr.msk.bf16.mxu1 %vm5352_vm4, %v3178_v7  ;;  %v3597_v8 = vpop.eup %3596  ;;  %v1897_v24 = vmul.f32 0.5, %v3595_v63 }
 0x506   : > { %3243 = vmatpush1.bf16.msra.mxu1 %v3196_v53  ;;  %v3599_v38 = vpop.eup %3598  ;;  %v1898_v37 = vmul.f32 0.5, %v3597_v8  ;;  %v1900_v25 = vadd.f32 0.5, %v1896_v21 }
 0x507   : > { %3485 = vmatmul.mubr.msk.bf16.vlgmr.msra.gmra.mrb[12].mxu0 %vm3185_vm3, %v3174_v52  ;;  %v1899_v27 = vmul.f32 0.5, %v3599_v38  ;;  %v1901_v23 = vadd.f32 0.5, %v1897_v24 }
 0x508   : > { %v1902_v61 = vadd.f32 0.5, %v1898_v37  ;;  %v3291_v49 = vsub.f32 1.0, %v1900_v25  ;;  %v3299_v45 = vmul.f32 %v3612_v3, %v1900_v25 }
 0x509   : > { %3487 = vmatmul.mubr.msk.bf16.vlgmr.msra.gmra.mrb[12].mxu1 %vm3185_vm3, %v3174_v52  ;;  %v1903_v41 = vadd.f32 0.5, %v1899_v27  ;;  %v3292_v17 = vsub.f32 1.0, %v1901_v23  ;;  %v3300_v4 = vmul.f32 %v3613_v54, %v1901_v23 }
 0x50a   : > { %v3293_v11 = vsub.f32 1.0, %v1902_v61  ;;  %v3301_v13 = vmul.f32 %v3614_v31, %v1902_v61 }
 0x50b   : > { %v3294_v52 = vsub.f32 1.0, %v1903_v41  ;;  %v3302_v12 = vmul.f32 %v3615_v14, %v1903_v41 }
 0x5da   : > { %v3235_v34 = vpop.f32.mrb[12].mxu0 }
 0x5db   : > { %v3236_v28 = vadd.f32 %v3235_v34, %v3183_v56  ;;  %v3237_v36 = vpop.f32.mrb[13].mxu0 }
 0x5dc   : > { %v3238_v40 = vadd.f32 %v3237_v36, %v3183_v56  ;;  %v3276_v26 = vpop.f32.mrb[12].mxu1  ;;  %v3239_v1 = vpop.f32.mrb[14].mxu0 }
 0x5dd   : > { %v3283_v50 = vadd.f32 %v3236_v28, %v417_v33  ;;  %v3277_v30 = vadd.f32 %v3276_v26, %v3183_v56  ;;  %v3278_v60 = vpop.f32.mrb[13].mxu1  ;;  %v3240_v29 = vpop.f32.mrb[15].mxu0 }
 0x5de   : > { %v3284_v62 = vadd.f32 %v3238_v40, %v418_v6  ;;  %v3279_v22 = vadd.f32 %v3278_v60, %v3183_v56  ;;  %v3280_v0 = vpop.f32.mrb[14].mxu1 }
 0x5df   : > { %3600 = vtanh.f32 %v3283_v50  ;;  %v3285_v18 = vadd.f32 %v3277_v30, %v419_v44  ;;  %v3281_v39 = vpop.f32.mrb[15].mxu1 }
 0x5e0   : > { %3602 = vtanh.f32 %v3284_v62  ;;  %v3286_v58 = vadd.f32 %v3279_v22, %v420_v15 }
 0x5e1   : > { %3604 = vtanh.f32 %v3285_v18 }
 0x5e2   : > { %3606 = vtanh.f32 %v3286_v58 }
 0x5e9   : > { %v3601_v57 = vpop.eup %3600 }
 0x5ea   : > { %v3603_v19 = vpop.eup %3602  ;;  %v3295_v7 = vmul.f32 %v3601_v57, %v3291_v49 }
 0x5eb   : > { %v3605_v53 = vpop.eup %3604  ;;  %v3296_v47 = vmul.f32 %v3603_v19, %v3292_v17 }
 0x5ec   : > { %v3607_v5 = vpop.eup %3606  ;;  %v3303_v43 = vadd.f32 %v3299_v45, %v3295_v7  ;;  %v3297_v2 = vmul.f32 %v3605_v53, %v3293_v11 }
 0x5ed   : > { %v3304_v32 = vadd.f32 %v3300_v4, %v3296_v47  ;;  %v3298_v55 = vmul.f32 %v3607_v5, %v3294_v52 }
 0x5ee   : > { %3307 = vst [vmem:[#allocation2] sm:$0xff] %v3303_v43  ;;  %3311 = vst [vmem:[%s3772_s18] sm:$0xff] %v3303_v43  ;;  %v3305_v20 = vadd.f32 %v3301_v13, %v3297_v2 }
 0x5ef   : > { %3308 = vst [vmem:[#allocation2 + $0x8] sm:$0xff] %v3304_v32  ;;  %3312 = vst [vmem:[%s3772_s18 + $0x8] sm:$0xff] %v3304_v32  ;;  %v3306_v59 = vadd.f32 %v3302_v12, %v3298_v55 }
 0x5f0   : > { %3309 = vst [vmem:[#allocation2 + $0x10] sm:$0xff] %v3305_v20  ;;  %3313 = vst [vmem:[%s3772_s18 + $0x10] sm:$0xff] %v3305_v20 }
 0x5f1   : > { %3310 = vst [vmem:[#allocation2 + $0x18] sm:$0xff] %v3306_v59  ;;  %3314 = vst [vmem:[%s3772_s18 + $0x18] sm:$0xff] %v3306_v59 }
 0x5f2 PF: > { %s20_s17 = sadd.s32 1, %s3654_s17   ;;  %s5357_s30 = sld [smem:[#allocation4_spill]] }
 0x5f3   : > { %p17_p8 = scmp.ge.s32.totalorder %s20_s17, 8   ;;  %s5358_s26 = sld [smem:[#allocation5_spill]] }
 0x5f4   : > { %s5359_s13 = smov %s3646_s15  ;;  %s5360_s14 = smov %s3650_s16 }
 0x5f5   :  { %19 = sbr.rel (!%p17_p8) target bundleno = 3 (0x3), region = 119 }
 0x5f8   : > { %s5361_s15 = smov %s5357_s30 }
 0x5f9   : > { %s5362_s16 = smov %s5358_s26 }

</bundles_post_ra>
